<compile_context>
chip_gen: v7x
topology: tpu7x:2x2x1
jax: 0.10.0
libtpu: 0.0.40
codegen_flags: <defaults>
</compile_context>

<pallas_src>
import functools
import math

import jax
import jax.numpy as jnp
from jax.experimental import pallas as pl
from jax.experimental.pallas import tpu as pltpu

# ----------------------------- small synthetic config -----------------------
B = 2               # batch
S_ENC = 16          # encoder sequence length
S_DEC = 8           # decoder sequence length
H_ENC = 128         # additional-encoder hidden size (lane-dense)
D_MODEL = 128       # BART d_model (lane-dense)
N_HEADS = 4
HEAD_DIM = D_MODEL // N_HEADS
FFN = 256
ENC_LAYERS = 2      # additional-encoder layers
BART_ENC_LAYERS = 1
BART_DEC_LAYERS = 1
VOCAB_ENC = 128
VOCAB_BART = 256
MAX_POS = 64
NEG_INF = -1e9      # additive mask value (softmax kept in f32)

_ENC_LAYER_KEYS = ("wqkv", "bqkv", "wo", "bo", "ln1g", "ln1b",
                   "w1", "b1", "w2", "b2", "ln2g", "ln2b")
_DEC_LAYER_KEYS = ("swqkv", "sbqkv", "swo", "sbo", "ln1g", "ln1b",
                   "cwq", "cbq", "cwkv", "cbkv", "cwo", "cbo", "ln2g", "ln2b",
                   "w1", "b1", "w2", "b2", "ln3g", "ln3b")


# ----------------------------- in-kernel math helpers ------------------------
def _gelu(x):
    c = math.sqrt(2.0 / math.pi)
    return 0.5 * x * (1.0 + jnp.tanh(c * (x + 0.044715 * x * x * x)))


def _act_fn(x, act):
    if act == "relu":
        return jnp.maximum(x, 0.0)
    if act == "gelu":
        return _gelu(x)
    return x


def _ln(x, g, b, eps):
    """Row layernorm in f32. g/b are [1, H]."""
    mu = jnp.mean(x, axis=-1, keepdims=True)
    var = jnp.mean((x - mu) ** 2, axis=-1, keepdims=True)
    return (x - mu) * jax.lax.rsqrt(var + eps) * g + b


def _dot_nt(a, b):
    """a: [M, K], b: [N, K] -> a @ b.T with f32 accumulation on the MXU."""
    return jax.lax.dot_general(a, b, (((1,), (1,)), ((), ())),
                               preferred_element_type=jnp.float32)


def _dot(a_f32_or_bf16, w_bf16):
    return jnp.dot(a_f32_or_bf16.astype(jnp.bfloat16), w_bf16,
                   preferred_element_type=jnp.float32)


def _sdpa(q, k, v, add_mask, n_heads):
    """Scaled-dot-product attention over lane-concatenated heads.

    q: [Mq, D] f32 (scale already folded into the Q projection),
    k/v: [Mk, D] f32, add_mask broadcastable to [Mq, Mk] (additive, f32).
    Heads are static 32-lane slices; softmax stays in f32; MXU ops are bf16.
    Returns the re-assembled context [Mq, D] f32.
    """
    bf = jnp.bfloat16
    d = q.shape[-1]
    hd = d // n_heads
    qb, kb, vb = q.astype(bf), k.astype(bf), v.astype(bf)
    ctx = []
    for h in range(n_heads):
        sl = slice(h * hd, (h + 1) * hd)
        s = _dot_nt(qb[:, sl], kb[:, sl]) + add_mask          # [Mq, Mk] f32
        s = s - jnp.max(s, axis=-1, keepdims=True)
        p = jnp.exp(s)
        p = p * pl.reciprocal(jnp.sum(p, axis=-1, keepdims=True), approx=True)
        ctx.append(jnp.dot(p.astype(bf), vb[:, sl],
                           preferred_element_type=jnp.float32))
    return jnp.concatenate(ctx, axis=-1)                       # [Mq, D] f32


def _ffn(y, w1, b1, w2, b2, act):
    h1 = _act_fn(_dot(y, w1) + b1, act)
    return _dot(h1, w2) + b2


def _encoder_layer(x, add_mask, wqkv, bqkv, wo, bo, ln1g, ln1b,
                   w1, b1, w2, b2, ln2g, ln2b, *, n_heads, eps, act):
    """Post-LN transformer encoder layer over a packed [B*S, D] slab."""
    d = x.shape[-1]
    qkv = _dot(x, wqkv) + bqkv                                 # [M, 3D]
    ctx = _sdpa(qkv[:, :d], qkv[:, d:2 * d], qkv[:, 2 * d:], add_mask, n_heads)
    attn = _dot(ctx, wo) + bo
    y = _ln(x + attn, ln1g, ln1b, eps)
    f = _ffn(y, w1, b1, w2, b2, act)
    return _ln(y + f, ln2g, ln2b, eps)


def _decoder_layer(x, henc_bf, self_mask, cross_mask, p, *, n_heads, eps, act):
    """Post-LN BART decoder layer (self-attn + cross-attn + FFN)."""
    d = x.shape[-1]
    qkv = _dot(x, p["swqkv"]) + p["sbqkv"]
    ctx = _sdpa(qkv[:, :d], qkv[:, d:2 * d], qkv[:, 2 * d:], self_mask, n_heads)
    a = _dot(ctx, p["swo"]) + p["sbo"]
    y = _ln(x + a, p["ln1g"], p["ln1b"], eps)
    q = _dot(y, p["cwq"]) + p["cbq"]                           # [Md, D]
    kv = jnp.dot(henc_bf, p["cwkv"],
                 preferred_element_type=jnp.float32) + p["cbkv"]  # [Me, 2D]
    ctx = _sdpa(q, kv[:, :d], kv[:, d:], cross_mask, n_heads)
    c = _dot(ctx, p["cwo"]) + p["cbo"]
    z = _ln(y + c, p["ln2g"], p["ln2b"], eps)
    f = _ffn(z, p["w1"], p["b1"], p["w2"], p["b2"], act)
    return _ln(z + f, p["ln3g"], p["ln3b"], eps)


# ----------------------------- fused Pallas kernels --------------------------
def _encoder_stack_kernel(x_ref, mask_ref, embg_ref, embb_ref, *rest,
                          n_add_layers, n_bart_layers, n_heads,
                          eps_enc, eps_bart, act):
    """BERT emb-LN + add-encoder layers + bridge + BART encoder layers."""
    n = len(_ENC_LAYER_KEYS)
    add_refs = rest[:n]
    wd_ref, bd_ref, pos_ref, bgd_ref, bbd_ref = rest[n:n + 5]
    bart_refs = rest[n + 5:n + 5 + n]
    o_ref = rest[n + 5 + n]

    add_mask = mask_ref[...]                                   # [Me, Me] f32
    x = _ln(x_ref[...], embg_ref[...], embb_ref[...], eps_enc)
    for l in range(n_add_layers):
        lp = [r[l] for r in add_refs]
        x = _encoder_layer(x, add_mask, *lp, n_heads=n_heads, eps=eps_enc, act=act)

    # dense bridge + ReLU (+ dropout p=0) + BART learned positions + emb-LN
    y = jnp.maximum(_dot(x, wd_ref[...]) + bd_ref[...], 0.0)
    x = _ln(y + pos_ref[...], bgd_ref[...], bbd_ref[...], eps_bart)

    for l in range(n_bart_layers):
        lp = [r[l] for r in bart_refs]
        x = _encoder_layer(x, add_mask, *lp, n_heads=n_heads, eps=eps_bart, act=act)

    o_ref[...] = x.astype(o_ref.dtype)


def _decoder_stack_kernel(d_ref, h_ref, smask_ref, cmask_ref,
                          embg_ref, embb_ref, *rest,
                          n_layers, n_heads, eps, act):
    """BART dec emb-LN + decoder layers (causal self-attn + cross-attn + FFN)."""
    n = len(_DEC_LAYER_KEYS)
    dec_refs = rest[:n]
    o_ref = rest[n]

    henc_bf = h_ref[...]                                       # [Me, D] bf16
    smask = smask_ref[...]                                     # [Md, Md] f32
    cmask = cmask_ref[...]                                     # [Md, Me] f32
    x = _ln(d_ref[...], embg_ref[...], embb_ref[...], eps)
    for l in range(n_layers):
        lp = {k: r[l] for k, r in zip(_DEC_LAYER_KEYS, dec_refs)}
        x = _decoder_layer(x, henc_bf, smask, cmask, lp,
                           n_heads=n_heads, eps=eps, act=act)
    o_ref[...] = x.astype(o_ref.dtype)


def _lmhead_xent_kernel(d_ref, emb_ref, bias_ref, labels_ref, logits_ref, loss_ref):
    """Tied LM head (d @ emb.T + bias) fused with token cross-entropy."""
    logits = _dot_nt(d_ref[...].astype(jnp.bfloat16), emb_ref[...]) + bias_ref[...]
    logits_ref[...] = logits.astype(logits_ref.dtype)
    labels = labels_ref[...]                                   # [M, 1] int32
    m = jnp.max(logits, axis=-1, keepdims=True)
    lse = jnp.log(jnp.sum(jnp.exp(logits - m), axis=-1, keepdims=True)) + m
    onehot = jax.lax.broadcasted_iota(jnp.int32, logits.shape, 1) == labels
    picked = jnp.sum(jnp.where(onehot, logits, 0.0), axis=-1, keepdims=True)
    per_tok = lse - picked                                     # [M, 1]
    valid = (labels != -100).astype(jnp.float32)               # torch CE ignore_index
    loss = jnp.sum(per_tok * valid) / jnp.maximum(jnp.sum(valid), 1.0)
    loss_ref[...] = loss.reshape(1, 1)


# ----------------------------- pallas_call wrappers ---------------------------
def _full_spec(a):
    """Whole-array block (grid=(1,)) — constant index map."""
    n = a.ndim
    return pl.BlockSpec(a.shape, lambda *_: (0,) * n)


def encoder_stack(x_slab, enc_add_mask, pk):
    m = x_slab.shape[0]
    embg, embb = pk["enc_emb_ln"]
    args = ([x_slab, enc_add_mask, embg, embb]
            + list(pk["add_stack"]) + list(pk["bridge"]) + list(pk["bart_enc_stack"]))
    kernel = functools.partial(
        _encoder_stack_kernel,
        n_add_layers=pk["add_stack"][0].shape[0],
        n_bart_layers=pk["bart_enc_stack"][0].shape[0],
        n_heads=N_HEADS, eps_enc=1e-12, eps_bart=1e-5, act="gelu")
    return pl.pallas_call(
        kernel,
        out_shape=jax.ShapeDtypeStruct((m, D_MODEL), jnp.bfloat16),
        grid=(1,),
        in_specs=[_full_spec(a) for a in args],
        out_specs=pl.BlockSpec((m, D_MODEL), lambda i: (0, 0)),
        compiler_params=pltpu.CompilerParams(dimension_semantics=("arbitrary",)),
    )(*args)


def decoder_stack(d_slab, h2_bf16, self_add_mask, cross_add_mask, pk):
    md = d_slab.shape[0]
    embg, embb = pk["dec_emb_ln"]
    args = ([d_slab, h2_bf16, self_add_mask, cross_add_mask, embg, embb]
            + list(pk["dec_stack"]))
    kernel = functools.partial(
        _decoder_stack_kernel,
        n_layers=pk["dec_stack"][0].shape[0],
        n_heads=N_HEADS, eps=1e-5, act="gelu")
    return pl.pallas_call(
        kernel,
        out_shape=jax.ShapeDtypeStruct((md, D_MODEL), jnp.bfloat16),
        grid=(1,),
        in_specs=[_full_spec(a) for a in args],
        out_specs=pl.BlockSpec((md, D_MODEL), lambda i: (0, 0)),
        compiler_params=pltpu.CompilerParams(dimension_semantics=("arbitrary",)),
    )(*args)


def fused_lmhead_xent(d2_bf16, emb_bf16, bias, labels_flat):
    m, _ = d2_bf16.shape
    v = emb_bf16.shape[0]
    labels2 = labels_flat.reshape(m, 1).astype(jnp.int32)
    args = [d2_bf16, emb_bf16, bias, labels2]
    logits, loss = pl.pallas_call(
        _lmhead_xent_kernel,
        out_shape=(jax.ShapeDtypeStruct((m, v), jnp.float32),
                   jax.ShapeDtypeStruct((1, 1), jnp.float32)),
        grid=(1,),
        in_specs=[_full_spec(a) for a in args],
        out_specs=(pl.BlockSpec((m, v), lambda i: (0, 0)),
                   pl.BlockSpec((1, 1), lambda i: (0, 0))),
        compiler_params=pltpu.CompilerParams(dimension_semantics=("arbitrary",)),
    )(*args)
    return logits, loss[0, 0]


# ----------------------------- forward pass ----------------------------------
def codeformer_forward(pk, enc_ids, enc_mask, token_type_ids,
                       labels, dec_ids, dec_mask):
    f32 = jnp.float32
    bz, s = enc_ids.shape
    bd, sd = dec_ids.shape
    me, md = bz * s, bd * sd

    # ---- embedding gathers (plain-JAX glue, fused by XLA) ----
    x = (pk["word_emb"][enc_ids]
         + pk["pos_emb"][jnp.arange(s)][None]
         + pk["type_emb"][token_type_ids]).reshape(me, H_ENC).astype(f32)
    d = (pk["shared_emb"][dec_ids]
         + pk["dec_pos_emb"][jnp.arange(sd) + 2][None]   # BART positions: offset 2
         ).reshape(md, D_MODEL).astype(f32)

    # ---- packed-batch additive attention masks (block-diagonal over batch) ----
    ekeep = enc_mask.reshape(me).astype(f32)
    dkeep = dec_mask.reshape(md).astype(f32)
    ebid = jnp.repeat(jnp.arange(bz), s)
    dbid = jnp.repeat(jnp.arange(bd), sd)
    dpos = jnp.tile(jnp.arange(sd), bd)
    enc_add = jnp.where((ebid[:, None] == ebid[None, :]) & (ekeep[None, :] > 0.5),
                        0.0, NEG_INF).astype(f32)                         # [Me, Me]
    dec_self_add = jnp.where((dbid[:, None] == dbid[None, :])
                             & (dpos[None, :] <= dpos[:, None])
                             & (dkeep[None, :] > 0.5), 0.0, NEG_INF).astype(f32)
    dec_cross_add = jnp.where((dbid[:, None] == ebid[None, :]) & (ekeep[None, :] > 0.5),
                              0.0, NEG_INF).astype(f32)                   # [Md, Me]

    # ---- 3 fused kernel launches ----
    h2 = encoder_stack(x, enc_add, pk)                        # [Me, D] bf16
    d2 = decoder_stack(d, h2, dec_self_add, dec_cross_add, pk)  # [Md, D] bf16
    logits, loss = fused_lmhead_xent(d2, pk["lm_emb"], pk["final_logits_bias"],
                                     labels.reshape(-1))
    return {"loss": loss, "logits": logits.reshape(bd, sd, VOCAB_BART)}


# ----------------------------- parameter packing ------------------------------
def _pack_enc_layer(p, scale):
    """Fused-QKV packing; 1/sqrt(head_dim) folded into the Q weights/bias."""
    bf, f32 = jnp.bfloat16, jnp.float32
    a = p["attn"]
    wqkv = jnp.concatenate([a["wq"] * scale, a["wk"], a["wv"]], axis=1).astype(bf)
    bqkv = jnp.concatenate([a["bq"] * scale, a["bk"], a["bv"]]).reshape(1, -1).astype(f32)
    return dict(
        wqkv=wqkv, bqkv=bqkv,
        wo=a["wo"].astype(bf), bo=a["bo"].reshape(1, -1).astype(f32),
        ln1g=p["ln1_g"].reshape(1, -1).astype(f32),
        ln1b=p["ln1_b"].reshape(1, -1).astype(f32),
        w1=p["w1"].astype(bf), b1=p["b1"].reshape(1, -1).astype(f32),
        w2=p["w2"].astype(bf), b2=p["b2"].reshape(1, -1).astype(f32),
        ln2g=p["ln2_g"].reshape(1, -1).astype(f32),
        ln2b=p["ln2_b"].reshape(1, -1).astype(f32))


def _pack_dec_layer(p, scale):
    bf, f32 = jnp.bfloat16, jnp.float32
    sa, ca = p["self_attn"], p["cross_attn"]
    swqkv = jnp.concatenate([sa["wq"] * scale, sa["wk"], sa["wv"]], axis=1).astype(bf)
    sbqkv = jnp.concatenate([sa["bq"] * scale, sa["bk"], sa["bv"]]).reshape(1, -1).astype(f32)
    cwkv = jnp.concatenate([ca["wk"], ca["wv"]], axis=1).astype(bf)
    cbkv = jnp.concatenate([ca["bk"], ca["bv"]]).reshape(1, -1).astype(f32)
    return dict(
        swqkv=swqkv, sbqkv=sbqkv,
        swo=sa["wo"].astype(bf), sbo=sa["bo"].reshape(1, -1).astype(f32),
        ln1g=p["ln1_g"].reshape(1, -1).astype(f32),
        ln1b=p["ln1_b"].reshape(1, -1).astype(f32),
        cwq=(ca["wq"] * scale).astype(bf),
        cbq=(ca["bq"] * scale).reshape(1, -1).astype(f32),
        cwkv=cwkv, cbkv=cbkv,
        cwo=ca["wo"].astype(bf), cbo=ca["bo"].reshape(1, -1).astype(f32),
        ln2g=p["ln2_g"].reshape(1, -1).astype(f32),
        ln2b=p["ln2_b"].reshape(1, -1).astype(f32),
        w1=p["w1"].astype(bf), b1=p["b1"].reshape(1, -1).astype(f32),
        w2=p["w2"].astype(bf), b2=p["b2"].reshape(1, -1).astype(f32),
        ln3g=p["ln3_g"].reshape(1, -1).astype(f32),
        ln3b=p["ln3_b"].reshape(1, -1).astype(f32))


def _stack_layers(packed_list, keys):
    return [jnp.stack([d[k] for d in packed_list], axis=0) for k in keys]


def pack_params(params):
    """Wrapper-side packing: fused QKV, per-layer stacking, bf16 weights."""
    bf, f32 = jnp.bfloat16, jnp.float32
    scale = 1.0 / math.sqrt(HEAD_DIM)
    p = params["add_encoder"]
    bp = params["bart"]
    dn = params["dense"]

    add_stack = _stack_layers([_pack_enc_layer(lp, scale) for lp in p["layers"]],
                              _ENC_LAYER_KEYS)
    bart_enc_stack = _stack_layers([_pack_enc_layer(lp, scale) for lp in bp["enc_layers"]],
                                   _ENC_LAYER_KEYS)
    dec_stack = _stack_layers([_pack_dec_layer(lp, scale) for lp in bp["dec_layers"]],
                              _DEC_LAYER_KEYS)
    # BART learned positions (offset 2), pre-tiled across the packed batch slab.
    pos_enc = jnp.tile(bp["enc_pos_emb"][2:2 + S_ENC], (B, 1)).astype(f32)
    bridge = [dn["w"].astype(bf), dn["b"].reshape(1, -1).astype(f32), pos_enc,
              bp["enc_emb_ln_g"].reshape(1, -1).astype(f32),
              bp["enc_emb_ln_b"].reshape(1, -1).astype(f32)]

    return dict(
        word_emb=p["word_emb"], pos_emb=p["pos_emb"], type_emb=p["type_emb"],
        enc_emb_ln=(p["emb_ln_g"].reshape(1, -1).astype(f32),
                    p["emb_ln_b"].reshape(1, -1).astype(f32)),
        add_stack=add_stack, bridge=bridge, bart_enc_stack=bart_enc_stack,
        shared_emb=bp["shared_emb"], dec_pos_emb=bp["dec_pos_emb"],
        dec_emb_ln=(bp["dec_emb_ln_g"].reshape(1, -1).astype(f32),
                    bp["dec_emb_ln_b"].reshape(1, -1).astype(f32)),
        dec_stack=dec_stack,
        lm_emb=bp["shared_emb"].astype(bf),
        final_logits_bias=bp["final_logits_bias"].reshape(1, -1).astype(f32))


# ----------------------------- parameter init --------------------------------
class KeyGen:
    def __init__(self, key):
        self.key = key

    def __call__(self):
        self.key, sub = jax.random.split(self.key)
        return sub


def _normal(kg, shape, scale=0.02):
    return jax.random.normal(kg(), shape, dtype=jnp.float32) * scale


def init_attn(kg, d):
    return dict(
        wq=_normal(kg, (d, d)), bq=jnp.zeros((d,), jnp.float32),
        wk=_normal(kg, (d, d)), bk=jnp.zeros((d,), jnp.float32),
        wv=_normal(kg, (d, d)), bv=jnp.zeros((d,), jnp.float32),
        wo=_normal(kg, (d, d)), bo=jnp.zeros((d,), jnp.float32),
    )


def init_enc_layer(kg, d, f):
    return dict(
        attn=init_attn(kg, d),
        ln1_g=jnp.ones((d,), jnp.float32), ln1_b=jnp.zeros((d,), jnp.float32),
        w1=_normal(kg, (d, f)), b1=jnp.zeros((f,), jnp.float32),
        w2=_normal(kg, (f, d)), b2=jnp.zeros((d,), jnp.float32),
        ln2_g=jnp.ones((d,), jnp.float32), ln2_b=jnp.zeros((d,), jnp.float32),
    )


def init_dec_layer(kg, d, f):
    return dict(
        self_attn=init_attn(kg, d),
        ln1_g=jnp.ones((d,), jnp.float32), ln1_b=jnp.zeros((d,), jnp.float32),
        cross_attn=init_attn(kg, d),
        ln2_g=jnp.ones((d,), jnp.float32), ln2_b=jnp.zeros((d,), jnp.float32),
        w1=_normal(kg, (d, f)), b1=jnp.zeros((f,), jnp.float32),
        w2=_normal(kg, (f, d)), b2=jnp.zeros((d,), jnp.float32),
        ln3_g=jnp.ones((d,), jnp.float32), ln3_b=jnp.zeros((d,), jnp.float32),
    )


def init_params(seed=0):
    kg = KeyGen(jax.random.PRNGKey(seed))
    add_encoder = dict(
        word_emb=_normal(kg, (VOCAB_ENC, H_ENC)),
        pos_emb=_normal(kg, (MAX_POS, H_ENC)),
        type_emb=_normal(kg, (2, H_ENC)),
        emb_ln_g=jnp.ones((H_ENC,), jnp.float32),
        emb_ln_b=jnp.zeros((H_ENC,), jnp.float32),
        layers=[init_enc_layer(kg, H_ENC, FFN) for _ in range(ENC_LAYERS)],
    )
    dense = dict(w=_normal(kg, (H_ENC, D_MODEL)),
                 b=jnp.zeros((D_MODEL,), jnp.float32))
    bart = dict(
        shared_emb=_normal(kg, (VOCAB_BART, D_MODEL)),
        final_logits_bias=jnp.zeros((VOCAB_BART,), jnp.float32),
        enc_pos_emb=_normal(kg, (MAX_POS, D_MODEL)),
        enc_emb_ln_g=jnp.ones((D_MODEL,), jnp.float32),
        enc_emb_ln_b=jnp.zeros((D_MODEL,), jnp.float32),
        enc_layers=[init_enc_layer(kg, D_MODEL, FFN) for _ in range(BART_ENC_LAYERS)],
        dec_pos_emb=_normal(kg, (MAX_POS, D_MODEL)),
        dec_emb_ln_g=jnp.ones((D_MODEL,), jnp.float32),
        dec_emb_ln_b=jnp.zeros((D_MODEL,), jnp.float32),
        dec_layers=[init_dec_layer(kg, D_MODEL, FFN) for _ in range(BART_DEC_LAYERS)],
    )
    return dict(add_encoder=add_encoder, dense=dense, bart=bart)


# ----------------------------- main -------------------------------------------
if __name__ == "__main__":
    params = init_params(seed=0)
    packed = pack_params(params)     # one-time wrapper-side packing (fused QKV, bf16)

    k = jax.random.PRNGKey(0)
    k_enc, k_lab = jax.random.split(k)
    encoder_input = jax.random.randint(k_enc, (B, S_ENC), 0, VOCAB_ENC, dtype=jnp.int32)
    encoder_attention_mask = jnp.ones((B, S_ENC), jnp.int32)
    encoder_attention_mask = encoder_attention_mask.at[1, -3:].set(0)   # pad tail of ex. 1
    encoder_token_type_ids = jnp.zeros((B, S_ENC), jnp.int32)

    labels = jax.random.randint(k_lab, (B, S_DEC), 0, VOCAB_BART, dtype=jnp.int32)
    decoder_start = jnp.full((B, 1), 2, dtype=jnp.int32)                # BART decoder_start
    decoder_input = jnp.concatenate([decoder_start, labels[:, :-1]], axis=1)
    decoder_attention_mask = jnp.ones((B, S_DEC), jnp.int32)

    fwd = jax.jit(codeformer_forward)
    out = fwd(packed, encoder_input, encoder_attention_mask, encoder_token_type_ids,
              labels, decoder_input, decoder_attention_mask)
    jax.block_until_ready(out)

    assert out["logits"].shape == (B, S_DEC, VOCAB_BART)
    assert jnp.isfinite(out["loss"]).item()
    assert bool(jnp.all(jnp.isfinite(out["logits"])))
    print("KERNEL_OK")
</pallas_src>

<mosaic_0001>
module attributes {stable_mosaic.version = 11 : i64} {
  func.func @_lmhead_xent_kernel(%arg0: i32, %arg1: memref<16x128xbf16, #tpu.memory_space<vmem>>, %arg2: memref<256x128xbf16, #tpu.memory_space<vmem>>, %arg3: memref<1x256xf32, #tpu.memory_space<vmem>>, %arg4: memref<16x1xi32, #tpu.memory_space<vmem>>, %arg5: memref<16x256xf32, #tpu.memory_space<vmem>>, %arg6: memref<1x1xf32, #tpu.memory_space<vmem>>) attributes {dimension_semantics = [#tpu.dimension_semantics<arbitrary>], iteration_bounds = array<i64: 1>, scalar_prefetch = 0 : i64, scratch_operands = 0 : i64, tpu.core_type = #tpu.core_type<tc>, window_params = [{pipeline_mode = #tpu.pipeline_mode<synchronous>, transform_indices = @transform_0, window_bounds = array<i64: 16, 128>}, {pipeline_mode = #tpu.pipeline_mode<synchronous>, transform_indices = @transform_1, window_bounds = array<i64: 256, 128>}, {pipeline_mode = #tpu.pipeline_mode<synchronous>, transform_indices = @transform_2, window_bounds = array<i64: 1, 256>}, {pipeline_mode = #tpu.pipeline_mode<synchronous>, transform_indices = @transform_3, window_bounds = array<i64: 16, 1>}, {pipeline_mode = #tpu.pipeline_mode<synchronous>, transform_indices = @transform_4, window_bounds = array<i64: 16, 256>}, {pipeline_mode = #tpu.pipeline_mode<synchronous>, transform_indices = @transform_5, window_bounds = array<i64: 1, 1>}]} {
    %c0 = arith.constant 0 : index
    %c0_0 = arith.constant 0 : index
    %0 = vector.load %arg1[%c0, %c0_0] : memref<16x128xbf16, #tpu.memory_space<vmem>>, vector<16x128xbf16>
    %c0_1 = arith.constant 0 : index
    %c0_2 = arith.constant 0 : index
    %1 = vector.load %arg2[%c0_1, %c0_2] : memref<256x128xbf16, #tpu.memory_space<vmem>>, vector<256x128xbf16>
    %cst = arith.constant dense<0.000000e+00> : vector<16x256xf32>
    %2 = tpu.matmul %0, %1, %cst {dimension_numbers = #tpu.dot_dimension_numbers<[1], [1], [0], [0], [0, 0, 1, 0], [], []>} : vector<16x128xbf16>, vector<256x128xbf16>, vector<16x256xf32> -> vector<16x256xf32>
    %c0_3 = arith.constant 0 : index
    %c0_4 = arith.constant 0 : index
    %3 = vector.load %arg3[%c0_3, %c0_4] : memref<1x256xf32, #tpu.memory_space<vmem>>, vector<1x256xf32>
    %4 = vector.broadcast %3 : vector<1x256xf32> to vector<16x256xf32>
    %5 = arith.addf %2, %4 : vector<16x256xf32>
    %c0_5 = arith.constant 0 : index
    %c0_6 = arith.constant 0 : index
    %6 = vector.load %arg5[%c0_5, %c0_6] : memref<16x256xf32, #tpu.memory_space<vmem>>, vector<16x256xf32>
    tpu.vector_store %arg5[%c0_5, %c0_6], %5 {strides = array<i32>} : memref<16x256xf32, #tpu.memory_space<vmem>>, vector<16x256xf32>,
    %c0_7 = arith.constant 0 : index
    %c0_8 = arith.constant 0 : index
    %7 = vector.load %arg4[%c0_7, %c0_8] : memref<16x1xi32, #tpu.memory_space<vmem>>, vector<16x1xi32>
    %cst_9 = arith.constant dense<0xFF800000> : vector<16xf32>
    %8 = vector.multi_reduction <maximumf>, %5, %cst_9 [1] : vector<16x256xf32> to vector<16xf32>
    %9 = vector.shape_cast %8 : vector<16xf32> to vector<16x1xf32>
    %10 = vector.broadcast %9 : vector<16x1xf32> to vector<16x256xf32>
    %11 = arith.subf %5, %10 : vector<16x256xf32>
    %12 = math.exp %11 : vector<16x256xf32>
    %cst_10 = arith.constant dense<0.000000e+00> : vector<16xf32>
    %13 = vector.multi_reduction <add>, %12, %cst_10 [1] : vector<16x256xf32> to vector<16xf32>
    %14 = vector.shape_cast %13 : vector<16xf32> to vector<16x1xf32>
    %15 = math.log %14 : vector<16x1xf32>
    %16 = arith.addf %15, %9 : vector<16x1xf32>
    %17 = tpu.iota {dimensions = array<i32: 1>} : vector<16x256xi32>
    %18 = vector.broadcast %7 : vector<16x1xi32> to vector<16x256xi32>
    %19 = arith.cmpi eq, %17, %18 : vector<16x256xi32>
    %cst_11 = arith.constant 0.000000e+00 : f32
    %20 = vector.broadcast %cst_11 : f32 to vector<16x256xf32>
    %21 = arith.select %19, %5, %20 : vector<16x256xi1>, vector<16x256xf32>
    %cst_12 = arith.constant dense<0.000000e+00> : vector<16xf32>
    %22 = vector.multi_reduction <add>, %21, %cst_12 [1] : vector<16x256xf32> to vector<16xf32>
    %23 = vector.shape_cast %22 : vector<16xf32> to vector<16x1xf32>
    %24 = arith.subf %16, %23 : vector<16x1xf32>
    %c-100_i32 = arith.constant -100 : i32
    %25 = vector.broadcast %c-100_i32 : i32 to vector<16x1xi32>
    %26 = arith.cmpi ne, %7, %25 : vector<16x1xi32>
    %27 = arith.extui %26 : vector<16x1xi1> to vector<16x1xi32>
    %28 = arith.sitofp %27 : vector<16x1xi32> to vector<16x1xf32>
    %29 = arith.mulf %24, %28 : vector<16x1xf32>
    %30 = vector.shape_cast %29 : vector<16x1xf32> to vector<1x16x1xf32>
    %cst_13 = arith.constant dense<0.000000e+00> : vector<1xf32>
    %31 = vector.multi_reduction <add>, %30, %cst_13 [1, 2] : vector<1x16x1xf32> to vector<1xf32>
    %32 = vector.shape_cast %31 : vector<1xf32> to vector<1x1x1xf32>
    %33 = vector.extract %32[0, 0, 0] : f32 from vector<1x1x1xf32>
    %34 = vector.shape_cast %28 : vector<16x1xf32> to vector<1x16x1xf32>
    %cst_14 = arith.constant dense<0.000000e+00> : vector<1xf32>
    %35 = vector.multi_reduction <add>, %34, %cst_14 [1, 2] : vector<1x16x1xf32> to vector<1xf32>
    %36 = vector.shape_cast %35 : vector<1xf32> to vector<1x1x1xf32>
    %37 = vector.extract %36[0, 0, 0] : f32 from vector<1x1x1xf32>
    %cst_15 = arith.constant 1.000000e+00 : f32
    %38 = arith.maximumf %37, %cst_15 : f32
    %39 = arith.divf %33, %38 : f32
    %40 = vector.broadcast %39 : f32 to vector<1x1xf32>
    %c0_16 = arith.constant 0 : index
    %c0_17 = arith.constant 0 : index
    %41 = vector.load %arg6[%c0_16, %c0_17] : memref<1x1xf32, #tpu.memory_space<vmem>>, vector<1x1xf32>
    tpu.vector_store %arg6[%c0_16, %c0_17], %40 {strides = array<i32>} : memref<1x1xf32, #tpu.memory_space<vmem>>, vector<1x1xf32>,
    return
  }
  func.func @transform_0(%arg0: i32) -> (i32, i32) {
    %c0_i32 = arith.constant 0 : i32
    %c0_i32_0 = arith.constant 0 : i32
    %c0_i32_1 = arith.constant 0 : i32
    return %c0_i32, %c0_i32_0 : i32, i32
  }
  func.func @transform_1(%arg0: i32) -> (i32, i32) {
    %c0_i32 = arith.constant 0 : i32
    %c0_i32_0 = arith.constant 0 : i32
    %c0_i32_1 = arith.constant 0 : i32
    return %c0_i32, %c0_i32_0 : i32, i32
  }
  func.func @transform_2(%arg0: i32) -> (i32, i32) {
    %c0_i32 = arith.constant 0 : i32
    %c0_i32_0 = arith.constant 0 : i32
    %c0_i32_1 = arith.constant 0 : i32
    return %c0_i32, %c0_i32_0 : i32, i32
  }
  func.func @transform_3(%arg0: i32) -> (i32, i32) {
    %c0_i32 = arith.constant 0 : i32
    %c0_i32_0 = arith.constant 0 : i32
    %c0_i32_1 = arith.constant 0 : i32
    return %c0_i32, %c0_i32_0 : i32, i32
  }
  func.func @transform_4(%arg0: i32) -> (i32, i32) {
    %c0_i32 = arith.constant 0 : i32
    %c0_i32_0 = arith.constant 0 : i32
    %c0_i32_1 = arith.constant 0 : i32
    return %c0_i32, %c0_i32_0 : i32, i32
  }
  func.func @transform_5(%arg0: i32) -> (i32, i32) {
    %c0_i32 = arith.constant 0 : i32
    %c0_i32_0 = arith.constant 0 : i32
    %c0_i32_1 = arith.constant 0 : i32
    return %c0_i32, %c0_i32_0 : i32, i32
  }
}

module attributes {stable_mosaic.version = 11 : i64} {
  func.func @_encoder_stack_kernel(%arg0: i32, %arg1: memref<32x128xf32, #tpu.memory_space<vmem>>, %arg2: memref<32x32xf32, #tpu.memory_space<vmem>>, %arg3: memref<1x128xf32, #tpu.memory_space<vmem>>, %arg4: memref<1x128xf32, #tpu.memory_space<vmem>>, %arg5: memref<2x128x384xbf16, #tpu.memory_space<vmem>>, %arg6: memref<2x1x384xf32, #tpu.memory_space<vmem>>, %arg7: memref<2x128x128xbf16, #tpu.memory_space<vmem>>, %arg8: memref<2x1x128xf32, #tpu.memory_space<vmem>>, %arg9: memref<2x1x128xf32, #tpu.memory_space<vmem>>, %arg10: memref<2x1x128xf32, #tpu.memory_space<vmem>>, %arg11: memref<2x128x256xbf16, #tpu.memory_space<vmem>>, %arg12: memref<2x1x256xf32, #tpu.memory_space<vmem>>, %arg13: memref<2x256x128xbf16, #tpu.memory_space<vmem>>, %arg14: memref<2x1x128xf32, #tpu.memory_space<vmem>>, %arg15: memref<2x1x128xf32, #tpu.memory_space<vmem>>, %arg16: memref<2x1x128xf32, #tpu.memory_space<vmem>>, %arg17: memref<128x128xbf16, #tpu.memory_space<vmem>>, %arg18: memref<1x128xf32, #tpu.memory_space<vmem>>, %arg19: memref<32x128xf32, #tpu.memory_space<vmem>>, %arg20: memref<1x128xf32, #tpu.memory_space<vmem>>, %arg21: memref<1x128xf32, #tpu.memory_space<vmem>>, %arg22: memref<1x128x384xbf16, #tpu.memory_space<vmem>>, %arg23: memref<1x1x384xf32, #tpu.memory_space<vmem>>, %arg24: memref<1x128x128xbf16, #tpu.memory_space<vmem>>, %arg25: memref<1x1x128xf32, #tpu.memory_space<vmem>>, %arg26: memref<1x1x128xf32, #tpu.memory_space<vmem>>, %arg27: memref<1x1x128xf32, #tpu.memory_space<vmem>>, %arg28: memref<1x128x256xbf16, #tpu.memory_space<vmem>>, %arg29: memref<1x1x256xf32, #tpu.memory_space<vmem>>, %arg30: memref<1x256x128xbf16, #tpu.memory_space<vmem>>, %arg31: memref<1x1x128xf32, #tpu.memory_space<vmem>>, %arg32: memref<1x1x128xf32, #tpu.memory_space<vmem>>, %arg33: memref<1x1x128xf32, #tpu.memory_space<vmem>>, %arg34: memref<32x128xbf16, #tpu.memory_space<vmem>>) attributes {dimension_semantics = [#tpu.dimension_semantics<arbitrary>], iteration_bounds = array<i64: 1>, scalar_prefetch = 0 : i64, scratch_operands = 0 : i64, tpu.core_type = #tpu.core_type<tc>, window_params = [{pipeline_mode = #tpu.pipeline_mode<synchronous>, transform_indices = @transform_0, window_bounds = array<i64: 32, 128>}, {pipeline_mode = #tpu.pipeline_mode<synchronous>, transform_indices = @transform_1, window_bounds = array<i64: 32, 32>}, {pipeline_mode = #tpu.pipeline_mode<synchronous>, transform_indices = @transform_2, window_bounds = array<i64: 1, 128>}, {pipeline_mode = #tpu.pipeline_mode<synchronous>, transform_indices = @transform_3, window_bounds = array<i64: 1, 128>}, {pipeline_mode = #tpu.pipeline_mode<synchronous>, transform_indices = @transform_4, window_bounds = array<i64: 2, 128, 384>}, {pipeline_mode = #tpu.pipeline_mode<synchronous>, transform_indices = @transform_5, window_bounds = array<i64: 2, 1, 384>}, {pipeline_mode = #tpu.pipeline_mode<synchronous>, transform_indices = @transform_6, window_bounds = array<i64: 2, 128, 128>}, {pipeline_mode = #tpu.pipeline_mode<synchronous>, transform_indices = @transform_7, window_bounds = array<i64: 2, 1, 128>}, {pipeline_mode = #tpu.pipeline_mode<synchronous>, transform_indices = @transform_8, window_bounds = array<i64: 2, 1, 128>}, {pipeline_mode = #tpu.pipeline_mode<synchronous>, transform_indices = @transform_9, window_bounds = array<i64: 2, 1, 128>}, {pipeline_mode = #tpu.pipeline_mode<synchronous>, transform_indices = @transform_10, window_bounds = array<i64: 2, 128, 256>}, {pipeline_mode = #tpu.pipeline_mode<synchronous>, transform_indices = @transform_11, window_bounds = array<i64: 2, 1, 256>}, {pipeline_mode = #tpu.pipeline_mode<synchronous>, transform_indices = @transform_12, window_bounds = array<i64: 2, 256, 128>}, {pipeline_mode = #tpu.pipeline_mode<synchronous>, transform_indices = @transform_13, window_bounds = array<i64: 2, 1, 128>}, {pipeline_mode = #tpu.pipeline_mode<synchronous>, transform_indices = @transform_14, window_bounds = array<i64: 2, 1, 128>}, {pipeline_mode = #tpu.pipeline_mode<synchronous>, transform_indices = @transform_15, window_bounds = array<i64: 2, 1, 128>}, {pipeline_mode = #tpu.pipeline_mode<synchronous>, transform_indices = @transform_16, window_bounds = array<i64: 128, 128>}, {pipeline_mode = #tpu.pipeline_mode<synchronous>, transform_indices = @transform_17, window_bounds = array<i64: 1, 128>}, {pipeline_mode = #tpu.pipeline_mode<synchronous>, transform_indices = @transform_18, window_bounds = array<i64: 32, 128>}, {pipeline_mode = #tpu.pipeline_mode<synchronous>, transform_indices = @transform_19, window_bounds = array<i64: 1, 128>}, {pipeline_mode = #tpu.pipeline_mode<synchronous>, transform_indices = @transform_20, window_bounds = array<i64: 1, 128>}, {pipeline_mode = #tpu.pipeline_mode<synchronous>, transform_indices = @transform_21, window_bounds = array<i64: 1, 128, 384>}, {pipeline_mode = #tpu.pipeline_mode<synchronous>, transform_indices = @transform_22, window_bounds = array<i64: 1, 1, 384>}, {pipeline_mode = #tpu.pipeline_mode<synchronous>, transform_indices = @transform_23, window_bounds = array<i64: 1, 128, 128>}, {pipeline_mode = #tpu.pipeline_mode<synchronous>, transform_indices = @transform_24, window_bounds = array<i64: 1, 1, 128>}, {pipeline_mode = #tpu.pipeline_mode<synchronous>, transform_indices = @transform_25, window_bounds = array<i64: 1, 1, 128>}, {pipeline_mode = #tpu.pipeline_mode<synchronous>, transform_indices = @transform_26, window_bounds = array<i64: 1, 1, 128>}, {pipeline_mode = #tpu.pipeline_mode<synchronous>, transform_indices = @transform_27, window_bounds = array<i64: 1, 128, 256>}, {pipeline_mode = #tpu.pipeline_mode<synchronous>, transform_indices = @transform_28, window_bounds = array<i64: 1, 1, 256>}, {pipeline_mode = #tpu.pipeline_mode<synchronous>, transform_indices = @transform_29, window_bounds = array<i64: 1, 256, 128>}, {pipeline_mode = #tpu.pipeline_mode<synchronous>, transform_indices = @transform_30, window_bounds = array<i64: 1, 1, 128>}, {pipeline_mode = #tpu.pipeline_mode<synchronous>, transform_indices = @transform_31, window_bounds = array<i64: 1, 1, 128>}, {pipeline_mode = #tpu.pipeline_mode<synchronous>, transform_indices = @transform_32, window_bounds = array<i64: 1, 1, 128>}, {pipeline_mode = #tpu.pipeline_mode<synchronous>, transform_indices = @transform_33, window_bounds = array<i64: 32, 128>}]} {
    %c0 = arith.constant 0 : index
    %c0_0 = arith.constant 0 : index
    %0 = vector.load %arg2[%c0, %c0_0] : memref<32x32xf32, #tpu.memory_space<vmem>>, vector<32x32xf32>
    %c0_1 = arith.constant 0 : index
    %c0_2 = arith.constant 0 : index
    %1 = vector.load %arg1[%c0_1, %c0_2] : memref<32x128xf32, #tpu.memory_space<vmem>>, vector<32x128xf32>
    %c0_3 = arith.constant 0 : index
    %c0_4 = arith.constant 0 : index
    %2 = vector.load %arg3[%c0_3, %c0_4] : memref<1x128xf32, #tpu.memory_space<vmem>>, vector<1x128xf32>
    %c0_5 = arith.constant 0 : index
    %c0_6 = arith.constant 0 : index
    %3 = vector.load %arg4[%c0_5, %c0_6] : memref<1x128xf32, #tpu.memory_space<vmem>>, vector<1x128xf32>
    %cst = arith.constant dense<0.000000e+00> : vector<32xf32>
    %4 = vector.multi_reduction <add>, %1, %cst [1] : vector<32x128xf32> to vector<32xf32>
    %5 = vector.shape_cast %4 : vector<32xf32> to vector<32x1xf32>
    %cst_7 = arith.constant 1.280000e+02 : f32
    %6 = vector.broadcast %cst_7 : f32 to vector<32x1xf32>
    %7 = arith.divf %5, %6 : vector<32x1xf32>
    %8 = vector.broadcast %7 : vector<32x1xf32> to vector<32x128xf32>
    %9 = arith.subf %1, %8 : vector<32x128xf32>
    %10 = arith.mulf %9, %9 : vector<32x128xf32>
    %cst_8 = arith.constant dense<0.000000e+00> : vector<32xf32>
    %11 = vector.multi_reduction <add>, %10, %cst_8 [1] : vector<32x128xf32> to vector<32xf32>
    %12 = vector.shape_cast %11 : vector<32xf32> to vector<32x1xf32>
    %cst_9 = arith.constant 1.280000e+02 : f32
    %13 = vector.broadcast %cst_9 : f32 to vector<32x1xf32>
    %14 = arith.divf %12, %13 : vector<32x1xf32>
    %15 = vector.broadcast %7 : vector<32x1xf32> to vector<32x128xf32>
    %16 = arith.subf %1, %15 : vector<32x128xf32>
    %cst_10 = arith.constant 9.99999996E-13 : f32
    %17 = vector.broadcast %cst_10 : f32 to vector<32x1xf32>
    %18 = arith.addf %14, %17 : vector<32x1xf32>
    %19 = math.rsqrt %18 : vector<32x1xf32>
    %20 = vector.broadcast %19 : vector<32x1xf32> to vector<32x128xf32>
    %21 = arith.mulf %16, %20 : vector<32x128xf32>
    %22 = vector.broadcast %2 : vector<1x128xf32> to vector<32x128xf32>
    %23 = arith.mulf %21, %22 : vector<32x128xf32>
    %24 = vector.broadcast %3 : vector<1x128xf32> to vector<32x128xf32>
    %25 = arith.addf %23, %24 : vector<32x128xf32>
    %c0_11 = arith.constant 0 : index
    %c0_12 = arith.constant 0 : index
    %c0_13 = arith.constant 0 : index
    %26 = vector.load %arg5[%c0_11, %c0_12, %c0_13] : memref<2x128x384xbf16, #tpu.memory_space<vmem>>, vector<1x128x384xbf16>
    %27 = vector.shape_cast %26 : vector<1x128x384xbf16> to vector<128x384xbf16>
    %c0_14 = arith.constant 0 : index
    %c0_15 = arith.constant 0 : index
    %c0_16 = arith.constant 0 : index
    %28 = vector.load %arg6[%c0_14, %c0_15, %c0_16] : memref<2x1x384xf32, #tpu.memory_space<vmem>>, vector<1x1x384xf32>
    %29 = vector.shape_cast %28 : vector<1x1x384xf32> to vector<1x384xf32>
    %c0_17 = arith.constant 0 : index
    %c0_18 = arith.constant 0 : index
    %c0_19 = arith.constant 0 : index
    %30 = vector.load %arg7[%c0_17, %c0_18, %c0_19] : memref<2x128x128xbf16, #tpu.memory_space<vmem>>, vector<1x128x128xbf16>
    %31 = vector.shape_cast %30 : vector<1x128x128xbf16> to vector<128x128xbf16>
    %c0_20 = arith.constant 0 : index
    %c0_21 = arith.constant 0 : index
    %c0_22 = arith.constant 0 : index
    %32 = vector.load %arg8[%c0_20, %c0_21, %c0_22] : memref<2x1x128xf32, #tpu.memory_space<vmem>>, vector<1x1x128xf32>
    %33 = vector.shape_cast %32 : vector<1x1x128xf32> to vector<1x128xf32>
    %c0_23 = arith.constant 0 : index
    %c0_24 = arith.constant 0 : index
    %c0_25 = arith.constant 0 : index
    %34 = vector.load %arg9[%c0_23, %c0_24, %c0_25] : memref<2x1x128xf32, #tpu.memory_space<vmem>>, vector<1x1x128xf32>
    %35 = vector.shape_cast %34 : vector<1x1x128xf32> to vector<1x128xf32>
    %c0_26 = arith.constant 0 : index
    %c0_27 = arith.constant 0 : index
    %c0_28 = arith.constant 0 : index
    %36 = vector.load %arg10[%c0_26, %c0_27, %c0_28] : memref<2x1x128xf32, #tpu.memory_space<vmem>>, vector<1x1x128xf32>
    %37 = vector.shape_cast %36 : vector<1x1x128xf32> to vector<1x128xf32>
    %c0_29 = arith.constant 0 : index
    %c0_30 = arith.constant 0 : index
    %c0_31 = arith.constant 0 : index
    %38 = vector.load %arg11[%c0_29, %c0_30, %c0_31] : memref<2x128x256xbf16, #tpu.memory_space<vmem>>, vector<1x128x256xbf16>
    %39 = vector.shape_cast %38 : vector<1x128x256xbf16> to vector<128x256xbf16>
    %c0_32 = arith.constant 0 : index
    %c0_33 = arith.constant 0 : index
    %c0_34 = arith.constant 0 : index
    %40 = vector.load %arg12[%c0_32, %c0_33, %c0_34] : memref<2x1x256xf32, #tpu.memory_space<vmem>>, vector<1x1x256xf32>
    %41 = vector.shape_cast %40 : vector<1x1x256xf32> to vector<1x256xf32>
    %c0_35 = arith.constant 0 : index
    %c0_36 = arith.constant 0 : index
    %c0_37 = arith.constant 0 : index
    %42 = vector.load %arg13[%c0_35, %c0_36, %c0_37] : memref<2x256x128xbf16, #tpu.memory_space<vmem>>, vector<1x256x128xbf16>
    %43 = vector.shape_cast %42 : vector<1x256x128xbf16> to vector<256x128xbf16>
    %c0_38 = arith.constant 0 : index
    %c0_39 = arith.constant 0 : index
    %c0_40 = arith.constant 0 : index
    %44 = vector.load %arg14[%c0_38, %c0_39, %c0_40] : memref<2x1x128xf32, #tpu.memory_space<vmem>>, vector<1x1x128xf32>
    %45 = vector.shape_cast %44 : vector<1x1x128xf32> to vector<1x128xf32>
    %c0_41 = arith.constant 0 : index
    %c0_42 = arith.constant 0 : index
    %c0_43 = arith.constant 0 : index
    %46 = vector.load %arg15[%c0_41, %c0_42, %c0_43] : memref<2x1x128xf32, #tpu.memory_space<vmem>>, vector<1x1x128xf32>
    %47 = vector.shape_cast %46 : vector<1x1x128xf32> to vector<1x128xf32>
    %c0_44 = arith.constant 0 : index
    %c0_45 = arith.constant 0 : index
    %c0_46 = arith.constant 0 : index
    %48 = vector.load %arg16[%c0_44, %c0_45, %c0_46] : memref<2x1x128xf32, #tpu.memory_space<vmem>>, vector<1x1x128xf32>
    %49 = vector.shape_cast %48 : vector<1x1x128xf32> to vector<1x128xf32>
    %50 = arith.truncf %25 : vector<32x128xf32> to vector<32x128xbf16>
    %cst_47 = arith.constant dense<0.000000e+00> : vector<32x384xf32>
    %51 = tpu.matmul %50, %27, %cst_47 {dimension_numbers = #tpu.dot_dimension_numbers<[1], [0], [0], [1], [0, 0, 1, 1], [], []>} : vector<32x128xbf16>, vector<128x384xbf16>, vector<32x384xf32> -> vector<32x384xf32>
    %52 = vector.broadcast %29 : vector<1x384xf32> to vector<32x384xf32>
    %53 = arith.addf %51, %52 : vector<32x384xf32>
    %54 = vector.extract_strided_slice %53 {offsets = [0, 0], sizes = [32, 128], strides = [1, 1]} : vector<32x384xf32> to vector<32x128xf32>
    %55 = vector.extract_strided_slice %53 {offsets = [0, 128], sizes = [32, 128], strides = [1, 1]} : vector<32x384xf32> to vector<32x128xf32>
    %56 = vector.extract_strided_slice %53 {offsets = [0, 256], sizes = [32, 128], strides = [1, 1]} : vector<32x384xf32> to vector<32x128xf32>
    %57 = arith.truncf %54 : vector<32x128xf32> to vector<32x128xbf16>
    %58 = arith.truncf %55 : vector<32x128xf32> to vector<32x128xbf16>
    %59 = arith.truncf %56 : vector<32x128xf32> to vector<32x128xbf16>
    %60 = vector.extract_strided_slice %57 {offsets = [0, 0], sizes = [32, 32], strides = [1, 1]} : vector<32x128xbf16> to vector<32x32xbf16>
    %61 = vector.extract_strided_slice %58 {offsets = [0, 0], sizes = [32, 32], strides = [1, 1]} : vector<32x128xbf16> to vector<32x32xbf16>
    %cst_48 = arith.constant dense<0.000000e+00> : vector<32x32xf32>
    %62 = tpu.matmul %60, %61, %cst_48 {dimension_numbers = #tpu.dot_dimension_numbers<[1], [1], [0], [0], [0, 0, 1, 0], [], []>} : vector<32x32xbf16>, vector<32x32xbf16>, vector<32x32xf32> -> vector<32x32xf32>
    %63 = arith.addf %62, %0 : vector<32x32xf32>
    %cst_49 = arith.constant dense<0xFF800000> : vector<32xf32>
    %64 = vector.multi_reduction <maximumf>, %63, %cst_49 [1] : vector<32x32xf32> to vector<32xf32>
    %65 = vector.shape_cast %64 : vector<32xf32> to vector<32x1xf32>
    %66 = vector.broadcast %65 : vector<32x1xf32> to vector<32x32xf32>
    %67 = arith.subf %63, %66 : vector<32x32xf32>
    %68 = math.exp %67 : vector<32x32xf32>
    %cst_50 = arith.constant dense<0.000000e+00> : vector<32xf32>
    %69 = vector.multi_reduction <add>, %68, %cst_50 [1] : vector<32x32xf32> to vector<32xf32>
    %70 = vector.shape_cast %69 : vector<32xf32> to vector<32x1xf32>
    %71 = tpu.reciprocal %70 {approx = true} : vector<32x1xf32> -> vector<32x1xf32>
    %72 = vector.broadcast %71 : vector<32x1xf32> to vector<32x32xf32>
    %73 = arith.mulf %68, %72 : vector<32x32xf32>
    %74 = arith.truncf %73 : vector<32x32xf32> to vector<32x32xbf16>
    %75 = vector.extract_strided_slice %59 {offsets = [0, 0], sizes = [32, 32], strides = [1, 1]} : vector<32x128xbf16> to vector<32x32xbf16>
    %cst_51 = arith.constant dense<0.000000e+00> : vector<32x32xf32>
    %76 = tpu.matmul %74, %75, %cst_51 {dimension_numbers = #tpu.dot_dimension_numbers<[1], [0], [0], [1], [0, 0, 1, 1], [], []>} : vector<32x32xbf16>, vector<32x32xbf16>, vector<32x32xf32> -> vector<32x32xf32>
    %77 = vector.extract_strided_slice %57 {offsets = [0, 32], sizes = [32, 32], strides = [1, 1]} : vector<32x128xbf16> to vector<32x32xbf16>
    %78 = vector.extract_strided_slice %58 {offsets = [0, 32], sizes = [32, 32], strides = [1, 1]} : vector<32x128xbf16> to vector<32x32xbf16>
    %cst_52 = arith.constant dense<0.000000e+00> : vector<32x32xf32>
    %79 = tpu.matmul %77, %78, %cst_52 {dimension_numbers = #tpu.dot_dimension_numbers<[1], [1], [0], [0], [0, 0, 1, 0], [], []>} : vector<32x32xbf16>, vector<32x32xbf16>, vector<32x32xf32> -> vector<32x32xf32>
    %80 = arith.addf %79, %0 : vector<32x32xf32>
    %cst_53 = arith.constant dense<0xFF800000> : vector<32xf32>
    %81 = vector.multi_reduction <maximumf>, %80, %cst_53 [1] : vector<32x32xf32> to vector<32xf32>
    %82 = vector.shape_cast %81 : vector<32xf32> to vector<32x1xf32>
    %83 = vector.broadcast %82 : vector<32x1xf32> to vector<32x32xf32>
    %84 = arith.subf %80, %83 : vector<32x32xf32>
    %85 = math.exp %84 : vector<32x32xf32>
    %cst_54 = arith.constant dense<0.000000e+00> : vector<32xf32>
    %86 = vector.multi_reduction <add>, %85, %cst_54 [1] : vector<32x32xf32> to vector<32xf32>
    %87 = vector.shape_cast %86 : vector<32xf32> to vector<32x1xf32>
    %88 = tpu.reciprocal %87 {approx = true} : vector<32x1xf32> -> vector<32x1xf32>
    %89 = vector.broadcast %88 : vector<32x1xf32> to vector<32x32xf32>
    %90 = arith.mulf %85, %89 : vector<32x32xf32>
    %91 = arith.truncf %90 : vector<32x32xf32> to vector<32x32xbf16>
    %92 = vector.extract_strided_slice %59 {offsets = [0, 32], sizes = [32, 32], strides = [1, 1]} : vector<32x128xbf16> to vector<32x32xbf16>
    %cst_55 = arith.constant dense<0.000000e+00> : vector<32x32xf32>
    %93 = tpu.matmul %91, %92, %cst_55 {dimension_numbers = #tpu.dot_dimension_numbers<[1], [0], [0], [1], [0, 0, 1, 1], [], []>} : vector<32x32xbf16>, vector<32x32xbf16>, vector<32x32xf32> -> vector<32x32xf32>
    %94 = vector.extract_strided_slice %57 {offsets = [0, 64], sizes = [32, 32], strides = [1, 1]} : vector<32x128xbf16> to vector<32x32xbf16>
    %95 = vector.extract_strided_slice %58 {offsets = [0, 64], sizes = [32, 32], strides = [1, 1]} : vector<32x128xbf16> to vector<32x32xbf16>
    %cst_56 = arith.constant dense<0.000000e+00> : vector<32x32xf32>
    %96 = tpu.matmul %94, %95, %cst_56 {dimension_numbers = #tpu.dot_dimension_numbers<[1], [1], [0], [0], [0, 0, 1, 0], [], []>} : vector<32x32xbf16>, vector<32x32xbf16>, vector<32x32xf32> -> vector<32x32xf32>
    %97 = arith.addf %96, %0 : vector<32x32xf32>
    %cst_57 = arith.constant dense<0xFF800000> : vector<32xf32>
    %98 = vector.multi_reduction <maximumf>, %97, %cst_57 [1] : vector<32x32xf32> to vector<32xf32>
    %99 = vector.shape_cast %98 : vector<32xf32> to vector<32x1xf32>
    %100 = vector.broadcast %99 : vector<32x1xf32> to vector<32x32xf32>
    %101 = arith.subf %97, %100 : vector<32x32xf32>
    %102 = math.exp %101 : vector<32x32xf32>
    %cst_58 = arith.constant dense<0.000000e+00> : vector<32xf32>
    %103 = vector.multi_reduction <add>, %102, %cst_58 [1] : vector<32x32xf32> to vector<32xf32>
    %104 = vector.shape_cast %103 : vector<32xf32> to vector<32x1xf32>
    %105 = tpu.reciprocal %104 {approx = true} : vector<32x1xf32> -> vector<32x1xf32>
    %106 = vector.broadcast %105 : vector<32x1xf32> to vector<32x32xf32>
    %107 = arith.mulf %102, %106 : vector<32x32xf32>
    %108 = arith.truncf %107 : vector<32x32xf32> to vector<32x32xbf16>
    %109 = vector.extract_strided_slice %59 {offsets = [0, 64], sizes = [32, 32], strides = [1, 1]} : vector<32x128xbf16> to vector<32x32xbf16>
    %cst_59 = arith.constant dense<0.000000e+00> : vector<32x32xf32>
    %110 = tpu.matmul %108, %109, %cst_59 {dimension_numbers = #tpu.dot_dimension_numbers<[1], [0], [0], [1], [0, 0, 1, 1], [], []>} : vector<32x32xbf16>, vector<32x32xbf16>, vector<32x32xf32> -> vector<32x32xf32>
    %111 = vector.extract_strided_slice %57 {offsets = [0, 96], sizes = [32, 32], strides = [1, 1]} : vector<32x128xbf16> to vector<32x32xbf16>
    %112 = vector.extract_strided_slice %58 {offsets = [0, 96], sizes = [32, 32], strides = [1, 1]} : vector<32x128xbf16> to vector<32x32xbf16>
    %cst_60 = arith.constant dense<0.000000e+00> : vector<32x32xf32>
    %113 = tpu.matmul %111, %112, %cst_60 {dimension_numbers = #tpu.dot_dimension_numbers<[1], [1], [0], [0], [0, 0, 1, 0], [], []>} : vector<32x32xbf16>, vector<32x32xbf16>, vector<32x32xf32> -> vector<32x32xf32>
    %114 = arith.addf %113, %0 : vector<32x32xf32>
    %cst_61 = arith.constant dense<0xFF800000> : vector<32xf32>
    %115 = vector.multi_reduction <maximumf>, %114, %cst_61 [1] : vector<32x32xf32> to vector<32xf32>
    %116 = vector.shape_cast %115 : vector<32xf32> to vector<32x1xf32>
    %117 = vector.broadcast %116 : vector<32x1xf32> to vector<32x32xf32>
    %118 = arith.subf %114, %117 : vector<32x32xf32>
    %119 = math.exp %118 : vector<32x32xf32>
    %cst_62 = arith.constant dense<0.000000e+00> : vector<32xf32>
    %120 = vector.multi_reduction <add>, %119, %cst_62 [1] : vector<32x32xf32> to vector<32xf32>
    %121 = vector.shape_cast %120 : vector<32xf32> to vector<32x1xf32>
    %122 = tpu.reciprocal %121 {approx = true} : vector<32x1xf32> -> vector<32x1xf32>
    %123 = vector.broadcast %122 : vector<32x1xf32> to vector<32x32xf32>
    %124 = arith.mulf %119, %123 : vector<32x32xf32>
    %125 = arith.truncf %124 : vector<32x32xf32> to vector<32x32xbf16>
    %126 = vector.extract_strided_slice %59 {offsets = [0, 96], sizes = [32, 32], strides = [1, 1]} : vector<32x128xbf16> to vector<32x32xbf16>
    %cst_63 = arith.constant dense<0.000000e+00> : vector<32x32xf32>
    %127 = tpu.matmul %125, %126, %cst_63 {dimension_numbers = #tpu.dot_dimension_numbers<[1], [0], [0], [1], [0, 0, 1, 1], [], []>} : vector<32x32xbf16>, vector<32x32xbf16>, vector<32x32xf32> -> vector<32x32xf32>
    %128 = tpu.concatenate %76, %93, %110, %127 in 1 : vector<32x32xf32>, vector<32x32xf32>, vector<32x32xf32>, vector<32x32xf32> -> vector<32x128xf32>
    %129 = arith.truncf %128 : vector<32x128xf32> to vector<32x128xbf16>
    %cst_64 = arith.constant dense<0.000000e+00> : vector<32x128xf32>
    %130 = tpu.matmul %129, %31, %cst_64 {dimension_numbers = #tpu.dot_dimension_numbers<[1], [0], [0], [1], [0, 0, 1, 1], [], []>} : vector<32x128xbf16>, vector<128x128xbf16>, vector<32x128xf32> -> vector<32x128xf32>
    %131 = vector.broadcast %33 : vector<1x128xf32> to vector<32x128xf32>
    %132 = arith.addf %130, %131 : vector<32x128xf32>
    %133 = arith.addf %25, %132 : vector<32x128xf32>
    %cst_65 = arith.constant dense<0.000000e+00> : vector<32xf32>
    %134 = vector.multi_reduction <add>, %133, %cst_65 [1] : vector<32x128xf32> to vector<32xf32>
    %135 = vector.shape_cast %134 : vector<32xf32> to vector<32x1xf32>
    %cst_66 = arith.constant 1.280000e+02 : f32
    %136 = vector.broadcast %cst_66 : f32 to vector<32x1xf32>
    %137 = arith.divf %135, %136 : vector<32x1xf32>
    %138 = vector.broadcast %137 : vector<32x1xf32> to vector<32x128xf32>
    %139 = arith.subf %133, %138 : vector<32x128xf32>
    %140 = arith.mulf %139, %139 : vector<32x128xf32>
    %cst_67 = arith.constant dense<0.000000e+00> : vector<32xf32>
    %141 = vector.multi_reduction <add>, %140, %cst_67 [1] : vector<32x128xf32> to vector<32xf32>
    %142 = vector.shape_cast %141 : vector<32xf32> to vector<32x1xf32>
    %cst_68 = arith.constant 1.280000e+02 : f32
    %143 = vector.broadcast %cst_68 : f32 to vector<32x1xf32>
    %144 = arith.divf %142, %143 : vector<32x1xf32>
    %145 = vector.broadcast %137 : vector<32x1xf32> to vector<32x128xf32>
    %146 = arith.subf %133, %145 : vector<32x128xf32>
    %cst_69 = arith.constant 9.99999996E-13 : f32
    %147 = vector.broadcast %cst_69 : f32 to vector<32x1xf32>
    %148 = arith.addf %144, %147 : vector<32x1xf32>
    %149 = math.rsqrt %148 : vector<32x1xf32>
    %150 = vector.broadcast %149 : vector<32x1xf32> to vector<32x128xf32>
    %151 = arith.mulf %146, %150 : vector<32x128xf32>
    %152 = vector.broadcast %35 : vector<1x128xf32> to vector<32x128xf32>
    %153 = arith.mulf %151, %152 : vector<32x128xf32>
    %154 = vector.broadcast %37 : vector<1x128xf32> to vector<32x128xf32>
    %155 = arith.addf %153, %154 : vector<32x128xf32>
    %156 = arith.truncf %155 : vector<32x128xf32> to vector<32x128xbf16>
    %cst_70 = arith.constant dense<0.000000e+00> : vector<32x256xf32>
    %157 = tpu.matmul %156, %39, %cst_70 {dimension_numbers = #tpu.dot_dimension_numbers<[1], [0], [0], [1], [0, 0, 1, 1], [], []>} : vector<32x128xbf16>, vector<128x256xbf16>, vector<32x256xf32> -> vector<32x256xf32>
    %158 = vector.broadcast %41 : vector<1x256xf32> to vector<32x256xf32>
    %159 = arith.addf %157, %158 : vector<32x256xf32>
    %cst_71 = arith.constant 5.000000e-01 : f32
    %160 = vector.broadcast %cst_71 : f32 to vector<32x256xf32>
    %161 = arith.mulf %160, %159 : vector<32x256xf32>
    %cst_72 = arith.constant 4.471500e-02 : f32
    %162 = vector.broadcast %cst_72 : f32 to vector<32x256xf32>
    %163 = arith.mulf %162, %159 : vector<32x256xf32>
    %164 = arith.mulf %163, %159 : vector<32x256xf32>
    %165 = arith.mulf %164, %159 : vector<32x256xf32>
    %166 = arith.addf %159, %165 : vector<32x256xf32>
    %cst_73 = arith.constant 0.797884583 : f32
    %167 = vector.broadcast %cst_73 : f32 to vector<32x256xf32>
    %168 = arith.mulf %167, %166 : vector<32x256xf32>
    %169 = math.tanh %168 : vector<32x256xf32>
    %cst_74 = arith.constant 1.000000e+00 : f32
    %170 = vector.broadcast %cst_74 : f32 to vector<32x256xf32>
    %171 = arith.addf %170, %169 : vector<32x256xf32>
    %172 = arith.mulf %161, %171 : vector<32x256xf32>
    %173 = arith.truncf %172 : vector<32x256xf32> to vector<32x256xbf16>
    %cst_75 = arith.constant dense<0.000000e+00> : vector<32x128xf32>
    %174 = tpu.matmul %173, %43, %cst_75 {dimension_numbers = #tpu.dot_dimension_numbers<[1], [0], [0], [1], [0, 0, 1, 1], [], []>} : vector<32x256xbf16>, vector<256x128xbf16>, vector<32x128xf32> -> vector<32x128xf32>
    %175 = vector.broadcast %45 : vector<1x128xf32> to vector<32x128xf32>
    %176 = arith.addf %174, %175 : vector<32x128xf32>
    %177 = arith.addf %155, %176 : vector<32x128xf32>
    %cst_76 = arith.constant dense<0.000000e+00> : vector<32xf32>
    %178 = vector.multi_reduction <add>, %177, %cst_76 [1] : vector<32x128xf32> to vector<32xf32>
    %179 = vector.shape_cast %178 : vector<32xf32> to vector<32x1xf32>
    %cst_77 = arith.constant 1.280000e+02 : f32
    %180 = vector.broadcast %cst_77 : f32 to vector<32x1xf32>
    %181 = arith.divf %179, %180 : vector<32x1xf32>
    %182 = vector.broadcast %181 : vector<32x1xf32> to vector<32x128xf32>
    %183 = arith.subf %177, %182 : vector<32x128xf32>
    %184 = arith.mulf %183, %183 : vector<32x128xf32>
    %cst_78 = arith.constant dense<0.000000e+00> : vector<32xf32>
    %185 = vector.multi_reduction <add>, %184, %cst_78 [1] : vector<32x128xf32> to vector<32xf32>
    %186 = vector.shape_cast %185 : vector<32xf32> to vector<32x1xf32>
    %cst_79 = arith.constant 1.280000e+02 : f32
    %187 = vector.broadcast %cst_79 : f32 to vector<32x1xf32>
    %188 = arith.divf %186, %187 : vector<32x1xf32>
    %189 = vector.broadcast %181 : vector<32x1xf32> to vector<32x128xf32>
    %190 = arith.subf %177, %189 : vector<32x128xf32>
    %cst_80 = arith.constant 9.99999996E-13 : f32
    %191 = vector.broadcast %cst_80 : f32 to vector<32x1xf32>
    %192 = arith.addf %188, %191 : vector<32x1xf32>
    %193 = math.rsqrt %192 : vector<32x1xf32>
    %194 = vector.broadcast %193 : vector<32x1xf32> to vector<32x128xf32>
    %195 = arith.mulf %190, %194 : vector<32x128xf32>
    %196 = vector.broadcast %47 : vector<1x128xf32> to vector<32x128xf32>
    %197 = arith.mulf %195, %196 : vector<32x128xf32>
    %198 = vector.broadcast %49 : vector<1x128xf32> to vector<32x128xf32>
    %199 = arith.addf %197, %198 : vector<32x128xf32>
    %c1 = arith.constant 1 : index
    %c0_81 = arith.constant 0 : index
    %c0_82 = arith.constant 0 : index
    %200 = vector.load %arg5[%c1, %c0_81, %c0_82] : memref<2x128x384xbf16, #tpu.memory_space<vmem>>, vector<1x128x384xbf16>
    %201 = vector.shape_cast %200 : vector<1x128x384xbf16> to vector<128x384xbf16>
    %c1_83 = arith.constant 1 : index
    %c0_84 = arith.constant 0 : index
    %c0_85 = arith.constant 0 : index
    %202 = vector.load %arg6[%c1_83, %c0_84, %c0_85] : memref<2x1x384xf32, #tpu.memory_space<vmem>>, vector<1x1x384xf32>
    %203 = vector.shape_cast %202 : vector<1x1x384xf32> to vector<1x384xf32>
    %c1_86 = arith.constant 1 : index
    %c0_87 = arith.constant 0 : index
    %c0_88 = arith.constant 0 : index
    %204 = vector.load %arg7[%c1_86, %c0_87, %c0_88] : memref<2x128x128xbf16, #tpu.memory_space<vmem>>, vector<1x128x128xbf16>
    %205 = vector.shape_cast %204 : vector<1x128x128xbf16> to vector<128x128xbf16>
    %c1_89 = arith.constant 1 : index
    %c0_90 = arith.constant 0 : index
    %c0_91 = arith.constant 0 : index
    %206 = vector.load %arg8[%c1_89, %c0_90, %c0_91] : memref<2x1x128xf32, #tpu.memory_space<vmem>>, vector<1x1x128xf32>
    %207 = vector.shape_cast %206 : vector<1x1x128xf32> to vector<1x128xf32>
    %c1_92 = arith.constant 1 : index
    %c0_93 = arith.constant 0 : index
    %c0_94 = arith.constant 0 : index
    %208 = vector.load %arg9[%c1_92, %c0_93, %c0_94] : memref<2x1x128xf32, #tpu.memory_space<vmem>>, vector<1x1x128xf32>
    %209 = vector.shape_cast %208 : vector<1x1x128xf32> to vector<1x128xf32>
    %c1_95 = arith.constant 1 : index
    %c0_96 = arith.constant 0 : index
    %c0_97 = arith.constant 0 : index
    %210 = vector.load %arg10[%c1_95, %c0_96, %c0_97] : memref<2x1x128xf32, #tpu.memory_space<vmem>>, vector<1x1x128xf32>
    %211 = vector.shape_cast %210 : vector<1x1x128xf32> to vector<1x128xf32>
    %c1_98 = arith.constant 1 : index
    %c0_99 = arith.constant 0 : index
    %c0_100 = arith.constant 0 : index
    %212 = vector.load %arg11[%c1_98, %c0_99, %c0_100] : memref<2x128x256xbf16, #tpu.memory_space<vmem>>, vector<1x128x256xbf16>
    %213 = vector.shape_cast %212 : vector<1x128x256xbf16> to vector<128x256xbf16>
    %c1_101 = arith.constant 1 : index
    %c0_102 = arith.constant 0 : index
    %c0_103 = arith.constant 0 : index
    %214 = vector.load %arg12[%c1_101, %c0_102, %c0_103] : memref<2x1x256xf32, #tpu.memory_space<vmem>>, vector<1x1x256xf32>
    %215 = vector.shape_cast %214 : vector<1x1x256xf32> to vector<1x256xf32>
    %c1_104 = arith.constant 1 : index
    %c0_105 = arith.constant 0 : index
    %c0_106 = arith.constant 0 : index
    %216 = vector.load %arg13[%c1_104, %c0_105, %c0_106] : memref<2x256x128xbf16, #tpu.memory_space<vmem>>, vector<1x256x128xbf16>
    %217 = vector.shape_cast %216 : vector<1x256x128xbf16> to vector<256x128xbf16>
    %c1_107 = arith.constant 1 : index
    %c0_108 = arith.constant 0 : index
    %c0_109 = arith.constant 0 : index
    %218 = vector.load %arg14[%c1_107, %c0_108, %c0_109] : memref<2x1x128xf32, #tpu.memory_space<vmem>>, vector<1x1x128xf32>
    %219 = vector.shape_cast %218 : vector<1x1x128xf32> to vector<1x128xf32>
    %c1_110 = arith.constant 1 : index
    %c0_111 = arith.constant 0 : index
    %c0_112 = arith.constant 0 : index
    %220 = vector.load %arg15[%c1_110, %c0_111, %c0_112] : memref<2x1x128xf32, #tpu.memory_space<vmem>>, vector<1x1x128xf32>
    %221 = vector.shape_cast %220 : vector<1x1x128xf32> to vector<1x128xf32>
    %c1_113 = arith.constant 1 : index
    %c0_114 = arith.constant 0 : index
    %c0_115 = arith.constant 0 : index
    %222 = vector.load %arg16[%c1_113, %c0_114, %c0_115] : memref<2x1x128xf32, #tpu.memory_space<vmem>>, vector<1x1x128xf32>
    %223 = vector.shape_cast %222 : vector<1x1x128xf32> to vector<1x128xf32>
    %224 = arith.truncf %199 : vector<32x128xf32> to vector<32x128xbf16>
    %cst_116 = arith.constant dense<0.000000e+00> : vector<32x384xf32>
    %225 = tpu.matmul %224, %201, %cst_116 {dimension_numbers = #tpu.dot_dimension_numbers<[1], [0], [0], [1], [0, 0, 1, 1], [], []>} : vector<32x128xbf16>, vector<128x384xbf16>, vector<32x384xf32> -> vector<32x384xf32>
    %226 = vector.broadcast %203 : vector<1x384xf32> to vector<32x384xf32>
    %227 = arith.addf %225, %226 : vector<32x384xf32>
    %228 = vector.extract_strided_slice %227 {offsets = [0, 0], sizes = [32, 128], strides = [1, 1]} : vector<32x384xf32> to vector<32x128xf32>
    %229 = vector.extract_strided_slice %227 {offsets = [0, 128], sizes = [32, 128], strides = [1, 1]} : vector<32x384xf32> to vector<32x128xf32>
    %230 = vector.extract_strided_slice %227 {offsets = [0, 256], sizes = [32, 128], strides = [1, 1]} : vector<32x384xf32> to vector<32x128xf32>
    %231 = arith.truncf %228 : vector<32x128xf32> to vector<32x128xbf16>
    %232 = arith.truncf %229 : vector<32x128xf32> to vector<32x128xbf16>
    %233 = arith.truncf %230 : vector<32x128xf32> to vector<32x128xbf16>
    %234 = vector.extract_strided_slice %231 {offsets = [0, 0], sizes = [32, 32], strides = [1, 1]} : vector<32x128xbf16> to vector<32x32xbf16>
    %235 = vector.extract_strided_slice %232 {offsets = [0, 0], sizes = [32, 32], strides = [1, 1]} : vector<32x128xbf16> to vector<32x32xbf16>
    %cst_117 = arith.constant dense<0.000000e+00> : vector<32x32xf32>
    %236 = tpu.matmul %234, %235, %cst_117 {dimension_numbers = #tpu.dot_dimension_numbers<[1], [1], [0], [0], [0, 0, 1, 0], [], []>} : vector<32x32xbf16>, vector<32x32xbf16>, vector<32x32xf32> -> vector<32x32xf32>
    %237 = arith.addf %236, %0 : vector<32x32xf32>
    %cst_118 = arith.constant dense<0xFF800000> : vector<32xf32>
    %238 = vector.multi_reduction <maximumf>, %237, %cst_118 [1] : vector<32x32xf32> to vector<32xf32>
    %239 = vector.shape_cast %238 : vector<32xf32> to vector<32x1xf32>
    %240 = vector.broadcast %239 : vector<32x1xf32> to vector<32x32xf32>
    %241 = arith.subf %237, %240 : vector<32x32xf32>
    %242 = math.exp %241 : vector<32x32xf32>
    %cst_119 = arith.constant dense<0.000000e+00> : vector<32xf32>
    %243 = vector.multi_reduction <add>, %242, %cst_119 [1] : vector<32x32xf32> to vector<32xf32>
    %244 = vector.shape_cast %243 : vector<32xf32> to vector<32x1xf32>
    %245 = tpu.reciprocal %244 {approx = true} : vector<32x1xf32> -> vector<32x1xf32>
    %246 = vector.broadcast %245 : vector<32x1xf32> to vector<32x32xf32>
    %247 = arith.mulf %242, %246 : vector<32x32xf32>
    %248 = arith.truncf %247 : vector<32x32xf32> to vector<32x32xbf16>
    %249 = vector.extract_strided_slice %233 {offsets = [0, 0], sizes = [32, 32], strides = [1, 1]} : vector<32x128xbf16> to vector<32x32xbf16>
    %cst_120 = arith.constant dense<0.000000e+00> : vector<32x32xf32>
    %250 = tpu.matmul %248, %249, %cst_120 {dimension_numbers = #tpu.dot_dimension_numbers<[1], [0], [0], [1], [0, 0, 1, 1], [], []>} : vector<32x32xbf16>, vector<32x32xbf16>, vector<32x32xf32> -> vector<32x32xf32>
    %251 = vector.extract_strided_slice %231 {offsets = [0, 32], sizes = [32, 32], strides = [1, 1]} : vector<32x128xbf16> to vector<32x32xbf16>
    %252 = vector.extract_strided_slice %232 {offsets = [0, 32], sizes = [32, 32], strides = [1, 1]} : vector<32x128xbf16> to vector<32x32xbf16>
    %cst_121 = arith.constant dense<0.000000e+00> : vector<32x32xf32>
    %253 = tpu.matmul %251, %252, %cst_121 {dimension_numbers = #tpu.dot_dimension_numbers<[1], [1], [0], [0], [0, 0, 1, 0], [], []>} : vector<32x32xbf16>, vector<32x32xbf16>, vector<32x32xf32> -> vector<32x32xf32>
    %254 = arith.addf %253, %0 : vector<32x32xf32>
    %cst_122 = arith.constant dense<0xFF800000> : vector<32xf32>
    %255 = vector.multi_reduction <maximumf>, %254, %cst_122 [1] : vector<32x32xf32> to vector<32xf32>
    %256 = vector.shape_cast %255 : vector<32xf32> to vector<32x1xf32>
    %257 = vector.broadcast %256 : vector<32x1xf32> to vector<32x32xf32>
    %258 = arith.subf %254, %257 : vector<32x32xf32>
    %259 = math.exp %258 : vector<32x32xf32>
    %cst_123 = arith.constant dense<0.000000e+00> : vector<32xf32>
    %260 = vector.multi_reduction <add>, %259, %cst_123 [1] : vector<32x32xf32> to vector<32xf32>
    %261 = vector.shape_cast %260 : vector<32xf32> to vector<32x1xf32>
    %262 = tpu.reciprocal %261 {approx = true} : vector<32x1xf32> -> vector<32x1xf32>
    %263 = vector.broadcast %262 : vector<32x1xf32> to vector<32x32xf32>
    %264 = arith.mulf %259, %263 : vector<32x32xf32>
    %265 = arith.truncf %264 : vector<32x32xf32> to vector<32x32xbf16>
    %266 = vector.extract_strided_slice %233 {offsets = [0, 32], sizes = [32, 32], strides = [1, 1]} : vector<32x128xbf16> to vector<32x32xbf16>
    %cst_124 = arith.constant dense<0.000000e+00> : vector<32x32xf32>
    %267 = tpu.matmul %265, %266, %cst_124 {dimension_numbers = #tpu.dot_dimension_numbers<[1], [0], [0], [1], [0, 0, 1, 1], [], []>} : vector<32x32xbf16>, vector<32x32xbf16>, vector<32x32xf32> -> vector<32x32xf32>
    %268 = vector.extract_strided_slice %231 {offsets = [0, 64], sizes = [32, 32], strides = [1, 1]} : vector<32x128xbf16> to vector<32x32xbf16>
    %269 = vector.extract_strided_slice %232 {offsets = [0, 64], sizes = [32, 32], strides = [1, 1]} : vector<32x128xbf16> to vector<32x32xbf16>
    %cst_125 = arith.constant dense<0.000000e+00> : vector<32x32xf32>
    %270 = tpu.matmul %268, %269, %cst_125 {dimension_numbers = #tpu.dot_dimension_numbers<[1], [1], [0], [0], [0, 0, 1, 0], [], []>} : vector<32x32xbf16>, vector<32x32xbf16>, vector<32x32xf32> -> vector<32x32xf32>
    %271 = arith.addf %270, %0 : vector<32x32xf32>
    %cst_126 = arith.constant dense<0xFF800000> : vector<32xf32>
    %272 = vector.multi_reduction <maximumf>, %271, %cst_126 [1] : vector<32x32xf32> to vector<32xf32>
    %273 = vector.shape_cast %272 : vector<32xf32> to vector<32x1xf32>
    %274 = vector.broadcast %273 : vector<32x1xf32> to vector<32x32xf32>
    %275 = arith.subf %271, %274 : vector<32x32xf32>
    %276 = math.exp %275 : vector<32x32xf32>
    %cst_127 = arith.constant dense<0.000000e+00> : vector<32xf32>
    %277 = vector.multi_reduction <add>, %276, %cst_127 [1] : vector<32x32xf32> to vector<32xf32>
    %278 = vector.shape_cast %277 : vector<32xf32> to vector<32x1xf32>
    %279 = tpu.reciprocal %278 {approx = true} : vector<32x1xf32> -> vector<32x1xf32>
    %280 = vector.broadcast %279 : vector<32x1xf32> to vector<32x32xf32>
    %281 = arith.mulf %276, %280 : vector<32x32xf32>
    %282 = arith.truncf %281 : vector<32x32xf32> to vector<32x32xbf16>
    %283 = vector.extract_strided_slice %233 {offsets = [0, 64], sizes = [32, 32], strides = [1, 1]} : vector<32x128xbf16> to vector<32x32xbf16>
    %cst_128 = arith.constant dense<0.000000e+00> : vector<32x32xf32>
    %284 = tpu.matmul %282, %283, %cst_128 {dimension_numbers = #tpu.dot_dimension_numbers<[1], [0], [0], [1], [0, 0, 1, 1], [], []>} : vector<32x32xbf16>, vector<32x32xbf16>, vector<32x32xf32> -> vector<32x32xf32>
    %285 = vector.extract_strided_slice %231 {offsets = [0, 96], sizes = [32, 32], strides = [1, 1]} : vector<32x128xbf16> to vector<32x32xbf16>
    %286 = vector.extract_strided_slice %232 {offsets = [0, 96], sizes = [32, 32], strides = [1, 1]} : vector<32x128xbf16> to vector<32x32xbf16>
    %cst_129 = arith.constant dense<0.000000e+00> : vector<32x32xf32>
    %287 = tpu.matmul %285, %286, %cst_129 {dimension_numbers = #tpu.dot_dimension_numbers<[1], [1], [0], [0], [0, 0, 1, 0], [], []>} : vector<32x32xbf16>, vector<32x32xbf16>, vector<32x32xf32> -> vector<32x32xf32>
    %288 = arith.addf %287, %0 : vector<32x32xf32>
    %cst_130 = arith.constant dense<0xFF800000> : vector<32xf32>
    %289 = vector.multi_reduction <maximumf>, %288, %cst_130 [1] : vector<32x32xf32> to vector<32xf32>
    %290 = vector.shape_cast %289 : vector<32xf32> to vector<32x1xf32>
    %291 = vector.broadcast %290 : vector<32x1xf32> to vector<32x32xf32>
    %292 = arith.subf %288, %291 : vector<32x32xf32>
    %293 = math.exp %292 : vector<32x32xf32>
    %cst_131 = arith.constant dense<0.000000e+00> : vector<32xf32>
    %294 = vector.multi_reduction <add>, %293, %cst_131 [1] : vector<32x32xf32> to vector<32xf32>
    %295 = vector.shape_cast %294 : vector<32xf32> to vector<32x1xf32>
    %296 = tpu.reciprocal %295 {approx = true} : vector<32x1xf32> -> vector<32x1xf32>
    %297 = vector.broadcast %296 : vector<32x1xf32> to vector<32x32xf32>
    %298 = arith.mulf %293, %297 : vector<32x32xf32>
    %299 = arith.truncf %298 : vector<32x32xf32> to vector<32x32xbf16>
    %300 = vector.extract_strided_slice %233 {offsets = [0, 96], sizes = [32, 32], strides = [1, 1]} : vector<32x128xbf16> to vector<32x32xbf16>
    %cst_132 = arith.constant dense<0.000000e+00> : vector<32x32xf32>
    %301 = tpu.matmul %299, %300, %cst_132 {dimension_numbers = #tpu.dot_dimension_numbers<[1], [0], [0], [1], [0, 0, 1, 1], [], []>} : vector<32x32xbf16>, vector<32x32xbf16>, vector<32x32xf32> -> vector<32x32xf32>
    %302 = tpu.concatenate %250, %267, %284, %301 in 1 : vector<32x32xf32>, vector<32x32xf32>, vector<32x32xf32>, vector<32x32xf32> -> vector<32x128xf32>
    %303 = arith.truncf %302 : vector<32x128xf32> to vector<32x128xbf16>
    %cst_133 = arith.constant dense<0.000000e+00> : vector<32x128xf32>
    %304 = tpu.matmul %303, %205, %cst_133 {dimension_numbers = #tpu.dot_dimension_numbers<[1], [0], [0], [1], [0, 0, 1, 1], [], []>} : vector<32x128xbf16>, vector<128x128xbf16>, vector<32x128xf32> -> vector<32x128xf32>
    %305 = vector.broadcast %207 : vector<1x128xf32> to vector<32x128xf32>
    %306 = arith.addf %304, %305 : vector<32x128xf32>
    %307 = arith.addf %199, %306 : vector<32x128xf32>
    %cst_134 = arith.constant dense<0.000000e+00> : vector<32xf32>
    %308 = vector.multi_reduction <add>, %307, %cst_134 [1] : vector<32x128xf32> to vector<32xf32>
    %309 = vector.shape_cast %308 : vector<32xf32> to vector<32x1xf32>
    %cst_135 = arith.constant 1.280000e+02 : f32
    %310 = vector.broadcast %cst_135 : f32 to vector<32x1xf32>
    %311 = arith.divf %309, %310 : vector<32x1xf32>
    %312 = vector.broadcast %311 : vector<32x1xf32> to vector<32x128xf32>
    %313 = arith.subf %307, %312 : vector<32x128xf32>
    %314 = arith.mulf %313, %313 : vector<32x128xf32>
    %cst_136 = arith.constant dense<0.000000e+00> : vector<32xf32>
    %315 = vector.multi_reduction <add>, %314, %cst_136 [1] : vector<32x128xf32> to vector<32xf32>
    %316 = vector.shape_cast %315 : vector<32xf32> to vector<32x1xf32>
    %cst_137 = arith.constant 1.280000e+02 : f32
    %317 = vector.broadcast %cst_137 : f32 to vector<32x1xf32>
    %318 = arith.divf %316, %317 : vector<32x1xf32>
    %319 = vector.broadcast %311 : vector<32x1xf32> to vector<32x128xf32>
    %320 = arith.subf %307, %319 : vector<32x128xf32>
    %cst_138 = arith.constant 9.99999996E-13 : f32
    %321 = vector.broadcast %cst_138 : f32 to vector<32x1xf32>
    %322 = arith.addf %318, %321 : vector<32x1xf32>
    %323 = math.rsqrt %322 : vector<32x1xf32>
    %324 = vector.broadcast %323 : vector<32x1xf32> to vector<32x128xf32>
    %325 = arith.mulf %320, %324 : vector<32x128xf32>
    %326 = vector.broadcast %209 : vector<1x128xf32> to vector<32x128xf32>
    %327 = arith.mulf %325, %326 : vector<32x128xf32>
    %328 = vector.broadcast %211 : vector<1x128xf32> to vector<32x128xf32>
    %329 = arith.addf %327, %328 : vector<32x128xf32>
    %330 = arith.truncf %329 : vector<32x128xf32> to vector<32x128xbf16>
    %cst_139 = arith.constant dense<0.000000e+00> : vector<32x256xf32>
    %331 = tpu.matmul %330, %213, %cst_139 {dimension_numbers = #tpu.dot_dimension_numbers<[1], [0], [0], [1], [0, 0, 1, 1], [], []>} : vector<32x128xbf16>, vector<128x256xbf16>, vector<32x256xf32> -> vector<32x256xf32>
    %332 = vector.broadcast %215 : vector<1x256xf32> to vector<32x256xf32>
    %333 = arith.addf %331, %332 : vector<32x256xf32>
    %cst_140 = arith.constant 5.000000e-01 : f32
    %334 = vector.broadcast %cst_140 : f32 to vector<32x256xf32>
    %335 = arith.mulf %334, %333 : vector<32x256xf32>
    %cst_141 = arith.constant 4.471500e-02 : f32
    %336 = vector.broadcast %cst_141 : f32 to vector<32x256xf32>
    %337 = arith.mulf %336, %333 : vector<32x256xf32>
    %338 = arith.mulf %337, %333 : vector<32x256xf32>
    %339 = arith.mulf %338, %333 : vector<32x256xf32>
    %340 = arith.addf %333, %339 : vector<32x256xf32>
    %cst_142 = arith.constant 0.797884583 : f32
    %341 = vector.broadcast %cst_142 : f32 to vector<32x256xf32>
    %342 = arith.mulf %341, %340 : vector<32x256xf32>
    %343 = math.tanh %342 : vector<32x256xf32>
    %cst_143 = arith.constant 1.000000e+00 : f32
    %344 = vector.broadcast %cst_143 : f32 to vector<32x256xf32>
    %345 = arith.addf %344, %343 : vector<32x256xf32>
    %346 = arith.mulf %335, %345 : vector<32x256xf32>
    %347 = arith.truncf %346 : vector<32x256xf32> to vector<32x256xbf16>
    %cst_144 = arith.constant dense<0.000000e+00> : vector<32x128xf32>
    %348 = tpu.matmul %347, %217, %cst_144 {dimension_numbers = #tpu.dot_dimension_numbers<[1], [0], [0], [1], [0, 0, 1, 1], [], []>} : vector<32x256xbf16>, vector<256x128xbf16>, vector<32x128xf32> -> vector<32x128xf32>
    %349 = vector.broadcast %219 : vector<1x128xf32> to vector<32x128xf32>
    %350 = arith.addf %348, %349 : vector<32x128xf32>
    %351 = arith.addf %329, %350 : vector<32x128xf32>
    %cst_145 = arith.constant dense<0.000000e+00> : vector<32xf32>
    %352 = vector.multi_reduction <add>, %351, %cst_145 [1] : vector<32x128xf32> to vector<32xf32>
    %353 = vector.shape_cast %352 : vector<32xf32> to vector<32x1xf32>
    %cst_146 = arith.constant 1.280000e+02 : f32
    %354 = vector.broadcast %cst_146 : f32 to vector<32x1xf32>
    %355 = arith.divf %353, %354 : vector<32x1xf32>
    %356 = vector.broadcast %355 : vector<32x1xf32> to vector<32x128xf32>
    %357 = arith.subf %351, %356 : vector<32x128xf32>
    %358 = arith.mulf %357, %357 : vector<32x128xf32>
    %cst_147 = arith.constant dense<0.000000e+00> : vector<32xf32>
    %359 = vector.multi_reduction <add>, %358, %cst_147 [1] : vector<32x128xf32> to vector<32xf32>
    %360 = vector.shape_cast %359 : vector<32xf32> to vector<32x1xf32>
    %cst_148 = arith.constant 1.280000e+02 : f32
    %361 = vector.broadcast %cst_148 : f32 to vector<32x1xf32>
    %362 = arith.divf %360, %361 : vector<32x1xf32>
    %363 = vector.broadcast %355 : vector<32x1xf32> to vector<32x128xf32>
    %364 = arith.subf %351, %363 : vector<32x128xf32>
    %cst_149 = arith.constant 9.99999996E-13 : f32
    %365 = vector.broadcast %cst_149 : f32 to vector<32x1xf32>
    %366 = arith.addf %362, %365 : vector<32x1xf32>
    %367 = math.rsqrt %366 : vector<32x1xf32>
    %368 = vector.broadcast %367 : vector<32x1xf32> to vector<32x128xf32>
    %369 = arith.mulf %364, %368 : vector<32x128xf32>
    %370 = vector.broadcast %221 : vector<1x128xf32> to vector<32x128xf32>
    %371 = arith.mulf %369, %370 : vector<32x128xf32>
    %372 = vector.broadcast %223 : vector<1x128xf32> to vector<32x128xf32>
    %373 = arith.addf %371, %372 : vector<32x128xf32>
    %c0_150 = arith.constant 0 : index
    %c0_151 = arith.constant 0 : index
    %374 = vector.load %arg17[%c0_150, %c0_151] : memref<128x128xbf16, #tpu.memory_space<vmem>>, vector<128x128xbf16>
    %375 = arith.truncf %373 : vector<32x128xf32> to vector<32x128xbf16>
    %cst_152 = arith.constant dense<0.000000e+00> : vector<32x128xf32>
    %376 = tpu.matmul %375, %374, %cst_152 {dimension_numbers = #tpu.dot_dimension_numbers<[1], [0], [0], [1], [0, 0, 1, 1], [], []>} : vector<32x128xbf16>, vector<128x128xbf16>, vector<32x128xf32> -> vector<32x128xf32>
    %c0_153 = arith.constant 0 : index
    %c0_154 = arith.constant 0 : index
    %377 = vector.load %arg18[%c0_153, %c0_154] : memref<1x128xf32, #tpu.memory_space<vmem>>, vector<1x128xf32>
    %378 = vector.broadcast %377 : vector<1x128xf32> to vector<32x128xf32>
    %379 = arith.addf %376, %378 : vector<32x128xf32>
    %cst_155 = arith.constant 0.000000e+00 : f32
    %380 = vector.broadcast %cst_155 : f32 to vector<32x128xf32>
    %381 = arith.maximumf %379, %380 : vector<32x128xf32>
    %c0_156 = arith.constant 0 : index
    %c0_157 = arith.constant 0 : index
    %382 = vector.load %arg19[%c0_156, %c0_157] : memref<32x128xf32, #tpu.memory_space<vmem>>, vector<32x128xf32>
    %383 = arith.addf %381, %382 : vector<32x128xf32>
    %c0_158 = arith.constant 0 : index
    %c0_159 = arith.constant 0 : index
    %384 = vector.load %arg20[%c0_158, %c0_159] : memref<1x128xf32, #tpu.memory_space<vmem>>, vector<1x128xf32>
    %c0_160 = arith.constant 0 : index
    %c0_161 = arith.constant 0 : index
    %385 = vector.load %arg21[%c0_160, %c0_161] : memref<1x128xf32, #tpu.memory_space<vmem>>, vector<1x128xf32>
    %cst_162 = arith.constant dense<0.000000e+00> : vector<32xf32>
    %386 = vector.multi_reduction <add>, %383, %cst_162 [1] : vector<32x128xf32> to vector<32xf32>
    %387 = vector.shape_cast %386 : vector<32xf32> to vector<32x1xf32>
    %cst_163 = arith.constant 1.280000e+02 : f32
    %388 = vector.broadcast %cst_163 : f32 to vector<32x1xf32>
    %389 = arith.divf %387, %388 : vector<32x1xf32>
    %390 = vector.broadcast %389 : vector<32x1xf32> to vector<32x128xf32>
    %391 = arith.subf %383, %390 : vector<32x128xf32>
    %392 = arith.mulf %391, %391 : vector<32x128xf32>
    %cst_164 = arith.constant dense<0.000000e+00> : vector<32xf32>
    %393 = vector.multi_reduction <add>, %392, %cst_164 [1] : vector<32x128xf32> to vector<32xf32>
    %394 = vector.shape_cast %393 : vector<32xf32> to vector<32x1xf32>
    %cst_165 = arith.constant 1.280000e+02 : f32
    %395 = vector.broadcast %cst_165 : f32 to vector<32x1xf32>
    %396 = arith.divf %394, %395 : vector<32x1xf32>
    %397 = vector.broadcast %389 : vector<32x1xf32> to vector<32x128xf32>
    %398 = arith.subf %383, %397 : vector<32x128xf32>
    %cst_166 = arith.constant 9.99999974E-6 : f32
    %399 = vector.broadcast %cst_166 : f32 to vector<32x1xf32>
    %400 = arith.addf %396, %399 : vector<32x1xf32>
    %401 = math.rsqrt %400 : vector<32x1xf32>
    %402 = vector.broadcast %401 : vector<32x1xf32> to vector<32x128xf32>
    %403 = arith.mulf %398, %402 : vector<32x128xf32>
    %404 = vector.broadcast %384 : vector<1x128xf32> to vector<32x128xf32>
    %405 = arith.mulf %403, %404 : vector<32x128xf32>
    %406 = vector.broadcast %385 : vector<1x128xf32> to vector<32x128xf32>
    %407 = arith.addf %405, %406 : vector<32x128xf32>
    %c0_167 = arith.constant 0 : index
    %c0_168 = arith.constant 0 : index
    %c0_169 = arith.constant 0 : index
    %408 = vector.load %arg22[%c0_167, %c0_168, %c0_169] : memref<1x128x384xbf16, #tpu.memory_space<vmem>>, vector<1x128x384xbf16>
    %409 = vector.shape_cast %408 : vector<1x128x384xbf16> to vector<128x384xbf16>
    %c0_170 = arith.constant 0 : index
    %c0_171 = arith.constant 0 : index
    %c0_172 = arith.constant 0 : index
    %410 = vector.load %arg23[%c0_170, %c0_171, %c0_172] : memref<1x1x384xf32, #tpu.memory_space<vmem>>, vector<1x1x384xf32>
    %411 = vector.shape_cast %410 : vector<1x1x384xf32> to vector<1x384xf32>
    %c0_173 = arith.constant 0 : index
    %c0_174 = arith.constant 0 : index
    %c0_175 = arith.constant 0 : index
    %412 = vector.load %arg24[%c0_173, %c0_174, %c0_175] : memref<1x128x128xbf16, #tpu.memory_space<vmem>>, vector<1x128x128xbf16>
    %413 = vector.shape_cast %412 : vector<1x128x128xbf16> to vector<128x128xbf16>
    %c0_176 = arith.constant 0 : index
    %c0_177 = arith.constant 0 : index
    %c0_178 = arith.constant 0 : index
    %414 = vector.load %arg25[%c0_176, %c0_177, %c0_178] : memref<1x1x128xf32, #tpu.memory_space<vmem>>, vector<1x1x128xf32>
    %415 = vector.shape_cast %414 : vector<1x1x128xf32> to vector<1x128xf32>
    %c0_179 = arith.constant 0 : index
    %c0_180 = arith.constant 0 : index
    %c0_181 = arith.constant 0 : index
    %416 = vector.load %arg26[%c0_179, %c0_180, %c0_181] : memref<1x1x128xf32, #tpu.memory_space<vmem>>, vector<1x1x128xf32>
    %417 = vector.shape_cast %416 : vector<1x1x128xf32> to vector<1x128xf32>
    %c0_182 = arith.constant 0 : index
    %c0_183 = arith.constant 0 : index
    %c0_184 = arith.constant 0 : index
    %418 = vector.load %arg27[%c0_182, %c0_183, %c0_184] : memref<1x1x128xf32, #tpu.memory_space<vmem>>, vector<1x1x128xf32>
    %419 = vector.shape_cast %418 : vector<1x1x128xf32> to vector<1x128xf32>
    %c0_185 = arith.constant 0 : index
    %c0_186 = arith.constant 0 : index
    %c0_187 = arith.constant 0 : index
    %420 = vector.load %arg28[%c0_185, %c0_186, %c0_187] : memref<1x128x256xbf16, #tpu.memory_space<vmem>>, vector<1x128x256xbf16>
    %421 = vector.shape_cast %420 : vector<1x128x256xbf16> to vector<128x256xbf16>
    %c0_188 = arith.constant 0 : index
    %c0_189 = arith.constant 0 : index
    %c0_190 = arith.constant 0 : index
    %422 = vector.load %arg29[%c0_188, %c0_189, %c0_190] : memref<1x1x256xf32, #tpu.memory_space<vmem>>, vector<1x1x256xf32>
    %423 = vector.shape_cast %422 : vector<1x1x256xf32> to vector<1x256xf32>
    %c0_191 = arith.constant 0 : index
    %c0_192 = arith.constant 0 : index
    %c0_193 = arith.constant 0 : index
    %424 = vector.load %arg30[%c0_191, %c0_192, %c0_193] : memref<1x256x128xbf16, #tpu.memory_space<vmem>>, vector<1x256x128xbf16>
    %425 = vector.shape_cast %424 : vector<1x256x128xbf16> to vector<256x128xbf16>
    %c0_194 = arith.constant 0 : index
    %c0_195 = arith.constant 0 : index
    %c0_196 = arith.constant 0 : index
    %426 = vector.load %arg31[%c0_194, %c0_195, %c0_196] : memref<1x1x128xf32, #tpu.memory_space<vmem>>, vector<1x1x128xf32>
    %427 = vector.shape_cast %426 : vector<1x1x128xf32> to vector<1x128xf32>
    %c0_197 = arith.constant 0 : index
    %c0_198 = arith.constant 0 : index
    %c0_199 = arith.constant 0 : index
    %428 = vector.load %arg32[%c0_197, %c0_198, %c0_199] : memref<1x1x128xf32, #tpu.memory_space<vmem>>, vector<1x1x128xf32>
    %429 = vector.shape_cast %428 : vector<1x1x128xf32> to vector<1x128xf32>
    %c0_200 = arith.constant 0 : index
    %c0_201 = arith.constant 0 : index
    %c0_202 = arith.constant 0 : index
    %430 = vector.load %arg33[%c0_200, %c0_201, %c0_202] : memref<1x1x128xf32, #tpu.memory_space<vmem>>, vector<1x1x128xf32>
    %431 = vector.shape_cast %430 : vector<1x1x128xf32> to vector<1x128xf32>
    %432 = arith.truncf %407 : vector<32x128xf32> to vector<32x128xbf16>
    %cst_203 = arith.constant dense<0.000000e+00> : vector<32x384xf32>
    %433 = tpu.matmul %432, %409, %cst_203 {dimension_numbers = #tpu.dot_dimension_numbers<[1], [0], [0], [1], [0, 0, 1, 1], [], []>} : vector<32x128xbf16>, vector<128x384xbf16>, vector<32x384xf32> -> vector<32x384xf32>
    %434 = vector.broadcast %411 : vector<1x384xf32> to vector<32x384xf32>
    %435 = arith.addf %433, %434 : vector<32x384xf32>
    %436 = vector.extract_strided_slice %435 {offsets = [0, 0], sizes = [32, 128], strides = [1, 1]} : vector<32x384xf32> to vector<32x128xf32>
    %437 = vector.extract_strided_slice %435 {offsets = [0, 128], sizes = [32, 128], strides = [1, 1]} : vector<32x384xf32> to vector<32x128xf32>
    %438 = vector.extract_strided_slice %435 {offsets = [0, 256], sizes = [32, 128], strides = [1, 1]} : vector<32x384xf32> to vector<32x128xf32>
    %439 = arith.truncf %436 : vector<32x128xf32> to vector<32x128xbf16>
    %440 = arith.truncf %437 : vector<32x128xf32> to vector<32x128xbf16>
    %441 = arith.truncf %438 : vector<32x128xf32> to vector<32x128xbf16>
    %442 = vector.extract_strided_slice %439 {offsets = [0, 0], sizes = [32, 32], strides = [1, 1]} : vector<32x128xbf16> to vector<32x32xbf16>
    %443 = vector.extract_strided_slice %440 {offsets = [0, 0], sizes = [32, 32], strides = [1, 1]} : vector<32x128xbf16> to vector<32x32xbf16>
    %cst_204 = arith.constant dense<0.000000e+00> : vector<32x32xf32>
    %444 = tpu.matmul %442, %443, %cst_204 {dimension_numbers = #tpu.dot_dimension_numbers<[1], [1], [0], [0], [0, 0, 1, 0], [], []>} : vector<32x32xbf16>, vector<32x32xbf16>, vector<32x32xf32> -> vector<32x32xf32>
    %445 = arith.addf %444, %0 : vector<32x32xf32>
    %cst_205 = arith.constant dense<0xFF800000> : vector<32xf32>
    %446 = vector.multi_reduction <maximumf>, %445, %cst_205 [1] : vector<32x32xf32> to vector<32xf32>
    %447 = vector.shape_cast %446 : vector<32xf32> to vector<32x1xf32>
    %448 = vector.broadcast %447 : vector<32x1xf32> to vector<32x32xf32>
    %449 = arith.subf %445, %448 : vector<32x32xf32>
    %450 = math.exp %449 : vector<32x32xf32>
    %cst_206 = arith.constant dense<0.000000e+00> : vector<32xf32>
    %451 = vector.multi_reduction <add>, %450, %cst_206 [1] : vector<32x32xf32> to vector<32xf32>
    %452 = vector.shape_cast %451 : vector<32xf32> to vector<32x1xf32>
    %453 = tpu.reciprocal %452 {approx = true} : vector<32x1xf32> -> vector<32x1xf32>
    %454 = vector.broadcast %453 : vector<32x1xf32> to vector<32x32xf32>
    %455 = arith.mulf %450, %454 : vector<32x32xf32>
    %456 = arith.truncf %455 : vector<32x32xf32> to vector<32x32xbf16>
    %457 = vector.extract_strided_slice %441 {offsets = [0, 0], sizes = [32, 32], strides = [1, 1]} : vector<32x128xbf16> to vector<32x32xbf16>
    %cst_207 = arith.constant dense<0.000000e+00> : vector<32x32xf32>
    %458 = tpu.matmul %456, %457, %cst_207 {dimension_numbers = #tpu.dot_dimension_numbers<[1], [0], [0], [1], [0, 0, 1, 1], [], []>} : vector<32x32xbf16>, vector<32x32xbf16>, vector<32x32xf32> -> vector<32x32xf32>
    %459 = vector.extract_strided_slice %439 {offsets = [0, 32], sizes = [32, 32], strides = [1, 1]} : vector<32x128xbf16> to vector<32x32xbf16>
    %460 = vector.extract_strided_slice %440 {offsets = [0, 32], sizes = [32, 32], strides = [1, 1]} : vector<32x128xbf16> to vector<32x32xbf16>
    %cst_208 = arith.constant dense<0.000000e+00> : vector<32x32xf32>
    %461 = tpu.matmul %459, %460, %cst_208 {dimension_numbers = #tpu.dot_dimension_numbers<[1], [1], [0], [0], [0, 0, 1, 0], [], []>} : vector<32x32xbf16>, vector<32x32xbf16>, vector<32x32xf32> -> vector<32x32xf32>
    %462 = arith.addf %461, %0 : vector<32x32xf32>
    %cst_209 = arith.constant dense<0xFF800000> : vector<32xf32>
    %463 = vector.multi_reduction <maximumf>, %462, %cst_209 [1] : vector<32x32xf32> to vector<32xf32>
    %464 = vector.shape_cast %463 : vector<32xf32> to vector<32x1xf32>
    %465 = vector.broadcast %464 : vector<32x1xf32> to vector<32x32xf32>
    %466 = arith.subf %462, %465 : vector<32x32xf32>
    %467 = math.exp %466 : vector<32x32xf32>
    %cst_210 = arith.constant dense<0.000000e+00> : vector<32xf32>
    %468 = vector.multi_reduction <add>, %467, %cst_210 [1] : vector<32x32xf32> to vector<32xf32>
    %469 = vector.shape_cast %468 : vector<32xf32> to vector<32x1xf32>
    %470 = tpu.reciprocal %469 {approx = true} : vector<32x1xf32> -> vector<32x1xf32>
    %471 = vector.broadcast %470 : vector<32x1xf32> to vector<32x32xf32>
    %472 = arith.mulf %467, %471 : vector<32x32xf32>
    %473 = arith.truncf %472 : vector<32x32xf32> to vector<32x32xbf16>
    %474 = vector.extract_strided_slice %441 {offsets = [0, 32], sizes = [32, 32], strides = [1, 1]} : vector<32x128xbf16> to vector<32x32xbf16>
    %cst_211 = arith.constant dense<0.000000e+00> : vector<32x32xf32>
    %475 = tpu.matmul %473, %474, %cst_211 {dimension_numbers = #tpu.dot_dimension_numbers<[1], [0], [0], [1], [0, 0, 1, 1], [], []>} : vector<32x32xbf16>, vector<32x32xbf16>, vector<32x32xf32> -> vector<32x32xf32>
    %476 = vector.extract_strided_slice %439 {offsets = [0, 64], sizes = [32, 32], strides = [1, 1]} : vector<32x128xbf16> to vector<32x32xbf16>
    %477 = vector.extract_strided_slice %440 {offsets = [0, 64], sizes = [32, 32], strides = [1, 1]} : vector<32x128xbf16> to vector<32x32xbf16>
    %cst_212 = arith.constant dense<0.000000e+00> : vector<32x32xf32>
    %478 = tpu.matmul %476, %477, %cst_212 {dimension_numbers = #tpu.dot_dimension_numbers<[1], [1], [0], [0], [0, 0, 1, 0], [], []>} : vector<32x32xbf16>, vector<32x32xbf16>, vector<32x32xf32> -> vector<32x32xf32>
    %479 = arith.addf %478, %0 : vector<32x32xf32>
    %cst_213 = arith.constant dense<0xFF800000> : vector<32xf32>
    %480 = vector.multi_reduction <maximumf>, %479, %cst_213 [1] : vector<32x32xf32> to vector<32xf32>
    %481 = vector.shape_cast %480 : vector<32xf32> to vector<32x1xf32>
    %482 = vector.broadcast %481 : vector<32x1xf32> to vector<32x32xf32>
    %483 = arith.subf %479, %482 : vector<32x32xf32>
    %484 = math.exp %483 : vector<32x32xf32>
    %cst_214 = arith.constant dense<0.000000e+00> : vector<32xf32>
    %485 = vector.multi_reduction <add>, %484, %cst_214 [1] : vector<32x32xf32> to vector<32xf32>
    %486 = vector.shape_cast %485 : vector<32xf32> to vector<32x1xf32>
    %487 = tpu.reciprocal %486 {approx = true} : vector<32x1xf32> -> vector<32x1xf32>
    %488 = vector.broadcast %487 : vector<32x1xf32> to vector<32x32xf32>
    %489 = arith.mulf %484, %488 : vector<32x32xf32>
    %490 = arith.truncf %489 : vector<32x32xf32> to vector<32x32xbf16>
    %491 = vector.extract_strided_slice %441 {offsets = [0, 64], sizes = [32, 32], strides = [1, 1]} : vector<32x128xbf16> to vector<32x32xbf16>
    %cst_215 = arith.constant dense<0.000000e+00> : vector<32x32xf32>
    %492 = tpu.matmul %490, %491, %cst_215 {dimension_numbers = #tpu.dot_dimension_numbers<[1], [0], [0], [1], [0, 0, 1, 1], [], []>} : vector<32x32xbf16>, vector<32x32xbf16>, vector<32x32xf32> -> vector<32x32xf32>
    %493 = vector.extract_strided_slice %439 {offsets = [0, 96], sizes = [32, 32], strides = [1, 1]} : vector<32x128xbf16> to vector<32x32xbf16>
    %494 = vector.extract_strided_slice %440 {offsets = [0, 96], sizes = [32, 32], strides = [1, 1]} : vector<32x128xbf16> to vector<32x32xbf16>
    %cst_216 = arith.constant dense<0.000000e+00> : vector<32x32xf32>
    %495 = tpu.matmul %493, %494, %cst_216 {dimension_numbers = #tpu.dot_dimension_numbers<[1], [1], [0], [0], [0, 0, 1, 0], [], []>} : vector<32x32xbf16>, vector<32x32xbf16>, vector<32x32xf32> -> vector<32x32xf32>
    %496 = arith.addf %495, %0 : vector<32x32xf32>
    %cst_217 = arith.constant dense<0xFF800000> : vector<32xf32>
    %497 = vector.multi_reduction <maximumf>, %496, %cst_217 [1] : vector<32x32xf32> to vector<32xf32>
    %498 = vector.shape_cast %497 : vector<32xf32> to vector<32x1xf32>
    %499 = vector.broadcast %498 : vector<32x1xf32> to vector<32x32xf32>
    %500 = arith.subf %496, %499 : vector<32x32xf32>
    %501 = math.exp %500 : vector<32x32xf32>
    %cst_218 = arith.constant dense<0.000000e+00> : vector<32xf32>
    %502 = vector.multi_reduction <add>, %501, %cst_218 [1] : vector<32x32xf32> to vector<32xf32>
    %503 = vector.shape_cast %502 : vector<32xf32> to vector<32x1xf32>
    %504 = tpu.reciprocal %503 {approx = true} : vector<32x1xf32> -> vector<32x1xf32>
    %505 = vector.broadcast %504 : vector<32x1xf32> to vector<32x32xf32>
    %506 = arith.mulf %501, %505 : vector<32x32xf32>
    %507 = arith.truncf %506 : vector<32x32xf32> to vector<32x32xbf16>
    %508 = vector.extract_strided_slice %441 {offsets = [0, 96], sizes = [32, 32], strides = [1, 1]} : vector<32x128xbf16> to vector<32x32xbf16>
    %cst_219 = arith.constant dense<0.000000e+00> : vector<32x32xf32>
    %509 = tpu.matmul %507, %508, %cst_219 {dimension_numbers = #tpu.dot_dimension_numbers<[1], [0], [0], [1], [0, 0, 1, 1], [], []>} : vector<32x32xbf16>, vector<32x32xbf16>, vector<32x32xf32> -> vector<32x32xf32>
    %510 = tpu.concatenate %458, %475, %492, %509 in 1 : vector<32x32xf32>, vector<32x32xf32>, vector<32x32xf32>, vector<32x32xf32> -> vector<32x128xf32>
    %511 = arith.truncf %510 : vector<32x128xf32> to vector<32x128xbf16>
    %cst_220 = arith.constant dense<0.000000e+00> : vector<32x128xf32>
    %512 = tpu.matmul %511, %413, %cst_220 {dimension_numbers = #tpu.dot_dimension_numbers<[1], [0], [0], [1], [0, 0, 1, 1], [], []>} : vector<32x128xbf16>, vector<128x128xbf16>, vector<32x128xf32> -> vector<32x128xf32>
    %513 = vector.broadcast %415 : vector<1x128xf32> to vector<32x128xf32>
    %514 = arith.addf %512, %513 : vector<32x128xf32>
    %515 = arith.addf %407, %514 : vector<32x128xf32>
    %cst_221 = arith.constant dense<0.000000e+00> : vector<32xf32>
    %516 = vector.multi_reduction <add>, %515, %cst_221 [1] : vector<32x128xf32> to vector<32xf32>
    %517 = vector.shape_cast %516 : vector<32xf32> to vector<32x1xf32>
    %cst_222 = arith.constant 1.280000e+02 : f32
    %518 = vector.broadcast %cst_222 : f32 to vector<32x1xf32>
    %519 = arith.divf %517, %518 : vector<32x1xf32>
    %520 = vector.broadcast %519 : vector<32x1xf32> to vector<32x128xf32>
    %521 = arith.subf %515, %520 : vector<32x128xf32>
    %522 = arith.mulf %521, %521 : vector<32x128xf32>
    %cst_223 = arith.constant dense<0.000000e+00> : vector<32xf32>
    %523 = vector.multi_reduction <add>, %522, %cst_223 [1] : vector<32x128xf32> to vector<32xf32>
    %524 = vector.shape_cast %523 : vector<32xf32> to vector<32x1xf32>
    %cst_224 = arith.constant 1.280000e+02 : f32
    %525 = vector.broadcast %cst_224 : f32 to vector<32x1xf32>
    %526 = arith.divf %524, %525 : vector<32x1xf32>
    %527 = vector.broadcast %519 : vector<32x1xf32> to vector<32x128xf32>
    %528 = arith.subf %515, %527 : vector<32x128xf32>
    %cst_225 = arith.constant 9.99999974E-6 : f32
    %529 = vector.broadcast %cst_225 : f32 to vector<32x1xf32>
    %530 = arith.addf %526, %529 : vector<32x1xf32>
    %531 = math.rsqrt %530 : vector<32x1xf32>
    %532 = vector.broadcast %531 : vector<32x1xf32> to vector<32x128xf32>
    %533 = arith.mulf %528, %532 : vector<32x128xf32>
    %534 = vector.broadcast %417 : vector<1x128xf32> to vector<32x128xf32>
    %535 = arith.mulf %533, %534 : vector<32x128xf32>
    %536 = vector.broadcast %419 : vector<1x128xf32> to vector<32x128xf32>
    %537 = arith.addf %535, %536 : vector<32x128xf32>
    %538 = arith.truncf %537 : vector<32x128xf32> to vector<32x128xbf16>
    %cst_226 = arith.constant dense<0.000000e+00> : vector<32x256xf32>
    %539 = tpu.matmul %538, %421, %cst_226 {dimension_numbers = #tpu.dot_dimension_numbers<[1], [0], [0], [1], [0, 0, 1, 1], [], []>} : vector<32x128xbf16>, vector<128x256xbf16>, vector<32x256xf32> -> vector<32x256xf32>
    %540 = vector.broadcast %423 : vector<1x256xf32> to vector<32x256xf32>
    %541 = arith.addf %539, %540 : vector<32x256xf32>
    %cst_227 = arith.constant 5.000000e-01 : f32
    %542 = vector.broadcast %cst_227 : f32 to vector<32x256xf32>
    %543 = arith.mulf %542, %541 : vector<32x256xf32>
    %cst_228 = arith.constant 4.471500e-02 : f32
    %544 = vector.broadcast %cst_228 : f32 to vector<32x256xf32>
    %545 = arith.mulf %544, %541 : vector<32x256xf32>
    %546 = arith.mulf %545, %541 : vector<32x256xf32>
    %547 = arith.mulf %546, %541 : vector<32x256xf32>
    %548 = arith.addf %541, %547 : vector<32x256xf32>
    %cst_229 = arith.constant 0.797884583 : f32
    %549 = vector.broadcast %cst_229 : f32 to vector<32x256xf32>
    %550 = arith.mulf %549, %548 : vector<32x256xf32>
    %551 = math.tanh %550 : vector<32x256xf32>
    %cst_230 = arith.constant 1.000000e+00 : f32
    %552 = vector.broadcast %cst_230 : f32 to vector<32x256xf32>
    %553 = arith.addf %552, %551 : vector<32x256xf32>
    %554 = arith.mulf %543, %553 : vector<32x256xf32>
    %555 = arith.truncf %554 : vector<32x256xf32> to vector<32x256xbf16>
    %cst_231 = arith.constant dense<0.000000e+00> : vector<32x128xf32>
    %556 = tpu.matmul %555, %425, %cst_231 {dimension_numbers = #tpu.dot_dimension_numbers<[1], [0], [0], [1], [0, 0, 1, 1], [], []>} : vector<32x256xbf16>, vector<256x128xbf16>, vector<32x128xf32> -> vector<32x128xf32>
    %557 = vector.broadcast %427 : vector<1x128xf32> to vector<32x128xf32>
    %558 = arith.addf %556, %557 : vector<32x128xf32>
    %559 = arith.addf %537, %558 : vector<32x128xf32>
    %cst_232 = arith.constant dense<0.000000e+00> : vector<32xf32>
    %560 = vector.multi_reduction <add>, %559, %cst_232 [1] : vector<32x128xf32> to vector<32xf32>
    %561 = vector.shape_cast %560 : vector<32xf32> to vector<32x1xf32>
    %cst_233 = arith.constant 1.280000e+02 : f32
    %562 = vector.broadcast %cst_233 : f32 to vector<32x1xf32>
    %563 = arith.divf %561, %562 : vector<32x1xf32>
    %564 = vector.broadcast %563 : vector<32x1xf32> to vector<32x128xf32>
    %565 = arith.subf %559, %564 : vector<32x128xf32>
    %566 = arith.mulf %565, %565 : vector<32x128xf32>
    %cst_234 = arith.constant dense<0.000000e+00> : vector<32xf32>
    %567 = vector.multi_reduction <add>, %566, %cst_234 [1] : vector<32x128xf32> to vector<32xf32>
    %568 = vector.shape_cast %567 : vector<32xf32> to vector<32x1xf32>
    %cst_235 = arith.constant 1.280000e+02 : f32
    %569 = vector.broadcast %cst_235 : f32 to vector<32x1xf32>
    %570 = arith.divf %568, %569 : vector<32x1xf32>
    %571 = vector.broadcast %563 : vector<32x1xf32> to vector<32x128xf32>
    %572 = arith.subf %559, %571 : vector<32x128xf32>
    %cst_236 = arith.constant 9.99999974E-6 : f32
    %573 = vector.broadcast %cst_236 : f32 to vector<32x1xf32>
    %574 = arith.addf %570, %573 : vector<32x1xf32>
    %575 = math.rsqrt %574 : vector<32x1xf32>
    %576 = vector.broadcast %575 : vector<32x1xf32> to vector<32x128xf32>
    %577 = arith.mulf %572, %576 : vector<32x128xf32>
    %578 = vector.broadcast %429 : vector<1x128xf32> to vector<32x128xf32>
    %579 = arith.mulf %577, %578 : vector<32x128xf32>
    %580 = vector.broadcast %431 : vector<1x128xf32> to vector<32x128xf32>
    %581 = arith.addf %579, %580 : vector<32x128xf32>
    %582 = arith.truncf %581 : vector<32x128xf32> to vector<32x128xbf16>
    %c0_237 = arith.constant 0 : index
    %c0_238 = arith.constant 0 : index
    %583 = vector.load %arg34[%c0_237, %c0_238] : memref<32x128xbf16, #tpu.memory_space<vmem>>, vector<32x128xbf16>
    tpu.vector_store %arg34[%c0_237, %c0_238], %582 {strides = array<i32>} : memref<32x128xbf16, #tpu.memory_space<vmem>>, vector<32x128xbf16>,
    return
  }
  func.func @transform_0(%arg0: i32) -> (i32, i32) {
    %c0_i32 = arith.constant 0 : i32
    %c0_i32_0 = arith.constant 0 : i32
    %c0_i32_1 = arith.constant 0 : i32
    return %c0_i32, %c0_i32_0 : i32, i32
  }
  func.func @transform_1(%arg0: i32) -> (i32, i32) {
    %c0_i32 = arith.constant 0 : i32
    %c0_i32_0 = arith.constant 0 : i32
    %c0_i32_1 = arith.constant 0 : i32
    return %c0_i32, %c0_i32_0 : i32, i32
  }
  func.func @transform_2(%arg0: i32) -> (i32, i32) {
    %c0_i32 = arith.constant 0 : i32
    %c0_i32_0 = arith.constant 0 : i32
    %c0_i32_1 = arith.constant 0 : i32
    return %c0_i32, %c0_i32_0 : i32, i32
  }
  func.func @transform_3(%arg0: i32) -> (i32, i32) {
    %c0_i32 = arith.constant 0 : i32
    %c0_i32_0 = arith.constant 0 : i32
    %c0_i32_1 = arith.constant 0 : i32
    return %c0_i32, %c0_i32_0 : i32, i32
  }
  func.func @transform_4(%arg0: i32) -> (i32, i32, i32) {
    %c0_i32 = arith.constant 0 : i32
    %c0_i32_0 = arith.constant 0 : i32
    %c0_i32_1 = arith.constant 0 : i32
    %c0_i32_2 = arith.constant 0 : i32
    return %c0_i32, %c0_i32_0, %c0_i32_1 : i32, i32, i32
  }
  func.func @transform_5(%arg0: i32) -> (i32, i32, i32) {
    %c0_i32 = arith.constant 0 : i32
    %c0_i32_0 = arith.constant 0 : i32
    %c0_i32_1 = arith.constant 0 : i32
    %c0_i32_2 = arith.constant 0 : i32
    return %c0_i32, %c0_i32_0, %c0_i32_1 : i32, i32, i32
  }
  func.func @transform_6(%arg0: i32) -> (i32, i32, i32) {
    %c0_i32 = arith.constant 0 : i32
    %c0_i32_0 = arith.constant 0 : i32
    %c0_i32_1 = arith.constant 0 : i32
    %c0_i32_2 = arith.constant 0 : i32
    return %c0_i32, %c0_i32_0, %c0_i32_1 : i32, i32, i32
  }
  func.func @transform_7(%arg0: i32) -> (i32, i32, i32) {
    %c0_i32 = arith.constant 0 : i32
    %c0_i32_0 = arith.constant 0 : i32
    %c0_i32_1 = arith.constant 0 : i32
    %c0_i32_2 = arith.constant 0 : i32
    return %c0_i32, %c0_i32_0, %c0_i32_1 : i32, i32, i32
  }
  func.func @transform_8(%arg0: i32) -> (i32, i32, i32) {
    %c0_i32 = arith.constant 0 : i32
    %c0_i32_0 = arith.constant 0 : i32
    %c0_i32_1 = arith.constant 0 : i32
    %c0_i32_2 = arith.constant 0 : i32
    return %c0_i32, %c0_i32_0, %c0_i32_1 : i32, i32, i32
  }
  func.func @transform_9(%arg0: i32) -> (i32, i32, i32) {
    %c0_i32 = arith.constant 0 : i32
    %c0_i32_0 = arith.constant 0 : i32
    %c0_i32_1 = arith.constant 0 : i32
    %c0_i32_2 = arith.constant 0 : i32
    return %c0_i32, %c0_i32_0, %c0_i32_1 : i32, i32, i32
  }
  func.func @transform_10(%arg0: i32) -> (i32, i32, i32) {
    %c0_i32 = arith.constant 0 : i32
    %c0_i32_0 = arith.constant 0 : i32
    %c0_i32_1 = arith.constant 0 : i32
    %c0_i32_2 = arith.constant 0 : i32
    return %c0_i32, %c0_i32_0, %c0_i32_1 : i32, i32, i32
  }
  func.func @transform_11(%arg0: i32) -> (i32, i32, i32) {
    %c0_i32 = arith.constant 0 : i32
    %c0_i32_0 = arith.constant 0 : i32
    %c0_i32_1 = arith.constant 0 : i32
    %c0_i32_2 = arith.constant 0 : i32
    return %c0_i32, %c0_i32_0, %c0_i32_1 : i32, i32, i32
  }
  func.func @transform_12(%arg0: i32) -> (i32, i32, i32) {
    %c0_i32 = arith.constant 0 : i32
    %c0_i32_0 = arith.constant 0 : i32
    %c0_i32_1 = arith.constant 0 : i32
    %c0_i32_2 = arith.constant 0 : i32
    return %c0_i32, %c0_i32_0, %c0_i32_1 : i32, i32, i32
  }
  func.func @transform_13(%arg0: i32) -> (i32, i32, i32) {
    %c0_i32 = arith.constant 0 : i32
    %c0_i32_0 = arith.constant 0 : i32
    %c0_i32_1 = arith.constant 0 : i32
    %c0_i32_2 = arith.constant 0 : i32
    return %c0_i32, %c0_i32_0, %c0_i32_1 : i32, i32, i32
  }
  func.func @transform_14(%arg0: i32) -> (i32, i32, i32) {
    %c0_i32 = arith.constant 0 : i32
    %c0_i32_0 = arith.constant 0 : i32
    %c0_i32_1 = arith.constant 0 : i32
    %c0_i32_2 = arith.constant 0 : i32
    return %c0_i32, %c0_i32_0, %c0_i32_1 : i32, i32, i32
  }
  func.func @transform_15(%arg0: i32) -> (i32, i32, i32) {
    %c0_i32 = arith.constant 0 : i32
    %c0_i32_0 = arith.constant 0 : i32
    %c0_i32_1 = arith.constant 0 : i32
    %c0_i32_2 = arith.constant 0 : i32
    return %c0_i32, %c0_i32_0, %c0_i32_1 : i32, i32, i32
  }
  func.func @transform_16(%arg0: i32) -> (i32, i32) {
    %c0_i32 = arith.constant 0 : i32
    %c0_i32_0 = arith.constant 0 : i32
    %c0_i32_1 = arith.constant 0 : i32
    return %c0_i32, %c0_i32_0 : i32, i32
  }
  func.func @transform_17(%arg0: i32) -> (i32, i32) {
    %c0_i32 = arith.constant 0 : i32
    %c0_i32_0 = arith.constant 0 : i32
    %c0_i32_1 = arith.constant 0 : i32
    return %c0_i32, %c0_i32_0 : i32, i32
  }
  func.func @transform_18(%arg0: i32) -> (i32, i32) {
    %c0_i32 = arith.constant 0 : i32
    %c0_i32_0 = arith.constant 0 : i32
    %c0_i32_1 = arith.constant 0 : i32
    return %c0_i32, %c0_i32_0 : i32, i32
  }
  func.func @transform_19(%arg0: i32) -> (i32, i32) {
    %c0_i32 = arith.constant 0 : i32
    %c0_i32_0 = arith.constant 0 : i32
    %c0_i32_1 = arith.constant 0 : i32
    return %c0_i32, %c0_i32_0 : i32, i32
  }
  func.func @transform_20(%arg0: i32) -> (i32, i32) {
    %c0_i32 = arith.constant 0 : i32
    %c0_i32_0 = arith.constant 0 : i32
    %c0_i32_1 = arith.constant 0 : i32
    return %c0_i32, %c0_i32_0 : i32, i32
  }
  func.func @transform_21(%arg0: i32) -> (i32, i32, i32) {
    %c0_i32 = arith.constant 0 : i32
    %c0_i32_0 = arith.constant 0 : i32
    %c0_i32_1 = arith.constant 0 : i32
    %c0_i32_2 = arith.constant 0 : i32
    return %c0_i32, %c0_i32_0, %c0_i32_1 : i32, i32, i32
  }
  func.func @transform_22(%arg0: i32) -> (i32, i32, i32) {
    %c0_i32 = arith.constant 0 : i32
    %c0_i32_0 = arith.constant 0 : i32
    %c0_i32_1 = arith.constant 0 : i32
    %c0_i32_2 = arith.constant 0 : i32
    return %c0_i32, %c0_i32_0, %c0_i32_1 : i32, i32, i32
  }
  func.func @transform_23(%arg0: i32) -> (i32, i32, i32) {
    %c0_i32 = arith.constant 0 : i32
    %c0_i32_0 = arith.constant 0 : i32
    %c0_i32_1 = arith.constant 0 : i32
    %c0_i32_2 = arith.constant 0 : i32
    return %c0_i32, %c0_i32_0, %c0_i32_1 : i32, i32, i32
  }
  func.func @transform_24(%arg0: i32) -> (i32, i32, i32) {
    %c0_i32 = arith.constant 0 : i32
    %c0_i32_0 = arith.constant 0 : i32
    %c0_i32_1 = arith.constant 0 : i32
    %c0_i32_2 = arith.constant 0 : i32
    return %c0_i32, %c0_i32_0, %c0_i32_1 : i32, i32, i32
  }
  func.func @transform_25(%arg0: i32) -> (i32, i32, i32) {
    %c0_i32 = arith.constant 0 : i32
    %c0_i32_0 = arith.constant 0 : i32
    %c0_i32_1 = arith.constant 0 : i32
    %c0_i32_2 = arith.constant 0 : i32
    return %c0_i32, %c0_i32_0, %c0_i32_1 : i32, i32, i32
  }
  func.func @transform_26(%arg0: i32) -> (i32, i32, i32) {
    %c0_i32 = arith.constant 0 : i32
    %c0_i32_0 = arith.constant 0 : i32
    %c0_i32_1 = arith.constant 0 : i32
    %c0_i32_2 = arith.constant 0 : i32
    return %c0_i32, %c0_i32_0, %c0_i32_1 : i32, i32, i32
  }
  func.func @transform_27(%arg0: i32) -> (i32, i32, i32) {
    %c0_i32 = arith.constant 0 : i32
    %c0_i32_0 = arith.constant 0 : i32
    %c0_i32_1 = arith.constant 0 : i32
    %c0_i32_2 = arith.constant 0 : i32
    return %c0_i32, %c0_i32_0, %c0_i32_1 : i32, i32, i32
  }
  func.func @transform_28(%arg0: i32) -> (i32, i32, i32) {
    %c0_i32 = arith.constant 0 : i32
    %c0_i32_0 = arith.constant 0 : i32
    %c0_i32_1 = arith.constant 0 : i32
    %c0_i32_2 = arith.constant 0 : i32
    return %c0_i32, %c0_i32_0, %c0_i32_1 : i32, i32, i32
  }
  func.func @transform_29(%arg0: i32) -> (i32, i32, i32) {
    %c0_i32 = arith.constant 0 : i32
    %c0_i32_0 = arith.constant 0 : i32
    %c0_i32_1 = arith.constant 0 : i32
    %c0_i32_2 = arith.constant 0 : i32
    return %c0_i32, %c0_i32_0, %c0_i32_1 : i32, i32, i32
  }
  func.func @transform_30(%arg0: i32) -> (i32, i32, i32) {
    %c0_i32 = arith.constant 0 : i32
    %c0_i32_0 = arith.constant 0 : i32
    %c0_i32_1 = arith.constant 0 : i32
    %c0_i32_2 = arith.constant 0 : i32
    return %c0_i32, %c0_i32_0, %c0_i32_1 : i32, i32, i32
  }
  func.func @transform_31(%arg0: i32) -> (i32, i32, i32) {
    %c0_i32 = arith.constant 0 : i32
    %c0_i32_0 = arith.constant 0 : i32
    %c0_i32_1 = arith.constant 0 : i32
    %c0_i32_2 = arith.constant 0 : i32
    return %c0_i32, %c0_i32_0, %c0_i32_1 : i32, i32, i32
  }
  func.func @transform_32(%arg0: i32) -> (i32, i32, i32) {
    %c0_i32 = arith.constant 0 : i32
    %c0_i32_0 = arith.constant 0 : i32
    %c0_i32_1 = arith.constant 0 : i32
    %c0_i32_2 = arith.constant 0 : i32
    return %c0_i32, %c0_i32_0, %c0_i32_1 : i32, i32, i32
  }
  func.func @transform_33(%arg0: i32) -> (i32, i32) {
    %c0_i32 = arith.constant 0 : i32
    %c0_i32_0 = arith.constant 0 : i32
    %c0_i32_1 = arith.constant 0 : i32
    return %c0_i32, %c0_i32_0 : i32, i32
  }
}

module attributes {stable_mosaic.version = 11 : i64} {
  func.func @_decoder_stack_kernel(%arg0: i32, %arg1: memref<16x128xf32, #tpu.memory_space<vmem>>, %arg2: memref<32x128xbf16, #tpu.memory_space<vmem>>, %arg3: memref<16x16xf32, #tpu.memory_space<vmem>>, %arg4: memref<16x32xf32, #tpu.memory_space<vmem>>, %arg5: memref<1x128xf32, #tpu.memory_space<vmem>>, %arg6: memref<1x128xf32, #tpu.memory_space<vmem>>, %arg7: memref<1x128x384xbf16, #tpu.memory_space<vmem>>, %arg8: memref<1x1x384xf32, #tpu.memory_space<vmem>>, %arg9: memref<1x128x128xbf16, #tpu.memory_space<vmem>>, %arg10: memref<1x1x128xf32, #tpu.memory_space<vmem>>, %arg11: memref<1x1x128xf32, #tpu.memory_space<vmem>>, %arg12: memref<1x1x128xf32, #tpu.memory_space<vmem>>, %arg13: memref<1x128x128xbf16, #tpu.memory_space<vmem>>, %arg14: memref<1x1x128xf32, #tpu.memory_space<vmem>>, %arg15: memref<1x128x256xbf16, #tpu.memory_space<vmem>>, %arg16: memref<1x1x256xf32, #tpu.memory_space<vmem>>, %arg17: memref<1x128x128xbf16, #tpu.memory_space<vmem>>, %arg18: memref<1x1x128xf32, #tpu.memory_space<vmem>>, %arg19: memref<1x1x128xf32, #tpu.memory_space<vmem>>, %arg20: memref<1x1x128xf32, #tpu.memory_space<vmem>>, %arg21: memref<1x128x256xbf16, #tpu.memory_space<vmem>>, %arg22: memref<1x1x256xf32, #tpu.memory_space<vmem>>, %arg23: memref<1x256x128xbf16, #tpu.memory_space<vmem>>, %arg24: memref<1x1x128xf32, #tpu.memory_space<vmem>>, %arg25: memref<1x1x128xf32, #tpu.memory_space<vmem>>, %arg26: memref<1x1x128xf32, #tpu.memory_space<vmem>>, %arg27: memref<16x128xbf16, #tpu.memory_space<vmem>>) attributes {dimension_semantics = [#tpu.dimension_semantics<arbitrary>], iteration_bounds = array<i64: 1>, scalar_prefetch = 0 : i64, scratch_operands = 0 : i64, tpu.core_type = #tpu.core_type<tc>, window_params = [{pipeline_mode = #tpu.pipeline_mode<synchronous>, transform_indices = @transform_0, window_bounds = array<i64: 16, 128>}, {pipeline_mode = #tpu.pipeline_mode<synchronous>, transform_indices = @transform_1, window_bounds = array<i64: 32, 128>}, {pipeline_mode = #tpu.pipeline_mode<synchronous>, transform_indices = @transform_2, window_bounds = array<i64: 16, 16>}, {pipeline_mode = #tpu.pipeline_mode<synchronous>, transform_indices = @transform_3, window_bounds = array<i64: 16, 32>}, {pipeline_mode = #tpu.pipeline_mode<synchronous>, transform_indices = @transform_4, window_bounds = array<i64: 1, 128>}, {pipeline_mode = #tpu.pipeline_mode<synchronous>, transform_indices = @transform_5, window_bounds = array<i64: 1, 128>}, {pipeline_mode = #tpu.pipeline_mode<synchronous>, transform_indices = @transform_6, window_bounds = array<i64: 1, 128, 384>}, {pipeline_mode = #tpu.pipeline_mode<synchronous>, transform_indices = @transform_7, window_bounds = array<i64: 1, 1, 384>}, {pipeline_mode = #tpu.pipeline_mode<synchronous>, transform_indices = @transform_8, window_bounds = array<i64: 1, 128, 128>}, {pipeline_mode = #tpu.pipeline_mode<synchronous>, transform_indices = @transform_9, window_bounds = array<i64: 1, 1, 128>}, {pipeline_mode = #tpu.pipeline_mode<synchronous>, transform_indices = @transform_10, window_bounds = array<i64: 1, 1, 128>}, {pipeline_mode = #tpu.pipeline_mode<synchronous>, transform_indices = @transform_11, window_bounds = array<i64: 1, 1, 128>}, {pipeline_mode = #tpu.pipeline_mode<synchronous>, transform_indices = @transform_12, window_bounds = array<i64: 1, 128, 128>}, {pipeline_mode = #tpu.pipeline_mode<synchronous>, transform_indices = @transform_13, window_bounds = array<i64: 1, 1, 128>}, {pipeline_mode = #tpu.pipeline_mode<synchronous>, transform_indices = @transform_14, window_bounds = array<i64: 1, 128, 256>}, {pipeline_mode = #tpu.pipeline_mode<synchronous>, transform_indices = @transform_15, window_bounds = array<i64: 1, 1, 256>}, {pipeline_mode = #tpu.pipeline_mode<synchronous>, transform_indices = @transform_16, window_bounds = array<i64: 1, 128, 128>}, {pipeline_mode = #tpu.pipeline_mode<synchronous>, transform_indices = @transform_17, window_bounds = array<i64: 1, 1, 128>}, {pipeline_mode = #tpu.pipeline_mode<synchronous>, transform_indices = @transform_18, window_bounds = array<i64: 1, 1, 128>}, {pipeline_mode = #tpu.pipeline_mode<synchronous>, transform_indices = @transform_19, window_bounds = array<i64: 1, 1, 128>}, {pipeline_mode = #tpu.pipeline_mode<synchronous>, transform_indices = @transform_20, window_bounds = array<i64: 1, 128, 256>}, {pipeline_mode = #tpu.pipeline_mode<synchronous>, transform_indices = @transform_21, window_bounds = array<i64: 1, 1, 256>}, {pipeline_mode = #tpu.pipeline_mode<synchronous>, transform_indices = @transform_22, window_bounds = array<i64: 1, 256, 128>}, {pipeline_mode = #tpu.pipeline_mode<synchronous>, transform_indices = @transform_23, window_bounds = array<i64: 1, 1, 128>}, {pipeline_mode = #tpu.pipeline_mode<synchronous>, transform_indices = @transform_24, window_bounds = array<i64: 1, 1, 128>}, {pipeline_mode = #tpu.pipeline_mode<synchronous>, transform_indices = @transform_25, window_bounds = array<i64: 1, 1, 128>}, {pipeline_mode = #tpu.pipeline_mode<synchronous>, transform_indices = @transform_26, window_bounds = array<i64: 16, 128>}]} {
    %c0 = arith.constant 0 : index
    %c0_0 = arith.constant 0 : index
    %0 = vector.load %arg2[%c0, %c0_0] : memref<32x128xbf16, #tpu.memory_space<vmem>>, vector<32x128xbf16>
    %c0_1 = arith.constant 0 : index
    %c0_2 = arith.constant 0 : index
    %1 = vector.load %arg3[%c0_1, %c0_2] : memref<16x16xf32, #tpu.memory_space<vmem>>, vector<16x16xf32>
    %c0_3 = arith.constant 0 : index
    %c0_4 = arith.constant 0 : index
    %2 = vector.load %arg4[%c0_3, %c0_4] : memref<16x32xf32, #tpu.memory_space<vmem>>, vector<16x32xf32>
    %c0_5 = arith.constant 0 : index
    %c0_6 = arith.constant 0 : index
    %3 = vector.load %arg1[%c0_5, %c0_6] : memref<16x128xf32, #tpu.memory_space<vmem>>, vector<16x128xf32>
    %c0_7 = arith.constant 0 : index
    %c0_8 = arith.constant 0 : index
    %4 = vector.load %arg5[%c0_7, %c0_8] : memref<1x128xf32, #tpu.memory_space<vmem>>, vector<1x128xf32>
    %c0_9 = arith.constant 0 : index
    %c0_10 = arith.constant 0 : index
    %5 = vector.load %arg6[%c0_9, %c0_10] : memref<1x128xf32, #tpu.memory_space<vmem>>, vector<1x128xf32>
    %cst = arith.constant dense<0.000000e+00> : vector<16xf32>
    %6 = vector.multi_reduction <add>, %3, %cst [1] : vector<16x128xf32> to vector<16xf32>
    %7 = vector.shape_cast %6 : vector<16xf32> to vector<16x1xf32>
    %cst_11 = arith.constant 1.280000e+02 : f32
    %8 = vector.broadcast %cst_11 : f32 to vector<16x1xf32>
    %9 = arith.divf %7, %8 : vector<16x1xf32>
    %10 = vector.broadcast %9 : vector<16x1xf32> to vector<16x128xf32>
    %11 = arith.subf %3, %10 : vector<16x128xf32>
    %12 = arith.mulf %11, %11 : vector<16x128xf32>
    %cst_12 = arith.constant dense<0.000000e+00> : vector<16xf32>
    %13 = vector.multi_reduction <add>, %12, %cst_12 [1] : vector<16x128xf32> to vector<16xf32>
    %14 = vector.shape_cast %13 : vector<16xf32> to vector<16x1xf32>
    %cst_13 = arith.constant 1.280000e+02 : f32
    %15 = vector.broadcast %cst_13 : f32 to vector<16x1xf32>
    %16 = arith.divf %14, %15 : vector<16x1xf32>
    %17 = vector.broadcast %9 : vector<16x1xf32> to vector<16x128xf32>
    %18 = arith.subf %3, %17 : vector<16x128xf32>
    %cst_14 = arith.constant 9.99999974E-6 : f32
    %19 = vector.broadcast %cst_14 : f32 to vector<16x1xf32>
    %20 = arith.addf %16, %19 : vector<16x1xf32>
    %21 = math.rsqrt %20 : vector<16x1xf32>
    %22 = vector.broadcast %21 : vector<16x1xf32> to vector<16x128xf32>
    %23 = arith.mulf %18, %22 : vector<16x128xf32>
    %24 = vector.broadcast %4 : vector<1x128xf32> to vector<16x128xf32>
    %25 = arith.mulf %23, %24 : vector<16x128xf32>
    %26 = vector.broadcast %5 : vector<1x128xf32> to vector<16x128xf32>
    %27 = arith.addf %25, %26 : vector<16x128xf32>
    %c0_15 = arith.constant 0 : index
    %c0_16 = arith.constant 0 : index
    %c0_17 = arith.constant 0 : index
    %28 = vector.load %arg7[%c0_15, %c0_16, %c0_17] : memref<1x128x384xbf16, #tpu.memory_space<vmem>>, vector<1x128x384xbf16>
    %29 = vector.shape_cast %28 : vector<1x128x384xbf16> to vector<128x384xbf16>
    %c0_18 = arith.constant 0 : index
    %c0_19 = arith.constant 0 : index
    %c0_20 = arith.constant 0 : index
    %30 = vector.load %arg8[%c0_18, %c0_19, %c0_20] : memref<1x1x384xf32, #tpu.memory_space<vmem>>, vector<1x1x384xf32>
    %31 = vector.shape_cast %30 : vector<1x1x384xf32> to vector<1x384xf32>
    %c0_21 = arith.constant 0 : index
    %c0_22 = arith.constant 0 : index
    %c0_23 = arith.constant 0 : index
    %32 = vector.load %arg9[%c0_21, %c0_22, %c0_23] : memref<1x128x128xbf16, #tpu.memory_space<vmem>>, vector<1x128x128xbf16>
    %33 = vector.shape_cast %32 : vector<1x128x128xbf16> to vector<128x128xbf16>
    %c0_24 = arith.constant 0 : index
    %c0_25 = arith.constant 0 : index
    %c0_26 = arith.constant 0 : index
    %34 = vector.load %arg10[%c0_24, %c0_25, %c0_26] : memref<1x1x128xf32, #tpu.memory_space<vmem>>, vector<1x1x128xf32>
    %35 = vector.shape_cast %34 : vector<1x1x128xf32> to vector<1x128xf32>
    %c0_27 = arith.constant 0 : index
    %c0_28 = arith.constant 0 : index
    %c0_29 = arith.constant 0 : index
    %36 = vector.load %arg11[%c0_27, %c0_28, %c0_29] : memref<1x1x128xf32, #tpu.memory_space<vmem>>, vector<1x1x128xf32>
    %37 = vector.shape_cast %36 : vector<1x1x128xf32> to vector<1x128xf32>
    %c0_30 = arith.constant 0 : index
    %c0_31 = arith.constant 0 : index
    %c0_32 = arith.constant 0 : index
    %38 = vector.load %arg12[%c0_30, %c0_31, %c0_32] : memref<1x1x128xf32, #tpu.memory_space<vmem>>, vector<1x1x128xf32>
    %39 = vector.shape_cast %38 : vector<1x1x128xf32> to vector<1x128xf32>
    %c0_33 = arith.constant 0 : index
    %c0_34 = arith.constant 0 : index
    %c0_35 = arith.constant 0 : index
    %40 = vector.load %arg13[%c0_33, %c0_34, %c0_35] : memref<1x128x128xbf16, #tpu.memory_space<vmem>>, vector<1x128x128xbf16>
    %41 = vector.shape_cast %40 : vector<1x128x128xbf16> to vector<128x128xbf16>
    %c0_36 = arith.constant 0 : index
    %c0_37 = arith.constant 0 : index
    %c0_38 = arith.constant 0 : index
    %42 = vector.load %arg14[%c0_36, %c0_37, %c0_38] : memref<1x1x128xf32, #tpu.memory_space<vmem>>, vector<1x1x128xf32>
    %43 = vector.shape_cast %42 : vector<1x1x128xf32> to vector<1x128xf32>
    %c0_39 = arith.constant 0 : index
    %c0_40 = arith.constant 0 : index
    %c0_41 = arith.constant 0 : index
    %44 = vector.load %arg15[%c0_39, %c0_40, %c0_41] : memref<1x128x256xbf16, #tpu.memory_space<vmem>>, vector<1x128x256xbf16>
    %45 = vector.shape_cast %44 : vector<1x128x256xbf16> to vector<128x256xbf16>
    %c0_42 = arith.constant 0 : index
    %c0_43 = arith.constant 0 : index
    %c0_44 = arith.constant 0 : index
    %46 = vector.load %arg16[%c0_42, %c0_43, %c0_44] : memref<1x1x256xf32, #tpu.memory_space<vmem>>, vector<1x1x256xf32>
    %47 = vector.shape_cast %46 : vector<1x1x256xf32> to vector<1x256xf32>
    %c0_45 = arith.constant 0 : index
    %c0_46 = arith.constant 0 : index
    %c0_47 = arith.constant 0 : index
    %48 = vector.load %arg17[%c0_45, %c0_46, %c0_47] : memref<1x128x128xbf16, #tpu.memory_space<vmem>>, vector<1x128x128xbf16>
    %49 = vector.shape_cast %48 : vector<1x128x128xbf16> to vector<128x128xbf16>
    %c0_48 = arith.constant 0 : index
    %c0_49 = arith.constant 0 : index
    %c0_50 = arith.constant 0 : index
    %50 = vector.load %arg18[%c0_48, %c0_49, %c0_50] : memref<1x1x128xf32, #tpu.memory_space<vmem>>, vector<1x1x128xf32>
    %51 = vector.shape_cast %50 : vector<1x1x128xf32> to vector<1x128xf32>
    %c0_51 = arith.constant 0 : index
    %c0_52 = arith.constant 0 : index
    %c0_53 = arith.constant 0 : index
    %52 = vector.load %arg19[%c0_51, %c0_52, %c0_53] : memref<1x1x128xf32, #tpu.memory_space<vmem>>, vector<1x1x128xf32>
    %53 = vector.shape_cast %52 : vector<1x1x128xf32> to vector<1x128xf32>
    %c0_54 = arith.constant 0 : index
    %c0_55 = arith.constant 0 : index
    %c0_56 = arith.constant 0 : index
    %54 = vector.load %arg20[%c0_54, %c0_55, %c0_56] : memref<1x1x128xf32, #tpu.memory_space<vmem>>, vector<1x1x128xf32>
    %55 = vector.shape_cast %54 : vector<1x1x128xf32> to vector<1x128xf32>
    %c0_57 = arith.constant 0 : index
    %c0_58 = arith.constant 0 : index
    %c0_59 = arith.constant 0 : index
    %56 = vector.load %arg21[%c0_57, %c0_58, %c0_59] : memref<1x128x256xbf16, #tpu.memory_space<vmem>>, vector<1x128x256xbf16>
    %57 = vector.shape_cast %56 : vector<1x128x256xbf16> to vector<128x256xbf16>
    %c0_60 = arith.constant 0 : index
    %c0_61 = arith.constant 0 : index
    %c0_62 = arith.constant 0 : index
    %58 = vector.load %arg22[%c0_60, %c0_61, %c0_62] : memref<1x1x256xf32, #tpu.memory_space<vmem>>, vector<1x1x256xf32>
    %59 = vector.shape_cast %58 : vector<1x1x256xf32> to vector<1x256xf32>
    %c0_63 = arith.constant 0 : index
    %c0_64 = arith.constant 0 : index
    %c0_65 = arith.constant 0 : index
    %60 = vector.load %arg23[%c0_63, %c0_64, %c0_65] : memref<1x256x128xbf16, #tpu.memory_space<vmem>>, vector<1x256x128xbf16>
    %61 = vector.shape_cast %60 : vector<1x256x128xbf16> to vector<256x128xbf16>
    %c0_66 = arith.constant 0 : index
    %c0_67 = arith.constant 0 : index
    %c0_68 = arith.constant 0 : index
    %62 = vector.load %arg24[%c0_66, %c0_67, %c0_68] : memref<1x1x128xf32, #tpu.memory_space<vmem>>, vector<1x1x128xf32>
    %63 = vector.shape_cast %62 : vector<1x1x128xf32> to vector<1x128xf32>
    %c0_69 = arith.constant 0 : index
    %c0_70 = arith.constant 0 : index
    %c0_71 = arith.constant 0 : index
    %64 = vector.load %arg25[%c0_69, %c0_70, %c0_71] : memref<1x1x128xf32, #tpu.memory_space<vmem>>, vector<1x1x128xf32>
    %65 = vector.shape_cast %64 : vector<1x1x128xf32> to vector<1x128xf32>
    %c0_72 = arith.constant 0 : index
    %c0_73 = arith.constant 0 : index
    %c0_74 = arith.constant 0 : index
    %66 = vector.load %arg26[%c0_72, %c0_73, %c0_74] : memref<1x1x128xf32, #tpu.memory_space<vmem>>, vector<1x1x128xf32>
    %67 = vector.shape_cast %66 : vector<1x1x128xf32> to vector<1x128xf32>
    %68 = arith.truncf %27 : vector<16x128xf32> to vector<16x128xbf16>
    %cst_75 = arith.constant dense<0.000000e+00> : vector<16x384xf32>
    %69 = tpu.matmul %68, %29, %cst_75 {dimension_numbers = #tpu.dot_dimension_numbers<[1], [0], [0], [1], [0, 0, 1, 1], [], []>} : vector<16x128xbf16>, vector<128x384xbf16>, vector<16x384xf32> -> vector<16x384xf32>
    %70 = vector.broadcast %31 : vector<1x384xf32> to vector<16x384xf32>
    %71 = arith.addf %69, %70 : vector<16x384xf32>
    %72 = vector.extract_strided_slice %71 {offsets = [0, 0], sizes = [16, 128], strides = [1, 1]} : vector<16x384xf32> to vector<16x128xf32>
    %73 = vector.extract_strided_slice %71 {offsets = [0, 128], sizes = [16, 128], strides = [1, 1]} : vector<16x384xf32> to vector<16x128xf32>
    %74 = vector.extract_strided_slice %71 {offsets = [0, 256], sizes = [16, 128], strides = [1, 1]} : vector<16x384xf32> to vector<16x128xf32>
    %75 = arith.truncf %72 : vector<16x128xf32> to vector<16x128xbf16>
    %76 = arith.truncf %73 : vector<16x128xf32> to vector<16x128xbf16>
    %77 = arith.truncf %74 : vector<16x128xf32> to vector<16x128xbf16>
    %78 = vector.extract_strided_slice %75 {offsets = [0, 0], sizes = [16, 32], strides = [1, 1]} : vector<16x128xbf16> to vector<16x32xbf16>
    %79 = vector.extract_strided_slice %76 {offsets = [0, 0], sizes = [16, 32], strides = [1, 1]} : vector<16x128xbf16> to vector<16x32xbf16>
    %cst_76 = arith.constant dense<0.000000e+00> : vector<16x16xf32>
    %80 = tpu.matmul %78, %79, %cst_76 {dimension_numbers = #tpu.dot_dimension_numbers<[1], [1], [0], [0], [0, 0, 1, 0], [], []>} : vector<16x32xbf16>, vector<16x32xbf16>, vector<16x16xf32> -> vector<16x16xf32>
    %81 = arith.addf %80, %1 : vector<16x16xf32>
    %cst_77 = arith.constant dense<0xFF800000> : vector<16xf32>
    %82 = vector.multi_reduction <maximumf>, %81, %cst_77 [1] : vector<16x16xf32> to vector<16xf32>
    %83 = vector.shape_cast %82 : vector<16xf32> to vector<16x1xf32>
    %84 = vector.broadcast %83 : vector<16x1xf32> to vector<16x16xf32>
    %85 = arith.subf %81, %84 : vector<16x16xf32>
    %86 = math.exp %85 : vector<16x16xf32>
    %cst_78 = arith.constant dense<0.000000e+00> : vector<16xf32>
    %87 = vector.multi_reduction <add>, %86, %cst_78 [1] : vector<16x16xf32> to vector<16xf32>
    %88 = vector.shape_cast %87 : vector<16xf32> to vector<16x1xf32>
    %89 = tpu.reciprocal %88 {approx = true} : vector<16x1xf32> -> vector<16x1xf32>
    %90 = vector.broadcast %89 : vector<16x1xf32> to vector<16x16xf32>
    %91 = arith.mulf %86, %90 : vector<16x16xf32>
    %92 = arith.truncf %91 : vector<16x16xf32> to vector<16x16xbf16>
    %93 = vector.extract_strided_slice %77 {offsets = [0, 0], sizes = [16, 32], strides = [1, 1]} : vector<16x128xbf16> to vector<16x32xbf16>
    %cst_79 = arith.constant dense<0.000000e+00> : vector<16x32xf32>
    %94 = tpu.matmul %92, %93, %cst_79 {dimension_numbers = #tpu.dot_dimension_numbers<[1], [0], [0], [1], [0, 0, 1, 1], [], []>} : vector<16x16xbf16>, vector<16x32xbf16>, vector<16x32xf32> -> vector<16x32xf32>
    %95 = vector.extract_strided_slice %75 {offsets = [0, 32], sizes = [16, 32], strides = [1, 1]} : vector<16x128xbf16> to vector<16x32xbf16>
    %96 = vector.extract_strided_slice %76 {offsets = [0, 32], sizes = [16, 32], strides = [1, 1]} : vector<16x128xbf16> to vector<16x32xbf16>
    %cst_80 = arith.constant dense<0.000000e+00> : vector<16x16xf32>
    %97 = tpu.matmul %95, %96, %cst_80 {dimension_numbers = #tpu.dot_dimension_numbers<[1], [1], [0], [0], [0, 0, 1, 0], [], []>} : vector<16x32xbf16>, vector<16x32xbf16>, vector<16x16xf32> -> vector<16x16xf32>
    %98 = arith.addf %97, %1 : vector<16x16xf32>
    %cst_81 = arith.constant dense<0xFF800000> : vector<16xf32>
    %99 = vector.multi_reduction <maximumf>, %98, %cst_81 [1] : vector<16x16xf32> to vector<16xf32>
    %100 = vector.shape_cast %99 : vector<16xf32> to vector<16x1xf32>
    %101 = vector.broadcast %100 : vector<16x1xf32> to vector<16x16xf32>
    %102 = arith.subf %98, %101 : vector<16x16xf32>
    %103 = math.exp %102 : vector<16x16xf32>
    %cst_82 = arith.constant dense<0.000000e+00> : vector<16xf32>
    %104 = vector.multi_reduction <add>, %103, %cst_82 [1] : vector<16x16xf32> to vector<16xf32>
    %105 = vector.shape_cast %104 : vector<16xf32> to vector<16x1xf32>
    %106 = tpu.reciprocal %105 {approx = true} : vector<16x1xf32> -> vector<16x1xf32>
    %107 = vector.broadcast %106 : vector<16x1xf32> to vector<16x16xf32>
    %108 = arith.mulf %103, %107 : vector<16x16xf32>
    %109 = arith.truncf %108 : vector<16x16xf32> to vector<16x16xbf16>
    %110 = vector.extract_strided_slice %77 {offsets = [0, 32], sizes = [16, 32], strides = [1, 1]} : vector<16x128xbf16> to vector<16x32xbf16>
    %cst_83 = arith.constant dense<0.000000e+00> : vector<16x32xf32>
    %111 = tpu.matmul %109, %110, %cst_83 {dimension_numbers = #tpu.dot_dimension_numbers<[1], [0], [0], [1], [0, 0, 1, 1], [], []>} : vector<16x16xbf16>, vector<16x32xbf16>, vector<16x32xf32> -> vector<16x32xf32>
    %112 = vector.extract_strided_slice %75 {offsets = [0, 64], sizes = [16, 32], strides = [1, 1]} : vector<16x128xbf16> to vector<16x32xbf16>
    %113 = vector.extract_strided_slice %76 {offsets = [0, 64], sizes = [16, 32], strides = [1, 1]} : vector<16x128xbf16> to vector<16x32xbf16>
    %cst_84 = arith.constant dense<0.000000e+00> : vector<16x16xf32>
    %114 = tpu.matmul %112, %113, %cst_84 {dimension_numbers = #tpu.dot_dimension_numbers<[1], [1], [0], [0], [0, 0, 1, 0], [], []>} : vector<16x32xbf16>, vector<16x32xbf16>, vector<16x16xf32> -> vector<16x16xf32>
    %115 = arith.addf %114, %1 : vector<16x16xf32>
    %cst_85 = arith.constant dense<0xFF800000> : vector<16xf32>
    %116 = vector.multi_reduction <maximumf>, %115, %cst_85 [1] : vector<16x16xf32> to vector<16xf32>
    %117 = vector.shape_cast %116 : vector<16xf32> to vector<16x1xf32>
    %118 = vector.broadcast %117 : vector<16x1xf32> to vector<16x16xf32>
    %119 = arith.subf %115, %118 : vector<16x16xf32>
    %120 = math.exp %119 : vector<16x16xf32>
    %cst_86 = arith.constant dense<0.000000e+00> : vector<16xf32>
    %121 = vector.multi_reduction <add>, %120, %cst_86 [1] : vector<16x16xf32> to vector<16xf32>
    %122 = vector.shape_cast %121 : vector<16xf32> to vector<16x1xf32>
    %123 = tpu.reciprocal %122 {approx = true} : vector<16x1xf32> -> vector<16x1xf32>
    %124 = vector.broadcast %123 : vector<16x1xf32> to vector<16x16xf32>
    %125 = arith.mulf %120, %124 : vector<16x16xf32>
    %126 = arith.truncf %125 : vector<16x16xf32> to vector<16x16xbf16>
    %127 = vector.extract_strided_slice %77 {offsets = [0, 64], sizes = [16, 32], strides = [1, 1]} : vector<16x128xbf16> to vector<16x32xbf16>
    %cst_87 = arith.constant dense<0.000000e+00> : vector<16x32xf32>
    %128 = tpu.matmul %126, %127, %cst_87 {dimension_numbers = #tpu.dot_dimension_numbers<[1], [0], [0], [1], [0, 0, 1, 1], [], []>} : vector<16x16xbf16>, vector<16x32xbf16>, vector<16x32xf32> -> vector<16x32xf32>
    %129 = vector.extract_strided_slice %75 {offsets = [0, 96], sizes = [16, 32], strides = [1, 1]} : vector<16x128xbf16> to vector<16x32xbf16>
    %130 = vector.extract_strided_slice %76 {offsets = [0, 96], sizes = [16, 32], strides = [1, 1]} : vector<16x128xbf16> to vector<16x32xbf16>
    %cst_88 = arith.constant dense<0.000000e+00> : vector<16x16xf32>
    %131 = tpu.matmul %129, %130, %cst_88 {dimension_numbers = #tpu.dot_dimension_numbers<[1], [1], [0], [0], [0, 0, 1, 0], [], []>} : vector<16x32xbf16>, vector<16x32xbf16>, vector<16x16xf32> -> vector<16x16xf32>
    %132 = arith.addf %131, %1 : vector<16x16xf32>
    %cst_89 = arith.constant dense<0xFF800000> : vector<16xf32>
    %133 = vector.multi_reduction <maximumf>, %132, %cst_89 [1] : vector<16x16xf32> to vector<16xf32>
    %134 = vector.shape_cast %133 : vector<16xf32> to vector<16x1xf32>
    %135 = vector.broadcast %134 : vector<16x1xf32> to vector<16x16xf32>
    %136 = arith.subf %132, %135 : vector<16x16xf32>
    %137 = math.exp %136 : vector<16x16xf32>
    %cst_90 = arith.constant dense<0.000000e+00> : vector<16xf32>
    %138 = vector.multi_reduction <add>, %137, %cst_90 [1] : vector<16x16xf32> to vector<16xf32>
    %139 = vector.shape_cast %138 : vector<16xf32> to vector<16x1xf32>
    %140 = tpu.reciprocal %139 {approx = true} : vector<16x1xf32> -> vector<16x1xf32>
    %141 = vector.broadcast %140 : vector<16x1xf32> to vector<16x16xf32>
    %142 = arith.mulf %137, %141 : vector<16x16xf32>
    %143 = arith.truncf %142 : vector<16x16xf32> to vector<16x16xbf16>
    %144 = vector.extract_strided_slice %77 {offsets = [0, 96], sizes = [16, 32], strides = [1, 1]} : vector<16x128xbf16> to vector<16x32xbf16>
    %cst_91 = arith.constant dense<0.000000e+00> : vector<16x32xf32>
    %145 = tpu.matmul %143, %144, %cst_91 {dimension_numbers = #tpu.dot_dimension_numbers<[1], [0], [0], [1], [0, 0, 1, 1], [], []>} : vector<16x16xbf16>, vector<16x32xbf16>, vector<16x32xf32> -> vector<16x32xf32>
    %146 = tpu.concatenate %94, %111, %128, %145 in 1 : vector<16x32xf32>, vector<16x32xf32>, vector<16x32xf32>, vector<16x32xf32> -> vector<16x128xf32>
    %147 = arith.truncf %146 : vector<16x128xf32> to vector<16x128xbf16>
    %cst_92 = arith.constant dense<0.000000e+00> : vector<16x128xf32>
    %148 = tpu.matmul %147, %33, %cst_92 {dimension_numbers = #tpu.dot_dimension_numbers<[1], [0], [0], [1], [0, 0, 1, 1], [], []>} : vector<16x128xbf16>, vector<128x128xbf16>, vector<16x128xf32> -> vector<16x128xf32>
    %149 = vector.broadcast %35 : vector<1x128xf32> to vector<16x128xf32>
    %150 = arith.addf %148, %149 : vector<16x128xf32>
    %151 = arith.addf %27, %150 : vector<16x128xf32>
    %cst_93 = arith.constant dense<0.000000e+00> : vector<16xf32>
    %152 = vector.multi_reduction <add>, %151, %cst_93 [1] : vector<16x128xf32> to vector<16xf32>
    %153 = vector.shape_cast %152 : vector<16xf32> to vector<16x1xf32>
    %cst_94 = arith.constant 1.280000e+02 : f32
    %154 = vector.broadcast %cst_94 : f32 to vector<16x1xf32>
    %155 = arith.divf %153, %154 : vector<16x1xf32>
    %156 = vector.broadcast %155 : vector<16x1xf32> to vector<16x128xf32>
    %157 = arith.subf %151, %156 : vector<16x128xf32>
    %158 = arith.mulf %157, %157 : vector<16x128xf32>
    %cst_95 = arith.constant dense<0.000000e+00> : vector<16xf32>
    %159 = vector.multi_reduction <add>, %158, %cst_95 [1] : vector<16x128xf32> to vector<16xf32>
    %160 = vector.shape_cast %159 : vector<16xf32> to vector<16x1xf32>
    %cst_96 = arith.constant 1.280000e+02 : f32
    %161 = vector.broadcast %cst_96 : f32 to vector<16x1xf32>
    %162 = arith.divf %160, %161 : vector<16x1xf32>
    %163 = vector.broadcast %155 : vector<16x1xf32> to vector<16x128xf32>
    %164 = arith.subf %151, %163 : vector<16x128xf32>
    %cst_97 = arith.constant 9.99999974E-6 : f32
    %165 = vector.broadcast %cst_97 : f32 to vector<16x1xf32>
    %166 = arith.addf %162, %165 : vector<16x1xf32>
    %167 = math.rsqrt %166 : vector<16x1xf32>
    %168 = vector.broadcast %167 : vector<16x1xf32> to vector<16x128xf32>
    %169 = arith.mulf %164, %168 : vector<16x128xf32>
    %170 = vector.broadcast %37 : vector<1x128xf32> to vector<16x128xf32>
    %171 = arith.mulf %169, %170 : vector<16x128xf32>
    %172 = vector.broadcast %39 : vector<1x128xf32> to vector<16x128xf32>
    %173 = arith.addf %171, %172 : vector<16x128xf32>
    %174 = arith.truncf %173 : vector<16x128xf32> to vector<16x128xbf16>
    %cst_98 = arith.constant dense<0.000000e+00> : vector<16x128xf32>
    %175 = tpu.matmul %174, %41, %cst_98 {dimension_numbers = #tpu.dot_dimension_numbers<[1], [0], [0], [1], [0, 0, 1, 1], [], []>} : vector<16x128xbf16>, vector<128x128xbf16>, vector<16x128xf32> -> vector<16x128xf32>
    %176 = vector.broadcast %43 : vector<1x128xf32> to vector<16x128xf32>
    %177 = arith.addf %175, %176 : vector<16x128xf32>
    %cst_99 = arith.constant dense<0.000000e+00> : vector<32x256xf32>
    %178 = tpu.matmul %0, %45, %cst_99 {dimension_numbers = #tpu.dot_dimension_numbers<[1], [0], [0], [1], [0, 0, 1, 1], [], []>} : vector<32x128xbf16>, vector<128x256xbf16>, vector<32x256xf32> -> vector<32x256xf32>
    %179 = vector.broadcast %47 : vector<1x256xf32> to vector<32x256xf32>
    %180 = arith.addf %178, %179 : vector<32x256xf32>
    %181 = vector.extract_strided_slice %180 {offsets = [0, 0], sizes = [32, 128], strides = [1, 1]} : vector<32x256xf32> to vector<32x128xf32>
    %182 = vector.extract_strided_slice %180 {offsets = [0, 128], sizes = [32, 128], strides = [1, 1]} : vector<32x256xf32> to vector<32x128xf32>
    %183 = arith.truncf %177 : vector<16x128xf32> to vector<16x128xbf16>
    %184 = arith.truncf %181 : vector<32x128xf32> to vector<32x128xbf16>
    %185 = arith.truncf %182 : vector<32x128xf32> to vector<32x128xbf16>
    %186 = vector.extract_strided_slice %183 {offsets = [0, 0], sizes = [16, 32], strides = [1, 1]} : vector<16x128xbf16> to vector<16x32xbf16>
    %187 = vector.extract_strided_slice %184 {offsets = [0, 0], sizes = [32, 32], strides = [1, 1]} : vector<32x128xbf16> to vector<32x32xbf16>
    %cst_100 = arith.constant dense<0.000000e+00> : vector<16x32xf32>
    %188 = tpu.matmul %186, %187, %cst_100 {dimension_numbers = #tpu.dot_dimension_numbers<[1], [1], [0], [0], [0, 0, 1, 0], [], []>} : vector<16x32xbf16>, vector<32x32xbf16>, vector<16x32xf32> -> vector<16x32xf32>
    %189 = arith.addf %188, %2 : vector<16x32xf32>
    %cst_101 = arith.constant dense<0xFF800000> : vector<16xf32>
    %190 = vector.multi_reduction <maximumf>, %189, %cst_101 [1] : vector<16x32xf32> to vector<16xf32>
    %191 = vector.shape_cast %190 : vector<16xf32> to vector<16x1xf32>
    %192 = vector.broadcast %191 : vector<16x1xf32> to vector<16x32xf32>
    %193 = arith.subf %189, %192 : vector<16x32xf32>
    %194 = math.exp %193 : vector<16x32xf32>
    %cst_102 = arith.constant dense<0.000000e+00> : vector<16xf32>
    %195 = vector.multi_reduction <add>, %194, %cst_102 [1] : vector<16x32xf32> to vector<16xf32>
    %196 = vector.shape_cast %195 : vector<16xf32> to vector<16x1xf32>
    %197 = tpu.reciprocal %196 {approx = true} : vector<16x1xf32> -> vector<16x1xf32>
    %198 = vector.broadcast %197 : vector<16x1xf32> to vector<16x32xf32>
    %199 = arith.mulf %194, %198 : vector<16x32xf32>
    %200 = arith.truncf %199 : vector<16x32xf32> to vector<16x32xbf16>
    %201 = vector.extract_strided_slice %185 {offsets = [0, 0], sizes = [32, 32], strides = [1, 1]} : vector<32x128xbf16> to vector<32x32xbf16>
    %cst_103 = arith.constant dense<0.000000e+00> : vector<16x32xf32>
    %202 = tpu.matmul %200, %201, %cst_103 {dimension_numbers = #tpu.dot_dimension_numbers<[1], [0], [0], [1], [0, 0, 1, 1], [], []>} : vector<16x32xbf16>, vector<32x32xbf16>, vector<16x32xf32> -> vector<16x32xf32>
    %203 = vector.extract_strided_slice %183 {offsets = [0, 32], sizes = [16, 32], strides = [1, 1]} : vector<16x128xbf16> to vector<16x32xbf16>
    %204 = vector.extract_strided_slice %184 {offsets = [0, 32], sizes = [32, 32], strides = [1, 1]} : vector<32x128xbf16> to vector<32x32xbf16>
    %cst_104 = arith.constant dense<0.000000e+00> : vector<16x32xf32>
    %205 = tpu.matmul %203, %204, %cst_104 {dimension_numbers = #tpu.dot_dimension_numbers<[1], [1], [0], [0], [0, 0, 1, 0], [], []>} : vector<16x32xbf16>, vector<32x32xbf16>, vector<16x32xf32> -> vector<16x32xf32>
    %206 = arith.addf %205, %2 : vector<16x32xf32>
    %cst_105 = arith.constant dense<0xFF800000> : vector<16xf32>
    %207 = vector.multi_reduction <maximumf>, %206, %cst_105 [1] : vector<16x32xf32> to vector<16xf32>
    %208 = vector.shape_cast %207 : vector<16xf32> to vector<16x1xf32>
    %209 = vector.broadcast %208 : vector<16x1xf32> to vector<16x32xf32>
    %210 = arith.subf %206, %209 : vector<16x32xf32>
    %211 = math.exp %210 : vector<16x32xf32>
    %cst_106 = arith.constant dense<0.000000e+00> : vector<16xf32>
    %212 = vector.multi_reduction <add>, %211, %cst_106 [1] : vector<16x32xf32> to vector<16xf32>
    %213 = vector.shape_cast %212 : vector<16xf32> to vector<16x1xf32>
    %214 = tpu.reciprocal %213 {approx = true} : vector<16x1xf32> -> vector<16x1xf32>
    %215 = vector.broadcast %214 : vector<16x1xf32> to vector<16x32xf32>
    %216 = arith.mulf %211, %215 : vector<16x32xf32>
    %217 = arith.truncf %216 : vector<16x32xf32> to vector<16x32xbf16>
    %218 = vector.extract_strided_slice %185 {offsets = [0, 32], sizes = [32, 32], strides = [1, 1]} : vector<32x128xbf16> to vector<32x32xbf16>
    %cst_107 = arith.constant dense<0.000000e+00> : vector<16x32xf32>
    %219 = tpu.matmul %217, %218, %cst_107 {dimension_numbers = #tpu.dot_dimension_numbers<[1], [0], [0], [1], [0, 0, 1, 1], [], []>} : vector<16x32xbf16>, vector<32x32xbf16>, vector<16x32xf32> -> vector<16x32xf32>
    %220 = vector.extract_strided_slice %183 {offsets = [0, 64], sizes = [16, 32], strides = [1, 1]} : vector<16x128xbf16> to vector<16x32xbf16>
    %221 = vector.extract_strided_slice %184 {offsets = [0, 64], sizes = [32, 32], strides = [1, 1]} : vector<32x128xbf16> to vector<32x32xbf16>
    %cst_108 = arith.constant dense<0.000000e+00> : vector<16x32xf32>
    %222 = tpu.matmul %220, %221, %cst_108 {dimension_numbers = #tpu.dot_dimension_numbers<[1], [1], [0], [0], [0, 0, 1, 0], [], []>} : vector<16x32xbf16>, vector<32x32xbf16>, vector<16x32xf32> -> vector<16x32xf32>
    %223 = arith.addf %222, %2 : vector<16x32xf32>
    %cst_109 = arith.constant dense<0xFF800000> : vector<16xf32>
    %224 = vector.multi_reduction <maximumf>, %223, %cst_109 [1] : vector<16x32xf32> to vector<16xf32>
    %225 = vector.shape_cast %224 : vector<16xf32> to vector<16x1xf32>
    %226 = vector.broadcast %225 : vector<16x1xf32> to vector<16x32xf32>
    %227 = arith.subf %223, %226 : vector<16x32xf32>
    %228 = math.exp %227 : vector<16x32xf32>
    %cst_110 = arith.constant dense<0.000000e+00> : vector<16xf32>
    %229 = vector.multi_reduction <add>, %228, %cst_110 [1] : vector<16x32xf32> to vector<16xf32>
    %230 = vector.shape_cast %229 : vector<16xf32> to vector<16x1xf32>
    %231 = tpu.reciprocal %230 {approx = true} : vector<16x1xf32> -> vector<16x1xf32>
    %232 = vector.broadcast %231 : vector<16x1xf32> to vector<16x32xf32>
    %233 = arith.mulf %228, %232 : vector<16x32xf32>
    %234 = arith.truncf %233 : vector<16x32xf32> to vector<16x32xbf16>
    %235 = vector.extract_strided_slice %185 {offsets = [0, 64], sizes = [32, 32], strides = [1, 1]} : vector<32x128xbf16> to vector<32x32xbf16>
    %cst_111 = arith.constant dense<0.000000e+00> : vector<16x32xf32>
    %236 = tpu.matmul %234, %235, %cst_111 {dimension_numbers = #tpu.dot_dimension_numbers<[1], [0], [0], [1], [0, 0, 1, 1], [], []>} : vector<16x32xbf16>, vector<32x32xbf16>, vector<16x32xf32> -> vector<16x32xf32>
    %237 = vector.extract_strided_slice %183 {offsets = [0, 96], sizes = [16, 32], strides = [1, 1]} : vector<16x128xbf16> to vector<16x32xbf16>
    %238 = vector.extract_strided_slice %184 {offsets = [0, 96], sizes = [32, 32], strides = [1, 1]} : vector<32x128xbf16> to vector<32x32xbf16>
    %cst_112 = arith.constant dense<0.000000e+00> : vector<16x32xf32>
    %239 = tpu.matmul %237, %238, %cst_112 {dimension_numbers = #tpu.dot_dimension_numbers<[1], [1], [0], [0], [0, 0, 1, 0], [], []>} : vector<16x32xbf16>, vector<32x32xbf16>, vector<16x32xf32> -> vector<16x32xf32>
    %240 = arith.addf %239, %2 : vector<16x32xf32>
    %cst_113 = arith.constant dense<0xFF800000> : vector<16xf32>
    %241 = vector.multi_reduction <maximumf>, %240, %cst_113 [1] : vector<16x32xf32> to vector<16xf32>
    %242 = vector.shape_cast %241 : vector<16xf32> to vector<16x1xf32>
    %243 = vector.broadcast %242 : vector<16x1xf32> to vector<16x32xf32>
    %244 = arith.subf %240, %243 : vector<16x32xf32>
    %245 = math.exp %244 : vector<16x32xf32>
    %cst_114 = arith.constant dense<0.000000e+00> : vector<16xf32>
    %246 = vector.multi_reduction <add>, %245, %cst_114 [1] : vector<16x32xf32> to vector<16xf32>
    %247 = vector.shape_cast %246 : vector<16xf32> to vector<16x1xf32>
    %248 = tpu.reciprocal %247 {approx = true} : vector<16x1xf32> -> vector<16x1xf32>
    %249 = vector.broadcast %248 : vector<16x1xf32> to vector<16x32xf32>
    %250 = arith.mulf %245, %249 : vector<16x32xf32>
    %251 = arith.truncf %250 : vector<16x32xf32> to vector<16x32xbf16>
    %252 = vector.extract_strided_slice %185 {offsets = [0, 96], sizes = [32, 32], strides = [1, 1]} : vector<32x128xbf16> to vector<32x32xbf16>
    %cst_115 = arith.constant dense<0.000000e+00> : vector<16x32xf32>
    %253 = tpu.matmul %251, %252, %cst_115 {dimension_numbers = #tpu.dot_dimension_numbers<[1], [0], [0], [1], [0, 0, 1, 1], [], []>} : vector<16x32xbf16>, vector<32x32xbf16>, vector<16x32xf32> -> vector<16x32xf32>
    %254 = tpu.concatenate %202, %219, %236, %253 in 1 : vector<16x32xf32>, vector<16x32xf32>, vector<16x32xf32>, vector<16x32xf32> -> vector<16x128xf32>
    %255 = arith.truncf %254 : vector<16x128xf32> to vector<16x128xbf16>
    %cst_116 = arith.constant dense<0.000000e+00> : vector<16x128xf32>
    %256 = tpu.matmul %255, %49, %cst_116 {dimension_numbers = #tpu.dot_dimension_numbers<[1], [0], [0], [1], [0, 0, 1, 1], [], []>} : vector<16x128xbf16>, vector<128x128xbf16>, vector<16x128xf32> -> vector<16x128xf32>
    %257 = vector.broadcast %51 : vector<1x128xf32> to vector<16x128xf32>
    %258 = arith.addf %256, %257 : vector<16x128xf32>
    %259 = arith.addf %173, %258 : vector<16x128xf32>
    %cst_117 = arith.constant dense<0.000000e+00> : vector<16xf32>
    %260 = vector.multi_reduction <add>, %259, %cst_117 [1] : vector<16x128xf32> to vector<16xf32>
    %261 = vector.shape_cast %260 : vector<16xf32> to vector<16x1xf32>
    %cst_118 = arith.constant 1.280000e+02 : f32
    %262 = vector.broadcast %cst_118 : f32 to vector<16x1xf32>
    %263 = arith.divf %261, %262 : vector<16x1xf32>
    %264 = vector.broadcast %263 : vector<16x1xf32> to vector<16x128xf32>
    %265 = arith.subf %259, %264 : vector<16x128xf32>
    %266 = arith.mulf %265, %265 : vector<16x128xf32>
    %cst_119 = arith.constant dense<0.000000e+00> : vector<16xf32>
    %267 = vector.multi_reduction <add>, %266, %cst_119 [1] : vector<16x128xf32> to vector<16xf32>
    %268 = vector.shape_cast %267 : vector<16xf32> to vector<16x1xf32>
    %cst_120 = arith.constant 1.280000e+02 : f32
    %269 = vector.broadcast %cst_120 : f32 to vector<16x1xf32>
    %270 = arith.divf %268, %269 : vector<16x1xf32>
    %271 = vector.broadcast %263 : vector<16x1xf32> to vector<16x128xf32>
    %272 = arith.subf %259, %271 : vector<16x128xf32>
    %cst_121 = arith.constant 9.99999974E-6 : f32
    %273 = vector.broadcast %cst_121 : f32 to vector<16x1xf32>
    %274 = arith.addf %270, %273 : vector<16x1xf32>
    %275 = math.rsqrt %274 : vector<16x1xf32>
    %276 = vector.broadcast %275 : vector<16x1xf32> to vector<16x128xf32>
    %277 = arith.mulf %272, %276 : vector<16x128xf32>
    %278 = vector.broadcast %53 : vector<1x128xf32> to vector<16x128xf32>
    %279 = arith.mulf %277, %278 : vector<16x128xf32>
    %280 = vector.broadcast %55 : vector<1x128xf32> to vector<16x128xf32>
    %281 = arith.addf %279, %280 : vector<16x128xf32>
    %282 = arith.truncf %281 : vector<16x128xf32> to vector<16x128xbf16>
    %cst_122 = arith.constant dense<0.000000e+00> : vector<16x256xf32>
    %283 = tpu.matmul %282, %57, %cst_122 {dimension_numbers = #tpu.dot_dimension_numbers<[1], [0], [0], [1], [0, 0, 1, 1], [], []>} : vector<16x128xbf16>, vector<128x256xbf16>, vector<16x256xf32> -> vector<16x256xf32>
    %284 = vector.broadcast %59 : vector<1x256xf32> to vector<16x256xf32>
    %285 = arith.addf %283, %284 : vector<16x256xf32>
    %cst_123 = arith.constant 5.000000e-01 : f32
    %286 = vector.broadcast %cst_123 : f32 to vector<16x256xf32>
    %287 = arith.mulf %286, %285 : vector<16x256xf32>
    %cst_124 = arith.constant 4.471500e-02 : f32
    %288 = vector.broadcast %cst_124 : f32 to vector<16x256xf32>
    %289 = arith.mulf %288, %285 : vector<16x256xf32>
    %290 = arith.mulf %289, %285 : vector<16x256xf32>
    %291 = arith.mulf %290, %285 : vector<16x256xf32>
    %292 = arith.addf %285, %291 : vector<16x256xf32>
    %cst_125 = arith.constant 0.797884583 : f32
    %293 = vector.broadcast %cst_125 : f32 to vector<16x256xf32>
    %294 = arith.mulf %293, %292 : vector<16x256xf32>
    %295 = math.tanh %294 : vector<16x256xf32>
    %cst_126 = arith.constant 1.000000e+00 : f32
    %296 = vector.broadcast %cst_126 : f32 to vector<16x256xf32>
    %297 = arith.addf %296, %295 : vector<16x256xf32>
    %298 = arith.mulf %287, %297 : vector<16x256xf32>
    %299 = arith.truncf %298 : vector<16x256xf32> to vector<16x256xbf16>
    %cst_127 = arith.constant dense<0.000000e+00> : vector<16x128xf32>
    %300 = tpu.matmul %299, %61, %cst_127 {dimension_numbers = #tpu.dot_dimension_numbers<[1], [0], [0], [1], [0, 0, 1, 1], [], []>} : vector<16x256xbf16>, vector<256x128xbf16>, vector<16x128xf32> -> vector<16x128xf32>
    %301 = vector.broadcast %63 : vector<1x128xf32> to vector<16x128xf32>
    %302 = arith.addf %300, %301 : vector<16x128xf32>
    %303 = arith.addf %281, %302 : vector<16x128xf32>
    %cst_128 = arith.constant dense<0.000000e+00> : vector<16xf32>
    %304 = vector.multi_reduction <add>, %303, %cst_128 [1] : vector<16x128xf32> to vector<16xf32>
    %305 = vector.shape_cast %304 : vector<16xf32> to vector<16x1xf32>
    %cst_129 = arith.constant 1.280000e+02 : f32
    %306 = vector.broadcast %cst_129 : f32 to vector<16x1xf32>
    %307 = arith.divf %305, %306 : vector<16x1xf32>
    %308 = vector.broadcast %307 : vector<16x1xf32> to vector<16x128xf32>
    %309 = arith.subf %303, %308 : vector<16x128xf32>
    %310 = arith.mulf %309, %309 : vector<16x128xf32>
    %cst_130 = arith.constant dense<0.000000e+00> : vector<16xf32>
    %311 = vector.multi_reduction <add>, %310, %cst_130 [1] : vector<16x128xf32> to vector<16xf32>
    %312 = vector.shape_cast %311 : vector<16xf32> to vector<16x1xf32>
    %cst_131 = arith.constant 1.280000e+02 : f32
    %313 = vector.broadcast %cst_131 : f32 to vector<16x1xf32>
    %314 = arith.divf %312, %313 : vector<16x1xf32>
    %315 = vector.broadcast %307 : vector<16x1xf32> to vector<16x128xf32>
    %316 = arith.subf %303, %315 : vector<16x128xf32>
    %cst_132 = arith.constant 9.99999974E-6 : f32
    %317 = vector.broadcast %cst_132 : f32 to vector<16x1xf32>
    %318 = arith.addf %314, %317 : vector<16x1xf32>
    %319 = math.rsqrt %318 : vector<16x1xf32>
    %320 = vector.broadcast %319 : vector<16x1xf32> to vector<16x128xf32>
    %321 = arith.mulf %316, %320 : vector<16x128xf32>
    %322 = vector.broadcast %65 : vector<1x128xf32> to vector<16x128xf32>
    %323 = arith.mulf %321, %322 : vector<16x128xf32>
    %324 = vector.broadcast %67 : vector<1x128xf32> to vector<16x128xf32>
    %325 = arith.addf %323, %324 : vector<16x128xf32>
    %326 = arith.truncf %325 : vector<16x128xf32> to vector<16x128xbf16>
    %c0_133 = arith.constant 0 : index
    %c0_134 = arith.constant 0 : index
    %327 = vector.load %arg27[%c0_133, %c0_134] : memref<16x128xbf16, #tpu.memory_space<vmem>>, vector<16x128xbf16>
    tpu.vector_store %arg27[%c0_133, %c0_134], %326 {strides = array<i32>} : memref<16x128xbf16, #tpu.memory_space<vmem>>, vector<16x128xbf16>,
    return
  }
  func.func @transform_0(%arg0: i32) -> (i32, i32) {
    %c0_i32 = arith.constant 0 : i32
    %c0_i32_0 = arith.constant 0 : i32
    %c0_i32_1 = arith.constant 0 : i32
    return %c0_i32, %c0_i32_0 : i32, i32
  }
  func.func @transform_1(%arg0: i32) -> (i32, i32) {
    %c0_i32 = arith.constant 0 : i32
    %c0_i32_0 = arith.constant 0 : i32
    %c0_i32_1 = arith.constant 0 : i32
    return %c0_i32, %c0_i32_0 : i32, i32
  }
  func.func @transform_2(%arg0: i32) -> (i32, i32) {
    %c0_i32 = arith.constant 0 : i32
    %c0_i32_0 = arith.constant 0 : i32
    %c0_i32_1 = arith.constant 0 : i32
    return %c0_i32, %c0_i32_0 : i32, i32
  }
  func.func @transform_3(%arg0: i32) -> (i32, i32) {
    %c0_i32 = arith.constant 0 : i32
    %c0_i32_0 = arith.constant 0 : i32
    %c0_i32_1 = arith.constant 0 : i32
    return %c0_i32, %c0_i32_0 : i32, i32
  }
  func.func @transform_4(%arg0: i32) -> (i32, i32) {
    %c0_i32 = arith.constant 0 : i32
    %c0_i32_0 = arith.constant 0 : i32
    %c0_i32_1 = arith.constant 0 : i32
    return %c0_i32, %c0_i32_0 : i32, i32
  }
  func.func @transform_5(%arg0: i32) -> (i32, i32) {
    %c0_i32 = arith.constant 0 : i32
    %c0_i32_0 = arith.constant 0 : i32
    %c0_i32_1 = arith.constant 0 : i32
    return %c0_i32, %c0_i32_0 : i32, i32
  }
  func.func @transform_6(%arg0: i32) -> (i32, i32, i32) {
    %c0_i32 = arith.constant 0 : i32
    %c0_i32_0 = arith.constant 0 : i32
    %c0_i32_1 = arith.constant 0 : i32
    %c0_i32_2 = arith.constant 0 : i32
    return %c0_i32, %c0_i32_0, %c0_i32_1 : i32, i32, i32
  }
  func.func @transform_7(%arg0: i32) -> (i32, i32, i32) {
    %c0_i32 = arith.constant 0 : i32
    %c0_i32_0 = arith.constant 0 : i32
    %c0_i32_1 = arith.constant 0 : i32
    %c0_i32_2 = arith.constant 0 : i32
    return %c0_i32, %c0_i32_0, %c0_i32_1 : i32, i32, i32
  }
  func.func @transform_8(%arg0: i32) -> (i32, i32, i32) {
    %c0_i32 = arith.constant 0 : i32
    %c0_i32_0 = arith.constant 0 : i32
    %c0_i32_1 = arith.constant 0 : i32
    %c0_i32_2 = arith.constant 0 : i32
    return %c0_i32, %c0_i32_0, %c0_i32_1 : i32, i32, i32
  }
  func.func @transform_9(%arg0: i32) -> (i32, i32, i32) {
    %c0_i32 = arith.constant 0 : i32
    %c0_i32_0 = arith.constant 0 : i32
    %c0_i32_1 = arith.constant 0 : i32
    %c0_i32_2 = arith.constant 0 : i32
    return %c0_i32, %c0_i32_0, %c0_i32_1 : i32, i32, i32
  }
  func.func @transform_10(%arg0: i32) -> (i32, i32, i32) {
    %c0_i32 = arith.constant 0 : i32
    %c0_i32_0 = arith.constant 0 : i32
    %c0_i32_1 = arith.constant 0 : i32
    %c0_i32_2 = arith.constant 0 : i32
    return %c0_i32, %c0_i32_0, %c0_i32_1 : i32, i32, i32
  }
  func.func @transform_11(%arg0: i32) -> (i32, i32, i32) {
    %c0_i32 = arith.constant 0 : i32
    %c0_i32_0 = arith.constant 0 : i32
    %c0_i32_1 = arith.constant 0 : i32
    %c0_i32_2 = arith.constant 0 : i32
    return %c0_i32, %c0_i32_0, %c0_i32_1 : i32, i32, i32
  }
  func.func @transform_12(%arg0: i32) -> (i32, i32, i32) {
    %c0_i32 = arith.constant 0 : i32
    %c0_i32_0 = arith.constant 0 : i32
    %c0_i32_1 = arith.constant 0 : i32
    %c0_i32_2 = arith.constant 0 : i32
    return %c0_i32, %c0_i32_0, %c0_i32_1 : i32, i32, i32
  }
  func.func @transform_13(%arg0: i32) -> (i32, i32, i32) {
    %c0_i32 = arith.constant 0 : i32
    %c0_i32_0 = arith.constant 0 : i32
    %c0_i32_1 = arith.constant 0 : i32
    %c0_i32_2 = arith.constant 0 : i32
    return %c0_i32, %c0_i32_0, %c0_i32_1 : i32, i32, i32
  }
  func.func @transform_14(%arg0: i32) -> (i32, i32, i32) {
    %c0_i32 = arith.constant 0 : i32
    %c0_i32_0 = arith.constant 0 : i32
    %c0_i32_1 = arith.constant 0 : i32
    %c0_i32_2 = arith.constant 0 : i32
    return %c0_i32, %c0_i32_0, %c0_i32_1 : i32, i32, i32
  }
  func.func @transform_15(%arg0: i32) -> (i32, i32, i32) {
    %c0_i32 = arith.constant 0 : i32
    %c0_i32_0 = arith.constant 0 : i32
    %c0_i32_1 = arith.constant 0 : i32
    %c0_i32_2 = arith.constant 0 : i32
    return %c0_i32, %c0_i32_0, %c0_i32_1 : i32, i32, i32
  }
  func.func @transform_16(%arg0: i32) -> (i32, i32, i32) {
    %c0_i32 = arith.constant 0 : i32
    %c0_i32_0 = arith.constant 0 : i32
    %c0_i32_1 = arith.constant 0 : i32
    %c0_i32_2 = arith.constant 0 : i32
    return %c0_i32, %c0_i32_0, %c0_i32_1 : i32, i32, i32
  }
  func.func @transform_17(%arg0: i32) -> (i32, i32, i32) {
    %c0_i32 = arith.constant 0 : i32
    %c0_i32_0 = arith.constant 0 : i32
    %c0_i32_1 = arith.constant 0 : i32
    %c0_i32_2 = arith.constant 0 : i32
    return %c0_i32, %c0_i32_0, %c0_i32_1 : i32, i32, i32
  }
  func.func @transform_18(%arg0: i32) -> (i32, i32, i32) {
    %c0_i32 = arith.constant 0 : i32
    %c0_i32_0 = arith.constant 0 : i32
    %c0_i32_1 = arith.constant 0 : i32
    %c0_i32_2 = arith.constant 0 : i32
    return %c0_i32, %c0_i32_0, %c0_i32_1 : i32, i32, i32
  }
  func.func @transform_19(%arg0: i32) -> (i32, i32, i32) {
    %c0_i32 = arith.constant 0 : i32
    %c0_i32_0 = arith.constant 0 : i32
    %c0_i32_1 = arith.constant 0 : i32
    %c0_i32_2 = arith.constant 0 : i32
    return %c0_i32, %c0_i32_0, %c0_i32_1 : i32, i32, i32
  }
  func.func @transform_20(%arg0: i32) -> (i32, i32, i32) {
    %c0_i32 = arith.constant 0 : i32
    %c0_i32_0 = arith.constant 0 : i32
    %c0_i32_1 = arith.constant 0 : i32
    %c0_i32_2 = arith.constant 0 : i32
    return %c0_i32, %c0_i32_0, %c0_i32_1 : i32, i32, i32
  }
  func.func @transform_21(%arg0: i32) -> (i32, i32, i32) {
    %c0_i32 = arith.constant 0 : i32
    %c0_i32_0 = arith.constant 0 : i32
    %c0_i32_1 = arith.constant 0 : i32
    %c0_i32_2 = arith.constant 0 : i32
    return %c0_i32, %c0_i32_0, %c0_i32_1 : i32, i32, i32
  }
  func.func @transform_22(%arg0: i32) -> (i32, i32, i32) {
    %c0_i32 = arith.constant 0 : i32
    %c0_i32_0 = arith.constant 0 : i32
    %c0_i32_1 = arith.constant 0 : i32
    %c0_i32_2 = arith.constant 0 : i32
    return %c0_i32, %c0_i32_0, %c0_i32_1 : i32, i32, i32
  }
  func.func @transform_23(%arg0: i32) -> (i32, i32, i32) {
    %c0_i32 = arith.constant 0 : i32
    %c0_i32_0 = arith.constant 0 : i32
    %c0_i32_1 = arith.constant 0 : i32
    %c0_i32_2 = arith.constant 0 : i32
    return %c0_i32, %c0_i32_0, %c0_i32_1 : i32, i32, i32
  }
  func.func @transform_24(%arg0: i32) -> (i32, i32, i32) {
    %c0_i32 = arith.constant 0 : i32
    %c0_i32_0 = arith.constant 0 : i32
    %c0_i32_1 = arith.constant 0 : i32
    %c0_i32_2 = arith.constant 0 : i32
    return %c0_i32, %c0_i32_0, %c0_i32_1 : i32, i32, i32
  }
  func.func @transform_25(%arg0: i32) -> (i32, i32, i32) {
    %c0_i32 = arith.constant 0 : i32
    %c0_i32_0 = arith.constant 0 : i32
    %c0_i32_1 = arith.constant 0 : i32
    %c0_i32_2 = arith.constant 0 : i32
    return %c0_i32, %c0_i32_0, %c0_i32_1 : i32, i32, i32
  }
  func.func @transform_26(%arg0: i32) -> (i32, i32) {
    %c0_i32 = arith.constant 0 : i32
    %c0_i32_0 = arith.constant 0 : i32
    %c0_i32_1 = arith.constant 0 : i32
    return %c0_i32, %c0_i32_0 : i32, i32
  }
}

</mosaic_0001>

<bundles_post_ra>
// kernel: codeformer_forward.5
= control target key start
LH: loop header
LB: loop body
LE: loop exit
PB: predicated region body
PF: predicated region fallthrough
CT: control target
= control target key end

     0   :  { %11 = vsyncpa [#allocation3], 0  ;;  %v476_v2 = vmov 0   ;;  %s609_s0 = inlined_call_operand.vmem [shape: bf16[16,128], index: 0, kind: input, shape index: {}]   ;;  %s610_s1 = inlined_call_operand.vmem [shape: bf16[256,128], index: 1, kind: input, shape index: {}]   ;;  %s611_s2 = inlined_call_operand.vmem [shape: f32[1,256], index: 2, kind: input, shape index: {}]   ;;  %s612_s3 = inlined_call_operand.vmem [shape: s32[16,1], index: 3, kind: input, shape index: {}]   ;;  %s613_s4 = inlined_call_operand.hbm [shape: f32[16,256], index: 4, kind: output, shape index: {0}]   ;;  %s614_s5 = inlined_call_operand.hbm [shape: f32[1,1], index: 5, kind: output, shape index: {1}]  }
   0x1   :  { %v397_v0 = vld [vmem:[%s610_s1 + $0x40] sm:$0xff]   ;;  %395 = vset.pattern.permute.xlu1 %v476_v2  ;;  %396 = vset.pattern.permute.xlu0 %v476_v2  ;;  %v399_v3 = vld [vmem:[%s610_s1 + $0x48] sm:$0xff]   ;;  %v401_v5 = vld [vmem:[%s610_s1 + $0x50] sm:$0xff]  }
   0x2   :  { %v398_v1 = vld [vmem:[%s610_s1] sm:$0xff]   ;;  %364 = vmatprep.subr.bf16.mxu0 %v397_v0  ;;  %v400_v4 = vld [vmem:[%s610_s1 + $0x8] sm:$0xff]   ;;  %v402_v6 = vld [vmem:[%s610_s1 + $0x10] sm:$0xff]  }
   0x3   :  { %365 = vmatpush3.bf16.xpose.msra.mxu0 %v398_v1  ;;  %v403_v7 = vld [vmem:[%s610_s1 + $0x58] sm:$0xff]   ;;  %v413_v8 = vld [vmem:[%s609_s0] sm:$0xff]  }
   0x4   :  { %366 = vmatprep.subr.bf16.mxu0 %v399_v3  ;;  %v540_v9 = vld [vmem:[%s612_s3] sm:$0xff] }
   0xb   :  { %367 = vmatpush3.bf16.xpose.msra.mxu0 %v400_v4 }
   0xc   :  { %368 = vmatprep.subr.bf16.mxu0 %v401_v5 }
   0xd   :  { %12 = vsyncpa [#allocation5], 0  ;;  %380 = vmatprep.mubr.bf16.mxu0 %v413_v8  ;;  %253 = vperm.xlu1 %395, %v540_v9   ;;  %v546_v10 = vld [vmem:[%s612_s3 + $0x8] sm:$0xff]  ;;  %v404_v11 = vld [vmem:[%s610_s1 + $0x18] sm:$0xff]   ;;  %v58_v20 = vlaneseq  ;;  %vm274_vm4 = vcmp.ne.s32.totalorder %v540_v9, 4294967196  ;;  %v477_v63 = vmov 0.0  }
   0xe   :  { %v405_v12 = vld [vmem:[%s610_s1 + $0x60] sm:$0xff]   ;;  %v407_v14 = vld [vmem:[%s610_s1 + $0x68] sm:$0xff]   ;;  %v409_v16 = vld [vmem:[%s610_s1 + $0x70] sm:$0xff]   ;;  %vm275_vm5 = vcmp.ne.s32.totalorder %v546_v10, 4294967196  ;;  %v362_v0 = vsel %vm274_vm4, 1.0, %v477_v63  ;;  %vm282_vm6 = vcmask 7168  }
   0xf   :  { %v406_v13 = vld [vmem:[%s610_s1 + $0x20] sm:$0xff]   ;;  %v408_v15 = vld [vmem:[%s610_s1 + $0x28] sm:$0xff]   ;;  %v410_v17 = vld [vmem:[%s610_s1 + $0x30] sm:$0xff]   ;;  %v59_v21 = vshrl.u32 %v58_v20, 7  ;;  %v250_v45 = vand.u32 127, %v58_v20  ;;  %v363_v1 = vsel %vm275_vm5, 1.0, %v477_v63 }
  0x10   :  { %v411_v18 = vld [vmem:[%s610_s1 + $0x78] sm:$0xff]   ;;  %v56_v23 = vld [vmem:[%s611_s2] sm:$0x3]  ;;  %v295_v2 = vsel %vm282_vm6, %v362_v0, 0.0  ;;  %v296_v3 = vsel %vm282_vm6, %v363_v1, 0.0 }
  0x11   :  { %256 = vperm.xlu1 %395, %v546_v10   ;;  %v412_v19 = vld [vmem:[%s610_s1 + $0x38] sm:$0xff]   ;;  %v60_v22 = vsub.s32 0, %v59_v21  ;;  %v64_v24 = vsub.s32 1, %v59_v21  ;;  %v251_v49 = vadd.s32 128, %v250_v45  ;;  %v297_v4 = vadd.f32 %v296_v3, %v295_v2  ;;  %s478_s1 = smov [#allocation2]  }
  0x12   :  { %s320_s2 = sshll.u32 %s478_s1, 4  ;;  %s321_s2 = int_to_ptr.vmem [resolvable:$true] %s320_s2 }
  0x13   :  { %369 = vmatpush3.bf16.xpose.msra.mxu0 %v402_v6  ;;  %v61_v25 = vrot.slane %v56_v23, %v60_v22  ;;  %v65_v26 = vrot.slane %v56_v23, %v64_v24  ;;  %s428_s6 = scalar_lea.vmem %s321_s2, 512  ;;  %p433_p1 = scmp.lt.s32.totalorder %s321_s2, %s321_s2 }
  0x14   :  { %370 = vmatprep.subr.bf16.mxu0 %v403_v7  ;;  %p429_p0 = scmp.ne.s32.totalorder %s321_s2, %s428_s6  ;;  %p434_p2 = scmp.lt.s32.totalorder %s428_s6, %s428_s6 }
  0x16   :  { %p435_p3 = por %p434_p2, %p433_p1 }
  0x18   :  { %p436_p4 = pnand %p435_p3, %p429_p0 }
  0x1b   :  { %371 = vmatpush3.bf16.xpose.msra.mxu0 %v404_v11 }
  0x1c   :  { %372 = vmatprep.subr.bf16.mxu0 %v405_v12 }
  0x23   :  { %373 = vmatpush3.bf16.xpose.msra.mxu0 %v406_v13 }
  0x24   :  { %374 = vmatprep.subr.bf16.mxu0 %v407_v14 }
  0x2b   :  { %375 = vmatpush3.bf16.xpose.msra.mxu0 %v408_v15 }
  0x2c   :  { %376 = vmatprep.subr.bf16.mxu0 %v409_v16 }
  0x33   :  { %377 = vmatpush3.bf16.xpose.msra.mxu0 %v410_v17 }
  0x34   :  { %378 = vmatprep.subr.bf16.mxu0 %v411_v18 }
  0x3b   :  { %379 = vmatpush3.bf16.xpose.msra.mxu0 %v412_v19 }
  0x42   :  { %381 = vmatmul.mubr.bf16.vlgmr.msra.gmra.mrb[0].mxu0 %v413_v8 }
  0x8c   :  { %v254_v48 = vpop.permute.xlu1 %253 }
  0x8d   :  { %vm258_vm0 = vcmp.eq.s32.totalorder %v250_v45, %v254_v48  ;;  %vm259_vm1 = vcmp.eq.s32.totalorder %v251_v49, %v254_v48 }
  0x90   :  { %v257_v52 = vpop.permute.xlu1 %256 }
  0x91   :  { %vm260_vm2 = vcmp.eq.s32.totalorder %v250_v45, %v257_v52  ;;  %vm261_vm3 = vcmp.eq.s32.totalorder %v251_v49, %v257_v52 }
 0x115   :  { %v204_v27 = vpop.f32.mrb[0].mxu0 }
 0x116   :  { %v205_v28 = vadd.f32 %v204_v27, %v61_v25  ;;  %v206_v29 = vpop.f32.mrb[1].mxu0 }
 0x117   :  { %v207_v30 = vadd.f32 %v206_v29, %v65_v26  ;;  %v208_v31 = vpop.f32.mrb[2].mxu0 }
 0x118   :  { %213 = vst [vmem:[#allocation2] sm:$0xff] %v205_v28  ;;  %v209_v32 = vadd.f32 %v208_v31, %v61_v25  ;;  %v210_v33 = vpop.f32.mrb[3].mxu0  ;;  %v262_v54 = vsel %vm258_vm0, %v205_v28, 0.0 }
 0x119   :  { %214 = vst [vmem:[#allocation2 + $0x8] sm:$0xff] %v207_v30  ;;  %v211_v34 = vadd.f32 %v210_v33, %v65_v26  ;;  %v219_v35 = vmax.f32 %v205_v28, %v207_v30  ;;  %v263_v55 = vsel %vm259_vm1, %v207_v30, 0.0 }
 0x11a   :  { %215 = vst [vmem:[#allocation2 + $0x10] sm:$0xff] %v209_v32  ;;  %v266_v58 = vadd.f32 %v263_v55, %v262_v54  ;;  %v264_v60 = vsel %vm260_vm2, %v209_v32, 0.0 }
 0x11b   :  { %216 = vst [vmem:[#allocation2 + $0x18] sm:$0xff] %v211_v34  ;;  %220 = vmax.xlane.f32.xlu0 %v219_v35  ;;  %v222_v36 = vmax.f32 %v209_v32, %v211_v34  ;;  %v265_v61 = vsel %vm261_vm3, %v211_v34, 0.0 }
 0x11c   :  { %v269_v62 = vadd.f32 %v265_v61, %v264_v60 }
 0x11f   :  { %223 = vmax.xlane.f32.xlu0 %v222_v36 }
 0x1a8   :  { %v221_v37 = vpop.xlane.xlu0 %220 }
 0x1a9   :  { %v225_v38 = vsub.f32 %v205_v28, %v221_v37  ;;  %v226_v39 = vsub.f32 %v207_v30, %v221_v37 }
 0x1ab   :  { %v229_v40 = vmul.f32 1.442695, %v225_v38  ;;  %v231_v41 = vmul.f32 1.442695, %v226_v39 }
 0x1ac   :  { %v224_v42 = vpop.xlane.xlu0 %223 }
 0x1ad   :  { %414 = vpow2.f32 %v229_v40  ;;  %v227_v43 = vsub.f32 %v209_v32, %v224_v42  ;;  %v228_v44 = vsub.f32 %v211_v34, %v224_v42 }
 0x1ae   :  { %416 = vpow2.f32 %v231_v41 }
 0x1af   :  { %v233_v46 = vmul.f32 1.442695, %v227_v43  ;;  %v235_v47 = vmul.f32 1.442695, %v228_v44 }
 0x1b1   :  { %418 = vpow2.f32 %v233_v46 }
 0x1b2   :  { %420 = vpow2.f32 %v235_v47 }
 0x1b7   :  { %v415_v50 = vpop.eup %414 }
 0x1b8   :  { %v417_v51 = vpop.eup %416 }
 0x1b9   :  { %v237_v53 = vadd.f32 %v417_v51, %v415_v50 }
 0x1bb   :  { %v419_v56 = vpop.eup %418  ;;  %238 = vadd.xlane.f32.xlu0 %v237_v53 }
 0x1bc   :  { %v421_v57 = vpop.eup %420 }
 0x1bd   :  { %v240_v59 = vadd.f32 %v421_v57, %v419_v56 }
 0x1bf   :  { %267 = vadd.xlane.f32.xlu0 %v266_v58  ;;  %241 = vadd.xlane.f32.xlu1 %v240_v59 }
 0x1c3   :  { %270 = vadd.xlane.f32.xlu0 %v269_v62 }
 0x248   :  { %v239_v5 = vpop.xlane.xlu0 %238 }
 0x249   :  { %422 = vlog2.f32 %v239_v5 }
 0x24c   :  { %v242_v6 = vpop.xlane.xlu1 %241  ;;  %v268_v11 = vpop.xlane.xlu0 %267 }
 0x24d   :  { %424 = vlog2.f32 %v242_v6 }
 0x250   :  { %v271_v15 = vpop.xlane.xlu0 %270 }
 0x253   :  { %v423_v7 = vpop.eup %422 }
 0x254   :  { %v244_v8 = vmul.f32 0.6931472, %v423_v7 }
 0x256   :  { %v247_v12 = vadd.f32 %v244_v8, %v221_v37 }
 0x257   :  { %v425_v9 = vpop.eup %424 }
 0x258   :  { %v246_v13 = vmul.f32 0.6931472, %v425_v9  ;;  %v272_v10 = vsub.f32 %v247_v12, %v268_v11 }
 0x25a   :  { %v248_v14 = vadd.f32 %v246_v13, %v224_v42  ;;  %v280_v16 = vmul.f32 %v362_v0, %v272_v10 }
 0x25c   :  { %v273_v17 = vsub.f32 %v248_v14, %v271_v15  ;;  %v283_v19 = vsel %vm282_vm6, %v280_v16, 0.0 }
 0x25e   :  { %v281_v18 = vmul.f32 %v363_v1, %v273_v17 }
 0x260   :  { %v284_v20 = vsel %vm282_vm6, %v281_v18, 0.0 }
 0x261   :  { %v285_v21 = vadd.f32 %v284_v20, %v283_v19 }
 0x263   :  { %286 = vadd.xlane.f32.xlu0 %v285_v21 }
 0x267   :  { %298 = vadd.xlane.f32.xlu0 %v297_v4 }
 0x2f0   :  { %v287_v22 = vpop.xlane.xlu0 %286 }
 0x2f1   :  { %v288_v23 = vrot.slane %v287_v22, 4 }
 0x2f3   :  { %v289_v24 = vadd.f32 %v288_v23, %v287_v22 }
 0x2f4   :  { %v299_v25 = vpop.xlane.xlu0 %298 }
 0x2f5   :  { %v290_v26 = vrot.slane %v289_v24, 2  ;;  %v300_v27 = vrot.slane %v299_v25, 4 }
 0x2f6   :  { %439 = shalt.err (!%p436_p4)
}
 0x2f7   :  { %s440_s9 = scalar_lea.hbm %s613_s4, 512 }
 0x2f8   :  { %p441_p5 = scmp.ne.s32.totalorder %s613_s4, %s440_s9  ;;  %p444_p6 = scmp.lt.u32.totalorder %s440_s9, %s613_s4 }
 0x2fa   :  { %p446_p7 = pnand %p444_p6, %p441_p5 }
 0x2fc   :  { %449 = shalt.err (!%p446_p7)
}
 0x2fd   :  { %s479_s0 = smov 256   ;;  %s480_s14 = smov 16   ;;  %v301_v28 = vadd.f32 %v300_v27, %v299_v25  ;;  %v291_v29 = vadd.f32 %v290_v26, %v289_v24  ;;  %vm313_vm7 = vcmask 0  }
 0x2fe   :  { %326 = dma.vmem_to_hbm [thread:$0]  %s321_s2, 512, %s613_s4, [#allocation3], %s479_s0, %s479_s0, %s480_s14  }
 0x2ff   :  { %v302_v30 = vrot.slane %v301_v28, 2  ;;  %v292_v31 = vrot.slane %v291_v29, 1  ;;  %s481_s3 = smov 1.0   ;;  %s482_s20 = smov [#allocation4]  }
 0x300   :  { %s333_s4 = sshll.u32 %s482_s20, 4  ;;  %s334_s4 = int_to_ptr.vmem [resolvable:$true] %s333_s4 }
 0x301   :  { %v303_v32 = vadd.f32 %v302_v30, %v301_v28  ;;  %v293_v33 = vadd.f32 %v292_v31, %v291_v29  ;;  %s450_s23 = scalar_lea.vmem %s334_s4, 16  ;;  %s454_s24 = scalar_lea.vmem %s334_s4, 32 }
 0x302   :  { %p451_p8 = scmp.ne.s32.totalorder %s334_s4, %s450_s23  ;;  %p455_p9 = scmp.lt.s32.totalorder %s334_s4, %s334_s4 }
 0x303   :  { %382 = vpush %v293_v33  ;;  %v304_v34 = vrot.slane %v303_v32, 1  ;;  %p456_p10 = scmp.lt.s32.totalorder %s454_s24, %s450_s23 }
 0x305   :  { %v305_v35 = vadd.f32 %v304_v34, %v303_v32  ;;  %p457_p11 = por %p456_p10, %p455_p9 }
 0x307   :  { %384 = vpush %v305_v35  ;;  %p458_p12 = pnand %p457_p11, %p451_p8 }
 0x334   :  { %s383_s17 = spop %382 }
 0x338   :  { %s385_s18 = spop %384 }
 0x339   :  { %s307_s19 = smax.f32 %s481_s3, %s385_s18 }
 0x33a   :  { %v308_v36 = vstv %s307_s19 }
 0x33b   :  { %426 = vrcp.f32 %v308_v36 }
 0x345   :  { %v427_v37 = vpop.eup %426 }
 0x346   :  { %386 = vpush %v427_v37 }
 0x377   :  { %s387_s21 = spop %386 }
 0x378   :  { %s311_s22 = smul.f32 %s387_s21, %s383_s17 }
 0x37a   :  { %v312_v38 = vstv %s311_s22 }
 0x37b   :  { %314 = vst.msk [vmem:[#allocation4] sm:$0x1] %vm313_vm7, %v312_v38 }
 0x37c   :  { %461 = shalt.err (!%p458_p12)
}
 0x37d   :  { %s462_s27 = scalar_lea.hbm %s614_s5, 16 }
 0x37e   :  { %p463_p13 = scmp.ne.s32.totalorder %s614_s5, %s462_s27  ;;  %p466_p0 = scmp.lt.u32.totalorder %s462_s27, %s614_s5 }
 0x380   :  { %p468_p1 = pnand %p466_p0, %p463_p13 }
 0x382   :  { %471 = shalt.err (!%p468_p1)
}
 0x383   :  { %336 = dma.vmem_to_hbm [thread:$0]  %s334_s4, 16, %s614_s5, [#allocation5]  }
 0x384   :  { %472 = dma.done.wait [#allocation3], 512  }
 0x385   :  { %473 = vsyncadd [#allocation3], 4294966784 }
 0x386   :  { %474 = dma.done.wait [#allocation5], 16  }
 0x387   :  { %475 = vsyncadd [#allocation5], 4294967280 }
 0x388   :  { %343 = vsyncpa [#allocation3], 1 }
 0x389   :  { %344 = vsyncpa [#allocation5], 1 }

// kernel: codeformer_forward.4
= control target key start
LH: loop header
LB: loop body
LE: loop exit
PB: predicated region body
PF: predicated region fallthrough
CT: control target
= control target key end

     0   :  { %v3147_v3 = vmov 0.0   ;;  %v3148_v30 = vmov 0   ;;  %vm3149_vm0 = vmmov 0   ;;  %v294_v53 = vlaneseq  ;;  %s3151_s29 = smov 64   ;;  %s3952_s0 = inlined_call_operand.vmem [shape: f32[16,128], index: 0, kind: input, shape index: {}]   ;;  %s3953_s6 = inlined_call_operand.vmem [shape: bf16[1,128,384], index: 6, kind: input, shape index: {}]   ;;  %s3954_s4 = inlined_call_operand.vmem [shape: f32[1,128], index: 4, kind: input, shape index: {}]   ;;  %s3955_s5 = inlined_call_operand.vmem [shape: f32[1,128], index: 5, kind: input, shape index: {}]   ;;  %s3956_s7 = inlined_call_operand.vmem [shape: f32[1,1,384], index: 7, kind: input, shape index: {}]   ;;  %s3957_s2 = inlined_call_operand.vmem [shape: f32[16,16], index: 2, kind: input, shape index: {}]   ;;  %s3958_s8 = inlined_call_operand.vmem [shape: bf16[1,128,128], index: 8, kind: input, shape index: {}]   ;;  %s3959_s9 = inlined_call_operand.vmem [shape: f32[1,1,128], index: 9, kind: input, shape index: {}]   ;;  %s3960_s14 = inlined_call_operand.vmem [shape: bf16[1,128,256], index: 14, kind: input, shape index: {}]   ;;  %s3961_s12 = inlined_call_operand.vmem [shape: bf16[1,128,128], index: 12, kind: input, shape index: {}]   ;;  %s3962_s1 = inlined_call_operand.vmem [shape: bf16[32,128], index: 1, kind: input, shape index: {}]   ;;  %s3963_s10 = inlined_call_operand.vmem [shape: f32[1,1,128], index: 10, kind: input, shape index: {}]   ;;  %s3964_s11 = inlined_call_operand.vmem [shape: f32[1,1,128], index: 11, kind: input, shape index: {}]   ;;  %s3965_s15 = inlined_call_operand.vmem [shape: f32[1,1,256], index: 15, kind: input, shape index: {}]   ;;  %s3966_s13 = inlined_call_operand.vmem [shape: f32[1,1,128], index: 13, kind: input, shape index: {}]   ;;  %s3967_s3 = inlined_call_operand.vmem [shape: f32[16,32], index: 3, kind: input, shape index: {}]   ;;  %s3968_s16 = inlined_call_operand.vmem [shape: bf16[1,128,128], index: 16, kind: input, shape index: {}]   ;;  %s3969_s17 = inlined_call_operand.vmem [shape: f32[1,1,128], index: 17, kind: input, shape index: {}]   ;;  %s3970_s20 = inlined_call_operand.vmem [shape: bf16[1,128,256], index: 20, kind: input, shape index: {}]   ;;  %s3971_s18 = inlined_call_operand.vmem [shape: f32[1,1,128], index: 18, kind: input, shape index: {}]   ;;  %s3972_s19 = inlined_call_operand.vmem [shape: f32[1,1,128], index: 19, kind: input, shape index: {}]   ;;  %s3973_s22 = inlined_call_operand.vmem [shape: bf16[1,256,128], index: 22, kind: input, shape index: {}]   ;;  %s3974_s21 = inlined_call_operand.vmem [shape: f32[1,1,256], index: 21, kind: input, shape index: {}]   ;;  %s3975_s23 = inlined_call_operand.vmem [shape: f32[1,1,128], index: 23, kind: input, shape index: {}]   ;;  %s3976_s24 = inlined_call_operand.vmem [shape: f32[1,1,128], index: 24, kind: input, shape index: {}]   ;;  %s3977_s25 = inlined_call_operand.vmem [shape: f32[1,1,128], index: 25, kind: input, shape index: {}]   ;;  %s3978_s26 = inlined_call_operand.vmem [shape: bf16[16,128], index: 26, kind: output, shape index: {}]  }
   0x1   :  { %3986 = sst [smem:[#allocation2_spill]] %s3952_s0  ;;  %2709 = vmatprep.subr.bf16.mxu1 %v3147_v3  ;;  %469 = vmatprep.mubr.bf16.mxu0 %v3148_v30  ;;  %vm524_vm1 = vcmask 261120   ;;  %vm572_vm2 = vcmask 130048   ;;  %vm1032_vm3 = vcmask 523264   ;;  %vm1035_vm4 = vcmask 785408  }
   0x2   :  { %3987 = sst [smem:[#allocation3_spill]] %s3953_s6  ;;  %2725 = vmatprep.mubr.msk.bf16.mxu1 %vm3149_vm0, %v3147_v3  ;;  %v295_v54 = vshrl.u32 %v294_v53, 7 }
   0x3   :  { %3988 = sst [smem:[#allocation4_spill]] %s3954_s4  ;;  %s3998_s0 = sld [smem:[#allocation3_spill]] }
   0x4   :  { %3989 = sst [smem:[#allocation5_spill]] %s3955_s5  ;;  %v3405_v55 = vsub.s32 0, %v295_v54  ;;  %v304_v56 = vsub.s32 2, %v295_v54  ;;  %v3410_v58 = vsub.s32 1, %v295_v54 }
   0x5   :  { %3990 = sst [smem:[#allocation6_spill]] %s3956_s7  ;;  %s4000_s6 = sld [smem:[#allocation5_spill]] }
   0x6   :  { %3991 = sst [smem:[#allocation7_spill]] %s3957_s2  ;;  %s3150_s7 = smov 96  }
   0x7   :  { %3992 = sst [smem:[#allocation8_spill]] %s3958_s8  ;;  %s3999_s8 = sld [smem:[#allocation4_spill]] }
   0x8   :  { %3993 = sst [smem:[#allocation9_spill]] %s3959_s9  ;;  %s3997_s9 = sld [smem:[#allocation2_spill]] }
   0x9   :  { %3994 = sst [smem:[#allocation10_spill]] %s3960_s14  ;;  %v2937_v2 = vld [vmem:[%s3998_s0 + $0x4] ss:$12 sps:$4 sm:$0xff]   ;;  %v2939_v4 = vld [vmem:[%s3998_s0] ss:$12 sps:$4 sm:$0xff]   ;;  %s4001_s14 = sld [smem:[#allocation6_spill]] }
   0xa   :  { %3995 = sst [smem:[#allocation11_spill]] %s3961_s12  ;;  %437 = vmatprep.subr.bf16.mxu0 %v2937_v2  ;;  %v2940_v5 = vld [vmem:[%s3998_s0 + $0x8] ss:$12 sps:$4 sm:$0xff]   ;;  %v2943_v15 = vld [vmem:[%s3998_s0 + $0x18] ss:$12 sps:$4 sm:$0xff]   ;;  %s3152_s12 = smov 32  }
   0xb   :  { %3996 = sst [smem:[#allocation12_spill]] %s3962_s1  ;;  %438 = vmatpush1.bf16.msra.mxu0 %v2939_v4  ;;  %v2941_v6 = vld [vmem:[%s3998_s0 + $0x1c] ss:$12 sps:$4 sm:$0xff]   ;;  %2710 = vmatpush3.bf16.msra.mxu1 %v2940_v5  ;;  %v2944_v16 = vld [vmem:[%s3998_s0 + $0x20] ss:$12 sps:$4 sm:$0xff]   ;;  %s4002_s2 = sld [smem:[#allocation7_spill]] }
   0xc   :  { %439 = vmatprep.subr.bf16.mxu0 %v2941_v6  ;;  %2711 = vmatprep.subr.bf16.mxu1 %v3147_v3  ;;  %v2945_v17 = vld [vmem:[%s3998_s0 + $0x34] ss:$12 sps:$4 sm:$0xff]   ;;  %v2947_v18 = vld [vmem:[%s3998_s0 + $0x30] ss:$12 sps:$4 sm:$0xff]   ;;  %v2948_v19 = vld [vmem:[%s3998_s0 + $0x38] ss:$12 sps:$4 sm:$0xff]  }
   0xd   :  { %v2949_v20 = vld [vmem:[%s3998_s0 + $0x4c] ss:$12 sps:$4 sm:$0xff]   ;;  %v2951_v21 = vld [vmem:[%s3998_s0 + $0x48] ss:$12 sps:$4 sm:$0xff]   ;;  %v2952_v22 = vld [vmem:[%s3998_s0 + $0x50] ss:$12 sps:$4 sm:$0xff]  }
   0xe   :  { %v92_v0 = vld [vmem:[%s3997_s9] sm:$0xff]  ;;  %v93_v1 = vld [vmem:[%s3997_s9 + $0x8] sm:$0xff]  ;;  %v2963_v31 = vld [vmem:[%s3998_s0 + $0x90] ss:$12 sps:$4 sm:$0xff]   ;;  %s4003_s27 = sld [smem:[#allocation8_spill]]  ;;  %s4004_s30 = sld [smem:[#allocation9_spill]] }
   0xf   :  { %96 = vadd.xlane.f32.xlu0 %v92_v0  ;;  %440 = vmatpush1.bf16.msra.mxu0 %v2943_v15  ;;  %v2953_v23 = vld [vmem:[%s3998_s0 + $0x64] ss:$12 sps:$4 sm:$0xff]   ;;  %v2955_v24 = vld [vmem:[%s3998_s0 + $0x60] ss:$12 sps:$4 sm:$0xff]   ;;  %v2956_v25 = vld [vmem:[%s3998_s0 + $0x68] ss:$12 sps:$4 sm:$0xff]  }
  0x10   :  { %2712 = vmatpush3.bf16.msra.mxu1 %v2944_v16  ;;  %441 = vmatprep.subr.bf16.mxu0 %v2945_v17  ;;  %v2957_v26 = vld [vmem:[%s3998_s0 + $0x7c] ss:$12 sps:$4 sm:$0xff]   ;;  %v2959_v27 = vld [vmem:[%s3998_s0 + $0x78] ss:$12 sps:$4 sm:$0xff]   ;;  %v2960_v28 = vld [vmem:[%s3998_s0 + $0x80] ss:$12 sps:$4 sm:$0xff]  }
  0x11   :  { %2713 = vmatprep.subr.bf16.mxu1 %v3147_v3  ;;  %v2961_v29 = vld [vmem:[%s3998_s0 + $0x94] ss:$12 sps:$4 sm:$0xff]   ;;  %v2964_v32 = vld [vmem:[%s3998_s0 + $0x98] ss:$12 sps:$4 sm:$0xff]   ;;  %v2968_v35 = vld [vmem:[%s3998_s0 + $0xb0] ss:$12 sps:$4 sm:$0xff]  }
  0x12   :  { %v2965_v33 = vld [vmem:[%s3998_s0 + $0xac] ss:$12 sps:$4 sm:$0xff]   ;;  %v2967_v34 = vld [vmem:[%s3998_s0 + $0xa8] ss:$12 sps:$4 sm:$0xff]   ;;  %v2476_v44 = vld [vmem:[%s3999_s8] ss:$0 sm:$0xff] }
  0x13   :  { %98 = vadd.xlane.f32.xlu0 %v93_v1  ;;  %442 = vmatpush1.bf16.msra.mxu0 %v2947_v18  ;;  %v2477_v48 = vld [vmem:[%s4000_s6] ss:$0 sm:$0xff]  ;;  %s4005_s0 = sld [smem:[#allocation10_spill]]  ;;  %s4007_s4 = sld [smem:[#allocation12_spill]] }
  0x14   :  { %2714 = vmatpush3.bf16.msra.mxu1 %v2948_v19  ;;  %443 = vmatprep.subr.bf16.mxu0 %v2949_v20  ;;  %v167_v57 = vld [vmem:[%s4001_s14] sm:$0x7] }
  0x15   :  { %2715 = vmatprep.subr.bf16.mxu1 %v3147_v3  ;;  %v297_v59 = vrot.slane %v167_v57, %v3405_v55  ;;  %v305_v60 = vrot.slane %v167_v57, %v304_v56  ;;  %v301_v63 = vrot.slane %v167_v57, %v3410_v58 }
  0x17   :  { %444 = vmatpush1.bf16.msra.mxu0 %v2951_v21 }
  0x18   :  { %2716 = vmatpush3.bf16.msra.mxu1 %v2952_v22  ;;  %445 = vmatprep.subr.bf16.mxu0 %v2953_v23 }
  0x19   :  { %2717 = vmatprep.subr.bf16.mxu1 %v3147_v3 }
  0x1b   :  { %446 = vmatpush1.bf16.msra.mxu0 %v2955_v24 }
  0x1c   :  { %2718 = vmatpush3.bf16.msra.mxu1 %v2956_v25  ;;  %447 = vmatprep.subr.bf16.mxu0 %v2957_v26  ;;  %v88_v26 = vld [vmem:[%s4002_s2] sm:$0xff] }
  0x1d   :  { %2719 = vmatprep.subr.bf16.mxu1 %v3147_v3 }
  0x1f   :  { %448 = vmatpush1.bf16.msra.mxu0 %v2959_v27 }
  0x20   :  { %2720 = vmatpush3.bf16.msra.mxu1 %v2960_v28  ;;  %449 = vmatprep.subr.bf16.mxu0 %v2961_v29  ;;  %v89_v28 = vld [vmem:[%s4002_s2 + $0x8] sm:$0xff]  ;;  %s4006_s2 = sld [smem:[#allocation11_spill]] }
  0x21   :  { %2721 = vmatprep.subr.bf16.mxu1 %v3147_v3 }
  0x23   :  { %450 = vmatpush1.bf16.msra.mxu0 %v2963_v31 }
  0x24   :  { %2722 = vmatpush3.bf16.msra.mxu1 %v2964_v32  ;;  %451 = vmatprep.subr.bf16.mxu0 %v2965_v33 }
  0x25   :  { %2723 = vmatprep.subr.bf16.mxu1 %v3147_v3 }
  0x27   :  { %452 = vmatpush1.bf16.msra.mxu0 %v2967_v34 }
  0x28   :  { %2724 = vmatpush3.bf16.msra.mxu1 %v2968_v35  ;;  %2729 = vmatprep.subr.bf16.mxu0 %v3147_v3 }
  0x29   :  { %2735 = vmatprep.subr.bf16.mxu1 %v3147_v3 }
  0x9c   :  { %v97_v7 = vpop.xlane.xlu0 %96 }
  0x9d   :  { %v101_v8 = vmul.f32 0.0078125, %v97_v7 }
  0x9f   :  { %v3308_v9 = vsub.f32 %v92_v0, %v101_v8 }
  0xa0   :  { %v99_v10 = vpop.xlane.xlu0 %98 }
  0xa1   :  { %v102_v11 = vmul.f32 0.0078125, %v99_v10  ;;  %v105_v12 = vmul.f32 %v3308_v9, %v3308_v9 }
  0xa3   :  { %v3312_v13 = vsub.f32 %v93_v1, %v102_v11  ;;  %107 = vadd.xlane.f32.xlu1 %v105_v12 }
  0xa5   :  { %v106_v14 = vmul.f32 %v3312_v13, %v3312_v13 }
  0xa7   :  { %109 = vadd.xlane.f32.xlu1 %v106_v14 }
 0x130   :  { %v108_v36 = vpop.xlane.xlu1 %107 }
 0x131   :  { %v111_v37 = vmul.f32 0.0078125, %v108_v36 }
 0x133   :  { %v113_v38 = vadd.f32 1e-05, %v111_v37 }
 0x134   :  { %v110_v39 = vpop.xlane.xlu1 %109 }
 0x135   :  { %3059 = vrsqrt.f32 %v113_v38  ;;  %v112_v40 = vmul.f32 0.0078125, %v110_v39 }
 0x137   :  { %v114_v41 = vadd.f32 1e-05, %v112_v40 }
 0x139   :  { %3061 = vrsqrt.f32 %v114_v41 }
 0x13f   :  { %v3060_v42 = vpop.eup %3059 }
 0x140   :  { %v117_v43 = vmul.f32 %v3060_v42, %v3308_v9 }
 0x142   :  { %v125_v47 = vmul.f32 %v2476_v44, %v117_v43 }
 0x143   :  { %v3062_v45 = vpop.eup %3061 }
 0x144   :  { %v118_v46 = vmul.f32 %v3062_v45, %v3312_v13  ;;  %v3395_v50 = vadd.f32 %v2477_v48, %v125_v47 }
 0x146   :  { %v126_v49 = vmul.f32 %v2476_v44, %v118_v46 }
 0x148   :  { %v3397_v51 = vadd.f32 %v2477_v48, %v126_v49 }
 0x14a   :  { %v292_v52 = vpack.c.bf16 %v3397_v51, %v3395_v50 }
 0x14c   :  { %470 = vmatmul.mubr.bf16.vlgmr.msra.gmra.mrb[0].mxu0 %v292_v52  ;;  %2726 = vmatmul.mubr.bf16.vlgmr.msra.gmra.mrb[0].mxu1 %v292_v52 }
 0x14d   :  { %2731 = vmatprep.mubr.msk.bf16.mxu0 %vm3149_vm0, %v3147_v3  ;;  %2737 = vmatprep.mubr.msk.bf16.mxu1 %vm3149_vm0, %v3147_v3 }
 0x21f   :  { %v471_v61 = vpop.f32.mrb[0].mxu0  ;;  %v514_v62 = vpop.f32.mrb[0].mxu1 }
 0x220   :  { %v473_v0 = vpop.f32.mrb[1].mxu0  ;;  %v2727_v1 = vpop.f32.mrb[1].mxu1  ;;  %v472_v5 = vadd.f32 %v471_v61, %v297_v59  ;;  %v515_v6 = vadd.f32 %v514_v62, %v305_v60 }
 0x221   :  { %v475_v2 = vpop.f32.mrb[2].mxu0  ;;  %v517_v4 = vpop.f32.mrb[2].mxu1  ;;  %v474_v11 = vadd.f32 %v473_v0, %v301_v63 }
 0x222   :  { %v476_v7 = vadd.f32 %v475_v2, %v297_v59  ;;  %v518_v8 = vadd.f32 %v517_v4, %v305_v60  ;;  %v477_v9 = vpop.f32.mrb[3].mxu0  ;;  %v2728_v10 = vpop.f32.mrb[3].mxu1 }
 0x223   :  { %v478_v12 = vadd.f32 %v477_v9, %v301_v63 }
 0x224   :  { %v521_v13 = vpack.c.bf16 %v476_v7, %v472_v5  ;;  %v3414_v14 = vpack.c.bf16 %v518_v8, %v515_v6 }
 0x225   :  { %v522_v15 = vpack.c.bf16 %v478_v12, %v474_v11 }
 0x226   :  { %2736 = vmatpush3.bf16.msra.mxu1 %v3414_v14  ;;  %641 = vrot.lane.b32.xlu1 %v521_v13, %s3150_s7 }
 0x227   :  { %644 = vrot.lane.b32.xlu0 %v522_v15, %s3150_s7  ;;  %v529_v16 = vsel %vm524_vm1, %v522_v15, 0  ;;  %2747 = vmatprep.subr.bf16.mxu1 %v3147_v3 }
 0x228   :  { %2730 = vmatpush3.bf16.xpose.msra.mxu0 %v529_v16 }
 0x229   :  { %2741 = vmatprep.subr.bf16.mxu0 %v3147_v3 }
 0x22a   :  { %766 = vrot.lane.b32.xlu1 %v522_v15, %s3151_s29 }
 0x22b   :  { %887 = vrot.lane.b32.xlu0 %v522_v15, %s3152_s12 }
 0x22e   :  { %764 = vrot.lane.b32.xlu1 %v521_v13, %s3151_s29 }
 0x22f   :  { %2732 = vmatmul.mubr.msk.bf16.vlgmr.msra.gmra.mrb[4].mxu0 %vm524_vm1, %v521_v13 }
 0x230   :  { %2743 = vmatprep.mubr.msk.bf16.mxu0 %vm3149_vm0, %v3147_v3 }
 0x232   :  { %885 = vrot.lane.b32.xlu1 %v521_v13, %s3152_s12 }
 0x298   :  { %v642_v17 = vpop.permute.xlu1 %641 }
 0x299   :  { %v645_v18 = vpop.permute.xlu0 %644 }
 0x29a   :  { %v650_v19 = vsel %vm524_vm1, %v645_v18, 0 }
 0x29b   :  { %2742 = vmatpush3.bf16.xpose.msra.mxu0 %v650_v19 }
 0x29c   :  { %2753 = vmatprep.subr.bf16.mxu0 %v3147_v3  ;;  %v767_v20 = vpop.permute.xlu1 %766 }
 0x29d   :  { %v772_v21 = vsel %vm524_vm1, %v767_v20, 0  ;;  %v888_v22 = vpop.permute.xlu0 %887 }
 0x29e   :  { %v893_v24 = vsel %vm524_vm1, %v888_v22, 0 }
 0x2a0   :  { %v765_v23 = vpop.permute.xlu1 %764 }
 0x2a2   :  { %2744 = vmatmul.mubr.msk.bf16.vlgmr.msra.gmra.mrb[8].mxu0 %vm524_vm1, %v642_v17 }
 0x2a3   :  { %2754 = vmatpush3.bf16.xpose.msra.mxu0 %v772_v21  ;;  %2755 = vmatprep.mubr.msk.bf16.mxu0 %vm3149_vm0, %v3147_v3 }
 0x2a4   :  { %2765 = vmatprep.subr.bf16.mxu0 %v3147_v3  ;;  %v886_v25 = vpop.permute.xlu1 %885 }
 0x2aa   :  { %2756 = vmatmul.mubr.msk.bf16.vlgmr.msra.gmra.mrb[12].mxu0 %vm524_vm1, %v765_v23 }
 0x2ab   :  { %2766 = vmatpush3.bf16.xpose.msra.mxu0 %v893_v24  ;;  %2767 = vmatprep.mubr.msk.bf16.mxu0 %vm3149_vm0, %v3147_v3 }
 0x2ac   :  { %2777 = vmatprep.subr.bf16.mxu0 %v3147_v3 }
 0x2b2   :  { %2768 = vmatmul.mubr.msk.bf16.vlgmr.msra.gmra.mrb[16].mxu0 %vm524_vm1, %v886_v25 }
 0x2b3   :  { %2793 = vmatprep.mubr.msk.bf16.mxu0 %vm3149_vm0, %v3147_v3 }
 0x302   :  { %v565_v27 = vpop.f32.mrb[4].mxu0 }
 0x303   :  { %v566_v29 = vadd.f32 %v565_v27, %v88_v26  ;;  %v2733_v31 = vpop.f32.mrb[5].mxu0 }
 0x304   :  { %v568_v32 = vpop.f32.mrb[6].mxu0 }
 0x305   :  { %v569_v33 = vadd.f32 %v568_v32, %v89_v28  ;;  %v2734_v34 = vpop.f32.mrb[7].mxu0  ;;  %v573_v35 = vsel %vm572_vm2, %v566_v29, -inf }
 0x306   :  { %574 = vmax.xlane.f32.xlu0 %v573_v35 }
 0x307   :  { %v576_v36 = vsel %vm572_vm2, %v569_v33, -inf }
 0x308   :  { %577 = vmax.xlane.f32.xlu1 %v576_v36 }
 0x375   :  { %v686_v37 = vpop.f32.mrb[8].mxu0 }
 0x376   :  { %v687_v38 = vadd.f32 %v686_v37, %v88_v26  ;;  %v2745_v39 = vpop.f32.mrb[9].mxu0 }
 0x377   :  { %v689_v40 = vpop.f32.mrb[10].mxu0 }
 0x378   :  { %v690_v41 = vadd.f32 %v689_v40, %v89_v28  ;;  %v2746_v42 = vpop.f32.mrb[11].mxu0  ;;  %v693_v43 = vsel %vm572_vm2, %v687_v38, -inf }
 0x379   :  { %694 = vmax.xlane.f32.xlu0 %v693_v43 }
 0x37a   :  { %v696_v44 = vsel %vm572_vm2, %v690_v41, -inf }
 0x37d   :  { %697 = vmax.xlane.f32.xlu0 %v696_v44  ;;  %v808_v45 = vpop.f32.mrb[12].mxu0 }
 0x37e   :  { %v809_v46 = vadd.f32 %v808_v45, %v88_v26  ;;  %v2757_v47 = vpop.f32.mrb[13].mxu0 }
 0x37f   :  { %v811_v48 = vpop.f32.mrb[14].mxu0 }
 0x380   :  { %v812_v49 = vadd.f32 %v811_v48, %v89_v28  ;;  %v2758_v52 = vpop.f32.mrb[15].mxu0  ;;  %v815_v53 = vsel %vm572_vm2, %v809_v46, -inf }
 0x381   :  { %816 = vmax.xlane.f32.xlu0 %v815_v53 }
 0x382   :  { %v818_v54 = vsel %vm572_vm2, %v812_v49, -inf }
 0x383   :  { %819 = vmax.xlane.f32.xlu1 %v818_v54 }
 0x385   :  { %v929_v56 = vpop.f32.mrb[16].mxu0 }
 0x386   :  { %v930_v57 = vadd.f32 %v929_v56, %v88_v26  ;;  %v2769_v59 = vpop.f32.mrb[17].mxu0 }
 0x387   :  { %v932_v60 = vpop.f32.mrb[18].mxu0 }
 0x388   :  { %v3456_v61 = vadd.f32 %v932_v60, %v89_v28  ;;  %v2770_v62 = vpop.f32.mrb[19].mxu0  ;;  %v936_v63 = vsel %vm572_vm2, %v930_v57, -inf }
 0x389   :  { %937 = vmax.xlane.f32.xlu0 %v936_v63 }
 0x38a   :  { %v939_v0 = vsel %vm572_vm2, %v3456_v61, -inf }
 0x38b   :  { %940 = vmax.xlane.f32.xlu1 %v939_v0 }
 0x393   :  { %v575_v1 = vpop.xlane.xlu0 %574 }
 0x394   :  { %v579_v2 = vsub.f32 %v566_v29, %v575_v1 }
 0x395   :  { %v578_v4 = vpop.xlane.xlu1 %577 }
 0x396   :  { %v581_v5 = vmul.f32 1.442695, %v579_v2  ;;  %v580_v6 = vsub.f32 %v569_v33, %v578_v4 }
 0x398   :  { %3063 = vpow2.f32 %v581_v5  ;;  %v583_v7 = vmul.f32 1.442695, %v580_v6 }
 0x39a   :  { %3065 = vpow2.f32 %v583_v7 }
 0x3a2   :  { %v3064_v8 = vpop.eup %3063 }
 0x3a3   :  { %v585_v9 = vsel %vm572_vm2, %v3064_v8, 0.0 }
 0x3a4   :  { %v3066_v10 = vpop.eup %3065  ;;  %586 = vadd.xlane.f32.xlu0 %v585_v9 }
 0x3a5   :  { %v588_v11 = vsel %vm572_vm2, %v3066_v10, 0.0 }
 0x3a6   :  { %589 = vadd.xlane.f32.xlu1 %v588_v11 }
 0x406   :  { %v695_v12 = vpop.xlane.xlu0 %694 }
 0x407   :  { %v699_v13 = vsub.f32 %v687_v38, %v695_v12 }
 0x409   :  { %v701_v15 = vmul.f32 1.442695, %v699_v13 }
 0x40a   :  { %v698_v16 = vpop.xlane.xlu0 %697 }
 0x40b   :  { %3067 = vpow2.f32 %v701_v15  ;;  %v700_v17 = vsub.f32 %v690_v41, %v698_v16 }
 0x40d   :  { %v703_v18 = vmul.f32 1.442695, %v700_v17 }
 0x40e   :  { %v817_v19 = vpop.xlane.xlu0 %816 }
 0x40f   :  { %3069 = vpow2.f32 %v703_v18  ;;  %v821_v20 = vsub.f32 %v809_v46, %v817_v19 }
 0x410   :  { %v820_v21 = vpop.xlane.xlu1 %819 }
 0x411   :  { %v823_v22 = vmul.f32 1.442695, %v821_v20  ;;  %v822_v23 = vsub.f32 %v812_v49, %v820_v21 }
 0x413   :  { %3071 = vpow2.f32 %v823_v22  ;;  %v825_v24 = vmul.f32 1.442695, %v822_v23 }
 0x415   :  { %v3068_v25 = vpop.eup %3067  ;;  %3073 = vpow2.f32 %v825_v24 }
 0x416   :  { %v938_v26 = vpop.xlane.xlu0 %937  ;;  %v705_v27 = vsel %vm572_vm2, %v3068_v25, 0.0 }
 0x417   :  { %v942_v28 = vsub.f32 %v930_v57, %v938_v26  ;;  %706 = vadd.xlane.f32.xlu0 %v705_v27  ;;  %v2970_v26 = vld [vmem:[%s4003_s27 + $0x8] sm:$0xff]  }
 0x418   :  { %v941_v39 = vpop.xlane.xlu1 %940 }
 0x419   :  { %v3070_v29 = vpop.eup %3069  ;;  %v944_v31 = vmul.f32 1.442695, %v942_v28  ;;  %v943_v46 = vsub.f32 %v3456_v61, %v941_v39 }
 0x41a   :  { %v708_v32 = vsel %vm572_vm2, %v3070_v29, 0.0 }
 0x41b   :  { %3075 = vpow2.f32 %v944_v31  ;;  %709 = vadd.xlane.f32.xlu1 %v708_v32  ;;  %v946_v48 = vmul.f32 1.442695, %v943_v46 }
 0x41d   :  { %v3072_v33 = vpop.eup %3071 }
 0x41e   :  { %v827_v34 = vsel %vm572_vm2, %v3072_v33, 0.0 }
 0x41f   :  { %v3074_v35 = vpop.eup %3073  ;;  %828 = vadd.xlane.f32.xlu0 %v827_v34  ;;  %v2972_v34 = vld [vmem:[%s4003_s27 + $0x18] sm:$0xff]  }
 0x420   :  { %v830_v36 = vsel %vm572_vm2, %v3074_v35, 0.0 }
 0x421   :  { %831 = vadd.xlane.f32.xlu1 %v830_v36  ;;  %v2974_v36 = vld [vmem:[%s4003_s27 + $0x28] sm:$0xff]  }
 0x425   :  { %v3076_v37 = vpop.eup %3075 }
 0x426   :  { %v948_v38 = vsel %vm572_vm2, %v3076_v37, 0.0 }
 0x427   :  { %949 = vadd.xlane.f32.xlu0 %v948_v38  ;;  %v2976_v38 = vld [vmem:[%s4003_s27 + $0x38] sm:$0xff]  }
 0x431   :  { %v587_v40 = vpop.xlane.xlu0 %586 }
 0x432   :  { %3077 = vrcp.f32 %v587_v40  ;;  %838 = vrot.lane.b32.xlu1 %v3414_v14, %s3151_s29 }
 0x433   :  { %v590_v41 = vpop.xlane.xlu1 %589 }
 0x434   :  { %3079 = vrcp.f32 %v590_v41 }
 0x435   :  { %3081 = vpow2.f32 %v946_v48 }
 0x43c   :  { %v3078_v42 = vpop.eup %3077 }
 0x43d   :  { %717 = vrot.lane.b32.xlu0 %v3414_v14, %s3150_s7  ;;  %v593_v44 = vmul.f32 %v3078_v42, %v3064_v8 }
 0x43e   :  { %v3080_v43 = vpop.eup %3079 }
 0x43f   :  { %v594_v45 = vmul.f32 %v3080_v43, %v3066_v10  ;;  %v3082_v49 = vpop.eup %3081 }
 0x440   :  { %v951_v52 = vsel %vm572_vm2, %v3082_v49, 0.0 }
 0x441   :  { %v595_v47 = vpack.c.bf16 %v594_v45, %v593_v44 }
 0x443   :  { %2738 = vmatmul.mubr.msk.bf16.vlgmr.msra.gmra.mrb[4].mxu1 %vm572_vm2, %v595_v47 }
 0x444   :  { %2749 = vmatprep.mubr.msk.bf16.mxu1 %vm3149_vm0, %v3147_v3 }
 0x456   :  { %952 = vadd.xlane.f32.xlu1 %v951_v52 }
 0x467   :  { %959 = vrot.lane.b32.xlu1 %v3414_v14, %s3152_s12 }
 0x4a4   :  { %v707_v53 = vpop.xlane.xlu0 %706 }
 0x4a8   :  { %v710_v54 = vpop.xlane.xlu1 %709 }
 0x4a9   :  { %3083 = vrcp.f32 %v710_v54 }
 0x4aa   :  { %3085 = vrcp.f32 %v707_v53 }
 0x4ac   :  { %v829_v57 = vpop.xlane.xlu0 %828 }
 0x4ae   :  { %v832_v56 = vpop.xlane.xlu1 %831 }
 0x4af   :  { %3087 = vrcp.f32 %v832_v56 }
 0x4b0   :  { %3089 = vrcp.f32 %v829_v57 }
 0x4b2   :  { %v839_v14 = vpop.permute.xlu1 %838 }
 0x4b3   :  { %v3084_v59 = vpop.eup %3083 }
 0x4b4   :  { %v950_v60 = vpop.xlane.xlu0 %949  ;;  %v3086_v61 = vpop.eup %3085  ;;  %v714_v62 = vmul.f32 %v3084_v59, %v3070_v29  ;;  %v2971_v29 = vld [vmem:[%s4003_s27 + $0x10] sm:$0xff]  }
 0x4b5   :  { %v713_v63 = vmul.f32 %v3086_v61, %v3068_v25  ;;  %3091 = vrcp.f32 %v950_v60  ;;  %v2969_v25 = vld [vmem:[%s4003_s27] sm:$0xff]  }
 0x4b6   :  { %2778 = vmatpush3.bf16.msra.mxu0 %v2969_v25 }
 0x4b7   :  { %v715_v1 = vpack.c.bf16 %v714_v62, %v713_v63  ;;  %2779 = vmatprep.subr.bf16.mxu0 %v3147_v3 }
 0x4b8   :  { %v718_v0 = vpop.permute.xlu0 %717 }
 0x4b9   :  { %2748 = vmatpush3.bf16.msra.mxu1 %v718_v0  ;;  %v3088_v2 = vpop.eup %3087  ;;  %v2510_v0 = vld [vmem:[%s4004_s30] ss:$0 sm:$0xff] }
 0x4ba   :  { %2759 = vmatprep.subr.bf16.mxu1 %v3147_v3  ;;  %v3090_v4 = vpop.eup %3089  ;;  %v836_v5 = vmul.f32 %v3088_v2, %v3074_v35  ;;  %2780 = vmatpush3.bf16.msra.mxu0 %v2970_v26  ;;  %v2973_v35 = vld [vmem:[%s4003_s27 + $0x20] sm:$0xff]  }
 0x4bb   :  { %v835_v6 = vmul.f32 %v3090_v4, %v3072_v33  ;;  %2781 = vmatprep.subr.bf16.mxu0 %v3147_v3 }
 0x4bc   :  { %2750 = vmatmul.mubr.msk.bf16.vlgmr.msra.gmra.mrb[8].mxu1 %vm572_vm2, %v715_v1 }
 0x4bd   :  { %2760 = vmatpush3.bf16.msra.mxu1 %v839_v14  ;;  %2761 = vmatprep.mubr.msk.bf16.mxu1 %vm3149_vm0, %v3147_v3  ;;  %v837_v7 = vpack.c.bf16 %v836_v5, %v835_v6 }
 0x4be   :  { %2771 = vmatprep.subr.bf16.mxu1 %v3147_v3  ;;  %2782 = vmatpush3.bf16.msra.mxu0 %v2971_v29  ;;  %v2996_v29 = vld [vmem:[%s4006_s2 + $0x8] sm:$0xff]  }
 0x4bf   :  { %v3092_v10 = vpop.eup %3091  ;;  %2783 = vmatprep.subr.bf16.mxu0 %v3147_v3 }
 0x4c0   :  { %v956_v12 = vmul.f32 %v3092_v10, %v3076_v37  ;;  %v2975_v37 = vld [vmem:[%s4003_s27 + $0x30] sm:$0xff]   ;;  %v2979_v10 = vld [vmem:[%s4005_s0 + $0x4] ss:$8 sps:$4 sm:$0xff]  }
 0x4c2   :  { %2784 = vmatpush3.bf16.msra.mxu0 %v2972_v34  ;;  %v3003_v34 = vld [vmem:[%s4005_s0 + $0x74] ss:$8 sps:$4 sm:$0xff]  }
 0x4c3   :  { %2785 = vmatprep.subr.bf16.mxu0 %v3147_v3 }
 0x4c4   :  { %2762 = vmatmul.mubr.msk.bf16.vlgmr.msra.gmra.mrb[12].mxu1 %vm572_vm2, %v837_v7 }
 0x4c5   :  { %2773 = vmatprep.mubr.msk.bf16.mxu1 %vm3149_vm0, %v3147_v3 }
 0x4c6   :  { %2786 = vmatpush3.bf16.msra.mxu0 %v2973_v35  ;;  %v3001_v35 = vld [vmem:[%s4005_s0 + $0x70] ss:$8 sps:$4 sm:$0xff]  }
 0x4c7   :  { %2787 = vmatprep.subr.bf16.mxu0 %v3147_v3 }
 0x4ca   :  { %2788 = vmatpush3.bf16.msra.mxu0 %v2974_v36  ;;  %v3004_v36 = vld [vmem:[%s4006_s2 + $0x18] sm:$0xff]  }
 0x4cb   :  { %2789 = vmatprep.subr.bf16.mxu0 %v3147_v3 }
 0x4ce   :  { %2790 = vmatpush3.bf16.msra.mxu0 %v2975_v37  ;;  %v3005_v37 = vld [vmem:[%s4007_s4] sm:$0xff]  }
 0x4cf   :  { %2791 = vmatprep.subr.bf16.mxu0 %v3147_v3 }
 0x4d2   :  { %2792 = vmatpush3.bf16.msra.mxu0 %v2976_v38  ;;  %v3006_v38 = vld [vmem:[%s4006_s2 + $0x20] sm:$0xff]  }
 0x4d3   :  { %1373 = vmatprep.subr.bf16.mxu0 %v2979_v10 }
 0x4e3   :  { %v953_v8 = vpop.xlane.xlu1 %952 }
 0x4e4   :  { %3093 = vrcp.f32 %v953_v8 }
 0x4e7   :  { %v960_v9 = vpop.permute.xlu1 %959 }
 0x4e8   :  { %2772 = vmatpush3.bf16.msra.mxu1 %v960_v9  ;;  %v2977_v9 = vld [vmem:[%s4005_s0] ss:$8 sps:$4 sm:$0xff]  }
 0x4e9   :  { %2797 = vmatprep.subr.bf16.mxu1 %v3147_v3 }
 0x4ee   :  { %v3094_v11 = vpop.eup %3093 }
 0x4ef   :  { %v957_v13 = vmul.f32 %v3094_v11, %v3082_v49  ;;  %v2982_v11 = vld [vmem:[%s4005_s0 + $0x14] ss:$8 sps:$4 sm:$0xff]  }
 0x4f1   :  { %v958_v15 = vpack.c.bf16 %v957_v13, %v956_v12  ;;  %v2992_v12 = vld [vmem:[%s4006_s2] sm:$0xff]  }
 0x4f2   :  { %v2983_v13 = vld [vmem:[%s4005_s0 + $0x20] ss:$8 sps:$4 sm:$0xff]  }
 0x4f3   :  { %2774 = vmatmul.mubr.msk.bf16.vlgmr.msra.gmra.mrb[16].mxu1 %vm572_vm2, %v958_v15  ;;  %v2988_v15 = vld [vmem:[%s4005_s0 + $0x34] ss:$8 sps:$4 sm:$0xff]  }
 0x4f4   :  { %2813 = vmatprep.mubr.msk.bf16.mxu1 %vm3149_vm0, %v3147_v3  ;;  %2798 = vmatpush3.bf16.msra.mxu1 %v2992_v12 }
 0x4f5   :  { %2799 = vmatprep.subr.bf16.mxu1 %v3147_v3 }
 0x4f8   :  { %2800 = vmatpush3.bf16.msra.mxu1 %v2996_v29 }
 0x4f9   :  { %2801 = vmatprep.subr.bf16.mxu1 %v3147_v3 }
 0x516   :  { %v633_v16 = vpop.f32.mrb[4].mxu1 }
 0x517   :  { %v2739_v17 = vpop.f32.mrb[5].mxu1 }
 0x518   :  { %v636_v18 = vpop.f32.mrb[6].mxu1  ;;  %v2991_v17 = vld [vmem:[%s4005_s0 + $0x44] ss:$8 sps:$4 sm:$0xff]  }
 0x519   :  { %v2740_v19 = vpop.f32.mrb[7].mxu1 }
 0x51a   :  { %v2995_v19 = vld [vmem:[%s4005_s0 + $0x54] ss:$8 sps:$4 sm:$0xff]  }
 0x58f   :  { %v757_v20 = vpop.f32.mrb[8].mxu1 }
 0x590   :  { %v2751_v21 = vpop.f32.mrb[9].mxu1 }
 0x591   :  { %v760_v22 = vpop.f32.mrb[10].mxu1 }
 0x592   :  { %v2907_v23 = vpack.i.bf16 %v760_v22, %v757_v20  ;;  %v2752_v24 = vpop.f32.mrb[11].mxu1  ;;  %v2993_v20 = vld [vmem:[%s4005_s0 + $0x50] ss:$8 sps:$4 sm:$0xff]  }
 0x594   :  { %2908 = vrot.lane.b32.xlu1 %v2907_v23, %s3152_s12 }
 0x597   :  { %v878_v27 = vpop.f32.mrb[12].mxu1 }
 0x598   :  { %v2763_v28 = vpop.f32.mrb[13].mxu1 }
 0x599   :  { %v881_v31 = vpop.f32.mrb[14].mxu1 }
 0x59a   :  { %v2912_v32 = vpack.i.bf16 %v881_v31, %v878_v27  ;;  %v2764_v33 = vpop.f32.mrb[15].mxu1  ;;  %v2999_v31 = vld [vmem:[%s4005_s0 + $0x64] ss:$8 sps:$4 sm:$0xff]  }
 0x59b   :  { %v3000_v33 = vld [vmem:[%s4006_s2 + $0x10] sm:$0xff]  }
 0x59c   :  { %2913 = vrot.lane.b32.xlu0 %v2912_v32, %s3151_s29  ;;  %v2997_v32 = vld [vmem:[%s4005_s0 + $0x60] ss:$8 sps:$4 sm:$0xff]   ;;  %2802 = vmatpush3.bf16.msra.mxu1 %v3000_v33 }
 0x59d   :  { %2803 = vmatprep.subr.bf16.mxu1 %v3147_v3  ;;  %v3676_v33 = vld [vmem:[%s3967_s3] sm:$0xff] }
 0x5a0   :  { %2804 = vmatpush3.bf16.msra.mxu1 %v3004_v36 }
 0x5a1   :  { %2805 = vmatprep.subr.bf16.mxu1 %v3147_v3 }
 0x5a4   :  { %2806 = vmatpush3.bf16.msra.mxu1 %v3006_v38 }
 0x5a5   :  { %2807 = vmatprep.subr.bf16.mxu1 %v3147_v3 }
 0x5c6   :  { %v999_v39 = vpop.f32.mrb[16].mxu1 }
 0x5c7   :  { %v2775_v40 = vpop.f32.mrb[17].mxu1 }
 0x5c8   :  { %v1002_v41 = vpop.f32.mrb[18].mxu1  ;;  %v3008_v40 = vld [vmem:[%s4007_s4 + $0x8] sm:$0xff]  }
 0x5c9   :  { %v2917_v42 = vpack.i.bf16 %v1002_v41, %v999_v39  ;;  %v2776_v43 = vpop.f32.mrb[19].mxu1  ;;  %v3007_v39 = vld [vmem:[%s4006_s2 + $0x28] sm:$0xff]   ;;  %v3009_v41 = vld [vmem:[%s4006_s2 + $0x30] sm:$0xff]  }
 0x5ca   :  { %2808 = vmatpush3.bf16.msra.mxu1 %v3007_v39 }
 0x5cb   :  { %2918 = vrot.lane.b32.xlu1 %v2917_v42, %s3150_s7  ;;  %2809 = vmatprep.subr.bf16.mxu1 %v3147_v3  ;;  %v3010_v42 = vld [vmem:[%s4006_s2 + $0x38] sm:$0xff]  }
 0x5ce   :  { %2810 = vmatpush3.bf16.msra.mxu1 %v3009_v41 }
 0x5cf   :  { %2811 = vmatprep.subr.bf16.mxu1 %v3147_v3 }
 0x5d2   :  { %2812 = vmatpush3.bf16.msra.mxu1 %v3010_v42 }
 0x5d3   :  { %2825 = vmatprep.subr.bf16.mxu1 %v3147_v3 }
 0x606   :  { %v2909_v44 = vpop.permute.xlu1 %2908 }
 0x607   :  { %v2911_v46 = vunpack.i.h.bf16 %v2909_v44  ;;  %v2910_v47 = vunpack.i.l.bf16 %v2909_v44 }
 0x609   :  { %v1031_v53 = vsel %vm524_vm1, %v636_v18, %v2911_v46  ;;  %v1030_v54 = vsel %vm524_vm1, %v633_v16, %v2910_v47  ;;  %v2986_v16 = vld [vmem:[%s4005_s0 + $0x30] ss:$8 sps:$4 sm:$0xff]   ;;  %v2989_v18 = vld [vmem:[%s4005_s0 + $0x40] ss:$8 sps:$4 sm:$0xff]  }
 0x60e   :  { %v2914_v45 = vpop.permute.xlu0 %2913 }
 0x60f   :  { %v2916_v48 = vunpack.i.h.bf16 %v2914_v45  ;;  %v2915_v49 = vunpack.i.l.bf16 %v2914_v45 }
 0x611   :  { %v1033_v59 = vsel %vm1032_vm3, %v1030_v54, %v2915_v49  ;;  %v1034_v60 = vsel %vm1032_vm3, %v1031_v53, %v2916_v48  ;;  %v2519_v53 = vld [vmem:[%s3963_s10] ss:$0 sm:$0xff] }
 0x63d   :  { %v2919_v52 = vpop.permute.xlu1 %2918 }
 0x63e   :  { %v2921_v56 = vunpack.i.h.bf16 %v2919_v52  ;;  %v2920_v57 = vunpack.i.l.bf16 %v2919_v52 }
 0x640   :  { %v1036_v61 = vsel %vm1035_vm4, %v1033_v59, %v2920_v57  ;;  %v1037_v62 = vsel %vm1035_vm4, %v1034_v60, %v2921_v56  ;;  %v2520_v59 = vld [vmem:[%s3964_s11] ss:$0 sm:$0xff] }
 0x641   :  { %v1038_v63 = vpack.c.bf16 %v1037_v62, %v1036_v61 }
 0x643   :  { %2794 = vmatmul.mubr.bf16.vlgmr.msra.gmra.mrb[20].mxu0 %v1038_v63 }
 0x644   :  { %1405 = vmatprep.mubr.bf16.mxu0 %v3148_v30  ;;  %1374 = vmatpush1.bf16.msra.mxu0 %v2977_v9 }
 0x645   :  { %1375 = vmatprep.subr.bf16.mxu0 %v2982_v11 }
 0x716   :  { %v1127_v1 = vpop.f32.mrb[20].mxu0 }
 0x717   :  { %v1128_v2 = vadd.f32 %v2510_v0, %v1127_v1  ;;  %v2795_v14 = vpop.f32.mrb[21].mxu0 }
 0x718   :  { %v1130_v4 = vpop.f32.mrb[22].mxu0 }
 0x719   :  { %v1131_v5 = vadd.f32 %v2510_v0, %v1130_v4  ;;  %v2796_v6 = vpop.f32.mrb[23].mxu0  ;;  %v1134_v7 = vadd.f32 %v1128_v2, %v3395_v50  ;;  %v2980_v50 = vld [vmem:[%s4005_s0 + $0x10] ss:$8 sps:$4 sm:$0xff]   ;;  %v220_v0 = vld [vmem:[%s3965_s15] sm:$0x3] }
 0x71a   :  { %1376 = vmatpush1.bf16.msra.mxu0 %v2980_v50  ;;  %v1274_v1 = vrot.slane %v220_v0, %v3405_v55  ;;  %v1278_v2 = vrot.slane %v220_v0, %v3410_v58 }
 0x71b   :  { %1136 = vadd.xlane.f32.xlu0 %v1134_v7  ;;  %v1135_v8 = vadd.f32 %v1131_v5, %v3397_v51  ;;  %v2985_v51 = vld [vmem:[%s4005_s0 + $0x24] ss:$8 sps:$4 sm:$0xff]  }
 0x71c   :  { %1377 = vmatprep.subr.bf16.mxu0 %v2985_v51 }
 0x71d   :  { %1138 = vadd.xlane.f32.xlu1 %v1135_v8 }
 0x71e   :  { %1378 = vmatpush1.bf16.msra.mxu0 %v2983_v13 }
 0x71f   :  { %1379 = vmatprep.subr.bf16.mxu0 %v2988_v15 }
 0x722   :  { %1380 = vmatpush1.bf16.msra.mxu0 %v2986_v16 }
 0x723   :  { %1381 = vmatprep.subr.bf16.mxu0 %v2991_v17 }
 0x726   :  { %1382 = vmatpush1.bf16.msra.mxu0 %v2989_v18 }
 0x727   :  { %1383 = vmatprep.subr.bf16.mxu0 %v2995_v19 }
 0x72a   :  { %1384 = vmatpush1.bf16.msra.mxu0 %v2993_v20 }
 0x72b   :  { %1385 = vmatprep.subr.bf16.mxu0 %v2999_v31 }
 0x72e   :  { %1386 = vmatpush1.bf16.msra.mxu0 %v2997_v32 }
 0x72f   :  { %1387 = vmatprep.subr.bf16.mxu0 %v3003_v34 }
 0x732   :  { %1388 = vmatpush1.bf16.msra.mxu0 %v3001_v35  ;;  %v3681_v35 = vld [vmem:[%s3967_s3 + $0x8] sm:$0xff] }
 0x733   :  { %2817 = vmatprep.subr.bf16.mxu0 %v3147_v3 }
 0x735   :  { %1406 = vmatmul.mubr.bf16.vlgmr.msra.gmra.mrb[24].mxu0 %v3005_v37 }
 0x736   :  { %1415 = vmatprep.mubr.bf16.mxu0 %v3148_v30 }
 0x73d   :  { %1416 = vmatmul.mubr.bf16.gmra.mrb[28].mxu0 %v3008_v40 }
 0x73e   :  { %2821 = vmatprep.mubr.msk.bf16.mxu0 %vm3149_vm0, %v3147_v3 }
 0x7a8   :  { %v1137_v21 = vpop.xlane.xlu0 %1136 }
 0x7a9   :  { %v1140_v22 = vmul.f32 0.0078125, %v1137_v21 }
 0x7aa   :  { %v1139_v23 = vpop.xlane.xlu1 %1138 }
 0x7ab   :  { %v1142_v24 = vsub.f32 %v1134_v7, %v1140_v22  ;;  %v1141_v25 = vmul.f32 0.0078125, %v1139_v23 }
 0x7ad   :  { %v1143_v26 = vsub.f32 %v1135_v8, %v1141_v25  ;;  %v1144_v27 = vmul.f32 %v1142_v24, %v1142_v24 }
 0x7af   :  { %1146 = vadd.xlane.f32.xlu0 %v1144_v27  ;;  %v1145_v28 = vmul.f32 %v1143_v26, %v1143_v26 }
 0x7b3   :  { %1148 = vadd.xlane.f32.xlu0 %v1145_v28 }
 0x808   :  { %v1407_v14 = vpop.f32.mrb[24].mxu0 }
 0x809   :  { %v1408_v4 = vadd.f32 %v1407_v14, %v1274_v1  ;;  %v1409_v5 = vpop.f32.mrb[25].mxu0 }
 0x80a   :  { %v1410_v6 = vadd.f32 %v1409_v5, %v1278_v2  ;;  %v1411_v7 = vpop.f32.mrb[26].mxu0 }
 0x80b   :  { %v1412_v8 = vadd.f32 %v1411_v7, %v1274_v1  ;;  %v1413_v9 = vpop.f32.mrb[27].mxu0 }
 0x80c   :  { %v1414_v10 = vadd.f32 %v1413_v9, %v1278_v2 }
 0x80d   :  { %v3646_v11 = vpack.c.bf16 %v1412_v8, %v1408_v4 }
 0x80e   :  { %v3648_v50 = vpack.c.bf16 %v1414_v10, %v1410_v6 }
 0x80f   :  { %v1435_v51 = vsel %vm524_vm1, %v3646_v11, 0 }
 0x810   :  { %v1417_v12 = vpop.f32.mrb[28].mxu0  ;;  %2818 = vmatpush3.bf16.xpose.msra.mxu0 %v1435_v51 }
 0x811   :  { %v1418_v13 = vadd.f32 %v1417_v12, %v1274_v1  ;;  %v1419_v15 = vpop.f32.mrb[29].mxu0  ;;  %2819 = vmatprep.subr.bf16.mxu0 %v3147_v3 }
 0x812   :  { %v1420_v16 = vadd.f32 %v1419_v15, %v1278_v2  ;;  %v1421_v17 = vpop.f32.mrb[30].mxu0 }
 0x813   :  { %v1422_v18 = vadd.f32 %v1421_v17, %v1274_v1  ;;  %v1423_v19 = vpop.f32.mrb[31].mxu0 }
 0x814   :  { %v1424_v20 = vadd.f32 %v1423_v19, %v1278_v2 }
 0x815   :  { %v3655_v21 = vpack.c.bf16 %v1422_v18, %v1418_v13 }
 0x816   :  { %v3657_v22 = vpack.c.bf16 %v1424_v20, %v1420_v16 }
 0x817   :  { %v1438_v23 = vsel %vm524_vm1, %v3655_v21, 0 }
 0x818   :  { %2820 = vmatpush3.bf16.xpose.msra.mxu0 %v1438_v23 }
 0x819   :  { %2841 = vmatprep.subr.bf16.mxu0 %v3147_v3 }
 0x83c   :  { %v1147_v43 = vpop.xlane.xlu0 %1146 }
 0x83d   :  { %v1150_v44 = vmul.f32 0.0078125, %v1147_v43 }
 0x83f   :  { %v1152_v45 = vadd.f32 1e-05, %v1150_v44 }
 0x840   :  { %v1149_v46 = vpop.xlane.xlu0 %1148 }
 0x841   :  { %3095 = vrsqrt.f32 %v1152_v45  ;;  %v1151_v47 = vmul.f32 0.0078125, %v1149_v46 }
 0x843   :  { %v1153_v48 = vadd.f32 1e-05, %v1151_v47 }
 0x845   :  { %3097 = vrsqrt.f32 %v1153_v48 }
 0x84b   :  { %v3096_v49 = vpop.eup %3095 }
 0x84c   :  { %v1156_v52 = vmul.f32 %v3096_v49, %v1142_v24  ;;  %v2521_v24 = vld [vmem:[%s3966_s13] ss:$0 sm:$0xff] }
 0x84e   :  { %v1164_v57 = vmul.f32 %v2519_v53, %v1156_v52 }
 0x84f   :  { %v3098_v54 = vpop.eup %3097 }
 0x850   :  { %v1157_v56 = vmul.f32 %v3098_v54, %v1143_v26  ;;  %v3633_v61 = vadd.f32 %v2520_v59, %v1164_v57 }
 0x852   :  { %v1165_v60 = vmul.f32 %v2519_v53, %v1157_v56 }
 0x854   :  { %v3635_v62 = vadd.f32 %v2520_v59, %v1165_v60 }
 0x856   :  { %v1174_v63 = vpack.c.bf16 %v3635_v62, %v3633_v61 }
 0x858   :  { %2814 = vmatmul.mubr.bf16.vlgmr.msra.gmra.mrb[20].mxu1 %v1174_v63 }
 0x859   :  { %2829 = vmatprep.mubr.msk.bf16.mxu1 %vm3149_vm0, %v3147_v3  ;;  %2826 = vmatpush3.bf16.msra.mxu1 %v3648_v50 }
 0x85a   :  { %2827 = vmatprep.subr.bf16.mxu1 %v3147_v3 }
 0x85d   :  { %2828 = vmatpush3.bf16.msra.mxu1 %v3657_v22 }
 0x85e   :  { %2833 = vmatprep.subr.bf16.mxu1 %v3147_v3 }
 0x92b   :  { %v1263_v25 = vpop.f32.mrb[20].mxu1 }
 0x92c   :  { %v2815_v26 = vpop.f32.mrb[21].mxu1  ;;  %v1264_v28 = vadd.f32 %v2521_v24, %v1263_v25 }
 0x92d   :  { %v1266_v27 = vpop.f32.mrb[22].mxu1 }
 0x92e   :  { %v1267_v29 = vadd.f32 %v2521_v24, %v1266_v27  ;;  %v2816_v31 = vpop.f32.mrb[23].mxu1 }
 0x930   :  { %v3667_v32 = vpack.c.bf16 %v1267_v29, %v1264_v28 }
 0x932   :  { %2822 = vmatmul.mubr.msk.bf16.vlgmr.msra.gmra.mrb[32].mxu0 %vm524_vm1, %v3667_v32 }
 0x933   :  { %2845 = vmatprep.mubr.msk.bf16.mxu0 %vm3149_vm0, %v3147_v3 }
 0xa05   :  { %v1474_v34 = vpop.f32.mrb[32].mxu0 }
 0xa06   :  { %v1475_v36 = vadd.f32 %v1474_v34, %v3676_v33  ;;  %v2823_v37 = vpop.f32.mrb[33].mxu0 }
 0xa07   :  { %v1477_v38 = vpop.f32.mrb[34].mxu0 }
 0xa08   :  { %v1478_v39 = vadd.f32 %v1477_v38, %v3681_v35  ;;  %v2824_v40 = vpop.f32.mrb[35].mxu0  ;;  %v1481_v41 = vsel %vm524_vm1, %v1475_v36, -inf }
 0xa09   :  { %1482 = vmax.xlane.f32.xlu0 %v1481_v41 }
 0xa0a   :  { %v1484_v42 = vsel %vm524_vm1, %v1478_v39, -inf }
 0xa0b   :  { %1485 = vmax.xlane.f32.xlu1 %v1484_v42 }
 0xa96   :  { %v1483_v43 = vpop.xlane.xlu0 %1482 }
 0xa97   :  { %v1487_v44 = vsub.f32 %v1475_v36, %v1483_v43 }
 0xa98   :  { %v1486_v45 = vpop.xlane.xlu1 %1485 }
 0xa99   :  { %v1489_v46 = vmul.f32 1.442695, %v1487_v44  ;;  %v1488_v47 = vsub.f32 %v1478_v39, %v1486_v45 }
 0xa9b   :  { %3099 = vpow2.f32 %v1489_v46  ;;  %v1491_v48 = vmul.f32 1.442695, %v1488_v47 }
 0xa9d   :  { %3101 = vpow2.f32 %v1491_v48 }
 0xaa5   :  { %v3100_v49 = vpop.eup %3099 }
 0xaa6   :  { %v1493_v52 = vsel %vm524_vm1, %v3100_v49, 0.0 }
 0xaa7   :  { %v3102_v53 = vpop.eup %3101  ;;  %1494 = vadd.xlane.f32.xlu0 %v1493_v52 }
 0xaa8   :  { %v1496_v54 = vsel %vm524_vm1, %v3102_v53, 0.0 }
 0xaa9   :  { %1497 = vadd.xlane.f32.xlu1 %v1496_v54 }
 0xaba   :  { %1555 = vrot.lane.b32.xlu1 %v3655_v21, %s3150_s7 }
 0xabd   :  { %1553 = vrot.lane.b32.xlu0 %v3646_v11, %s3150_s7 }
 0xabe   :  { %1684 = vrot.lane.b32.xlu1 %v3646_v11, %s3151_s29 }
 0xac1   :  { %1686 = vrot.lane.b32.xlu0 %v3655_v21, %s3151_s29 }
 0xac2   :  { %1549 = vrot.lane.b32.xlu1 %v3667_v32, %s3150_s7 }
 0xac6   :  { %1682 = vrot.lane.b32.xlu1 %v3667_v32, %s3151_s29 }
 0xb34   :  { %v1495_v56 = vpop.xlane.xlu0 %1494 }
 0xb35   :  { %3103 = vrcp.f32 %v1495_v56 }
 0xb36   :  { %v1498_v57 = vpop.xlane.xlu1 %1497 }
 0xb37   :  { %3105 = vrcp.f32 %v1498_v57 }
 0xb38   :  { %v1554_v1 = vpop.permute.xlu0 %1553 }
 0xb39   :  { %v1561_v14 = vsel %vm524_vm1, %v1554_v1, 0 }
 0xb3a   :  { %v1556_v4 = vpop.permute.xlu1 %1555 }
 0xb3b   :  { %v1564_v5 = vsel %vm524_vm1, %v1556_v4, 0 }
 0xb3c   :  { %v1687_v9 = vpop.permute.xlu0 %1686 }
 0xb3d   :  { %v1695_v10 = vsel %vm524_vm1, %v1687_v9, 0 }
 0xb3e   :  { %v1685_v6 = vpop.permute.xlu1 %1684 }
 0xb3f   :  { %v3104_v59 = vpop.eup %3103  ;;  %v1692_v8 = vsel %vm524_vm1, %v1685_v6, 0 }
 0xb40   :  { %v1501_v63 = vmul.f32 %v3104_v59, %v3100_v49 }
 0xb41   :  { %v3106_v60 = vpop.eup %3105 }
 0xb42   :  { %v1502_v0 = vmul.f32 %v3106_v60, %v3102_v53  ;;  %v1550_v7 = vpop.permute.xlu1 %1549 }
 0xb44   :  { %v1503_v2 = vpack.c.bf16 %v1502_v0, %v1501_v63 }
 0xb46   :  { %2830 = vmatmul.mubr.msk.bf16.vlgmr.msra.gmra.mrb[24].mxu1 %vm524_vm1, %v1503_v2  ;;  %v1683_v51 = vpop.permute.xlu1 %1682 }
 0xb47   :  { %2834 = vmatpush3.bf16.xpose.msra.mxu1 %v1561_v14  ;;  %2837 = vmatprep.mubr.msk.bf16.mxu1 %vm3149_vm0, %v3147_v3 }
 0xb48   :  { %2835 = vmatprep.subr.bf16.mxu1 %v3147_v3 }
 0xb4f   :  { %2836 = vmatpush3.bf16.xpose.msra.mxu1 %v1564_v5 }
 0xb50   :  { %2849 = vmatprep.subr.bf16.mxu1 %v3147_v3 }
 0xb56   :  { %2838 = vmatmul.mubr.msk.bf16.vlgmr.msra.gmra.mrb[28].mxu1 %vm524_vm1, %v1550_v7 }
 0xb57   :  { %2850 = vmatpush3.bf16.xpose.msra.mxu1 %v1692_v8  ;;  %2853 = vmatprep.mubr.msk.bf16.mxu1 %vm3149_vm0, %v3147_v3 }
 0xb58   :  { %2851 = vmatprep.subr.bf16.mxu1 %v3147_v3 }
 0xb5f   :  { %2852 = vmatpush3.bf16.xpose.msra.mxu1 %v1695_v10 }
 0xb60   :  { %2873 = vmatprep.subr.bf16.mxu1 %v3147_v3 }
 0xb66   :  { %2854 = vmatmul.mubr.msk.bf16.vlgmr.msra.gmra.mrb[32].mxu1 %vm524_vm1, %v1683_v51 }
 0xb67   :  { %2877 = vmatprep.mubr.msk.bf16.mxu1 %vm3149_vm0, %v3147_v3 }
 0xc19   :  { %v3718_v12 = vpop.f32.mrb[24].mxu1 }
 0xc1a   :  { %v2831_v13 = vpop.f32.mrb[25].mxu1 }
 0xc1b   :  { %v3720_v15 = vpop.f32.mrb[26].mxu1 }
 0xc1c   :  { %v2832_v16 = vpop.f32.mrb[27].mxu1 }
 0xc29   :  { %v1600_v17 = vpop.f32.mrb[28].mxu1 }
 0xc2a   :  { %v1601_v18 = vadd.f32 %v1600_v17, %v3676_v33  ;;  %v2839_v19 = vpop.f32.mrb[29].mxu1 }
 0xc2b   :  { %v1603_v20 = vpop.f32.mrb[30].mxu1 }
 0xc2c   :  { %v1604_v23 = vadd.f32 %v1603_v20, %v3681_v35  ;;  %v2840_v24 = vpop.f32.mrb[31].mxu1  ;;  %v1607_v25 = vsel %vm524_vm1, %v1601_v18, -inf }
 0xc2d   :  { %1608 = vmax.xlane.f32.xlu0 %v1607_v25 }
 0xc2e   :  { %v1610_v26 = vsel %vm524_vm1, %v1604_v23, -inf }
 0xc2f   :  { %1611 = vmax.xlane.f32.xlu1 %v1610_v26 }
 0xc39   :  { %v1731_v27 = vpop.f32.mrb[32].mxu1 }
 0xc3a   :  { %v1732_v28 = vadd.f32 %v1731_v27, %v3676_v33  ;;  %v2855_v29 = vpop.f32.mrb[33].mxu1 }
 0xc3b   :  { %v1734_v31 = vpop.f32.mrb[34].mxu1 }
 0xc3c   :  { %v1735_v34 = vadd.f32 %v1734_v31, %v3681_v35  ;;  %v2856_v36 = vpop.f32.mrb[35].mxu1  ;;  %v1738_v37 = vsel %vm524_vm1, %v1732_v28, -inf }
 0xc3d   :  { %1739 = vmax.xlane.f32.xlu0 %v1738_v37 }
 0xc3e   :  { %v1741_v38 = vsel %vm524_vm1, %v1735_v34, -inf }
 0xc40   :  { %1634 = vrot.lane.b32.xlu1 %v3657_v22, %s3150_s7 }
 0xc41   :  { %1742 = vmax.xlane.f32.xlu0 %v1741_v38 }
 0xc44   :  { %1761 = vrot.lane.b32.xlu1 %v3648_v50, %s3151_s29 }
 0xcba   :  { %v1609_v39 = vpop.xlane.xlu0 %1608 }
 0xcbb   :  { %v1613_v40 = vsub.f32 %v1601_v18, %v1609_v39 }
 0xcbc   :  { %v1612_v41 = vpop.xlane.xlu1 %1611 }
 0xcbd   :  { %v1615_v42 = vmul.f32 1.442695, %v1613_v40  ;;  %v1614_v43 = vsub.f32 %v1604_v23, %v1612_v41 }
 0xcbf   :  { %3107 = vpow2.f32 %v1615_v42  ;;  %v1617_v44 = vmul.f32 1.442695, %v1614_v43 }
 0xcc0   :  { %v1635_v1 = vpop.permute.xlu1 %1634 }
 0xcc1   :  { %3109 = vpow2.f32 %v1617_v44 }
 0xcc4   :  { %v1762_v2 = vpop.permute.xlu1 %1761 }
 0xcc9   :  { %v3108_v45 = vpop.eup %3107 }
 0xcca   :  { %v1619_v46 = vsel %vm524_vm1, %v3108_v45, 0.0  ;;  %v1740_v49 = vpop.xlane.xlu0 %1739 }
 0xccb   :  { %v3110_v47 = vpop.eup %3109  ;;  %1620 = vadd.xlane.f32.xlu0 %v1619_v46  ;;  %v1744_v53 = vsub.f32 %v1732_v28, %v1740_v49 }
 0xccc   :  { %v1622_v48 = vsel %vm524_vm1, %v3110_v47, 0.0 }
 0xccd   :  { %1623 = vadd.xlane.f32.xlu1 %v1622_v48  ;;  %v1746_v56 = vmul.f32 1.442695, %v1744_v53 }
 0xcce   :  { %v1743_v52 = vpop.xlane.xlu0 %1742 }
 0xccf   :  { %v1745_v54 = vsub.f32 %v1735_v34, %v1743_v52  ;;  %3111 = vpow2.f32 %v1746_v56 }
 0xcd1   :  { %v1748_v57 = vmul.f32 1.442695, %v1745_v54 }
 0xcd3   :  { %3113 = vpow2.f32 %v1748_v57 }
 0xcd9   :  { %v3112_v59 = vpop.eup %3111 }
 0xcda   :  { %v1750_v63 = vsel %vm524_vm1, %v3112_v59, 0.0 }
 0xcdd   :  { %v3114_v60 = vpop.eup %3113 }
 0xcde   :  { %1763 = vrot.lane.b32.xlu1 %v3657_v22, %s3151_s29  ;;  %v1753_v0 = vsel %vm524_vm1, %v3114_v60, 0.0 }
 0xce1   :  { %1632 = vrot.lane.b32.xlu0 %v3648_v50, %s3150_s7 }
 0xd00   :  { %1751 = vadd.xlane.f32.xlu0 %v1750_v63 }
 0xd02   :  { %1754 = vadd.xlane.f32.xlu1 %v1753_v0 }
 0xd13   :  { %1815 = vrot.lane.b32.xlu1 %v3655_v21, %s3152_s12 }
 0xd16   :  { %1813 = vrot.lane.b32.xlu0 %v3646_v11, %s3152_s12 }
 0xd1a   :  { %1811 = vrot.lane.b32.xlu0 %v3667_v32, %s3152_s12 }
 0xd58   :  { %v1621_v14 = vpop.xlane.xlu0 %1620 }
 0xd59   :  { %3115 = vrcp.f32 %v1621_v14 }
 0xd5a   :  { %v1624_v4 = vpop.xlane.xlu1 %1623 }
 0xd5b   :  { %3117 = vrcp.f32 %v1624_v4 }
 0xd5c   :  { %v1633_v5 = vpop.permute.xlu0 %1632 }
 0xd5d   :  { %2842 = vmatpush3.bf16.msra.mxu0 %v1633_v5  ;;  %v3012_v5 = vld [vmem:[%s3968_s16 + $0x8] sm:$0xff]  }
 0xd5e   :  { %2843 = vmatprep.subr.bf16.mxu0 %v3147_v3  ;;  %v1764_v32 = vpop.permute.xlu1 %1763 }
 0xd61   :  { %2844 = vmatpush3.bf16.msra.mxu0 %v1635_v1 }
 0xd62   :  { %2857 = vmatprep.subr.bf16.mxu0 %v3147_v3 }
 0xd63   :  { %v3116_v21 = vpop.eup %3115 }
 0xd64   :  { %v1627_v7 = vmul.f32 %v3116_v21, %v3108_v45  ;;  %v3013_v21 = vld [vmem:[%s3968_s16 + $0x10] sm:$0xff]  }
 0xd65   :  { %v3118_v6 = vpop.eup %3117 }
 0xd66   :  { %v1628_v11 = vmul.f32 %v3118_v6, %v3110_v47  ;;  %v3014_v6 = vld [vmem:[%s3968_s16 + $0x18] sm:$0xff]  }
 0xd68   :  { %v1629_v8 = vpack.c.bf16 %v1628_v11, %v1627_v7  ;;  %v3015_v7 = vld [vmem:[%s3968_s16 + $0x20] sm:$0xff]   ;;  %v3016_v11 = vld [vmem:[%s3968_s16 + $0x28] sm:$0xff]  }
 0xd6a   :  { %2846 = vmatmul.mubr.msk.bf16.vlgmr.msra.gmra.mrb[36].mxu0 %vm524_vm1, %v1629_v8  ;;  %v3017_v8 = vld [vmem:[%s3968_s16 + $0x30] sm:$0xff]  }
 0xd6b   :  { %2858 = vmatpush3.bf16.msra.mxu0 %v1762_v2  ;;  %2861 = vmatprep.mubr.msk.bf16.mxu0 %vm3149_vm0, %v3147_v3 }
 0xd6c   :  { %2859 = vmatprep.subr.bf16.mxu0 %v3147_v3 }
 0xd6f   :  { %2860 = vmatpush3.bf16.msra.mxu0 %v1764_v32  ;;  %v3018_v32 = vld [vmem:[%s3968_s16 + $0x38] sm:$0xff]  }
 0xd70   :  { %2865 = vmatprep.subr.bf16.mxu0 %v3147_v3 }
 0xd8d   :  { %v1752_v9 = vpop.xlane.xlu0 %1751 }
 0xd8e   :  { %3119 = vrcp.f32 %v1752_v9 }
 0xd8f   :  { %v1755_v10 = vpop.xlane.xlu1 %1754 }
 0xd90   :  { %3121 = vrcp.f32 %v1755_v10 }
 0xd91   :  { %v1814_v18 = vpop.permute.xlu0 %1813 }
 0xd92   :  { %v1821_v20 = vsel %vm524_vm1, %v1814_v18, 0 }
 0xd93   :  { %v1816_v23 = vpop.permute.xlu1 %1815 }
 0xd94   :  { %v1824_v24 = vsel %vm524_vm1, %v1816_v23, 0 }
 0xd95   :  { %v1812_v25 = vpop.permute.xlu0 %1811 }
 0xd98   :  { %v3120_v51 = vpop.eup %3119 }
 0xd99   :  { %v1758_v16 = vmul.f32 %v3120_v51, %v3112_v59 }
 0xd9a   :  { %v3122_v13 = vpop.eup %3121 }
 0xd9b   :  { %v1759_v17 = vmul.f32 %v3122_v13, %v3114_v60 }
 0xd9d   :  { %v1760_v19 = vpack.c.bf16 %v1759_v17, %v1758_v16 }
 0xd9f   :  { %2862 = vmatmul.mubr.msk.bf16.vlgmr.msra.gmra.mrb[40].mxu0 %vm524_vm1, %v1760_v19 }
 0xda0   :  { %2866 = vmatpush3.bf16.xpose.msra.mxu0 %v1821_v20  ;;  %2869 = vmatprep.mubr.msk.bf16.mxu0 %vm3149_vm0, %v3147_v3 }
 0xda1   :  { %2867 = vmatprep.subr.bf16.mxu0 %v3147_v3 }
 0xda8   :  { %2868 = vmatpush3.bf16.xpose.msra.mxu0 %v1824_v24 }
 0xdaf   :  { %2870 = vmatmul.mubr.msk.bf16.vlgmr.msra.gmra.mrb[44].mxu0 %vm524_vm1, %v1812_v25 }
 0xdb0   :  { %2230 = vmatprep.mubr.bf16.mxu0 %v3148_v30 }
 0xe3d   :  { %v1675_v26 = vpop.f32.mrb[36].mxu0 }
 0xe3e   :  { %v2847_v27 = vpop.f32.mrb[37].mxu0 }
 0xe3f   :  { %v1678_v28 = vpop.f32.mrb[38].mxu0 }
 0xe40   :  { %v2922_v29 = vpack.i.bf16 %v1678_v28, %v1675_v26  ;;  %v2848_v31 = vpop.f32.mrb[39].mxu0 }
 0xe72   :  { %v1804_v34 = vpop.f32.mrb[40].mxu0 }
 0xe73   :  { %v2863_v36 = vpop.f32.mrb[41].mxu0 }
 0xe74   :  { %v1807_v37 = vpop.f32.mrb[42].mxu0 }
 0xe75   :  { %v2927_v38 = vpack.i.bf16 %v1807_v37, %v1804_v34  ;;  %v2864_v39 = vpop.f32.mrb[43].mxu0 }
 0xe82   :  { %v1860_v40 = vpop.f32.mrb[44].mxu0 }
 0xe83   :  { %v1861_v41 = vadd.f32 %v1860_v40, %v3676_v33  ;;  %v2871_v42 = vpop.f32.mrb[45].mxu0 }
 0xe84   :  { %v1863_v43 = vpop.f32.mrb[46].mxu0 }
 0xe85   :  { %v1864_v44 = vadd.f32 %v1863_v43, %v3681_v35  ;;  %v2872_v45 = vpop.f32.mrb[47].mxu0  ;;  %v1867_v30 = vsel %vm524_vm1, %v1861_v41, -inf }
 0xe86   :  { %1868 = vmax.xlane.f32.xlu1 %v1867_v30  ;;  %v3019_v45 = vld [vmem:[%s3970_s20] ss:$8 sps:$4 sm:$0xff]   ;;  %v3021_v30 = vld [vmem:[%s3970_s20 + $0x4] ss:$8 sps:$4 sm:$0xff]  }
 0xe87   :  { %v1870_v46 = vsel %vm524_vm1, %v1864_v44, -inf  ;;  %2198 = vmatprep.subr.bf16.mxu0 %v3021_v30 }
 0xe88   :  { %1871 = vmax.xlane.f32.xlu0 %v1870_v46  ;;  %v3022_v46 = vld [vmem:[%s3970_s20 + $0x10] ss:$8 sps:$4 sm:$0xff]   ;;  %2199 = vmatpush1.bf16.msra.mxu0 %v3019_v45 }
 0xe97   :  { %1890 = vrot.lane.b32.xlu1 %v3648_v50, %s3152_s12 }
 0xe9b   :  { %2923 = vrot.lane.b32.xlu1 %v2922_v29, %s3152_s12 }
 0xe9f   :  { %2928 = vrot.lane.b32.xlu1 %v2927_v38, %s3151_s29  ;;  %v2556_v38 = vld [vmem:[%s3969_s17] ss:$0 sm:$0xff] }
 0xf13   :  { %v1869_v47 = vpop.xlane.xlu1 %1868 }
 0xf14   :  { %v1873_v33 = vsub.f32 %v1861_v41, %v1869_v47 }
 0xf15   :  { %v1872_v48 = vpop.xlane.xlu0 %1871 }
 0xf16   :  { %v1875_v49 = vmul.f32 1.442695, %v1873_v33  ;;  %v1874_v52 = vsub.f32 %v1864_v44, %v1872_v48 }
 0xf17   :  { %v1891_v35 = vpop.permute.xlu1 %1890 }
 0xf18   :  { %3123 = vpow2.f32 %v1875_v49  ;;  %v1877_v53 = vmul.f32 1.442695, %v1874_v52  ;;  %2874 = vmatpush3.bf16.msra.mxu1 %v1891_v35 }
 0xf19   :  { %2875 = vmatprep.subr.bf16.mxu1 %v3147_v3 }
 0xf1a   :  { %3125 = vpow2.f32 %v1877_v53 }
 0xf1b   :  { %v2924_v17 = vpop.permute.xlu1 %2923 }
 0xf1c   :  { %v2926_v19 = vunpack.i.h.bf16 %v2924_v17  ;;  %v2925_v20 = vunpack.i.l.bf16 %v2924_v17 }
 0xf1e   :  { %v1964_v26 = vsel %vm524_vm1, %v3718_v12, %v2925_v20 }
 0xf1f   :  { %v2929_v18 = vpop.permute.xlu1 %2928 }
 0xf20   :  { %v2931_v23 = vunpack.i.h.bf16 %v2929_v18  ;;  %v2930_v24 = vunpack.i.l.bf16 %v2929_v18 }
 0xf22   :  { %v3124_v54 = vpop.eup %3123  ;;  %v1966_v29 = vsel %vm1032_vm3, %v1964_v26, %v2930_v24  ;;  %v3044_v24 = vld [vmem:[%s3973_s22] sm:$0xff]   ;;  %v3047_v26 = vld [vmem:[%s3973_s22 + $0x50] sm:$0xff]  }
 0xf23   :  { %v1879_v56 = vsel %vm524_vm1, %v3124_v54, 0.0 }
 0xf24   :  { %v3126_v50 = vpop.eup %3125  ;;  %1880 = vadd.xlane.f32.xlu0 %v1879_v56  ;;  %v3025_v56 = vld [vmem:[%s3970_s20 + $0x20] ss:$8 sps:$4 sm:$0xff]  }
 0xf25   :  { %v1882_v57 = vsel %vm524_vm1, %v3126_v50, 0.0 }
 0xf28   :  { %1883 = vadd.xlane.f32.xlu0 %v1882_v57  ;;  %v3028_v57 = vld [vmem:[%s3970_s20 + $0x30] ss:$8 sps:$4 sm:$0xff]  }
 0xf3e   :  { %1892 = vrot.lane.b32.xlu0 %v3657_v22, %s3152_s12  ;;  %v3011_v22 = vld [vmem:[%s3968_s16] sm:$0xff]  }
 0xfb1   :  { %v1881_v59 = vpop.xlane.xlu0 %1880 }
 0xfb2   :  { %3127 = vrcp.f32 %v1881_v59  ;;  %v3033_v59 = vld [vmem:[%s3970_s20 + $0x44] ss:$8 sps:$4 sm:$0xff]  }
 0xfb5   :  { %v1884_v60 = vpop.xlane.xlu0 %1883 }
 0xfb6   :  { %3129 = vrcp.f32 %v1884_v60  ;;  %v3031_v60 = vld [vmem:[%s3970_s20 + $0x40] ss:$8 sps:$4 sm:$0xff]  }
 0xfb9   :  { %v1893_v63 = vpop.permute.xlu0 %1892 }
 0xfba   :  { %2876 = vmatpush3.bf16.msra.mxu1 %v1893_v63  ;;  %v3036_v63 = vld [vmem:[%s3970_s20 + $0x54] ss:$8 sps:$4 sm:$0xff]  }
 0xfbb   :  { %2881 = vmatprep.subr.bf16.mxu1 %v3147_v3 }
 0xfbc   :  { %v3128_v0 = vpop.eup %3127 }
 0xfbd   :  { %v1887_v2 = vmul.f32 %v3128_v0, %v3124_v54  ;;  %v3027_v54 = vld [vmem:[%s3970_s20 + $0x24] ss:$8 sps:$4 sm:$0xff]   ;;  %v3034_v0 = vld [vmem:[%s3970_s20 + $0x50] ss:$8 sps:$4 sm:$0xff]  }
 0xfc0   :  { %v3130_v1 = vpop.eup %3129 }
 0xfc1   :  { %v1888_v14 = vmul.f32 %v3130_v1, %v3126_v50  ;;  %v3030_v50 = vld [vmem:[%s3970_s20 + $0x34] ss:$8 sps:$4 sm:$0xff]   ;;  %v3039_v1 = vld [vmem:[%s3970_s20 + $0x64] ss:$8 sps:$4 sm:$0xff]  }
 0xfc3   :  { %v1889_v4 = vpack.c.bf16 %v1888_v14, %v1887_v2  ;;  %v3037_v2 = vld [vmem:[%s3970_s20 + $0x60] ss:$8 sps:$4 sm:$0xff]   ;;  %v3042_v14 = vld [vmem:[%s3970_s20 + $0x74] ss:$8 sps:$4 sm:$0xff]  }
 0xfc5   :  { %2878 = vmatmul.mubr.msk.bf16.vlgmr.msra.gmra.mrb[36].mxu1 %vm524_vm1, %v1889_v4  ;;  %v3040_v4 = vld [vmem:[%s3970_s20 + $0x70] ss:$8 sps:$4 sm:$0xff]  }
 0xfc6   :  { %2897 = vmatprep.mubr.msk.bf16.mxu1 %vm3149_vm0, %v3147_v3  ;;  %2882 = vmatpush3.bf16.msra.mxu1 %v3011_v22 }
 0xfc7   :  { %2883 = vmatprep.subr.bf16.mxu1 %v3147_v3 }
 0xfca   :  { %2884 = vmatpush3.bf16.msra.mxu1 %v3012_v5 }
 0xfcb   :  { %2885 = vmatprep.subr.bf16.mxu1 %v3147_v3 }
 0xfce   :  { %2886 = vmatpush3.bf16.msra.mxu1 %v3013_v21 }
 0xfcf   :  { %2887 = vmatprep.subr.bf16.mxu1 %v3147_v3 }
 0xfd2   :  { %2888 = vmatpush3.bf16.msra.mxu1 %v3014_v6 }
 0xfd3   :  { %2889 = vmatprep.subr.bf16.mxu1 %v3147_v3 }
 0xfd6   :  { %2890 = vmatpush3.bf16.msra.mxu1 %v3015_v7 }
 0xfd7   :  { %2891 = vmatprep.subr.bf16.mxu1 %v3147_v3 }
 0xfda   :  { %2892 = vmatpush3.bf16.msra.mxu1 %v3016_v11 }
 0xfdb   :  { %2893 = vmatprep.subr.bf16.mxu1 %v3147_v3 }
 0xfde   :  { %2894 = vmatpush3.bf16.msra.mxu1 %v3017_v8 }
 0xfdf   :  { %2895 = vmatprep.subr.bf16.mxu1 %v3147_v3  ;;  %v1965_v3 = vsel %vm524_vm1, %v3720_v15, %v2926_v19 }
 0xfe0   :  { %v1967_v31 = vsel %vm1032_vm3, %v1965_v3, %v2931_v23  ;;  %v3043_v23 = vld [vmem:[%s3973_s22 + $0x40] sm:$0xff]   ;;  %v3046_v3 = vld [vmem:[%s3973_s22 + $0x8] sm:$0xff]  }
 0xfe2   :  { %2896 = vmatpush3.bf16.msra.mxu1 %v3018_v32 }
 0xfe3   :  { %2687 = vmatprep.subr.bf16.mxu1 %v3043_v23 }
0x1098   :  { %v1933_v9 = vpop.f32.mrb[36].mxu1 }
0x1099   :  { %v2879_v10 = vpop.f32.mrb[37].mxu1 }
0x109a   :  { %v1936_v51 = vpop.f32.mrb[38].mxu1 }
0x109b   :  { %v2932_v13 = vpack.i.bf16 %v1936_v51, %v1933_v9  ;;  %v2880_v16 = vpop.f32.mrb[39].mxu1  ;;  %v2565_v9 = vld [vmem:[%s3971_s18] ss:$0 sm:$0xff] }
0x109c   :  { %v2566_v16 = vld [vmem:[%s3972_s19] ss:$0 sm:$0xff] }
0x109d   :  { %2933 = vrot.lane.b32.xlu1 %v2932_v13, %s3150_s7 }
0x110f   :  { %v2934_v25 = vpop.permute.xlu1 %2933 }
0x1110   :  { %v2936_v27 = vunpack.i.h.bf16 %v2934_v25  ;;  %v2935_v28 = vunpack.i.l.bf16 %v2934_v25  ;;  %v3045_v25 = vld [vmem:[%s3973_s22 + $0x48] sm:$0xff]  }
0x1112   :  { %v1969_v34 = vsel %vm1035_vm4, %v1967_v31, %v2936_v27  ;;  %v1968_v36 = vsel %vm1035_vm4, %v1966_v29, %v2935_v28  ;;  %v3048_v27 = vld [vmem:[%s3973_s22 + $0x10] sm:$0xff]   ;;  %v3049_v28 = vld [vmem:[%s3973_s22 + $0x58] sm:$0xff]   ;;  %v3051_v31 = vld [vmem:[%s3973_s22 + $0x60] sm:$0xff]  }
0x1113   :  { %v1970_v37 = vpack.c.bf16 %v1969_v34, %v1968_v36  ;;  %v3050_v29 = vld [vmem:[%s3973_s22 + $0x18] sm:$0xff]   ;;  %v3052_v34 = vld [vmem:[%s3973_s22 + $0x20] sm:$0xff]   ;;  %v3053_v36 = vld [vmem:[%s3973_s22 + $0x68] sm:$0xff]  }
0x1115   :  { %2898 = vmatmul.mubr.bf16.vlgmr.msra.gmra.mrb[40].mxu1 %v1970_v37  ;;  %v3054_v37 = vld [vmem:[%s3973_s22 + $0x28] sm:$0xff]  }
0x1116   :  { %2688 = vmatpush3.bf16.msra.mxu1 %v3044_v24 }
0x1117   :  { %2689 = vmatprep.subr.bf16.mxu1 %v3045_v25 }
0x111a   :  { %2690 = vmatpush3.bf16.msra.mxu1 %v3046_v3 }
0x111b   :  { %2691 = vmatprep.subr.bf16.mxu1 %v3047_v26  ;;  %v2583_v26 = vld [vmem:[%s3975_s23] ss:$0 sm:$0xff] }
0x111e   :  { %2692 = vmatpush3.bf16.msra.mxu1 %v3048_v27 }
0x111f   :  { %2693 = vmatprep.subr.bf16.mxu1 %v3049_v28 }
0x1122   :  { %2694 = vmatpush3.bf16.msra.mxu1 %v3050_v29 }
0x1123   :  { %2695 = vmatprep.subr.bf16.mxu1 %v3051_v31 }
0x1126   :  { %2696 = vmatpush3.bf16.msra.mxu1 %v3052_v34 }
0x1127   :  { %2697 = vmatprep.subr.bf16.mxu1 %v3053_v36 }
0x112a   :  { %2698 = vmatpush3.bf16.msra.mxu1 %v3054_v37 }
0x11e8   :  { %v2059_v15 = vpop.f32.mrb[40].mxu1 }
0x11e9   :  { %v2060_v39 = vadd.f32 %v2556_v38, %v2059_v15  ;;  %v2899_v40 = vpop.f32.mrb[41].mxu1  ;;  %v3056_v15 = vld [vmem:[%s3973_s22 + $0x30] sm:$0xff]  }
0x11ea   :  { %v2062_v12 = vpop.f32.mrb[42].mxu1  ;;  %v3058_v40 = vld [vmem:[%s3973_s22 + $0x38] sm:$0xff]  }
0x11eb   :  { %v2063_v41 = vadd.f32 %v2556_v38, %v2062_v12  ;;  %v2900_v42 = vpop.f32.mrb[43].mxu1  ;;  %v2066_v43 = vadd.f32 %v2060_v39, %v3633_v61  ;;  %v3024_v61 = vld [vmem:[%s3970_s20 + $0x14] ss:$8 sps:$4 sm:$0xff]   ;;  %v256_v12 = vld [vmem:[%s3974_s21] sm:$0x3] }
0x11ec   :  { %2200 = vmatprep.subr.bf16.mxu0 %v3024_v61  ;;  %v3055_v38 = vld [vmem:[%s3973_s22 + $0x70] sm:$0xff]   ;;  %v3057_v39 = vld [vmem:[%s3973_s22 + $0x78] sm:$0xff]   ;;  %v2115_v42 = vrot.slane %v256_v12, %v3410_v58 }
0x11ed   :  { %2068 = vadd.xlane.f32.xlu0 %v2066_v43  ;;  %v2067_v44 = vadd.f32 %v2063_v41, %v3635_v62  ;;  %2201 = vmatpush1.bf16.msra.mxu0 %v3022_v46  ;;  %v2111_v41 = vrot.slane %v256_v12, %v3405_v55 }
0x11ee   :  { %2202 = vmatprep.subr.bf16.mxu0 %v3027_v54  ;;  %2699 = vmatprep.subr.bf16.mxu1 %v3055_v38 }
0x11ef   :  { %2070 = vadd.xlane.f32.xlu1 %v2067_v44  ;;  %2700 = vmatpush3.bf16.msra.mxu1 %v3056_v15 }
0x11f0   :  { %2701 = vmatprep.subr.bf16.mxu1 %v3057_v39 }
0x11f1   :  { %2203 = vmatpush1.bf16.msra.mxu0 %v3025_v56 }
0x11f2   :  { %2204 = vmatprep.subr.bf16.mxu0 %v3030_v50 }
0x11f3   :  { %2702 = vmatpush3.bf16.msra.mxu1 %v3058_v40 }
0x11f5   :  { %2205 = vmatpush1.bf16.msra.mxu0 %v3028_v57 }
0x11f6   :  { %2206 = vmatprep.subr.bf16.mxu0 %v3033_v59 }
0x11f9   :  { %2207 = vmatpush1.bf16.msra.mxu0 %v3031_v60 }
0x11fa   :  { %2208 = vmatprep.subr.bf16.mxu0 %v3036_v63 }
0x11fd   :  { %2209 = vmatpush1.bf16.msra.mxu0 %v3034_v0 }
0x11fe   :  { %2210 = vmatprep.subr.bf16.mxu0 %v3039_v1 }
0x1201   :  { %2211 = vmatpush1.bf16.msra.mxu0 %v3037_v2 }
0x1202   :  { %2212 = vmatprep.subr.bf16.mxu0 %v3042_v14 }
0x1205   :  { %2213 = vmatpush1.bf16.msra.mxu0 %v3040_v4 }
0x127a   :  { %v2069_v62 = vpop.xlane.xlu0 %2068 }
0x127b   :  { %v2072_v47 = vmul.f32 0.0078125, %v2069_v62 }
0x127c   :  { %v2071_v33 = vpop.xlane.xlu1 %2070 }
0x127d   :  { %v2074_v48 = vsub.f32 %v2066_v43, %v2072_v47  ;;  %v2073_v49 = vmul.f32 0.0078125, %v2071_v33 }
0x127f   :  { %v2075_v52 = vsub.f32 %v2067_v44, %v2073_v49  ;;  %v2076_v35 = vmul.f32 %v2074_v48, %v2074_v48 }
0x1281   :  { %2078 = vadd.xlane.f32.xlu0 %v2076_v35  ;;  %v2077_v53 = vmul.f32 %v2075_v52, %v2075_v52 }
0x1285   :  { %2080 = vadd.xlane.f32.xlu0 %v2077_v53 }
0x130e   :  { %v2079_v22 = vpop.xlane.xlu0 %2078 }
0x130f   :  { %v2082_v5 = vmul.f32 0.0078125, %v2079_v22 }
0x1311   :  { %v2084_v21 = vadd.f32 1e-05, %v2082_v5 }
0x1312   :  { %v2081_v6 = vpop.xlane.xlu0 %2080 }
0x1313   :  { %3131 = vrsqrt.f32 %v2084_v21  ;;  %v2083_v7 = vmul.f32 0.0078125, %v2081_v6 }
0x1315   :  { %v2085_v11 = vadd.f32 1e-05, %v2083_v7 }
0x1317   :  { %3133 = vrsqrt.f32 %v2085_v11 }
0x131d   :  { %v3132_v8 = vpop.eup %3131 }
0x131e   :  { %v2088_v32 = vmul.f32 %v3132_v8, %v2074_v48 }
0x1320   :  { %v2096_v13 = vmul.f32 %v2565_v9, %v2088_v32 }
0x1321   :  { %v3134_v10 = vpop.eup %3133 }
0x1322   :  { %v2089_v51 = vmul.f32 %v3134_v10, %v2075_v52  ;;  %v3879_v18 = vadd.f32 %v2566_v16, %v2096_v13 }
0x1324   :  { %v2097_v17 = vmul.f32 %v2565_v9, %v2089_v51 }
0x1326   :  { %v3881_v19 = vadd.f32 %v2566_v16, %v2097_v17 }
0x1328   :  { %v2106_v20 = vpack.c.bf16 %v3881_v19, %v3879_v18 }
0x132a   :  { %2231 = vmatmul.mubr.bf16.vlgmr.msra.gmra.mrb[48].mxu0 %v2106_v20 }
0x13fd   :  { %v2232_v43 = vpop.f32.mrb[48].mxu0 }
0x13fe   :  { %v2233_v44 = vadd.f32 %v2232_v43, %v2111_v41  ;;  %v2234_v45 = vpop.f32.mrb[49].mxu0 }
0x13ff   :  { %v2235_v30 = vadd.f32 %v2234_v45, %v2115_v42  ;;  %v2236_v46 = vpop.f32.mrb[50].mxu0 }
0x1400   :  { %v2245_v61 = vmul.f32 0.044715, %v2233_v44  ;;  %v2237_v62 = vadd.f32 %v2236_v46, %v2111_v41  ;;  %v2238_v47 = vpop.f32.mrb[51].mxu0  ;;  %v2241_v8 = vmul.f32 0.5, %v2233_v44 }
0x1401   :  { %v2246_v33 = vmul.f32 0.044715, %v2235_v30  ;;  %v2239_v48 = vadd.f32 %v2238_v47, %v2115_v42  ;;  %v2242_v10 = vmul.f32 0.5, %v2235_v30 }
0x1402   :  { %v2249_v49 = vmul.f32 %v2245_v61, %v2233_v44  ;;  %v2247_v52 = vmul.f32 0.044715, %v2237_v62  ;;  %v2243_v32 = vmul.f32 0.5, %v2237_v62 }
0x1403   :  { %v2250_v35 = vmul.f32 %v2246_v33, %v2235_v30  ;;  %v2248_v53 = vmul.f32 0.044715, %v2239_v48  ;;  %v2244_v51 = vmul.f32 0.5, %v2239_v48  ;;  %v2600_v33 = vld [vmem:[%s3976_s24] ss:$0 sm:$0xff] }
0x1404   :  { %v2253_v54 = vmul.f32 %v2249_v49, %v2233_v44  ;;  %v2251_v56 = vmul.f32 %v2247_v52, %v2237_v62 }
0x1405   :  { %v2254_v50 = vmul.f32 %v2250_v35, %v2235_v30  ;;  %v2252_v55 = vmul.f32 %v2248_v53, %v2239_v48  ;;  %v2601_v53 = vld [vmem:[%s3977_s25] ss:$0 sm:$0xff] }
0x1406   :  { %v2257_v57 = vadd.f32 %v2253_v54, %v2233_v44  ;;  %v2255_v58 = vmul.f32 %v2251_v56, %v2237_v62 }
0x1407   :  { %v2256_v59 = vmul.f32 %v2252_v55, %v2239_v48  ;;  %v2258_v60 = vadd.f32 %v2254_v50, %v2235_v30 }
0x1408   :  { %v2261_v63 = vmul.f32 0.7978846, %v2257_v57  ;;  %v2259_v0 = vadd.f32 %v2255_v58, %v2237_v62 }
0x1409   :  { %v2260_v1 = vadd.f32 %v2256_v59, %v2239_v48  ;;  %v2262_v2 = vmul.f32 0.7978846, %v2258_v60 }
0x140a   :  { %3135 = vtanh.f32 %v2261_v63  ;;  %v2263_v14 = vmul.f32 0.7978846, %v2259_v0 }
0x140b   :  { %v2264_v4 = vmul.f32 0.7978846, %v2260_v1  ;;  %3137 = vtanh.f32 %v2262_v2 }
0x140c   :  { %3139 = vtanh.f32 %v2263_v14 }
0x140d   :  { %3141 = vtanh.f32 %v2264_v4 }
0x1414   :  { %v3136_v22 = vpop.eup %3135 }
0x1415   :  { %v3138_v5 = vpop.eup %3137  ;;  %v2269_v21 = vadd.f32 1.0, %v3136_v22 }
0x1416   :  { %v3140_v6 = vpop.eup %3139  ;;  %v2270_v7 = vadd.f32 1.0, %v3138_v5 }
0x1417   :  { %v3142_v11 = vpop.eup %3141  ;;  %v2271_v9 = vadd.f32 1.0, %v3140_v6  ;;  %v2273_v16 = vmul.f32 %v2269_v21, %v2241_v8 }
0x1418   :  { %v2272_v13 = vadd.f32 1.0, %v3142_v11  ;;  %v2274_v20 = vmul.f32 %v2270_v7, %v2242_v10 }
0x1419   :  { %v2275_v17 = vmul.f32 %v2271_v9, %v2243_v32 }
0x141a   :  { %v2276_v23 = vmul.f32 %v2272_v13, %v2244_v51 }
0x141b   :  { %v2277_v24 = vpack.c.bf16 %v2275_v17, %v2273_v16 }
0x141c   :  { %v2278_v25 = vpack.c.bf16 %v2276_v23, %v2274_v20 }
0x141e   :  { %2413 = vmatprep.mubr.bf16.mxu1 %v2278_v25 }
0x141f   :  { %2414 = vmatmul.mubr.bf16.vlgmr.msra.gmra.mrb[44].mxu1 %v2277_v24 }
0x14f2   :  { %v2703_v3 = vpop.f32.mrb[44].mxu1 }
0x14f3   :  { %v2704_v27 = vpop.f32.mrb[45].mxu1 }
0x14f4   :  { %v2705_v28 = vadd.f32 %v2704_v27, %v2703_v3  ;;  %v2706_v29 = vpop.f32.mrb[46].mxu1 }
0x14f5   :  { %v2707_v31 = vpop.f32.mrb[47].mxu1 }
0x14f6   :  { %v2416_v34 = vadd.f32 %v2705_v28, %v2583_v26  ;;  %v2708_v36 = vadd.f32 %v2707_v31, %v2706_v29 }
0x14f8   :  { %v2419_v37 = vadd.f32 %v2708_v36, %v2583_v26  ;;  %v2422_v38 = vadd.f32 %v2416_v34, %v3879_v18 }
0x14fa   :  { %2424 = vadd.xlane.f32.xlu0 %v2422_v38  ;;  %v2423_v15 = vadd.f32 %v2419_v37, %v3881_v19 }
0x14fc   :  { %2426 = vadd.xlane.f32.xlu1 %v2423_v15 }
0x1587   :  { %v2425_v39 = vpop.xlane.xlu0 %2424 }
0x1588   :  { %v2428_v40 = vmul.f32 0.0078125, %v2425_v39 }
0x1589   :  { %v2427_v12 = vpop.xlane.xlu1 %2426 }
0x158a   :  { %v2430_v41 = vsub.f32 %v2422_v38, %v2428_v40  ;;  %v2429_v42 = vmul.f32 0.0078125, %v2427_v12 }
0x158c   :  { %v2431_v43 = vsub.f32 %v2423_v15, %v2429_v42  ;;  %v2432_v44 = vmul.f32 %v2430_v41, %v2430_v41 }
0x158e   :  { %2434 = vadd.xlane.f32.xlu0 %v2432_v44  ;;  %v2433_v45 = vmul.f32 %v2431_v43, %v2431_v43 }
0x1590   :  { %2436 = vadd.xlane.f32.xlu1 %v2433_v45 }
0x161b   :  { %v2435_v30 = vpop.xlane.xlu0 %2434 }
0x161c   :  { %v2438_v46 = vmul.f32 0.0078125, %v2435_v30 }
0x161d   :  { %v2437_v61 = vpop.xlane.xlu1 %2436 }
0x161e   :  { %v2440_v62 = vadd.f32 1e-05, %v2438_v46  ;;  %v2439_v47 = vmul.f32 0.0078125, %v2437_v61 }
0x1620   :  { %3143 = vrsqrt.f32 %v2440_v62  ;;  %v2441_v18 = vadd.f32 1e-05, %v2439_v47 }
0x1622   :  { %3145 = vrsqrt.f32 %v2441_v18 }
0x162a   :  { %v3144_v19 = vpop.eup %3143 }
0x162b   :  { %v2444_v48 = vmul.f32 %v3144_v19, %v2430_v41 }
0x162c   :  { %v3146_v49 = vpop.eup %3145 }
0x162d   :  { %v2452_v52 = vmul.f32 %v2600_v33, %v2444_v48  ;;  %v2445_v35 = vmul.f32 %v3146_v49, %v2431_v43 }
0x162f   :  { %v2453_v54 = vmul.f32 %v2600_v33, %v2445_v35  ;;  %v2460_v56 = vadd.f32 %v2601_v53, %v2452_v52 }
0x1631   :  { %v2461_v50 = vadd.f32 %v2601_v53, %v2453_v54 }
0x1633   :  { %v2609_v55 = vpack.c.bf16 %v2461_v50, %v2460_v56 }
0x1635   :  { %2610 = vst [vmem:[%s3978_s26] sm:$0xff] %v2609_v55  }

// kernel: codeformer_forward.3
= control target key start
LH: loop header
LB: loop body
LE: loop exit
PB: predicated region body
PF: predicated region fallthrough
CT: control target
= control target key end

     0   :  { %s8027_s6 = smov 1   ;;  %s8028_s10 = smov 2   ;;  %s9460_s0 = inlined_call_operand.smem [shape: u32[34], index: -1, kind: input, shape index: {}] }
   0x1   :  { %s8097_s5 = sld [smem:[%s9460_s0]]   ;;  %s8029_s14 = smov 3  }
   0x2   :  { %s8102_s9 = sld [smem:[%s9460_s0 + %s8027_s6]]   ;;  %s8030_s18 = smov 4  }
   0x3   :  { %s8107_s13 = sld [smem:[%s9460_s0 + %s8028_s10]]   ;;  %s8031_s22 = smov 5  }
   0x4   :  { %s8112_s17 = sld [smem:[%s9460_s0 + %s8029_s14]]   ;;  %s8032_s26 = smov 6  }
   0x5   :  { %s8117_s21 = sld [smem:[%s9460_s0 + %s8030_s18]]   ;;  %s8033_s30 = smov 7  }
   0x6   :  { %s8122_s25 = sld [smem:[%s9460_s0 + %s8031_s22]]   ;;  %s8034_s4 = smov 8  }
   0x7   :  { %9475 = sst [smem:[#allocation40_spill]] %s8097_s5  ;;  %s8035_s10 = smov 9  }
   0x8   :  { %9476 = sst [smem:[#allocation41_spill]] %s8102_s9  ;;  %s8036_s15 = smov 10  }
   0x9   :  { %9477 = sst [smem:[#allocation42_spill]] %s8107_s13  ;;  %s8037_s20 = smov 11  }
   0xa   :  { %9478 = sst [smem:[#allocation43_spill]] %s8112_s17  ;;  %s8039_s1 = smov 13  }
   0xb   :  { %9479 = sst [smem:[#allocation44_spill]] %s8117_s21  ;;  %s8040_s7 = smov 14  }
   0xc   :  { %9480 = sst [smem:[#allocation45_spill]] %s8122_s25  ;;  %s8042_s22 = smov 16  }
   0xd   :  { %s8127_s29 = sld [smem:[%s9460_s0 + %s8032_s26]]   ;;  %s8038_s26 = smov 12  }
   0xe   :  { %s8132_s3 = sld [smem:[%s9460_s0 + %s8033_s30]]   ;;  %s8043_s28 = smov 17  }
   0xf   :  { %s8137_s8 = sld [smem:[%s9460_s0 + %s8034_s4]]  }
  0x10   :  { %s8142_s14 = sld [smem:[%s9460_s0 + %s8035_s10]]  }
  0x11   :  { %s8147_s19 = sld [smem:[%s9460_s0 + %s8036_s15]]   ;;  %s8041_s15 = smov 15  }
  0x12   :  { %s8152_s24 = sld [smem:[%s9460_s0 + %s8037_s20]]  }
  0x13   :  { %9481 = sst [smem:[#allocation46_spill]] %s8127_s29 }
  0x14   :  { %9482 = sst [smem:[#allocation47_spill]] %s8132_s3 }
  0x15   :  { %9483 = sst [smem:[#allocation48_spill]] %s8137_s8 }
  0x16   :  { %9484 = sst [smem:[#allocation49_spill]] %s8142_s14 }
  0x17   :  { %9485 = sst [smem:[#allocation50_spill]] %s8147_s19 }
  0x18   :  { %9486 = sst [smem:[#allocation51_spill]] %s8152_s24 }
  0x19   :  { %s8157_s30 = sld [smem:[%s9460_s0 + %s8038_s26]]  }
  0x1a   :  { %s8162_s6 = sld [smem:[%s9460_s0 + %s8039_s1]]  }
  0x1b   :  { %s8167_s12 = sld [smem:[%s9460_s0 + %s8040_s7]]   ;;  %s8044_s7 = smov 18  }
  0x1c   :  { %s8172_s20 = sld [smem:[%s9460_s0 + %s8041_s15]]   ;;  %s8045_s15 = smov 19  }
  0x1d   :  { %s8177_s27 = sld [smem:[%s9460_s0 + %s8042_s22]]   ;;  %s8046_s22 = smov 20  }
  0x1e   :  { %s8182_s4 = sld [smem:[%s9460_s0 + %s8043_s28]]   ;;  %s8047_s28 = smov 21  }
  0x1f   :  { %9487 = sst [smem:[#allocation52_spill]] %s8157_s30 }
  0x20   :  { %s8187_s24 = sld [smem:[%s9460_s0 + %s8044_s7]]   ;;  %s8048_s7 = smov 22  }
  0x21   :  { %s8192_s30 = sld [smem:[%s9460_s0 + %s8045_s15]]   ;;  %s8049_s15 = smov 23  }
  0x22   :  { %s8202_s14 = sld [smem:[%s9460_s0 + %s8047_s28]]   ;;  %s8051_s28 = smov 25  }
  0x23   :  { %9488 = sst [smem:[#allocation53_spill]] %s8177_s27 }
  0x24   :  { %s8197_s27 = sld [smem:[%s9460_s0 + %s8046_s22]]   ;;  %s8050_s22 = smov 24  }
  0x25   :  { %s8212_s8 = sld [smem:[%s9460_s0 + %s8049_s15]]   ;;  %s8053_s15 = smov 27  }
  0x26   :  { %9489 = sst [smem:[#allocation54_spill]] %s8187_s24 }
  0x27   :  { %s8207_s24 = sld [smem:[%s9460_s0 + %s8048_s7]]   ;;  %s8052_s7 = smov 26  }
  0x28   :  { %s8217_s19 = sld [smem:[%s9460_s0 + %s8050_s22]]   ;;  %s8054_s22 = smov 28  }
  0x29   :  { %s8222_s3 = sld [smem:[%s9460_s0 + %s8051_s28]]   ;;  %s8055_s28 = smov 29  }
  0x2a   :  { %s8227_s29 = sld [smem:[%s9460_s0 + %s8052_s7]]   ;;  %s8056_s7 = smov 30  }
  0x2b   :  { %s8232_s9 = sld [smem:[%s9460_s0 + %s8053_s15]]   ;;  %s8057_s15 = smov 31  }
  0x2c   :  { %s8237_s25 = sld [smem:[%s9460_s0 + %s8054_s22]]   ;;  %s8058_s22 = smov 32  }
  0x2d   :  { %s8242_s17 = sld [smem:[%s9460_s0 + %s8055_s28]]   ;;  %s8059_s28 = smov 33  }
  0x2e   :  { %s8247_s13 = sld [smem:[%s9460_s0 + %s8056_s7]]  }
  0x2f   :  { %s8252_s21 = sld [smem:[%s9460_s0 + %s8057_s15]]  }
  0x30   :  { %s8257_s5 = sld [smem:[%s9460_s0 + %s8058_s22]]  }
  0x33   :  { %9490 = sst [smem:[#allocation55_spill]] %s8242_s17 }
  0x34   :  { %s8262_s17 = sld [smem:[%s9460_s0 + %s8059_s28]]  }
  0x35   :  { %72 = vsyncpa [#allocation3], 0 }
  0x36   :  { %73 = vsyncpa [#allocation5], 0 }
  0x37   :  { %74 = vsyncpa [#allocation8], 0 }
  0x38   :  { %75 = vsyncpa [#allocation11], 0 }
  0x39   :  { %76 = vsyncpa [#allocation14], 0 }
  0x3a   :  { %77 = vsyncpa [#allocation17], 0 }
  0x3b   :  { %78 = vsyncpa [#allocation20], 0 }
  0x3c   :  { %79 = vsyncpa [#allocation23], 0 }
  0x3d   :  { %80 = vsyncpa [#allocation26], 0 }
  0x3e   :  { %81 = vsyncpa [#allocation29], 0  ;;  %s8060_s7 = smov [#allocation4]   ;;  %s8061_s11 = smov [#allocation7]  }
  0x3f   :  { %s125_s10 = sshll.u32 %s8060_s7, 4  ;;  %s152_s15 = sshll.u32 %s8061_s11, 4  ;;  %s126_s10 = int_to_ptr.vmem [resolvable:$true] %s125_s10  ;;  %s8264_s15 = int_to_ptr.vmem [resolvable:$true] %s152_s15 }
  0x40   :  { %s7611_s0 = scalar_lea.hbm %s8167_s12, 32 }
  0x41   :  { %p7612_p0 = scmp.ne.s32.totalorder %s8167_s12, %s7611_s0  ;;  %p7615_p1 = scmp.lt.u32.totalorder %s7611_s0, %s8167_s12 }
  0x43   :  { %p7617_p2 = pnand %p7615_p1, %p7612_p0 }
  0x45   :  { %7620 = shalt.err (!%p7617_p2)
}
  0x46   :  { %s7621_s16 = scalar_lea.vmem %s126_s10, 32  ;;  %p7626_p4 = scmp.lt.s32.totalorder %s126_s10, %s126_s10 }
  0x47   :  { %p7622_p3 = scmp.ne.s32.totalorder %s126_s10, %s7621_s16  ;;  %p7627_p5 = scmp.lt.s32.totalorder %s7621_s16, %s7621_s16 }
  0x49   :  { %p7628_p6 = por %p7627_p5, %p7626_p4 }
  0x4b   :  { %p7629_p7 = pnand %p7628_p6, %p7622_p3 }
  0x4d   :  { %7632 = shalt.err (!%p7629_p7)
}
  0x4e   :  { %s8062_s18 = smov 16   ;;  %s8063_s22 = smov 1  }
  0x4f   :  { %131 = dma.hbm_to_vmem [thread:$0]  %s8167_s12, 32, %s126_s10, [#allocation5], %s8062_s18, %s8062_s18, %s8063_s22  }
  0x50   :  { %s7633_s23 = scalar_lea.hbm %s8182_s4, 16 }
  0x51   :  { %p7634_p8 = scmp.ne.s32.totalorder %s8182_s4, %s7633_s23  ;;  %p7637_p9 = scmp.lt.u32.totalorder %s7633_s23, %s8182_s4 }
  0x53   :  { %p7639_p10 = pnand %p7637_p9, %p7634_p8 }
  0x55   :  { %7642 = shalt.err (!%p7639_p10)
}
  0x56   :  { %s7643_s26 = scalar_lea.vmem %s8264_s15, 16  ;;  %s7647_s28 = scalar_lea.vmem %s8264_s15, 32 }
  0x57   :  { %p7644_p11 = scmp.ne.s32.totalorder %s8264_s15, %s7643_s26  ;;  %p7648_p12 = scmp.lt.s32.totalorder %s8264_s15, %s8264_s15 }
  0x58   :  { %p7649_p13 = scmp.lt.s32.totalorder %s7647_s28, %s7643_s26 }
  0x5a   :  { %p7650_p0 = por %p7649_p13, %p7648_p12 }
  0x5c   :  { %p7651_p1 = pnand %p7650_p0, %p7644_p11 }
  0x5e   :  { %7654 = shalt.err (!%p7651_p1)
}
  0x5f   :  { %155 = dma.hbm_to_vmem [thread:$0]  %s8182_s4, 16, %s8264_s15, [#allocation8]  }
  0x60   :  { %s8064_s12 = smov [#allocation10]   ;;  %s8065_s2 = smov [#allocation13]  }
  0x61   :  { %s174_s1 = sshll.u32 %s8064_s12, 4  ;;  %s196_s7 = sshll.u32 %s8065_s2, 4  ;;  %s175_s1 = int_to_ptr.vmem [resolvable:$true] %s174_s1  ;;  %s197_s7 = int_to_ptr.vmem [resolvable:$true] %s196_s7 }
  0x62   :  { %s7655_s10 = scalar_lea.hbm %s8197_s27, 16 }
  0x63   :  { %p7656_p2 = scmp.ne.s32.totalorder %s8197_s27, %s7655_s10  ;;  %p7659_p3 = scmp.lt.u32.totalorder %s7655_s10, %s8197_s27 }
  0x65   :  { %p7661_p4 = pnand %p7659_p3, %p7656_p2 }
  0x67   :  { %7664 = shalt.err (!%p7661_p4)
}
  0x68   :  { %s7665_s11 = scalar_lea.vmem %s175_s1, 16  ;;  %s7669_s0 = scalar_lea.vmem %s175_s1, 32 }
  0x69   :  { %p7666_p5 = scmp.ne.s32.totalorder %s175_s1, %s7665_s11  ;;  %p7670_p6 = scmp.lt.s32.totalorder %s175_s1, %s175_s1 }
  0x6a   :  { %p7671_p7 = scmp.lt.s32.totalorder %s7669_s0, %s7665_s11 }
  0x6c   :  { %p7672_p8 = por %p7671_p7, %p7670_p6 }
  0x6e   :  { %p7673_p9 = pnand %p7672_p8, %p7666_p5 }
  0x70   :  { %7676 = shalt.err (!%p7673_p9)
}
  0x71   :  { %177 = dma.hbm_to_vmem [thread:$0]  %s8197_s27, 16, %s175_s1, [#allocation11]  }
  0x72   :  { %s7677_s4 = scalar_lea.hbm %s8207_s24, 48 }
  0x73   :  { %p7678_p10 = scmp.ne.s32.totalorder %s8207_s24, %s7677_s4  ;;  %p7681_p11 = scmp.lt.u32.totalorder %s7677_s4, %s8207_s24 }
  0x75   :  { %p7683_p12 = pnand %p7681_p11, %p7678_p10 }
  0x77   :  { %7686 = shalt.err (!%p7683_p12)
}
  0x78   :  { %s7687_s15 = scalar_lea.vmem %s197_s7, 48  ;;  %s7691_s16 = scalar_lea.vmem %s197_s7, 64 }
  0x79   :  { %p7688_p13 = scmp.ne.s32.totalorder %s197_s7, %s7687_s15  ;;  %p7692_p0 = scmp.lt.s32.totalorder %s197_s7, %s197_s7 }
  0x7a   :  { %p7693_p1 = scmp.lt.s32.totalorder %s7691_s16, %s7687_s15 }
  0x7c   :  { %p7694_p2 = por %p7693_p1, %p7692_p0 }
  0x7e   :  { %p7695_p3 = pnand %p7694_p2, %p7688_p13 }
  0x80   :  { %7698 = shalt.err (!%p7695_p3)
}
  0x81   :  { %199 = dma.hbm_to_vmem [thread:$0]  %s8207_s24, 48, %s197_s7, [#allocation14]  }
  0x82   :  { %s8066_s23 = smov [#allocation16]   ;;  %s8067_s26 = smov [#allocation19]  }
  0x83   :  { %s218_s27 = sshll.u32 %s8066_s23, 4  ;;  %s238_s28 = sshll.u32 %s8067_s26, 4  ;;  %s219_s27 = int_to_ptr.vmem [resolvable:$true] %s218_s27  ;;  %s239_s28 = int_to_ptr.vmem [resolvable:$true] %s238_s28 }
  0x84   :  { %s7699_s12 = scalar_lea.hbm %s8217_s19, 16 }
  0x85   :  { %p7700_p4 = scmp.ne.s32.totalorder %s8217_s19, %s7699_s12  ;;  %p7703_p5 = scmp.lt.u32.totalorder %s7699_s12, %s8217_s19 }
  0x87   :  { %p7705_p6 = pnand %p7703_p5, %p7700_p4 }
  0x89   :  { %7708 = shalt.err (!%p7705_p6)
}
  0x8a   :  { %s7709_s1 = scalar_lea.vmem %s219_s27, 16  ;;  %s7713_s2 = scalar_lea.vmem %s219_s27, 32 }
  0x8b   :  { %p7710_p7 = scmp.ne.s32.totalorder %s219_s27, %s7709_s1  ;;  %p7714_p8 = scmp.lt.s32.totalorder %s219_s27, %s219_s27 }
  0x8c   :  { %p7715_p9 = scmp.lt.s32.totalorder %s7713_s2, %s7709_s1 }
  0x8e   :  { %p7716_p10 = por %p7715_p9, %p7714_p8 }
  0x90   :  { %p7717_p11 = pnand %p7716_p10, %p7710_p7 }
  0x92   :  { %7720 = shalt.err (!%p7717_p11)
}
  0x93   :  { %221 = dma.hbm_to_vmem [thread:$0]  %s8217_s19, 16, %s219_s27, [#allocation17]  }
  0x94   :  { %s7721_s24 = scalar_lea.hbm %s8227_s29, 16 }
  0x95   :  { %p7722_p12 = scmp.ne.s32.totalorder %s8227_s29, %s7721_s24  ;;  %p7725_p13 = scmp.lt.u32.totalorder %s7721_s24, %s8227_s29 }
  0x97   :  { %p7727_p0 = pnand %p7725_p13, %p7722_p12 }
  0x99   :  { %7730 = shalt.err (!%p7727_p0)
}
  0x9a   :  { %s7731_s7 = scalar_lea.vmem %s239_s28, 16  ;;  %s7735_s10 = scalar_lea.vmem %s239_s28, 32 }
  0x9b   :  { %p7732_p1 = scmp.ne.s32.totalorder %s239_s28, %s7731_s7  ;;  %p7736_p2 = scmp.lt.s32.totalorder %s239_s28, %s239_s28 }
  0x9c   :  { %p7737_p3 = scmp.lt.s32.totalorder %s7735_s10, %s7731_s7 }
  0x9e   :  { %p7738_p4 = por %p7737_p3, %p7736_p2 }
  0xa0   :  { %p7739_p5 = pnand %p7738_p4, %p7732_p1 }
  0xa2   :  { %7742 = shalt.err (!%p7739_p5)
}
  0xa3   :  { %241 = dma.hbm_to_vmem [thread:$0]  %s8227_s29, 16, %s239_s28, [#allocation20]  }
  0xa4   :  { %s8068_s11 = smov [#allocation22]   ;;  %s8069_s0 = smov [#allocation25]  }
  0xa5   :  { %s260_s19 = sshll.u32 %s8068_s11, 4  ;;  %s282_s4 = sshll.u32 %s8069_s0, 4  ;;  %s261_s19 = int_to_ptr.vmem [resolvable:$true] %s260_s19  ;;  %s283_s4 = int_to_ptr.vmem [resolvable:$true] %s282_s4 }
  0xa6   :  { %s7743_s15 = scalar_lea.hbm %s8237_s25, 32 }
  0xa7   :  { %p7744_p6 = scmp.ne.s32.totalorder %s8237_s25, %s7743_s15  ;;  %p7747_p7 = scmp.lt.u32.totalorder %s7743_s15, %s8237_s25 }
  0xa9   :  { %p7749_p8 = pnand %p7747_p7, %p7744_p6 }
  0xab   :  { %7752 = shalt.err (!%p7749_p8)
}
  0xac   :  { %s7753_s16 = scalar_lea.vmem %s261_s19, 32  ;;  %p7758_p10 = scmp.lt.s32.totalorder %s261_s19, %s261_s19 }
  0xad   :  { %p7754_p9 = scmp.ne.s32.totalorder %s261_s19, %s7753_s16  ;;  %p7759_p11 = scmp.lt.s32.totalorder %s7753_s16, %s7753_s16 }
  0xaf   :  { %p7760_p12 = por %p7759_p11, %p7758_p10 }
  0xb1   :  { %p7761_p13 = pnand %p7760_p12, %p7754_p9 }
  0xb3   :  { %7764 = shalt.err (!%p7761_p13)
}
  0xb4   :  { %263 = dma.hbm_to_vmem [thread:$0]  %s8237_s25, 32, %s261_s19, [#allocation23]  }
  0xb5   :  { %s7765_s29 = scalar_lea.hbm %s8247_s13, 16 }
  0xb6   :  { %p7766_p0 = scmp.ne.s32.totalorder %s8247_s13, %s7765_s29  ;;  %p7769_p1 = scmp.lt.u32.totalorder %s7765_s29, %s8247_s13 }
  0xb8   :  { %p7771_p2 = pnand %p7769_p1, %p7766_p0 }
  0xba   :  { %7774 = shalt.err (!%p7771_p2)
}
  0xbb   :  { %s7775_s23 = scalar_lea.vmem %s283_s4, 16  ;;  %s7779_s27 = scalar_lea.vmem %s283_s4, 32 }
  0xbc   :  { %p7776_p3 = scmp.ne.s32.totalorder %s283_s4, %s7775_s23  ;;  %p7780_p4 = scmp.lt.s32.totalorder %s283_s4, %s283_s4 }
  0xbd   :  { %p7781_p5 = scmp.lt.s32.totalorder %s7779_s27, %s7775_s23 }
  0xbf   :  { %p7782_p6 = por %p7781_p5, %p7780_p4 }
  0xc1   :  { %p7783_p7 = pnand %p7782_p6, %p7776_p3 }
  0xc3   :  { %7786 = shalt.err (!%p7783_p7)
}
  0xc4   :  { %285 = dma.hbm_to_vmem [thread:$0]  %s8247_s13, 16, %s283_s4, [#allocation26]  }
  0xc5   :  { %s8070_s26 = smov [#allocation2]   ;;  %s8071_s28 = smov [#allocation6]  }
  0xc6   :  { %s113_s25 = sshll.u32 %s8070_s26, 4  ;;  %s137_s12 = sshll.u32 %s8071_s28, 4  ;;  %s114_s25 = int_to_ptr.vmem [resolvable:$true] %s113_s25  ;;  %s8307_s12 = int_to_ptr.vmem [resolvable:$true] %s137_s12 }
  0xc7   :  { %s7787_s1 = scalar_lea.hbm %s8162_s6, 32 }
  0xc8   :  { %p7788_p8 = scmp.ne.s32.totalorder %s8162_s6, %s7787_s1  ;;  %p7791_p9 = scmp.lt.u32.totalorder %s7787_s1, %s8162_s6 }
  0xca   :  { %p7793_p10 = pnand %p7791_p9, %p7788_p8 }
  0xcc   :  { %7796 = shalt.err (!%p7793_p10)
}
  0xcd   :  { %s7797_s2 = scalar_lea.vmem %s114_s25, 32  ;;  %p7802_p12 = scmp.lt.s32.totalorder %s114_s25, %s114_s25 }
  0xce   :  { %p7798_p11 = scmp.ne.s32.totalorder %s114_s25, %s7797_s2  ;;  %p7803_p13 = scmp.lt.s32.totalorder %s7797_s2, %s7797_s2 }
  0xd0   :  { %p7804_p0 = por %p7803_p13, %p7802_p12 }
  0xd2   :  { %p7805_p1 = pnand %p7804_p0, %p7798_p11 }
  0xd4   :  { %7808 = shalt.err (!%p7805_p1)
}
  0xd5   :  { %119 = dma.hbm_to_vmem [thread:$0]  %s8162_s6, 32, %s114_s25, [#allocation3], %s8062_s18, %s8062_s18, %s8063_s22  }
  0xd6   :  { %s7809_s13 = scalar_lea.hbm %s8172_s20, 32 }
  0xd7   :  { %p7810_p2 = scmp.ne.s32.totalorder %s8172_s20, %s7809_s13  ;;  %p7813_p3 = scmp.lt.u32.totalorder %s7809_s13, %s8172_s20 }
  0xd9   :  { %p7815_p4 = pnand %p7813_p3, %p7810_p2 }
  0xdb   :  { %7818 = shalt.err (!%p7815_p4)
}
  0xdc   :  { %s7819_s24 = scalar_lea.vmem %s8307_s12, 32  ;;  %p7824_p6 = scmp.lt.s32.totalorder %s8307_s12, %s8307_s12 }
  0xdd   :  { %p7820_p5 = scmp.ne.s32.totalorder %s8307_s12, %s7819_s24  ;;  %p7825_p7 = scmp.lt.s32.totalorder %s7819_s24, %s7819_s24 }
  0xdf   :  { %p7826_p8 = por %p7825_p7, %p7824_p6 }
  0xe1   :  { %p7827_p9 = pnand %p7826_p8, %p7820_p5 }
  0xe3   :  { %7830 = shalt.err (!%p7827_p9)
}
  0xe4   :  { %143 = dma.hbm_to_vmem [thread:$0]  %s8172_s20, 32, %s8307_s12, [#allocation5], %s8062_s18, %s8062_s18, %s8063_s22  }
  0xe5   :  { %s8072_s6 = smov [#allocation9]   ;;  %s8073_s10 = smov [#allocation12]  }
  0xe6   :  { %s164_s7 = sshll.u32 %s8072_s6, 4  ;;  %s183_s11 = sshll.u32 %s8073_s10, 4  ;;  %s165_s7 = int_to_ptr.vmem [resolvable:$true] %s164_s7  ;;  %s8328_s11 = int_to_ptr.vmem [resolvable:$true] %s183_s11 }
  0xe7   :  { %s7831_s19 = scalar_lea.hbm %s8192_s30, 16 }
  0xe8   :  { %p7832_p10 = scmp.ne.s32.totalorder %s8192_s30, %s7831_s19  ;;  %p7835_p11 = scmp.lt.u32.totalorder %s7831_s19, %s8192_s30 }
  0xea   :  { %p7837_p12 = pnand %p7835_p11, %p7832_p10 }
  0xec   :  { %7840 = shalt.err (!%p7837_p12)
}
  0xed   :  { %s7841_s0 = scalar_lea.vmem %s165_s7, 16  ;;  %s7845_s4 = scalar_lea.vmem %s165_s7, 32 }
  0xee   :  { %p7842_p13 = scmp.ne.s32.totalorder %s165_s7, %s7841_s0  ;;  %p7846_p0 = scmp.lt.s32.totalorder %s165_s7, %s165_s7 }
  0xef   :  { %p7847_p1 = scmp.lt.s32.totalorder %s7845_s4, %s7841_s0 }
  0xf1   :  { %p7848_p2 = por %p7847_p1, %p7846_p0 }
  0xf3   :  { %p7849_p3 = pnand %p7848_p2, %p7842_p13 }
  0xf5   :  { %7852 = shalt.err (!%p7849_p3)
}
  0xf6   :  { %167 = dma.hbm_to_vmem [thread:$0]  %s8192_s30, 16, %s165_s7, [#allocation8]  }
  0xf7   :  { %s7853_s20 = scalar_lea.hbm %s8202_s14, 3072 }
  0xf8   :  { %p7854_p4 = scmp.ne.s32.totalorder %s8202_s14, %s7853_s20  ;;  %p7857_p5 = scmp.lt.u32.totalorder %s7853_s20, %s8202_s14 }
  0xfa   :  { %p7859_p6 = pnand %p7857_p5, %p7854_p4 }
  0xfc   :  { %7862 = shalt.err (!%p7859_p6)
}
  0xfd   :  { %s7863_s18 = scalar_lea.vmem %s8328_s11, 3072  ;;  %p7868_p8 = scmp.lt.s32.totalorder %s8328_s11, %s8328_s11 }
  0xfe   :  { %p7864_p7 = scmp.ne.s32.totalorder %s8328_s11, %s7863_s18  ;;  %p7869_p9 = scmp.lt.s32.totalorder %s7863_s18, %s7863_s18 }
 0x100   :  { %p7870_p10 = por %p7869_p9, %p7868_p8 }
 0x102   :  { %p7871_p11 = pnand %p7870_p10, %p7864_p7 }
 0x104   :  { %7874 = shalt.err (!%p7871_p11)
}
 0x105   :  { %s8074_s22 = smov 192   ;;  %s8075_s30 = smov 12  }
 0x106   :  { %189 = dma.hbm_to_vmem [thread:$0]  %s8202_s14, 3072, %s8328_s11, [#allocation11], %s8074_s22, %s8074_s22, %s8075_s30  }
 0x107   :  { %s8076_s15 = smov [#allocation15]   ;;  %s7875_s29 = scalar_lea.hbm %s8212_s8, 1024 }
 0x108   :  { %s205_s16 = sshll.u32 %s8076_s15, 4  ;;  %p7876_p12 = scmp.ne.s32.totalorder %s8212_s8, %s7875_s29  ;;  %s206_s16 = int_to_ptr.vmem [resolvable:$true] %s205_s16 }
 0x109   :  { %p7879_p13 = scmp.lt.u32.totalorder %s7875_s29, %s8212_s8 }
 0x10b   :  { %p7881_p0 = pnand %p7879_p13, %p7876_p12 }
 0x10d   :  { %7884 = shalt.err (!%p7881_p0)
}
 0x10e   :  { %s7885_s23 = scalar_lea.vmem %s206_s16, 1024  ;;  %p7890_p2 = scmp.lt.s32.totalorder %s206_s16, %s206_s16 }
 0x10f   :  { %p7886_p1 = scmp.ne.s32.totalorder %s206_s16, %s7885_s23  ;;  %p7891_p3 = scmp.lt.s32.totalorder %s7885_s23, %s7885_s23 }
 0x111   :  { %p7892_p4 = por %p7891_p3, %p7890_p2 }
 0x113   :  { %p7893_p5 = pnand %p7892_p4, %p7886_p1 }
 0x115   :  { %7896 = shalt.err (!%p7893_p5)
}
 0x116   :  { %s8077_s27 = smov 64   ;;  %s8078_s14 = smov 4  }
 0x117   :  { %211 = dma.hbm_to_vmem [thread:$0]  %s8212_s8, 1024, %s206_s16, [#allocation14], %s8077_s27, %s8077_s27, %s8078_s14  }
 0x118   :  { %s8079_s26 = smov [#allocation18]   ;;  %s8080_s28 = smov [#allocation21]  }
 0x119   :  { %s228_s25 = sshll.u32 %s8079_s26, 4  ;;  %s247_s12 = sshll.u32 %s8080_s28, 4  ;;  %s229_s25 = int_to_ptr.vmem [resolvable:$true] %s228_s25  ;;  %s248_s12 = int_to_ptr.vmem [resolvable:$true] %s247_s12 }
 0x11a   :  { %s7897_s1 = scalar_lea.hbm %s8222_s3, 16 }
 0x11b   :  { %p7898_p6 = scmp.ne.s32.totalorder %s8222_s3, %s7897_s1  ;;  %p7901_p7 = scmp.lt.u32.totalorder %s7897_s1, %s8222_s3 }
 0x11d   :  { %p7903_p8 = pnand %p7901_p7, %p7898_p6 }
 0x11f   :  { %7906 = shalt.err (!%p7903_p8)
}
 0x120   :  { %s7907_s2 = scalar_lea.vmem %s229_s25, 16  ;;  %s7911_s13 = scalar_lea.vmem %s229_s25, 32 }
 0x121   :  { %p7908_p9 = scmp.ne.s32.totalorder %s229_s25, %s7907_s2  ;;  %p7912_p10 = scmp.lt.s32.totalorder %s229_s25, %s229_s25 }
 0x122   :  { %p7913_p11 = scmp.lt.s32.totalorder %s7911_s13, %s7907_s2 }
 0x124   :  { %p7914_p12 = por %p7913_p11, %p7912_p10 }
 0x126   :  { %p7915_p13 = pnand %p7914_p12, %p7908_p9 }
 0x128   :  { %7918 = shalt.err (!%p7915_p13)
}
 0x129   :  { %231 = dma.hbm_to_vmem [thread:$0]  %s8222_s3, 16, %s229_s25, [#allocation17]  }
 0x12a   :  { %s7919_s8 = scalar_lea.hbm %s8232_s9, 2048 }
 0x12b   :  { %p7920_p0 = scmp.ne.s32.totalorder %s8232_s9, %s7919_s8  ;;  %p7923_p1 = scmp.lt.u32.totalorder %s7919_s8, %s8232_s9 }
 0x12d   :  { %p7925_p2 = pnand %p7923_p1, %p7920_p0 }
 0x12f   :  { %7928 = shalt.err (!%p7925_p2)
}
 0x130   :  { %s7929_s24 = scalar_lea.vmem %s248_s12, 2048  ;;  %p7934_p4 = scmp.lt.s32.totalorder %s248_s12, %s248_s12 }
 0x131   :  { %p7930_p3 = scmp.ne.s32.totalorder %s248_s12, %s7929_s24  ;;  %p7935_p5 = scmp.lt.s32.totalorder %s7929_s24, %s7929_s24 }
 0x133   :  { %p7936_p6 = por %p7935_p5, %p7934_p4 }
 0x135   :  { %p7937_p7 = pnand %p7936_p6, %p7930_p3 }
 0x137   :  { %7940 = shalt.err (!%p7937_p7)
}
 0x138   :  { %s8081_s6 = smov 128   ;;  %s9491_s7 = sld [smem:[#allocation55_spill]] }
 0x139   :  { %s8082_s10 = smov 8   ;;  %s8083_s3 = smov [#allocation24]  }
 0x13a   :  { %253 = dma.hbm_to_vmem [thread:$0]  %s8232_s9, 2048, %s248_s12, [#allocation20], %s8081_s6, %s8081_s6, %s8082_s10  }
 0x13b   :  { %s269_s11 = sshll.u32 %s8083_s3, 4  ;;  %s8084_s19 = smov [#allocation27]   ;;  %s270_s11 = int_to_ptr.vmem [resolvable:$true] %s269_s11 }
 0x13c   :  { %s292_s0 = sshll.u32 %s8084_s19, 4  ;;  %s293_s0 = int_to_ptr.vmem [resolvable:$true] %s292_s0 }
 0x13e   :  { %s7941_s4 = scalar_lea.hbm %s9491_s7, 2048 }
 0x13f   :  { %p7942_p8 = scmp.ne.s32.totalorder %s9491_s7, %s7941_s4  ;;  %p7945_p9 = scmp.lt.u32.totalorder %s7941_s4, %s9491_s7 }
 0x141   :  { %p7947_p10 = pnand %p7945_p9, %p7942_p8 }
 0x143   :  { %7950 = shalt.err (!%p7947_p10)
}
 0x144   :  { %s7951_s20 = scalar_lea.vmem %s270_s11, 2048  ;;  %p7956_p12 = scmp.lt.s32.totalorder %s270_s11, %s270_s11 }
 0x145   :  { %p7952_p11 = scmp.ne.s32.totalorder %s270_s11, %s7951_s20  ;;  %p7957_p13 = scmp.lt.s32.totalorder %s7951_s20, %s7951_s20 }
 0x147   :  { %p7958_p0 = por %p7957_p13, %p7956_p12 }
 0x149   :  { %p7959_p1 = pnand %p7958_p0, %p7952_p11 }
 0x14b   :  { %7962 = shalt.err (!%p7959_p1)
}
 0x14c   :  { %275 = dma.hbm_to_vmem [thread:$0]  %s9491_s7, 2048, %s270_s11, [#allocation23], %s8077_s27, %s8077_s27, %s8078_s14  }
 0x14d   :  { %s7963_s9 = scalar_lea.hbm %s8252_s21, 16 }
 0x14e   :  { %p7964_p2 = scmp.ne.s32.totalorder %s8252_s21, %s7963_s9  ;;  %p7967_p3 = scmp.lt.u32.totalorder %s7963_s9, %s8252_s21 }
 0x150   :  { %p7969_p4 = pnand %p7967_p3, %p7964_p2 }
 0x152   :  { %7972 = shalt.err (!%p7969_p4)
}
 0x153   :  { %s7973_s18 = scalar_lea.vmem %s293_s0, 16  ;;  %s7977_s22 = scalar_lea.vmem %s293_s0, 32 }
 0x154   :  { %p7974_p5 = scmp.ne.s32.totalorder %s293_s0, %s7973_s18  ;;  %p7978_p6 = scmp.lt.s32.totalorder %s293_s0, %s293_s0 }
 0x155   :  { %p7979_p7 = scmp.lt.s32.totalorder %s7977_s22, %s7973_s18 }
 0x157   :  { %p7980_p8 = por %p7979_p7, %p7978_p6 }
 0x159   :  { %p7981_p9 = pnand %p7980_p8, %p7974_p5 }
 0x15b   :  { %7984 = shalt.err (!%p7981_p9)
}
 0x15c   :  { %295 = dma.hbm_to_vmem [thread:$0]  %s8252_s21, 16, %s293_s0, [#allocation26]  }
 0x15d   :  { %s8085_s30 = smov [#allocation28]   ;;  %s7985_s16 = scalar_lea.hbm %s8257_s5, 16 }
 0x15e   :  { %s302_s15 = sshll.u32 %s8085_s30, 4  ;;  %p7986_p10 = scmp.ne.s32.totalorder %s8257_s5, %s7985_s16  ;;  %s303_s15 = int_to_ptr.vmem [resolvable:$true] %s302_s15 }
 0x15f   :  { %p7989_p11 = scmp.lt.u32.totalorder %s7985_s16, %s8257_s5 }
 0x161   :  { %p7991_p12 = pnand %p7989_p11, %p7986_p10 }
 0x163   :  { %7994 = shalt.err (!%p7991_p12)
}
 0x164   :  { %s7995_s29 = scalar_lea.vmem %s303_s15, 16  ;;  %s7999_s23 = scalar_lea.vmem %s303_s15, 32 }
 0x165   :  { %p7996_p13 = scmp.ne.s32.totalorder %s303_s15, %s7995_s29  ;;  %p8000_p0 = scmp.lt.s32.totalorder %s303_s15, %s303_s15 }
 0x166   :  { %p8001_p1 = scmp.lt.s32.totalorder %s7999_s23, %s7995_s29 }
 0x168   :  { %p8002_p2 = por %p8001_p1, %p8000_p0 }
 0x16a   :  { %p8003_p3 = pnand %p8002_p2, %p7996_p13 }
 0x16c   :  { %8006 = shalt.err (!%p8003_p3)
}
 0x16d   :  { %305 = dma.hbm_to_vmem [thread:$0]  %s8257_s5, 16, %s303_s15, [#allocation29]  }
 0x16e   :  { %8007 = dma.done.wait [#allocation3], 32  }
 0x16f   :  { %8008 = vsyncadd [#allocation3], 4294967264 }
 0x170   :  { %8009 = dma.done.wait [#allocation5], 64  }
 0x171   :  { %8010 = vsyncadd [#allocation5], 4294967232 }
 0x172   :  { %8011 = dma.done.wait [#allocation8], 32  }
 0x173   :  { %8012 = vsyncadd [#allocation8], 4294967264 }
 0x174   :  { %8013 = dma.done.wait [#allocation11], 3088  }
 0x175   :  { %8014 = vsyncadd [#allocation11], 4294964208 }
 0x176   :  { %8015 = dma.done.wait [#allocation14], 1072  }
 0x177   :  { %8016 = vsyncadd [#allocation14], 4294966224 }
 0x178   :  { %8017 = dma.done.wait [#allocation17], 32  }
 0x179   :  { %8018 = vsyncadd [#allocation17], 4294967264 }
 0x17a   :  { %8019 = dma.done.wait [#allocation20], 2064  }
 0x17b   :  { %8020 = vsyncadd [#allocation20], 4294965232 }
 0x17c   :  { %8021 = dma.done.wait [#allocation23], 2080  }
 0x17d   :  { %8022 = vsyncadd [#allocation23], 4294965216 }
 0x17e   :  { %8023 = dma.done.wait [#allocation26], 32  }
 0x17f   :  { %8024 = vsyncadd [#allocation26], 4294967264 }
 0x180   :  { %8025 = dma.done.wait [#allocation29], 16  }
 0x181   :  { %8026 = vsyncadd [#allocation29], 4294967280  ;;  %s9492_s5 = sld [smem:[#allocation40_spill]]  ;;  %s9493_s21 = sld [smem:[#allocation44_spill]]  ;;  %v8086_v39 = vmov 0   ;;  %vm794_vm0 = vcmask 261120  }
 0x182   :  { %718 = vmatprep.mubr.bf16.mxu0 %v8086_v39  ;;  %s9494_s14 = sld [smem:[#allocation42_spill]]  ;;  %s9495_s26 = sld [smem:[#allocation43_spill]]  ;;  %vm1543_vm1 = vcmask 523264   ;;  %vm1548_vm2 = vcmask 785408  }
 0x183   :  { %s9496_s25 = sld [smem:[#allocation45_spill]]  ;;  %s9497_s28 = sld [smem:[#allocation41_spill]] }
 0x184   :  { %s8087_s12 = smov 96   ;;  %s8088_s1 = smov 32  }
 0x185   :  { %s9498_s2 = sld [smem:[#allocation46_spill]]  ;;  %s9499_s13 = sld [smem:[#allocation47_spill]] }
 0x186   :  { %s9500_s8 = sld [smem:[#allocation50_spill]]  ;;  %s9501_s24 = sld [smem:[#allocation48_spill]] }
 0x187   :  { %v365_v0 = vld [vmem:[%s9492_s5] sm:$0xff]  ;;  %v367_v1 = vld [vmem:[%s9492_s5 + $0x10] sm:$0xff]  ;;  %v366_v2 = vld [vmem:[%s9492_s5 + $0x8] sm:$0xff]  ;;  %s9502_s6 = sld [smem:[#allocation49_spill]]  ;;  %s9503_s7 = sld [smem:[#allocation52_spill]] }
 0x188   :  { %371 = vadd.xlane.f32.xlu0 %v365_v0  ;;  %375 = vadd.xlane.f32.xlu1 %v367_v1  ;;  %v368_v3 = vld [vmem:[%s9492_s5 + $0x18] sm:$0xff]  ;;  %v7051_v4 = vld [vmem:[%s9493_s21 + $0x4] ss:$12 sps:$4 sm:$0xff]   ;;  %v7053_v5 = vld [vmem:[%s9493_s21] ss:$12 sps:$4 sm:$0xff]   ;;  %s9504_s10 = sld [smem:[#allocation51_spill]] }
 0x189   :  { %v7054_v6 = vld [vmem:[%s9493_s21 + $0x1c] ss:$12 sps:$4 sm:$0xff]   ;;  %686 = vmatprep.subr.bf16.mxu0 %v7051_v4  ;;  %v7057_v24 = vld [vmem:[%s9493_s21 + $0x18] ss:$12 sps:$4 sm:$0xff]   ;;  %v7058_v25 = vld [vmem:[%s9493_s21 + $0x34] ss:$12 sps:$4 sm:$0xff]  }
 0x18a   :  { %v7056_v7 = vld [vmem:[%s9493_s21 + $0x8] ss:$12 sps:$4 sm:$0xff]   ;;  %687 = vmatpush1.bf16.msra.mxu0 %v7053_v5  ;;  %v7060_v26 = vld [vmem:[%s9493_s21 + $0x20] ss:$12 sps:$4 sm:$0xff]   ;;  %v7061_v27 = vld [vmem:[%s9493_s21 + $0x30] ss:$12 sps:$4 sm:$0xff]  }
 0x18b   :  { %6543 = vmatprep.subr.bf16.mxu1 %v7056_v7  ;;  %688 = vmatprep.subr.bf16.mxu0 %v7054_v6  ;;  %v7062_v28 = vld [vmem:[%s9493_s21 + $0x4c] ss:$12 sps:$4 sm:$0xff]   ;;  %v7065_v30 = vld [vmem:[%s9493_s21 + $0x48] ss:$12 sps:$4 sm:$0xff]   ;;  %v7066_v31 = vld [vmem:[%s9493_s21 + $0x64] ss:$12 sps:$4 sm:$0xff]  }
 0x18c   :  { %373 = vadd.xlane.f32.xlu0 %v366_v2  ;;  %377 = vadd.xlane.f32.xlu1 %v368_v3  ;;  %v7064_v29 = vld [vmem:[%s9493_s21 + $0x38] ss:$12 sps:$4 sm:$0xff]   ;;  %v7068_v32 = vld [vmem:[%s9493_s21 + $0x50] ss:$12 sps:$4 sm:$0xff]   ;;  %v7069_v33 = vld [vmem:[%s9493_s21 + $0x60] ss:$12 sps:$4 sm:$0xff]  }
 0x18d   :  { %6544 = vmatpush3.bf16.msra.mxu1 %v7056_v7  ;;  %v7070_v34 = vld [vmem:[%s9493_s21 + $0x7c] ss:$12 sps:$4 sm:$0xff]   ;;  %v7073_v36 = vld [vmem:[%s9493_s21 + $0x78] ss:$12 sps:$4 sm:$0xff]   ;;  %v7074_v37 = vld [vmem:[%s9493_s21 + $0x94] ss:$12 sps:$4 sm:$0xff]  }
 0x18e   :  { %689 = vmatpush1.bf16.msra.mxu0 %v7057_v24  ;;  %6545 = vmatprep.subr.bf16.mxu1 %v7060_v26  ;;  %v7072_v35 = vld [vmem:[%s9493_s21 + $0x68] ss:$12 sps:$4 sm:$0xff]   ;;  %v7076_v38 = vld [vmem:[%s9493_s21 + $0x80] ss:$12 sps:$4 sm:$0xff]   ;;  %v7077_v40 = vld [vmem:[%s9493_s21 + $0x90] ss:$12 sps:$4 sm:$0xff]  }
 0x18f   :  { %690 = vmatprep.subr.bf16.mxu0 %v7058_v25  ;;  %v7078_v41 = vld [vmem:[%s9493_s21 + $0xac] ss:$12 sps:$4 sm:$0xff]   ;;  %v7081_v43 = vld [vmem:[%s9493_s21 + $0xa8] ss:$12 sps:$4 sm:$0xff]   ;;  %v7082_v44 = vld [vmem:[%s9493_s21 + $0xb0] ss:$12 sps:$4 sm:$0xff]  }
 0x190   :  { %v7080_v42 = vld [vmem:[%s9493_s21 + $0x98] ss:$12 sps:$4 sm:$0xff]   ;;  %v5902_v59 = vld [vmem:[%s9494_s14] ss:$0 sm:$0xff]  ;;  %s9505_s3 = sld [smem:[#allocation53_spill]]  ;;  %s9506_s11 = sld [smem:[#allocation54_spill]] }
 0x191   :  { %6546 = vmatpush3.bf16.msra.mxu1 %v7060_v26 }
 0x192   :  { %691 = vmatpush1.bf16.msra.mxu0 %v7061_v27  ;;  %6547 = vmatprep.subr.bf16.mxu1 %v7064_v29 }
 0x193   :  { %692 = vmatprep.subr.bf16.mxu0 %v7062_v28 }
 0x195   :  { %6548 = vmatpush3.bf16.msra.mxu1 %v7064_v29 }
 0x196   :  { %693 = vmatpush1.bf16.msra.mxu0 %v7065_v30  ;;  %6549 = vmatprep.subr.bf16.mxu1 %v7068_v32 }
 0x197   :  { %694 = vmatprep.subr.bf16.mxu0 %v7066_v31 }
 0x199   :  { %6550 = vmatpush3.bf16.msra.mxu1 %v7068_v32 }
 0x19a   :  { %695 = vmatpush1.bf16.msra.mxu0 %v7069_v33  ;;  %6551 = vmatprep.subr.bf16.mxu1 %v7072_v35 }
 0x19b   :  { %696 = vmatprep.subr.bf16.mxu0 %v7070_v34 }
 0x19d   :  { %6552 = vmatpush3.bf16.msra.mxu1 %v7072_v35 }
 0x19e   :  { %697 = vmatpush1.bf16.msra.mxu0 %v7073_v36  ;;  %6553 = vmatprep.subr.bf16.mxu1 %v7076_v38 }
 0x19f   :  { %698 = vmatprep.subr.bf16.mxu0 %v7074_v37 }
 0x1a1   :  { %6554 = vmatpush3.bf16.msra.mxu1 %v7076_v38 }
 0x1a2   :  { %699 = vmatpush1.bf16.msra.mxu0 %v7077_v40  ;;  %6555 = vmatprep.subr.bf16.mxu1 %v7080_v42 }
 0x1a3   :  { %700 = vmatprep.subr.bf16.mxu0 %v7078_v41 }
 0x1a5   :  { %6556 = vmatpush3.bf16.msra.mxu1 %v7080_v42 }
 0x1a6   :  { %701 = vmatpush1.bf16.msra.mxu0 %v7081_v43  ;;  %6557 = vmatprep.subr.bf16.mxu1 %v7082_v44 }
 0x1a9   :  { %6558 = vmatpush3.bf16.msra.mxu1 %v7082_v44 }
 0x215   :  { %v372_v8 = vpop.xlane.xlu0 %371  ;;  %v376_v9 = vpop.xlane.xlu1 %375 }
 0x216   :  { %v380_v10 = vmul.f32 0.0078125, %v372_v8  ;;  %v382_v11 = vmul.f32 0.0078125, %v376_v9 }
 0x218   :  { %v8381_v12 = vsub.f32 %v365_v0, %v380_v10  ;;  %v8383_v13 = vsub.f32 %v367_v1, %v382_v11  ;;  %v5903_v0 = vld [vmem:[%s9495_s26] ss:$0 sm:$0xff] }
 0x219   :  { %v374_v14 = vpop.xlane.xlu0 %373  ;;  %v378_v15 = vpop.xlane.xlu1 %377 }
 0x21a   :  { %v381_v16 = vmul.f32 0.0078125, %v374_v14  ;;  %v388_v17 = vmul.f32 %v8381_v12, %v8381_v12  ;;  %v383_v18 = vmul.f32 0.0078125, %v378_v15  ;;  %v390_v19 = vmul.f32 %v8383_v13, %v8383_v13 }
 0x21c   :  { %392 = vadd.xlane.f32.xlu0 %v388_v17  ;;  %v8389_v20 = vsub.f32 %v366_v2, %v381_v16  ;;  %v8391_v21 = vsub.f32 %v368_v3, %v383_v18  ;;  %v468_v16 = vld [vmem:[%s9496_s25] sm:$0x7] }
 0x21e   :  { %v389_v22 = vmul.f32 %v8389_v20, %v8389_v20  ;;  %v391_v23 = vmul.f32 %v8391_v21, %v8391_v21 }
 0x220   :  { %396 = vadd.xlane.f32.xlu0 %v390_v19  ;;  %394 = vadd.xlane.f32.xlu1 %v389_v22 }
 0x224   :  { %398 = vadd.xlane.f32.xlu1 %v391_v23 }
 0x2a9   :  { %v393_v45 = vpop.xlane.xlu0 %392 }
 0x2aa   :  { %v400_v46 = vmul.f32 0.0078125, %v393_v45 }
 0x2ac   :  { %v404_v47 = vadd.f32 1e-12, %v400_v46 }
 0x2ad   :  { %v395_v48 = vpop.xlane.xlu1 %394  ;;  %v397_v49 = vpop.xlane.xlu0 %396 }
 0x2ae   :  { %7299 = vrsqrt.f32 %v404_v47  ;;  %v401_v50 = vmul.f32 0.0078125, %v395_v48  ;;  %v402_v51 = vmul.f32 0.0078125, %v397_v49 }
 0x2b0   :  { %v405_v52 = vadd.f32 1e-12, %v401_v50  ;;  %v406_v53 = vadd.f32 1e-12, %v402_v51 }
 0x2b1   :  { %v399_v54 = vpop.xlane.xlu1 %398 }
 0x2b2   :  { %7301 = vrsqrt.f32 %v405_v52  ;;  %v403_v55 = vmul.f32 0.0078125, %v399_v54 }
 0x2b3   :  { %7303 = vrsqrt.f32 %v406_v53 }
 0x2b4   :  { %v407_v56 = vadd.f32 1e-12, %v403_v55  ;;  %v8476_v55 = vld [vmem:[%s9497_s28] sm:$0xff] }
 0x2b6   :  { %7305 = vrsqrt.f32 %v407_v56 }
 0x2b8   :  { %v7300_v57 = vpop.eup %7299 }
 0x2b9   :  { %v412_v58 = vmul.f32 %v7300_v57, %v8381_v12  ;;  %v8479_v57 = vld [vmem:[%s9497_s28 + $0x10] sm:$0xff] }
 0x2bb   :  { %v422_v63 = vmul.f32 %v5902_v59, %v412_v58 }
 0x2bc   :  { %v7302_v60 = vpop.eup %7301 }
 0x2bd   :  { %v7304_v61 = vpop.eup %7303  ;;  %v413_v62 = vmul.f32 %v7302_v60, %v8389_v20  ;;  %v8423_v4 = vadd.f32 %v5903_v0, %v422_v63 }
 0x2be   :  { %v414_v1 = vmul.f32 %v7304_v61, %v8383_v13  ;;  %v543_v13 = vlaneseq }
 0x2bf   :  { %v423_v2 = vmul.f32 %v5902_v59, %v413_v62  ;;  %v8486_v62 = vld [vmem:[%s9497_s28 + $0x18] sm:$0xff] }
 0x2c0   :  { %v7306_v3 = vpop.eup %7305  ;;  %v424_v7 = vmul.f32 %v5902_v59, %v414_v1  ;;  %v544_v14 = vshrl.u32 %v543_v13, 7 }
 0x2c1   :  { %v8425_v5 = vadd.f32 %v5903_v0, %v423_v2  ;;  %v415_v6 = vmul.f32 %v7306_v3, %v8391_v21 }
 0x2c2   :  { %v8430_v10 = vadd.f32 %v5903_v0, %v424_v7  ;;  %v8437_v15 = vsub.s32 0, %v544_v14  ;;  %v8440_v17 = vsub.s32 1, %v544_v14  ;;  %v8443_v19 = vsub.s32 2, %v544_v14 }
 0x2c3   :  { %v540_v8 = vpack.c.bf16 %v8425_v5, %v8423_v4  ;;  %v425_v9 = vmul.f32 %v5902_v59, %v415_v6  ;;  %v8482_v59 = vld [vmem:[%s9497_s28 + $0x8] sm:$0xff] }
 0x2c4   :  { %v546_v18 = vrot.slane %v468_v16, %v8437_v15  ;;  %v550_v21 = vrot.slane %v468_v16, %v8440_v17  ;;  %v554_v27 = vrot.slane %v468_v16, %v8443_v19 }
 0x2c5   :  { %719 = vmatmul.mubr.bf16.vlgmr.msra.gmra.mrb[0].mxu0 %v540_v8  ;;  %6559 = vmatprep.mubr.bf16.mxu1 %v540_v8  ;;  %v8432_v11 = vadd.f32 %v5903_v0, %v425_v9 }
 0x2c6   :  { %728 = vmatprep.mubr.bf16.mxu0 %v8086_v39 }
 0x2c7   :  { %v541_v12 = vpack.c.bf16 %v8432_v11, %v8430_v10 }
 0x2c9   :  { %6560 = vmatmul.mubr.bf16.vlgmr.msra.gmra.mrb[0].mxu1 %v541_v12 }
 0x2cd   :  { %729 = vmatmul.mubr.bf16.gmra.mrb[4].mxu0 %v541_v12 }
 0x398   :  { %v720_v20 = vpop.f32.mrb[0].mxu0 }
 0x399   :  { %v722_v22 = vpop.f32.mrb[1].mxu0  ;;  %v721_v24 = vadd.f32 %v720_v20, %v546_v18 }
 0x39a   :  { %v724_v23 = vpop.f32.mrb[2].mxu0  ;;  %v723_v28 = vadd.f32 %v722_v22, %v550_v21 }
 0x39b   :  { %v725_v25 = vadd.f32 %v724_v23, %v546_v18  ;;  %v726_v26 = vpop.f32.mrb[3].mxu0 }
 0x39c   :  { %v727_v29 = vadd.f32 %v726_v26, %v550_v21  ;;  %v6561_v30 = vpop.f32.mrb[0].mxu1 }
 0x39d   :  { %v8447_v31 = vpack.c.bf16 %v725_v25, %v721_v24  ;;  %v773_v32 = vpop.f32.mrb[1].mxu1  ;;  %v782_v35 = vadd.f32 %v6561_v30, %v554_v27 }
 0x39e   :  { %v8449_v33 = vpack.c.bf16 %v727_v29, %v723_v28  ;;  %v6562_v34 = vpop.f32.mrb[2].mxu1  ;;  %v774_v38 = vadd.f32 %v773_v32, %v554_v27 }
 0x39f   :  { %v785_v36 = vadd.f32 %v6562_v34, %v554_v27  ;;  %v776_v37 = vpop.f32.mrb[3].mxu1  ;;  %6567 = vmatprep.mubr.msk.bf16.mxu0 %vm794_vm0, %v8447_v31 }
 0x3a0   :  { %v777_v40 = vadd.f32 %v776_v37, %v554_v27  ;;  %v730_v41 = vpop.f32.mrb[4].mxu0  ;;  %6875 = vmatprep.subr.msk.bf16.mxu0 %vm794_vm0, %v8449_v33  ;;  %v802_v42 = vsel %vm794_vm0, %v8449_v33, 0 }
 0x3a1   :  { %v8457_v43 = vpack.c.bf16 %v785_v36, %v782_v35  ;;  %v732_v44 = vpop.f32.mrb[5].mxu0  ;;  %6564 = vmatpush3.bf16.xpose.msra.mxu0 %v802_v42  ;;  %v731_v47 = vadd.f32 %v730_v41, %v546_v18 }
 0x3a2   :  { %v8459_v45 = vpack.c.bf16 %v777_v40, %v774_v38  ;;  %v734_v46 = vpop.f32.mrb[6].mxu0  ;;  %v733_v50 = vadd.f32 %v732_v44, %v550_v21 }
 0x3a3   :  { %v735_v48 = vadd.f32 %v734_v46, %v546_v18  ;;  %v736_v49 = vpop.f32.mrb[7].mxu0 }
 0x3a4   :  { %v737_v51 = vadd.f32 %v736_v49, %v550_v21  ;;  %6571 = vmatprep.subr.bf16.mxu1 %v8459_v45 }
 0x3a5   :  { %v8462_v52 = vpack.c.bf16 %v735_v48, %v731_v47  ;;  %6572 = vmatpush3.bf16.msra.mxu1 %v8459_v45 }
 0x3a6   :  { %v8465_v53 = vpack.c.bf16 %v737_v51, %v733_v50  ;;  %6573 = vmatprep.subr.bf16.mxu1 %v8457_v43 }
 0x3a8   :  { %6876 = vmatprep.subr.msk.bf16.mxu0 %vm794_vm0, %v8465_v53  ;;  %v805_v54 = vsel %vm794_vm0, %v8465_v53, 0 }
 0x3a9   :  { %6566 = vmatpush3.bf16.xpose.msra.mxu0 %v805_v54  ;;  %6574 = vmatpush3.bf16.msra.mxu1 %v8457_v43 }
 0x3b0   :  { %6568 = vmatmul.mubr.msk.bf16.vlgmr.msra.gmra.mrb[8].mxu0 %vm794_vm0, %v8462_v52 }
 0x483   :  { %v6569_v56 = vpop.f32.mrb[8].mxu0 }
 0x484   :  { %v841_v58 = vpop.f32.mrb[9].mxu0  ;;  %v850_v0 = vadd.f32 %v6569_v56, %v8479_v57 }
 0x485   :  { %v842_v60 = vadd.f32 %v841_v58, %v8476_v55  ;;  %v6570_v61 = vpop.f32.mrb[10].mxu0 }
 0x486   :  { %v844_v63 = vpop.f32.mrb[11].mxu0  ;;  %v853_v3 = vadd.f32 %v6570_v61, %v8486_v62  ;;  %v862_v7 = vsel %vm794_vm0, %v850_v0, -inf }
 0x487   :  { %v845_v1 = vadd.f32 %v844_v63, %v8482_v59  ;;  %v856_v2 = vsel %vm794_vm0, %v842_v60, -inf }
 0x488   :  { %857 = vmax.xlane.f32.xlu0 %v856_v2  ;;  %v865_v8 = vsel %vm794_vm0, %v853_v3, -inf }
 0x489   :  { %v859_v6 = vsel %vm794_vm0, %v845_v1, -inf }
 0x48a   :  { %860 = vmax.xlane.f32.xlu1 %v859_v6 }
 0x48c   :  { %863 = vmax.xlane.f32.xlu0 %v862_v7 }
 0x48e   :  { %866 = vmax.xlane.f32.xlu1 %v865_v8 }
 0x515   :  { %v858_v9 = vpop.xlane.xlu0 %857 }
 0x516   :  { %v868_v12 = vsub.f32 %v842_v60, %v858_v9 }
 0x517   :  { %v861_v13 = vpop.xlane.xlu1 %860 }
 0x518   :  { %v869_v14 = vsub.f32 %v845_v1, %v861_v13  ;;  %v872_v21 = vmul.f32 1.442695, %v868_v12 }
 0x519   :  { %v864_v16 = vpop.xlane.xlu0 %863 }
 0x51a   :  { %v874_v18 = vmul.f32 1.442695, %v869_v14  ;;  %v870_v20 = vsub.f32 %v850_v0, %v864_v16 }
 0x51b   :  { %v867_v22 = vpop.xlane.xlu1 %866 }
 0x51c   :  { %7307 = vpow2.f32 %v874_v18  ;;  %v876_v23 = vmul.f32 1.442695, %v870_v20  ;;  %v871_v24 = vsub.f32 %v853_v3, %v867_v22 }
 0x51e   :  { %7309 = vpow2.f32 %v876_v23  ;;  %v878_v25 = vmul.f32 1.442695, %v871_v24 }
 0x51f   :  { %7311 = vpow2.f32 %v872_v21 }
 0x520   :  { %7313 = vpow2.f32 %v878_v25 }
 0x526   :  { %v7308_v26 = vpop.eup %7307 }
 0x527   :  { %v883_v27 = vsel %vm794_vm0, %v7308_v26, 0.0 }
 0x528   :  { %v7310_v28 = vpop.eup %7309  ;;  %884 = vadd.xlane.f32.xlu1 %v883_v27 }
 0x529   :  { %v7312_v29 = vpop.eup %7311  ;;  %v886_v30 = vsel %vm794_vm0, %v7310_v28, 0.0 }
 0x52a   :  { %v7314_v32 = vpop.eup %7313  ;;  %887 = vadd.xlane.f32.xlu0 %v886_v30  ;;  %v880_v35 = vsel %vm794_vm0, %v7312_v29, 0.0 }
 0x52b   :  { %v889_v34 = vsel %vm794_vm0, %v7314_v32, 0.0 }
 0x52c   :  { %890 = vadd.xlane.f32.xlu1 %v889_v34 }
 0x52e   :  { %881 = vadd.xlane.f32.xlu0 %v880_v35 }
 0x53d   :  { %967 = vrot.lane.b32.xlu1 %v8465_v53, %s8087_s12 }
 0x541   :  { %959 = vrot.lane.b32.xlu1 %v8447_v31, %s8087_s12 }
 0x544   :  { %965 = vrot.lane.b32.xlu0 %v8449_v33, %s8087_s12 }
 0x545   :  { %1143 = vrot.lane.b32.xlu1 %v8449_v33, %s8077_s27 }
 0x548   :  { %961 = vrot.lane.b32.xlu0 %v8462_v52, %s8087_s12 }
 0x549   :  { %1145 = vrot.lane.b32.xlu1 %v8465_v53, %s8077_s27 }
 0x54c   :  { %1139 = vrot.lane.b32.xlu0 %v8447_v31, %s8077_s27 }
 0x54d   :  { %1141 = vrot.lane.b32.xlu1 %v8462_v52, %s8077_s27 }
 0x5b5   :  { %v885_v36 = vpop.xlane.xlu1 %884 }
 0x5b6   :  { %7315 = vrcp.f32 %v885_v36 }
 0x5b7   :  { %v888_v37 = vpop.xlane.xlu0 %887 }
 0x5b9   :  { %v891_v38 = vpop.xlane.xlu1 %890 }
 0x5ba   :  { %7317 = vrcp.f32 %v891_v38 }
 0x5bb   :  { %7319 = vrcp.f32 %v888_v37  ;;  %v882_v40 = vpop.xlane.xlu0 %881 }
 0x5bc   :  { %7321 = vrcp.f32 %v882_v40 }
 0x5bd   :  { %v968_v49 = vpop.permute.xlu1 %967 }
 0x5be   :  { %v979_v63 = vsel %vm794_vm0, %v968_v49, 0 }
 0x5bf   :  { %v966_v41 = vpop.permute.xlu0 %965 }
 0x5c0   :  { %6877 = vmatprep.subr.msk.bf16.mxu1 %vm794_vm0, %v966_v41  ;;  %v7316_v42 = vpop.eup %7315  ;;  %v976_v61 = vsel %vm794_vm0, %v966_v41, 0 }
 0x5c1   :  { %v897_v51 = vmul.f32 %v7316_v42, %v7308_v26  ;;  %v960_v60 = vpop.permute.xlu1 %959 }
 0x5c3   :  { %v962_v1 = vpop.permute.xlu0 %961 }
 0x5c4   :  { %v7318_v44 = vpop.eup %7317 }
 0x5c5   :  { %v7320_v46 = vpop.eup %7319  ;;  %v899_v48 = vmul.f32 %v7318_v44, %v7314_v32  ;;  %v1144_v0 = vpop.permute.xlu1 %1143 }
 0x5c6   :  { %v7322_v47 = vpop.eup %7321  ;;  %v898_v54 = vmul.f32 %v7320_v46, %v7310_v28  ;;  %v1154_v3 = vsel %vm794_vm0, %v1144_v0, 0 }
 0x5c7   :  { %v896_v50 = vmul.f32 %v7322_v47, %v7312_v29  ;;  %v1140_v2 = vpop.permute.xlu0 %1139 }
 0x5c8   :  { %v901_v58 = vpack.c.bf16 %v899_v48, %v898_v54 }
 0x5c9   :  { %v900_v56 = vpack.c.bf16 %v897_v51, %v896_v50  ;;  %v1146_v6 = vpop.permute.xlu1 %1145 }
 0x5ca   :  { %v1157_v7 = vsel %vm794_vm0, %v1146_v6, 0 }
 0x5cb   :  { %6575 = vmatprep.mubr.msk.bf16.mxu1 %vm794_vm0, %v900_v56 }
 0x5cc   :  { %6576 = vmatmul.mubr.msk.bf16.vlgmr.msra.gmra.mrb[4].mxu1 %vm794_vm0, %v901_v58 }
 0x5cd   :  { %6580 = vmatpush3.bf16.xpose.msra.mxu1 %v976_v61  ;;  %6583 = vmatprep.mubr.msk.bf16.mxu1 %vm794_vm0, %v960_v60  ;;  %v1142_v8 = vpop.permute.xlu1 %1141 }
 0x5ce   :  { %6878 = vmatprep.subr.msk.bf16.mxu1 %vm794_vm0, %v968_v49 }
 0x5d5   :  { %6582 = vmatpush3.bf16.xpose.msra.mxu1 %v979_v63 }
 0x5d6   :  { %6879 = vmatprep.subr.msk.bf16.mxu1 %vm794_vm0, %v1144_v0 }
 0x5dc   :  { %6584 = vmatmul.mubr.msk.bf16.vlgmr.msra.gmra.mrb[8].mxu1 %vm794_vm0, %v962_v1 }
 0x5dd   :  { %6596 = vmatpush3.bf16.xpose.msra.mxu1 %v1154_v3  ;;  %6599 = vmatprep.mubr.msk.bf16.mxu1 %vm794_vm0, %v1140_v2 }
 0x5de   :  { %6880 = vmatprep.subr.msk.bf16.mxu1 %vm794_vm0, %v1146_v6 }
 0x5e5   :  { %6598 = vmatpush3.bf16.xpose.msra.mxu1 %v1157_v7 }
 0x5ec   :  { %6600 = vmatmul.mubr.msk.bf16.vlgmr.msra.gmra.mrb[12].mxu1 %vm794_vm0, %v1142_v8 }
 0x69f   :  { %v8529_v9 = vpop.f32.mrb[4].mxu1 }
 0x6a0   :  { %v8531_v12 = vpop.f32.mrb[5].mxu1 }
 0x6a1   :  { %v8533_v13 = vpop.f32.mrb[6].mxu1 }
 0x6a2   :  { %v8535_v14 = vpop.f32.mrb[7].mxu1 }
 0x6af   :  { %v6585_v16 = vpop.f32.mrb[8].mxu1 }
 0x6b0   :  { %v1015_v18 = vpop.f32.mrb[9].mxu1  ;;  %v8565_v2 = vadd.f32 %v6585_v16, %v8479_v57 }
 0x6b1   :  { %v6586_v20 = vpop.f32.mrb[10].mxu1  ;;  %v8562_v1 = vadd.f32 %v1015_v18, %v8476_v55 }
 0x6b2   :  { %v1018_v21 = vpop.f32.mrb[11].mxu1  ;;  %v8570_v3 = vadd.f32 %v6586_v20, %v8486_v62 }
 0x6bf   :  { %v6601_v22 = vpop.f32.mrb[12].mxu1 }
 0x6c0   :  { %v1193_v23 = vpop.f32.mrb[13].mxu1  ;;  %v1202_v27 = vadd.f32 %v6601_v22, %v8479_v57 }
 0x6c1   :  { %v1194_v24 = vadd.f32 %v1193_v23, %v8476_v55  ;;  %v6602_v25 = vpop.f32.mrb[14].mxu1 }
 0x6c2   :  { %v1196_v26 = vpop.f32.mrb[15].mxu1  ;;  %v1205_v32 = vadd.f32 %v6602_v25, %v8486_v62  ;;  %v1214_v34 = vsel %vm794_vm0, %v1202_v27, -inf }
 0x6c3   :  { %v1197_v28 = vadd.f32 %v1196_v26, %v8482_v59  ;;  %v1208_v29 = vsel %vm794_vm0, %v1194_v24, -inf }
 0x6c4   :  { %1209 = vmax.xlane.f32.xlu0 %v1208_v29  ;;  %v1217_v35 = vsel %vm794_vm0, %v1205_v32, -inf }
 0x6c5   :  { %v1211_v30 = vsel %vm794_vm0, %v1197_v28, -inf }
 0x6c6   :  { %1212 = vmax.xlane.f32.xlu1 %v1211_v30 }
 0x6c8   :  { %1215 = vmax.xlane.f32.xlu0 %v1214_v34 }
 0x6cc   :  { %1218 = vmax.xlane.f32.xlu0 %v1217_v35 }
 0x6d7   :  { %1256 = vrot.lane.b32.xlu1 %v8457_v43, %s8077_s27 }
 0x751   :  { %v1210_v36 = vpop.xlane.xlu0 %1209 }
 0x752   :  { %v1220_v37 = vsub.f32 %v1194_v24, %v1210_v36 }
 0x753   :  { %v1213_v38 = vpop.xlane.xlu1 %1212 }
 0x754   :  { %v1224_v42 = vmul.f32 1.442695, %v1220_v37  ;;  %v1221_v44 = vsub.f32 %v1197_v28, %v1213_v38 }
 0x755   :  { %v1216_v40 = vpop.xlane.xlu0 %1215 }
 0x756   :  { %v1222_v41 = vsub.f32 %v1202_v27, %v1216_v40  ;;  %v1226_v49 = vmul.f32 1.442695, %v1221_v44 }
 0x757   :  { %v1257_v7 = vpop.permute.xlu1 %1256 }
 0x758   :  { %v1228_v46 = vmul.f32 1.442695, %v1222_v41 }
 0x759   :  { %v1219_v47 = vpop.xlane.xlu0 %1218 }
 0x75a   :  { %7323 = vpow2.f32 %v1228_v46  ;;  %v1223_v48 = vsub.f32 %v1205_v32, %v1219_v47 }
 0x75b   :  { %7325 = vpow2.f32 %v1224_v42 }
 0x75c   :  { %v1230_v50 = vmul.f32 1.442695, %v1223_v48 }
 0x75e   :  { %7327 = vpow2.f32 %v1230_v50 }
 0x75f   :  { %7329 = vpow2.f32 %v1226_v49 }
 0x764   :  { %v7324_v51 = vpop.eup %7323 }
 0x765   :  { %v1238_v54 = vsel %vm794_vm0, %v7324_v51, 0.0  ;;  %v7326_v56 = vpop.eup %7325 }
 0x766   :  { %1239 = vadd.xlane.f32.xlu0 %v1238_v54  ;;  %v1232_v60 = vsel %vm794_vm0, %v7326_v56, 0.0 }
 0x768   :  { %v7328_v58 = vpop.eup %7327 }
 0x769   :  { %v1241_v61 = vsel %vm794_vm0, %v7328_v58, 0.0  ;;  %v7330_v63 = vpop.eup %7329 }
 0x76a   :  { %1233 = vadd.xlane.f32.xlu0 %v1232_v60  ;;  %1242 = vadd.xlane.f32.xlu1 %v1241_v61  ;;  %v1235_v0 = vsel %vm794_vm0, %v7330_v63, 0.0 }
 0x76e   :  { %1236 = vadd.xlane.f32.xlu1 %v1235_v0 }
 0x77f   :  { %1319 = vrot.lane.b32.xlu1 %v8449_v33, %s8088_s1  ;;  %v1030_v33 = vsel %vm794_vm0, %v8562_v1, -inf }
 0x780   :  { %1254 = vrot.lane.b32.xlu0 %v8459_v45, %s8077_s27 }
 0x783   :  { %1321 = vrot.lane.b32.xlu1 %v8465_v53, %s8088_s1  ;;  %v1019_v53 = vadd.f32 %v1018_v21, %v8482_v59 }
 0x784   :  { %1315 = vrot.lane.b32.xlu0 %v8447_v31, %s8088_s1  ;;  %v1036_v31 = vsel %vm794_vm0, %v8565_v2, -inf }
 0x785   :  { %v1033_v6 = vsel %vm794_vm0, %v1019_v53, -inf }
 0x787   :  { %1317 = vrot.lane.b32.xlu1 %v8462_v52, %s8088_s1  ;;  %v1039_v52 = vsel %vm794_vm0, %v8570_v3, -inf }
 0x7a3   :  { %1031 = vmax.xlane.f32.xlu0 %v1030_v33 }
 0x7a7   :  { %1037 = vmax.xlane.f32.xlu0 %v1036_v31 }
 0x7ab   :  { %1040 = vmax.xlane.f32.xlu0 %v1039_v52  ;;  %1034 = vmax.xlane.f32.xlu1 %v1033_v6 }
 0x7f3   :  { %v1240_v8 = vpop.xlane.xlu0 %1239 }
 0x7f7   :  { %v1243_v16 = vpop.xlane.xlu1 %1242  ;;  %v1234_v18 = vpop.xlane.xlu0 %1233 }
 0x7f8   :  { %7331 = vrcp.f32 %v1243_v16 }
 0x7f9   :  { %7333 = vrcp.f32 %v1234_v18 }
 0x7fa   :  { %7335 = vrcp.f32 %v1240_v8 }
 0x7fb   :  { %v1237_v20 = vpop.xlane.xlu1 %1236  ;;  %v1255_v21 = vpop.permute.xlu0 %1254 }
 0x7fc   :  { %7337 = vrcp.f32 %v1237_v20  ;;  %6603 = vmatprep.subr.bf16.mxu1 %v1255_v21 }
 0x7fd   :  { %6604 = vmatpush3.bf16.msra.mxu1 %v1255_v21 }
 0x7fe   :  { %6605 = vmatprep.subr.bf16.mxu1 %v1257_v7 }
 0x7ff   :  { %v1320_v22 = vpop.permute.xlu1 %1319  ;;  %v1316_v35 = vpop.permute.xlu0 %1315 }
 0x800   :  { %v1330_v36 = vsel %vm794_vm0, %v1320_v22, 0 }
 0x801   :  { %6606 = vmatpush3.bf16.msra.mxu1 %v1257_v7 }
 0x802   :  { %6881 = vmatprep.subr.msk.bf16.mxu1 %vm794_vm0, %v1320_v22  ;;  %v7332_v23 = vpop.eup %7331 }
 0x803   :  { %v7334_v24 = vpop.eup %7333  ;;  %v1251_v27 = vmul.f32 %v7332_v23, %v7328_v58  ;;  %v1322_v37 = vpop.permute.xlu1 %1321 }
 0x804   :  { %v7336_v25 = vpop.eup %7335  ;;  %v1248_v28 = vmul.f32 %v7334_v24, %v7326_v56  ;;  %v1333_v38 = vsel %vm794_vm0, %v1322_v37, 0 }
 0x805   :  { %v1250_v30 = vmul.f32 %v7336_v25, %v7324_v51 }
 0x806   :  { %v7338_v26 = vpop.eup %7337 }
 0x807   :  { %v1249_v29 = vmul.f32 %v7338_v26, %v7330_v63  ;;  %v1253_v34 = vpack.c.bf16 %v1251_v27, %v1250_v30  ;;  %v1318_v40 = vpop.permute.xlu1 %1317 }
 0x809   :  { %v1252_v32 = vpack.c.bf16 %v1249_v29, %v1248_v28 }
 0x80b   :  { %6607 = vmatprep.mubr.msk.bf16.mxu1 %vm794_vm0, %v1252_v32 }
 0x80c   :  { %6608 = vmatmul.mubr.msk.bf16.vlgmr.msra.gmra.mrb[16].mxu1 %vm794_vm0, %v1253_v34 }
 0x80d   :  { %6612 = vmatpush3.bf16.xpose.msra.mxu1 %v1330_v36  ;;  %6615 = vmatprep.mubr.msk.bf16.mxu1 %vm794_vm0, %v1316_v35 }
 0x80e   :  { %6882 = vmatprep.subr.msk.bf16.mxu1 %vm794_vm0, %v1322_v37 }
 0x815   :  { %6614 = vmatpush3.bf16.xpose.msra.mxu1 %v1333_v38 }
 0x81c   :  { %6616 = vmatmul.mubr.msk.bf16.vlgmr.msra.gmra.mrb[20].mxu1 %vm794_vm0, %v1318_v40 }
 0x81d   :  { %1851 = vmatprep.mubr.bf16.mxu1 %v8086_v39 }
 0x830   :  { %v1032_v41 = vpop.xlane.xlu0 %1031 }
 0x831   :  { %v1042_v54 = vsub.f32 %v8562_v1, %v1032_v41 }
 0x833   :  { %v1046_v60 = vmul.f32 1.442695, %v1042_v54 }
 0x834   :  { %v1038_v49 = vpop.xlane.xlu0 %1037 }
 0x835   :  { %v1044_v61 = vsub.f32 %v8565_v2, %v1038_v49  ;;  %7339 = vpow2.f32 %v1046_v60 }
 0x837   :  { %v1050_v33 = vmul.f32 1.442695, %v1044_v61 }
 0x838   :  { %v1035_v51 = vpop.xlane.xlu1 %1034  ;;  %v1041_v58 = vpop.xlane.xlu0 %1040 }
 0x839   :  { %v1043_v56 = vsub.f32 %v1019_v53, %v1035_v51  ;;  %v1045_v0 = vsub.f32 %v8570_v3, %v1041_v58 }
 0x83b   :  { %v1048_v63 = vmul.f32 1.442695, %v1043_v56  ;;  %v1052_v52 = vmul.f32 1.442695, %v1045_v0 }
 0x83d   :  { %7341 = vpow2.f32 %v1048_v63 }
 0x83e   :  { %7343 = vpow2.f32 %v1050_v33 }
 0x83f   :  { %7345 = vpow2.f32 %v1052_v52  ;;  %v7340_v21 = vpop.eup %7339 }
 0x847   :  { %v7342_v22 = vpop.eup %7341 }
 0x848   :  { %v1057_v23 = vsel %vm794_vm0, %v7342_v22, 0.0 }
 0x8df   :  { %v8587_v42 = vpop.f32.mrb[16].mxu1 }
 0x8e0   :  { %v8589_v44 = vpop.f32.mrb[17].mxu1 }
 0x8e1   :  { %v8591_v46 = vpop.f32.mrb[18].mxu1 }
 0x8e2   :  { %v6976_v47 = vpack.i.bf16 %v8591_v46, %v8587_v42  ;;  %v8595_v48 = vpop.f32.mrb[19].mxu1 }
 0x8e3   :  { %v6971_v50 = vpack.i.bf16 %v8595_v48, %v8589_v44 }
 0x8ef   :  { %v6617_v31 = vpop.f32.mrb[20].mxu1 }
 0x8f0   :  { %v1369_v6 = vpop.f32.mrb[21].mxu1  ;;  %v1378_v1 = vadd.f32 %v6617_v31, %v8479_v57  ;;  %v1054_v57 = vsel %vm794_vm0, %v7340_v21, 0.0 }
 0x8f1   :  { %v1370_v7 = vadd.f32 %v1369_v6, %v8476_v55  ;;  %v6618_v8 = vpop.f32.mrb[22].mxu1 }
 0x8f2   :  { %v1372_v16 = vpop.f32.mrb[23].mxu1  ;;  %v1381_v3 = vadd.f32 %v6618_v8, %v8486_v62  ;;  %v1390_v20 = vsel %vm794_vm0, %v1378_v1, -inf }
 0x8f3   :  { %v1373_v53 = vadd.f32 %v1372_v16, %v8482_v59  ;;  %v1384_v2 = vsel %vm794_vm0, %v1370_v7, -inf  ;;  %v8611_v59 = vpop.eup %7343 }
 0x8f4   :  { %1385 = vmax.xlane.f32.xlu0 %v1384_v2  ;;  %v1393_v55 = vsel %vm794_vm0, %v1381_v3, -inf  ;;  %v8614_v24 = vpop.eup %7345  ;;  %v1060_v62 = vsel %vm794_vm0, %v8611_v59, 0.0 }
 0x8f5   :  { %v1387_v18 = vsel %vm794_vm0, %v1373_v53, -inf  ;;  %v1063_v25 = vsel %vm794_vm0, %v8614_v24, 0.0 }
 0x8f6   :  { %1388 = vmax.xlane.f32.xlu1 %v1387_v18 }
 0x8f8   :  { %1391 = vmax.xlane.f32.xlu0 %v1390_v20 }
 0x8fa   :  { %1394 = vmax.xlane.f32.xlu1 %v1393_v55 }
 0x8fc   :  { %1055 = vadd.xlane.f32.xlu0 %v1054_v57 }
 0x8fe   :  { %1058 = vadd.xlane.f32.xlu1 %v1057_v23 }
 0x900   :  { %1061 = vadd.xlane.f32.xlu0 %v1060_v62 }
 0x902   :  { %1064 = vadd.xlane.f32.xlu1 %v1063_v25 }
 0x913   :  { %1080 = vrot.lane.b32.xlu1 %v8457_v43, %s8087_s12 }
 0x917   :  { %1430 = vrot.lane.b32.xlu1 %v8459_v45, %s8088_s1 }
 0x981   :  { %v1386_v26 = vpop.xlane.xlu0 %1385 }
 0x982   :  { %v1396_v27 = vsub.f32 %v1370_v7, %v1386_v26 }
 0x983   :  { %v1389_v28 = vpop.xlane.xlu1 %1388 }
 0x984   :  { %v1400_v29 = vmul.f32 1.442695, %v1396_v27  ;;  %v1397_v32 = vsub.f32 %v1373_v53, %v1389_v28 }
 0x985   :  { %v1392_v30 = vpop.xlane.xlu0 %1391 }
 0x986   :  { %v1398_v34 = vsub.f32 %v1378_v1, %v1392_v30  ;;  %7347 = vpow2.f32 %v1400_v29  ;;  %v1402_v40 = vmul.f32 1.442695, %v1397_v32 }
 0x987   :  { %v1395_v35 = vpop.xlane.xlu1 %1394 }
 0x988   :  { %v1404_v36 = vmul.f32 1.442695, %v1398_v34  ;;  %v1399_v37 = vsub.f32 %v1381_v3, %v1395_v35  ;;  %v7083_v34 = vld [vmem:[%s9498_s2] sm:$0xff]   ;;  %v7084_v35 = vld [vmem:[%s9498_s2 + $0x8] sm:$0xff]  }
 0x989   :  { %v1056_v38 = vpop.xlane.xlu0 %1055 }
 0x98a   :  { %7349 = vpow2.f32 %v1404_v36  ;;  %v1406_v41 = vmul.f32 1.442695, %v1399_v37  ;;  %v7085_v36 = vld [vmem:[%s9498_s2 + $0x10] sm:$0xff]   ;;  %v7086_v37 = vld [vmem:[%s9498_s2 + $0x18] sm:$0xff]  }
 0x98b   :  { %7351 = vrcp.f32 %v1056_v38  ;;  %v1059_v49 = vpop.xlane.xlu1 %1058  ;;  %v7087_v38 = vld [vmem:[%s9498_s2 + $0x20] sm:$0xff]  }
 0x98c   :  { %7353 = vpow2.f32 %v1406_v41  ;;  %v7089_v41 = vld [vmem:[%s9498_s2 + $0x30] sm:$0xff]  }
 0x98d   :  { %7355 = vrcp.f32 %v1059_v49  ;;  %v1062_v1 = vpop.xlane.xlu0 %1061 }
 0x98e   :  { %7357 = vpow2.f32 %v1402_v40  ;;  %v7088_v40 = vld [vmem:[%s9498_s2 + $0x28] sm:$0xff]  }
 0x98f   :  { %v1065_v8 = vpop.xlane.xlu1 %1064 }
 0x990   :  { %v7348_v51 = vpop.eup %7347  ;;  %7359 = vrcp.f32 %v1065_v8 }
 0x991   :  { %v1408_v52 = vsel %vm794_vm0, %v7348_v51, 0.0  ;;  %7361 = vrcp.f32 %v1062_v1 }
 0x993   :  { %v1081_v16 = vpop.permute.xlu1 %1080 }
 0x994   :  { %v7350_v54 = vpop.eup %7349 }
 0x995   :  { %v7352_v56 = vpop.eup %7351  ;;  %v1414_v58 = vsel %vm794_vm0, %v7350_v54, 0.0 }
 0x996   :  { %v7354_v60 = vpop.eup %7353  ;;  %1415 = vadd.xlane.f32.xlu0 %v1414_v58  ;;  %v1070_v33 = vmul.f32 %v7352_v56, %v7340_v21  ;;  %v7090_v56 = vld [vmem:[%s9498_s2 + $0x38] sm:$0xff]  }
 0x997   :  { %v7356_v61 = vpop.eup %7355  ;;  %v1417_v63 = vsel %vm794_vm0, %v7354_v60, 0.0  ;;  %v1431_v53 = vpop.permute.xlu1 %1430 }
 0x998   :  { %v7358_v0 = vpop.eup %7357  ;;  %1418 = vadd.xlane.f32.xlu1 %v1417_v63  ;;  %v1071_v31 = vmul.f32 %v7356_v61, %v7342_v22 }
 0x999   :  { %v1411_v7 = vsel %vm794_vm0, %v7358_v0, 0.0 }
 0x99a   :  { %1409 = vadd.xlane.f32.xlu0 %v1408_v52  ;;  %v1074_v6 = vpack.c.bf16 %v1071_v31, %v1070_v33  ;;  %v7360_v21 = vpop.eup %7359 }
 0x99c   :  { %6591 = vmatprep.mubr.msk.bf16.mxu0 %vm794_vm0, %v1074_v6  ;;  %1412 = vadd.xlane.f32.xlu1 %v1411_v7 }
 0x9ad   :  { %1432 = vrot.lane.b32.xlu1 %v8457_v43, %s8088_s1  ;;  %v7362_v43 = vpop.eup %7361 }
 0x9ae   :  { %v1072_v22 = vmul.f32 %v7362_v43, %v8611_v59 }
 0x9b0   :  { %1078 = vrot.lane.b32.xlu0 %v8459_v45, %s8087_s12  ;;  %v1073_v45 = vmul.f32 %v7360_v21, %v8614_v24 }
 0x9b2   :  { %v1075_v23 = vpack.c.bf16 %v1073_v45, %v1072_v22 }
 0xa23   :  { %v1416_v2 = vpop.xlane.xlu0 %1415 }
 0xa25   :  { %v1419_v3 = vpop.xlane.xlu1 %1418 }
 0xa27   :  { %v1410_v18 = vpop.xlane.xlu0 %1409 }
 0xa28   :  { %7363 = vrcp.f32 %v1410_v18 }
 0xa29   :  { %7365 = vrcp.f32 %v1419_v3  ;;  %v1413_v20 = vpop.xlane.xlu1 %1412 }
 0xa2a   :  { %7367 = vrcp.f32 %v1413_v20 }
 0xa2b   :  { %7369 = vrcp.f32 %v1416_v2  ;;  %v1079_v55 = vpop.permute.xlu0 %1078 }
 0xa2c   :  { %6587 = vmatprep.subr.bf16.mxu0 %v1079_v55 }
 0xa2d   :  { %6588 = vmatpush3.bf16.msra.mxu0 %v1079_v55  ;;  %v1433_v27 = vpop.permute.xlu1 %1432 }
 0xa2e   :  { %6589 = vmatprep.subr.bf16.mxu0 %v1081_v16 }
 0xa31   :  { %6590 = vmatpush3.bf16.msra.mxu0 %v1081_v16 }
 0xa32   :  { %v7364_v57 = vpop.eup %7363  ;;  %6619 = vmatprep.subr.bf16.mxu0 %v1431_v53 }
 0xa33   :  { %v7366_v62 = vpop.eup %7365  ;;  %v1424_v28 = vmul.f32 %v7364_v57, %v7348_v51 }
 0xa34   :  { %v7368_v25 = vpop.eup %7367  ;;  %6592 = vmatmul.mubr.msk.bf16.vlgmr.msra.gmra.mrb[12].mxu0 %vm794_vm0, %v1075_v23  ;;  %v1427_v24 = vmul.f32 %v7366_v62, %v7354_v60 }
 0xa35   :  { %v7370_v26 = vpop.eup %7369  ;;  %6620 = vmatpush3.bf16.msra.mxu0 %v1431_v53  ;;  %v1425_v29 = vmul.f32 %v7368_v25, %v7358_v0 }
 0xa36   :  { %6621 = vmatprep.subr.bf16.mxu0 %v1433_v27  ;;  %v1426_v30 = vmul.f32 %v7370_v26, %v7350_v54 }
 0xa37   :  { %v1428_v59 = vpack.c.bf16 %v1425_v29, %v1424_v28 }
 0xa38   :  { %v1429_v32 = vpack.c.bf16 %v1427_v24, %v1426_v30  ;;  %v5944_v24 = vld [vmem:[%s9499_s13] ss:$0 sm:$0xff] }
 0xa39   :  { %6622 = vmatpush3.bf16.msra.mxu0 %v1433_v27  ;;  %6623 = vmatprep.mubr.msk.bf16.mxu0 %vm794_vm0, %v1428_v59 }
 0xa3a   :  { %6627 = vmatprep.subr.bf16.mxu0 %v7083_v34 }
 0xa3c   :  { %6624 = vmatmul.mubr.msk.bf16.vlgmr.msra.gmra.mrb[16].mxu0 %vm794_vm0, %v1429_v32 }
 0xa3d   :  { %6628 = vmatpush3.bf16.msra.mxu0 %v7083_v34 }
 0xa3e   :  { %6629 = vmatprep.subr.bf16.mxu0 %v7084_v35 }
 0xa41   :  { %6630 = vmatpush3.bf16.msra.mxu0 %v7084_v35 }
 0xa42   :  { %6631 = vmatprep.subr.bf16.mxu0 %v7085_v36 }
 0xa45   :  { %6632 = vmatpush3.bf16.msra.mxu0 %v7085_v36 }
 0xa46   :  { %6633 = vmatprep.subr.bf16.mxu0 %v7086_v37 }
 0xa49   :  { %6634 = vmatpush3.bf16.msra.mxu0 %v7086_v37 }
 0xa4a   :  { %6635 = vmatprep.subr.bf16.mxu0 %v7087_v38 }
 0xa4d   :  { %6636 = vmatpush3.bf16.msra.mxu0 %v7087_v38 }
 0xa4e   :  { %6637 = vmatprep.subr.bf16.mxu0 %v7088_v40 }
 0xa51   :  { %6638 = vmatpush3.bf16.msra.mxu0 %v7088_v40 }
 0xa52   :  { %6639 = vmatprep.subr.bf16.mxu0 %v7089_v41 }
 0xa55   :  { %6640 = vmatpush3.bf16.msra.mxu0 %v7089_v41 }
 0xa56   :  { %6641 = vmatprep.subr.bf16.mxu0 %v7090_v56 }
 0xa59   :  { %6642 = vmatpush3.bf16.msra.mxu0 %v7090_v56  ;;  %v7093_v56 = vld [vmem:[%s9500_s8 + $0x4] ss:$8 sps:$4 sm:$0xff]  }
 0xa5a   :  { %1819 = vmatprep.subr.bf16.mxu1 %v7093_v56 }
 0xb07   :  { %v6593_v49 = vpop.f32.mrb[12].mxu0 }
 0xb08   :  { %v1124_v51 = vpop.f32.mrb[13].mxu0 }
 0xb09   :  { %v6594_v54 = vpop.f32.mrb[14].mxu0 }
 0xb0a   :  { %v6966_v58 = vpack.i.bf16 %v6594_v54, %v6593_v49  ;;  %v1127_v60 = vpop.f32.mrb[15].mxu0  ;;  %v7091_v54 = vld [vmem:[%s9500_s8] ss:$8 sps:$4 sm:$0xff]  }
 0xb0b   :  { %v6961_v61 = vpack.i.bf16 %v1127_v60, %v1124_v51  ;;  %1820 = vmatpush1.bf16.msra.mxu1 %v7091_v54  ;;  %v7094_v60 = vld [vmem:[%s9500_s8 + $0x10] ss:$8 sps:$4 sm:$0xff]  }
 0xb0c   :  { %6967 = vrot.lane.b32.xlu1 %v6966_v58, %s8088_s1  ;;  %v7096_v58 = vld [vmem:[%s9500_s8 + $0x14] ss:$8 sps:$4 sm:$0xff]  }
 0xb0d   :  { %6962 = vrot.lane.b32.xlu0 %v6961_v61, %s8088_s1  ;;  %1821 = vmatprep.subr.bf16.mxu1 %v7096_v58 }
 0xb0f   :  { %v6625_v63 = vpop.f32.mrb[16].mxu0  ;;  %1822 = vmatpush1.bf16.msra.mxu1 %v7094_v60 }
 0xb10   :  { %6977 = vrot.lane.b32.xlu1 %v6976_v47, %s8077_s27  ;;  %v1476_v0 = vpop.f32.mrb[17].mxu0 }
 0xb11   :  { %6972 = vrot.lane.b32.xlu0 %v6971_v50, %s8077_s27  ;;  %v6626_v33 = vpop.f32.mrb[18].mxu0 }
 0xb12   :  { %v6986_v31 = vpack.i.bf16 %v6626_v33, %v6625_v63  ;;  %v1479_v52 = vpop.f32.mrb[19].mxu0 }
 0xb13   :  { %v6981_v6 = vpack.i.bf16 %v1479_v52, %v1476_v0 }
 0xb14   :  { %6987 = vrot.lane.b32.xlu1 %v6986_v31, %s8087_s12 }
 0xb15   :  { %6982 = vrot.lane.b32.xlu0 %v6981_v6, %s8087_s12 }
 0xb7e   :  { %v6968_v7 = vpop.permute.xlu1 %6967 }
 0xb7f   :  { %v6963_v8 = vpop.permute.xlu0 %6962  ;;  %v6970_v16 = vunpack.i.h.bf16 %v6968_v7  ;;  %v6969_v1 = vunpack.i.l.bf16 %v6968_v7 }
 0xb80   :  { %v6965_v46 = vunpack.i.h.bf16 %v6963_v8  ;;  %v6964_v47 = vunpack.i.l.bf16 %v6963_v8 }
 0xb81   :  { %v1542_v50 = vsel %vm794_vm0, %v8533_v13, %v6970_v16  ;;  %v1541_v18 = vsel %vm794_vm0, %v8529_v9, %v6969_v1 }
 0xb82   :  { %v6978_v42 = vpop.permute.xlu1 %6977  ;;  %v1540_v21 = vsel %vm794_vm0, %v8535_v14, %v6965_v46  ;;  %v1539_v55 = vsel %vm794_vm0, %v8531_v12, %v6964_v47  ;;  %v7099_v46 = vld [vmem:[%s9500_s8 + $0x24] ss:$8 sps:$4 sm:$0xff]   ;;  %v7097_v47 = vld [vmem:[%s9500_s8 + $0x20] ss:$8 sps:$4 sm:$0xff]  }
 0xb83   :  { %v6973_v53 = vpop.permute.xlu0 %6972  ;;  %v6980_v2 = vunpack.i.h.bf16 %v6978_v42  ;;  %v6979_v3 = vunpack.i.l.bf16 %v6978_v42  ;;  %1823 = vmatprep.subr.bf16.mxu1 %v7099_v46  ;;  %v504_v46 = vld [vmem:[%s9504_s10] sm:$0x3] }
 0xb84   :  { %v6975_v44 = vunpack.i.h.bf16 %v6973_v53  ;;  %v6974_v48 = vunpack.i.l.bf16 %v6973_v53  ;;  %1824 = vmatpush1.bf16.msra.mxu1 %v7097_v47  ;;  %v7102_v53 = vld [vmem:[%s9500_s8 + $0x34] ss:$8 sps:$4 sm:$0xff]   ;;  %v1732_v47 = vrot.slane %v504_v46, %v8437_v15 }
 0xb85   :  { %v1546_v57 = vsel %vm1543_vm1, %v1541_v18, %v6979_v3  ;;  %v1547_v23 = vsel %vm1543_vm1, %v1542_v50, %v6980_v2  ;;  %v7100_v2 = vld [vmem:[%s9500_s8 + $0x30] ss:$8 sps:$4 sm:$0xff]   ;;  %1825 = vmatprep.subr.bf16.mxu1 %v7102_v53  ;;  %v7105_v3 = vld [vmem:[%s9500_s8 + $0x44] ss:$8 sps:$4 sm:$0xff]   ;;  %v7108_v50 = vld [vmem:[%s9500_s8 + $0x54] ss:$8 sps:$4 sm:$0xff]   ;;  %v1736_v53 = vrot.slane %v504_v46, %v8440_v17 }
 0xb86   :  { %v6988_v20 = vpop.permute.xlu1 %6987  ;;  %v1544_v26 = vsel %vm1543_vm1, %v1539_v55, %v6974_v48  ;;  %v1545_v14 = vsel %vm1543_vm1, %v1540_v21, %v6975_v44  ;;  %v7103_v44 = vld [vmem:[%s9500_s8 + $0x40] ss:$8 sps:$4 sm:$0xff]   ;;  %v7106_v48 = vld [vmem:[%s9500_s8 + $0x50] ss:$8 sps:$4 sm:$0xff]   ;;  %v7111_v18 = vld [vmem:[%s9500_s8 + $0x64] ss:$8 sps:$4 sm:$0xff]  }
 0xb87   :  { %v6990_v43 = vunpack.i.h.bf16 %v6988_v20  ;;  %v6989_v45 = vunpack.i.l.bf16 %v6988_v20  ;;  %v6983_v22 = vpop.permute.xlu0 %6982  ;;  %v7109_v20 = vld [vmem:[%s9500_s8 + $0x60] ss:$8 sps:$4 sm:$0xff]   ;;  %v7114_v21 = vld [vmem:[%s9500_s8 + $0x74] ss:$8 sps:$4 sm:$0xff]   ;;  %v7112_v55 = vld [vmem:[%s9500_s8 + $0x70] ss:$8 sps:$4 sm:$0xff]  }
 0xb88   :  { %v6985_v13 = vunpack.i.h.bf16 %v6983_v22  ;;  %v6984_v62 = vunpack.i.l.bf16 %v6983_v22  ;;  %1826 = vmatpush1.bf16.msra.mxu1 %v7100_v2 }
 0xb89   :  { %v1552_v9 = vsel %vm1548_vm2, %v1547_v23, %v6990_v43  ;;  %v1551_v25 = vsel %vm1548_vm2, %v1546_v57, %v6989_v45  ;;  %1827 = vmatprep.subr.bf16.mxu1 %v7105_v3 }
 0xb8a   :  { %v1549_v12 = vsel %vm1548_vm2, %v1544_v26, %v6984_v62  ;;  %v1550_v27 = vsel %vm1548_vm2, %v1545_v14, %v6985_v13  ;;  %v1554_v28 = vpack.c.bf16 %v1552_v9, %v1551_v25 }
 0xb8b   :  { %v1553_v29 = vpack.c.bf16 %v1550_v27, %v1549_v12 }
 0xb8c   :  { %1828 = vmatpush1.bf16.msra.mxu1 %v7103_v44 }
 0xb8d   :  { %6643 = vmatprep.mubr.bf16.mxu0 %v1553_v29  ;;  %1829 = vmatprep.subr.bf16.mxu1 %v7108_v50 }
 0xb8e   :  { %6644 = vmatmul.mubr.bf16.vlgmr.msra.gmra.mrb[20].mxu0 %v1554_v28  ;;  %v5953_v28 = vld [vmem:[%s9501_s24] ss:$0 sm:$0xff] }
 0xb90   :  { %1830 = vmatpush1.bf16.msra.mxu1 %v7106_v48 }
 0xb91   :  { %1831 = vmatprep.subr.bf16.mxu1 %v7111_v18 }
 0xb94   :  { %1832 = vmatpush1.bf16.msra.mxu1 %v7109_v20 }
 0xb95   :  { %1833 = vmatprep.subr.bf16.mxu1 %v7114_v21 }
 0xb98   :  { %1834 = vmatpush1.bf16.msra.mxu1 %v7112_v55 }
 0xc61   :  { %v6645_v59 = vpop.f32.mrb[20].mxu0 }
 0xc62   :  { %v1643_v30 = vpop.f32.mrb[21].mxu0  ;;  %v1652_v36 = vadd.f32 %v6645_v59, %v5944_v24 }
 0xc63   :  { %v1644_v32 = vadd.f32 %v5944_v24, %v1643_v30  ;;  %v6646_v34 = vpop.f32.mrb[22].mxu0 }
 0xc64   :  { %v1646_v35 = vpop.f32.mrb[23].mxu0  ;;  %v1655_v41 = vadd.f32 %v6646_v34, %v5944_v24  ;;  %v1660_v49 = vadd.f32 %v1652_v36, %v8430_v10  ;;  %v5954_v34 = vld [vmem:[%s9502_s6] ss:$0 sm:$0xff] }
 0xc65   :  { %v1647_v37 = vadd.f32 %v5944_v24, %v1646_v35  ;;  %v1658_v38 = vadd.f32 %v1644_v32, %v8423_v4 }
 0xc66   :  { %v1661_v51 = vadd.f32 %v1655_v41, %v8432_v11 }
 0xc67   :  { %1662 = vadd.xlane.f32.xlu0 %v1658_v38  ;;  %v1659_v40 = vadd.f32 %v1647_v37, %v8425_v5 }
 0xc69   :  { %1664 = vadd.xlane.f32.xlu1 %v1659_v40 }
 0xc6b   :  { %1666 = vadd.xlane.f32.xlu0 %v1660_v49 }
 0xc6f   :  { %1668 = vadd.xlane.f32.xlu0 %v1661_v51 }
 0xcf4   :  { %v1663_v4 = vpop.xlane.xlu0 %1662 }
 0xcf5   :  { %v1670_v61 = vmul.f32 0.0078125, %v1663_v4  ;;  %v7115_v4 = vld [vmem:[%s9503_s7 + $0x40] sm:$0xff]  }
 0xcf6   :  { %v1665_v63 = vpop.xlane.xlu1 %1664  ;;  %6345 = vmatprep.subr.bf16.mxu0 %v7115_v4 }
 0xcf7   :  { %v1671_v5 = vmul.f32 0.0078125, %v1665_v63  ;;  %v1674_v0 = vsub.f32 %v1658_v38, %v1670_v61  ;;  %v7116_v61 = vld [vmem:[%s9503_s7] sm:$0xff]   ;;  %v7117_v63 = vld [vmem:[%s9503_s7 + $0x48] sm:$0xff]  }
 0xcf8   :  { %v1667_v33 = vpop.xlane.xlu0 %1666  ;;  %6346 = vmatpush3.bf16.msra.mxu0 %v7116_v61 }
 0xcf9   :  { %v1672_v10 = vmul.f32 0.0078125, %v1667_v33  ;;  %v1678_v31 = vmul.f32 %v1674_v0, %v1674_v0  ;;  %v1675_v11 = vsub.f32 %v1659_v40, %v1671_v5  ;;  %v7118_v5 = vld [vmem:[%s9503_s7 + $0x8] sm:$0xff]   ;;  %6347 = vmatprep.subr.bf16.mxu0 %v7117_v63  ;;  %v7120_v33 = vld [vmem:[%s9503_s7 + $0x10] sm:$0xff]  }
 0xcfb   :  { %1682 = vadd.xlane.f32.xlu0 %v1678_v31  ;;  %v1679_v52 = vmul.f32 %v1675_v11, %v1675_v11  ;;  %v1676_v6 = vsub.f32 %v1660_v49, %v1672_v10  ;;  %v7121_v10 = vld [vmem:[%s9503_s7 + $0x58] sm:$0xff]  }
 0xcfc   :  { %v1669_v7 = vpop.xlane.xlu0 %1668  ;;  %6348 = vmatpush3.bf16.msra.mxu0 %v7118_v5  ;;  %v7122_v31 = vld [vmem:[%s9503_s7 + $0x18] sm:$0xff]  }
 0xcfd   :  { %v1673_v8 = vmul.f32 0.0078125, %v1669_v7  ;;  %1684 = vadd.xlane.f32.xlu1 %v1679_v52  ;;  %v1680_v16 = vmul.f32 %v1676_v6, %v1676_v6  ;;  %v7124_v52 = vld [vmem:[%s9503_s7 + $0x20] sm:$0xff]   ;;  %v7126_v7 = vld [vmem:[%s9503_s7 + $0x28] sm:$0xff]  }
 0xcff   :  { %1686 = vadd.xlane.f32.xlu0 %v1680_v16  ;;  %v1677_v1 = vsub.f32 %v1661_v51, %v1673_v8  ;;  %v7127_v8 = vld [vmem:[%s9503_s7 + $0x70] sm:$0xff]  }
 0xd00   :  { %v7128_v16 = vld [vmem:[%s9503_s7 + $0x30] sm:$0xff]  }
 0xd01   :  { %v1681_v42 = vmul.f32 %v1677_v1, %v1677_v1 }
 0xd03   :  { %1688 = vadd.xlane.f32.xlu1 %v1681_v42  ;;  %v7130_v42 = vld [vmem:[%s9503_s7 + $0x38] sm:$0xff]  }
 0xd88   :  { %v1683_v43 = vpop.xlane.xlu0 %1682 }
 0xd89   :  { %v1690_v45 = vmul.f32 0.0078125, %v1683_v43 }
 0xd8a   :  { %v1685_v22 = vpop.xlane.xlu1 %1684 }
 0xd8b   :  { %v1694_v57 = vadd.f32 1e-12, %v1690_v45  ;;  %v1691_v23 = vmul.f32 0.0078125, %v1685_v22 }
 0xd8c   :  { %v1687_v13 = vpop.xlane.xlu0 %1686 }
 0xd8d   :  { %7371 = vrsqrt.f32 %v1694_v57  ;;  %v1695_v62 = vadd.f32 1e-12, %v1691_v23  ;;  %v1692_v9 = vmul.f32 0.0078125, %v1687_v13 }
 0xd8f   :  { %7373 = vrsqrt.f32 %v1695_v62  ;;  %v1696_v25 = vadd.f32 1e-12, %v1692_v9 }
 0xd90   :  { %v1689_v26 = vpop.xlane.xlu1 %1688 }
 0xd91   :  { %7375 = vrsqrt.f32 %v1696_v25  ;;  %v1693_v14 = vmul.f32 0.0078125, %v1689_v26 }
 0xd93   :  { %v1697_v12 = vadd.f32 1e-12, %v1693_v14 }
 0xd95   :  { %7377 = vrsqrt.f32 %v1697_v12 }
 0xd97   :  { %v7372_v27 = vpop.eup %7371 }
 0xd98   :  { %v1702_v29 = vmul.f32 %v7372_v27, %v1674_v0  ;;  %v7119_v0 = vld [vmem:[%s9503_s7 + $0x50] sm:$0xff]  }
 0xd99   :  { %v7374_v24 = vpop.eup %7373  ;;  %6349 = vmatprep.subr.bf16.mxu0 %v7119_v0 }
 0xd9a   :  { %v1703_v59 = vmul.f32 %v7374_v24, %v1675_v11  ;;  %v1712_v30 = vmul.f32 %v5953_v28, %v1702_v29  ;;  %6350 = vmatpush3.bf16.msra.mxu0 %v7120_v33  ;;  %v7123_v11 = vld [vmem:[%s9503_s7 + $0x60] sm:$0xff]  }
 0xd9b   :  { %v7376_v32 = vpop.eup %7375  ;;  %6351 = vmatprep.subr.bf16.mxu0 %v7121_v10 }
 0xd9c   :  { %v1713_v35 = vmul.f32 %v5953_v28, %v1703_v59  ;;  %v8697_v36 = vadd.f32 %v5954_v34, %v1712_v30  ;;  %v1704_v38 = vmul.f32 %v7376_v32, %v1676_v6  ;;  %v7125_v6 = vld [vmem:[%s9503_s7 + $0x68] sm:$0xff]  }
 0xd9e   :  { %v8699_v37 = vadd.f32 %v5954_v34, %v1713_v35  ;;  %v1714_v51 = vmul.f32 %v5953_v28, %v1704_v38  ;;  %6352 = vmatpush3.bf16.msra.mxu0 %v7122_v31 }
 0xd9f   :  { %v7378_v40 = vpop.eup %7377  ;;  %6353 = vmatprep.subr.bf16.mxu0 %v7123_v11 }
 0xda0   :  { %v1726_v41 = vpack.c.bf16 %v8699_v37, %v8697_v36  ;;  %v1705_v49 = vmul.f32 %v7378_v40, %v1677_v1  ;;  %v8706_v58 = vadd.f32 %v5954_v34, %v1714_v51  ;;  %v7129_v1 = vld [vmem:[%s9503_s7 + $0x78] sm:$0xff]  }
 0xda2   :  { %1852 = vmatmul.mubr.bf16.vlgmr.msra.gmra.mrb[24].mxu1 %v1726_v41  ;;  %v1715_v54 = vmul.f32 %v5953_v28, %v1705_v49  ;;  %6354 = vmatpush3.bf16.msra.mxu0 %v7124_v52 }
 0xda3   :  { %1861 = vmatprep.mubr.bf16.mxu1 %v8086_v39  ;;  %6355 = vmatprep.subr.bf16.mxu0 %v7125_v6 }
 0xda4   :  { %v8704_v56 = vadd.f32 %v5954_v34, %v1715_v54 }
 0xda6   :  { %v1727_v60 = vpack.c.bf16 %v8704_v56, %v8706_v58  ;;  %6356 = vmatpush3.bf16.msra.mxu0 %v7126_v7 }
 0xda7   :  { %6357 = vmatprep.subr.bf16.mxu0 %v7127_v8 }
 0xdaa   :  { %1862 = vmatmul.mubr.bf16.gmra.mrb[28].mxu1 %v1727_v60  ;;  %6358 = vmatpush3.bf16.msra.mxu0 %v7128_v16 }
 0xdab   :  { %2461 = vmatprep.mubr.bf16.mxu1 %v8086_v39  ;;  %6359 = vmatprep.subr.bf16.mxu0 %v7129_v1 }
 0xdae   :  { %6360 = vmatpush3.bf16.msra.mxu0 %v7130_v42 }
 0xe75   :  { %v1853_v2 = vpop.f32.mrb[24].mxu1 }
 0xe76   :  { %v8730_v3 = vadd.f32 %v1853_v2, %v1732_v47  ;;  %v1855_v44 = vpop.f32.mrb[25].mxu1 }
 0xe77   :  { %v8732_v48 = vadd.f32 %v1855_v44, %v1736_v53  ;;  %v1857_v50 = vpop.f32.mrb[26].mxu1 }
 0xe78   :  { %v1880_v18 = vmul.f32 0.044715, %v8730_v3  ;;  %v8735_v20 = vadd.f32 %v1857_v50, %v1732_v47  ;;  %v1859_v21 = vpop.f32.mrb[27].mxu1 }
 0xe79   :  { %v1881_v55 = vmul.f32 0.044715, %v8732_v48  ;;  %v8738_v43 = vadd.f32 %v1859_v21, %v1736_v53 }
 0xe7a   :  { %v1888_v45 = vmul.f32 %v1880_v18, %v8730_v3  ;;  %v1882_v22 = vmul.f32 0.044715, %v8735_v20 }
 0xe7b   :  { %v1889_v57 = vmul.f32 %v1881_v55, %v8732_v48  ;;  %v1883_v23 = vmul.f32 0.044715, %v8738_v43 }
 0xe7c   :  { %v1896_v13 = vmul.f32 %v1888_v45, %v8730_v3  ;;  %v1890_v62 = vmul.f32 %v1882_v22, %v8735_v20  ;;  %v1872_v45 = vmul.f32 0.5, %v8730_v3  ;;  %v1874_v22 = vmul.f32 0.5, %v8735_v20 }
 0xe7d   :  { %v1897_v9 = vmul.f32 %v1889_v57, %v8732_v48  ;;  %v1891_v25 = vmul.f32 %v1883_v23, %v8738_v43  ;;  %v1863_v26 = vpop.f32.mrb[28].mxu1  ;;  %v1873_v23 = vmul.f32 0.5, %v8732_v48 }
 0xe7e   :  { %v1904_v14 = vadd.f32 %v1896_v13, %v8730_v3  ;;  %v1898_v12 = vmul.f32 %v1890_v62, %v8735_v20  ;;  %v8750_v27 = vadd.f32 %v1863_v26, %v1732_v47  ;;  %v1865_v28 = vpop.f32.mrb[29].mxu1  ;;  %v1875_v13 = vmul.f32 0.5, %v8738_v43 }
 0xe7f   :  { %v1899_v29 = vmul.f32 %v1891_v25, %v8738_v43  ;;  %v8753_v24 = vadd.f32 %v1865_v28, %v1736_v53  ;;  %v1867_v59 = vpop.f32.mrb[30].mxu1  ;;  %v1905_v30 = vadd.f32 %v1897_v9, %v8732_v48 }
 0xe80   :  { %v1912_v32 = vmul.f32 0.7978846, %v1904_v14  ;;  %v1906_v34 = vadd.f32 %v1898_v12, %v8735_v20  ;;  %v1884_v35 = vmul.f32 0.044715, %v8750_v27  ;;  %v1868_v38 = vadd.f32 %v1867_v59, %v1732_v47  ;;  %v1869_v40 = vpop.f32.mrb[31].mxu1 }
 0xe81   :  { %v1885_v41 = vmul.f32 0.044715, %v8753_v24  ;;  %v1870_v49 = vadd.f32 %v1869_v40, %v1736_v53  ;;  %v1907_v51 = vadd.f32 %v1899_v29, %v8738_v43  ;;  %v1913_v54 = vmul.f32 0.7978846, %v1905_v30 }
 0xe82   :  { %7379 = vtanh.f32 %v1912_v32  ;;  %v1914_v60 = vmul.f32 0.7978846, %v1906_v34  ;;  %v1892_v4 = vmul.f32 %v1884_v35, %v8750_v27  ;;  %v1886_v61 = vmul.f32 0.044715, %v1868_v38 }
 0xe83   :  { %v1893_v63 = vmul.f32 %v1885_v41, %v8753_v24  ;;  %v1887_v5 = vmul.f32 0.044715, %v1870_v49  ;;  %v1915_v0 = vmul.f32 0.7978846, %v1907_v51  ;;  %7381 = vtanh.f32 %v1913_v54 }
 0xe84   :  { %7383 = vtanh.f32 %v1914_v60  ;;  %v1900_v33 = vmul.f32 %v1892_v4, %v8750_v27  ;;  %v1894_v10 = vmul.f32 %v1886_v61, %v1868_v38  ;;  %v1876_v20 = vmul.f32 0.5, %v8750_v27 }
 0xe85   :  { %v1901_v31 = vmul.f32 %v1893_v63, %v8753_v24  ;;  %v1895_v11 = vmul.f32 %v1887_v5, %v1870_v49  ;;  %7385 = vtanh.f32 %v1915_v0  ;;  %v1878_v48 = vmul.f32 0.5, %v1868_v38  ;;  %v5971_v0 = vld [vmem:[#allocation2] ss:$0 sm:$0xff] }
 0xe86   :  { %v1902_v52 = vmul.f32 %v1894_v10, %v1868_v38  ;;  %v1908_v6 = vadd.f32 %v1900_v33, %v8750_v27  ;;  %v1877_v43 = vmul.f32 0.5, %v8753_v24  ;;  %v1879_v40 = vmul.f32 0.5, %v1870_v49 }
 0xe87   :  { %v1903_v7 = vmul.f32 %v1895_v11, %v1870_v49  ;;  %v1909_v8 = vadd.f32 %v1901_v31, %v8753_v24 }
 0xe88   :  { %v1910_v16 = vadd.f32 %v1902_v52, %v1868_v38  ;;  %v1916_v1 = vmul.f32 0.7978846, %v1908_v6 }
 0xe89   :  { %v1911_v42 = vadd.f32 %v1903_v7, %v1870_v49  ;;  %v1917_v46 = vmul.f32 0.7978846, %v1909_v8 }
 0xe8a   :  { %v1918_v47 = vmul.f32 0.7978846, %v1910_v16  ;;  %7387 = vtanh.f32 %v1916_v1 }
 0xe8b   :  { %v1919_v53 = vmul.f32 0.7978846, %v1911_v42  ;;  %7389 = vtanh.f32 %v1917_v46 }
 0xe8c   :  { %v7380_v2 = vpop.eup %7379  ;;  %7391 = vtanh.f32 %v1918_v47 }
 0xe8d   :  { %v7382_v44 = vpop.eup %7381  ;;  %v1928_v50 = vadd.f32 1.0, %v7380_v2  ;;  %7393 = vtanh.f32 %v1919_v53  ;;  %v7131_v2 = vld [vmem:[%s9493_s21 + $0xc0] ss:$12 sps:$4 sm:$0xff]  }
 0xe8e   :  { %v7384_v18 = vpop.eup %7383  ;;  %v1929_v21 = vadd.f32 1.0, %v7382_v44  ;;  %v7133_v44 = vld [vmem:[%s9493_s21 + $0xc4] ss:$12 sps:$4 sm:$0xff]  }
 0xe8f   :  { %v7386_v55 = vpop.eup %7385  ;;  %v1930_v57 = vadd.f32 1.0, %v7384_v18  ;;  %v1936_v9 = vmul.f32 %v1928_v50, %v1872_v45  ;;  %v7136_v50 = vld [vmem:[%s9493_s21 + $0xdc] ss:$12 sps:$4 sm:$0xff]   ;;  %2429 = vmatprep.subr.bf16.mxu1 %v7133_v44 }
 0xe90   :  { %v1931_v62 = vadd.f32 1.0, %v7386_v55  ;;  %v1937_v26 = vmul.f32 %v1929_v21, %v1873_v23  ;;  %2430 = vmatpush1.bf16.msra.mxu1 %v7131_v2 }
 0xe91   :  { %v1938_v25 = vmul.f32 %v1930_v57, %v1874_v22  ;;  %2431 = vmatprep.subr.bf16.mxu1 %v7136_v50 }
 0xe92   :  { %v1939_v14 = vmul.f32 %v1931_v62, %v1875_v13 }
 0xe93   :  { %v1944_v12 = vpack.c.bf16 %v1938_v25, %v1936_v9 }
 0xe94   :  { %v7388_v28 = vpop.eup %7387  ;;  %v1945_v29 = vpack.c.bf16 %v1939_v14, %v1937_v26 }
 0xe95   :  { %v7390_v59 = vpop.eup %7389  ;;  %v1932_v30 = vadd.f32 1.0, %v7388_v28  ;;  %v7139_v28 = vld [vmem:[%s9493_s21 + $0xf4] ss:$12 sps:$4 sm:$0xff]  }
 0xe96   :  { %v7392_v32 = vpop.eup %7391  ;;  %2082 = vmatprep.mubr.bf16.mxu0 %v1945_v29  ;;  %v1933_v3 = vadd.f32 1.0, %v7390_v59  ;;  %v7140_v29 = vld [vmem:[%s9493_s21 + $0xc8] ss:$12 sps:$4 sm:$0xff]   ;;  %v7137_v59 = vld [vmem:[%s9493_s21 + $0xf0] ss:$12 sps:$4 sm:$0xff]  }
 0xe97   :  { %v7394_v34 = vpop.eup %7393  ;;  %2083 = vmatmul.mubr.bf16.vlgmr.msra.gmra.mrb[24].mxu0 %v1944_v12  ;;  %v1934_v35 = vadd.f32 1.0, %v7392_v32  ;;  %v1940_v51 = vmul.f32 %v1932_v30, %v1876_v20  ;;  %6647 = vmatprep.subr.bf16.mxu0 %v7140_v29  ;;  %v7143_v30 = vld [vmem:[%s9493_s21 + $0x10c] ss:$12 sps:$4 sm:$0xff]  }
 0xe98   :  { %v1935_v41 = vadd.f32 1.0, %v7394_v34  ;;  %v1941_v60 = vmul.f32 %v1933_v3, %v1877_v43  ;;  %6648 = vmatpush3.bf16.msra.mxu0 %v7140_v29  ;;  %v7144_v32 = vld [vmem:[%s9493_s21 + $0xe0] ss:$12 sps:$4 sm:$0xff]   ;;  %v7141_v3 = vld [vmem:[%s9493_s21 + $0x108] ss:$12 sps:$4 sm:$0xff]  }
 0xe99   :  { %v1942_v54 = vmul.f32 %v1934_v35, %v1878_v48  ;;  %6649 = vmatprep.subr.bf16.mxu0 %v7144_v32  ;;  %v7147_v34 = vld [vmem:[%s9493_s21 + $0x124] ss:$12 sps:$4 sm:$0xff]   ;;  %v7145_v48 = vld [vmem:[%s9493_s21 + $0x120] ss:$12 sps:$4 sm:$0xff]   ;;  %v7151_v35 = vld [vmem:[%s9493_s21 + $0x13c] ss:$12 sps:$4 sm:$0xff]  }
 0xe9a   :  { %v1943_v4 = vmul.f32 %v1935_v41, %v1879_v40  ;;  %v7148_v20 = vld [vmem:[%s9493_s21 + $0xf8] ss:$12 sps:$4 sm:$0xff]   ;;  %v7152_v43 = vld [vmem:[%s9493_s21 + $0x110] ss:$12 sps:$4 sm:$0xff]   ;;  %v7155_v41 = vld [vmem:[%s9493_s21 + $0x154] ss:$12 sps:$4 sm:$0xff]  }
 0xe9b   :  { %v1946_v61 = vpack.c.bf16 %v1942_v54, %v1940_v51  ;;  %v7149_v40 = vld [vmem:[%s9493_s21 + $0x138] ss:$12 sps:$4 sm:$0xff]   ;;  %v7156_v51 = vld [vmem:[%s9493_s21 + $0x128] ss:$12 sps:$4 sm:$0xff]   ;;  %v7153_v54 = vld [vmem:[%s9493_s21 + $0x150] ss:$12 sps:$4 sm:$0xff]  }
 0xe9c   :  { %v1947_v63 = vpack.c.bf16 %v1943_v4, %v1941_v60  ;;  %6650 = vmatpush3.bf16.msra.mxu0 %v7144_v32  ;;  %v7159_v60 = vld [vmem:[%s9493_s21 + $0x16c] ss:$12 sps:$4 sm:$0xff]  }
 0xe9d   :  { %6651 = vmatprep.subr.bf16.mxu0 %v7148_v20  ;;  %v7160_v4 = vld [vmem:[%s9493_s21 + $0x140] ss:$12 sps:$4 sm:$0xff]  }
 0xe9e   :  { %2090 = vmatprep.mubr.bf16.mxu0 %v1947_v63  ;;  %v7161_v63 = vld [vmem:[%s9493_s21 + $0x158] ss:$12 sps:$4 sm:$0xff]  }
 0xe9f   :  { %2091 = vmatmul.mubr.bf16.gmra.mrb[28].mxu0 %v1946_v61  ;;  %v7157_v61 = vld [vmem:[%s9493_s21 + $0x168] ss:$12 sps:$4 sm:$0xff]  }
 0xea0   :  { %6652 = vmatpush3.bf16.msra.mxu0 %v7148_v20 }
 0xea1   :  { %6653 = vmatprep.subr.bf16.mxu0 %v7152_v43 }
 0xea4   :  { %6654 = vmatpush3.bf16.msra.mxu0 %v7152_v43 }
 0xea5   :  { %6655 = vmatprep.subr.bf16.mxu0 %v7156_v51 }
 0xea8   :  { %6656 = vmatpush3.bf16.msra.mxu0 %v7156_v51 }
 0xea9   :  { %6657 = vmatprep.subr.bf16.mxu0 %v7160_v4 }
 0xeac   :  { %6658 = vmatpush3.bf16.msra.mxu0 %v7160_v4 }
 0xead   :  { %6659 = vmatprep.subr.bf16.mxu0 %v7161_v63 }
 0xeb0   :  { %6660 = vmatpush3.bf16.msra.mxu0 %v7161_v63 }
 0xf6a   :  { %v6361_v5 = vpop.f32.mrb[24].mxu0 }
 0xf6b   :  { %v6362_v33 = vpop.f32.mrb[25].mxu0 }
 0xf6c   :  { %v6363_v10 = vadd.f32 %v6362_v33, %v6361_v5  ;;  %v6364_v31 = vpop.f32.mrb[26].mxu0  ;;  %v7162_v5 = vld [vmem:[%s9493_s21 + $0x170] ss:$12 sps:$4 sm:$0xff]  }
 0xf6d   :  { %v6365_v27 = vpop.f32.mrb[27].mxu0  ;;  %6661 = vmatprep.subr.bf16.mxu0 %v7162_v5 }
 0xf6e   :  { %v2085_v38 = vadd.f32 %v6363_v10, %v5971_v0  ;;  %v6366_v11 = vadd.f32 %v6365_v27, %v6364_v31  ;;  %6662 = vmatpush3.bf16.msra.mxu0 %v7162_v5 }
 0xf70   :  { %v2088_v52 = vadd.f32 %v6366_v11, %v5971_v0  ;;  %v2099_v24 = vadd.f32 %v2085_v38, %v8697_v36 }
 0xf72   :  { %2103 = vadd.xlane.f32.xlu0 %v2099_v24  ;;  %v6367_v49 = vpop.f32.mrb[28].mxu0  ;;  %v2100_v6 = vadd.f32 %v2088_v52, %v8699_v37  ;;  %v7134_v37 = vld [vmem:[%s9493_s21 + $0xd8] ss:$12 sps:$4 sm:$0xff]  }
 0xf73   :  { %v6368_v7 = vpop.f32.mrb[29].mxu0  ;;  %2432 = vmatpush1.bf16.msra.mxu1 %v7134_v37 }
 0xf74   :  { %v6369_v8 = vadd.f32 %v6368_v7, %v6367_v49  ;;  %2105 = vadd.xlane.f32.xlu1 %v2100_v6  ;;  %v6370_v16 = vpop.f32.mrb[30].mxu0  ;;  %2433 = vmatprep.subr.bf16.mxu1 %v7139_v28 }
 0xf75   :  { %v6371_v1 = vpop.f32.mrb[31].mxu0 }
 0xf76   :  { %v2093_v42 = vadd.f32 %v6369_v8, %v5971_v0  ;;  %v6372_v46 = vadd.f32 %v6371_v1, %v6370_v16  ;;  %v5988_v16 = vld [vmem:[#allocation4] ss:$0 sm:$0xff] }
 0xf77   :  { %2434 = vmatpush1.bf16.msra.mxu1 %v7137_v59 }
 0xf78   :  { %v2096_v47 = vadd.f32 %v6372_v46, %v5971_v0  ;;  %v2101_v53 = vadd.f32 %v2093_v42, %v8706_v58  ;;  %2435 = vmatprep.subr.bf16.mxu1 %v7143_v30 }
 0xf7a   :  { %2107 = vadd.xlane.f32.xlu0 %v2101_v53  ;;  %v2102_v36 = vadd.f32 %v2096_v47, %v8704_v56 }
 0xf7b   :  { %2436 = vmatpush1.bf16.msra.mxu1 %v7141_v3 }
 0xf7c   :  { %2109 = vadd.xlane.f32.xlu1 %v2102_v36  ;;  %2437 = vmatprep.subr.bf16.mxu1 %v7147_v34 }
 0xf7f   :  { %2438 = vmatpush1.bf16.msra.mxu1 %v7145_v48 }
 0xf80   :  { %2439 = vmatprep.subr.bf16.mxu1 %v7151_v35 }
 0xf83   :  { %2440 = vmatpush1.bf16.msra.mxu1 %v7149_v40 }
 0xf84   :  { %2441 = vmatprep.subr.bf16.mxu1 %v7155_v41 }
 0xf87   :  { %2442 = vmatpush1.bf16.msra.mxu1 %v7153_v54 }
 0xf88   :  { %2443 = vmatprep.subr.bf16.mxu1 %v7159_v60 }
 0xf8b   :  { %2444 = vmatpush1.bf16.msra.mxu1 %v7157_v61 }
 0xfff   :  { %v2104_v18 = vpop.xlane.xlu0 %2103 }
0x1000   :  { %v2111_v21 = vmul.f32 0.0078125, %v2104_v18 }
0x1001   :  { %v2106_v55 = vpop.xlane.xlu1 %2105 }
0x1002   :  { %v2112_v45 = vmul.f32 0.0078125, %v2106_v55  ;;  %v8780_v22 = vsub.f32 %v2099_v24, %v2111_v21 }
0x1004   :  { %v2119_v58 = vmul.f32 %v8780_v22, %v8780_v22  ;;  %v8784_v56 = vsub.f32 %v2100_v6, %v2112_v45 }
0x1006   :  { %2123 = vadd.xlane.f32.xlu0 %v2119_v58  ;;  %v2120_v57 = vmul.f32 %v8784_v56, %v8784_v56 }
0x1007   :  { %v2108_v23 = vpop.xlane.xlu0 %2107 }
0x1008   :  { %v2113_v13 = vmul.f32 0.0078125, %v2108_v23  ;;  %2125 = vadd.xlane.f32.xlu1 %v2120_v57  ;;  %v6022_v23 = vld [vmem:[%s9496_s25 + $0x3] sm:$0x7] }
0x1009   :  { %v2110_v62 = vpop.xlane.xlu1 %2109  ;;  %v2297_v3 = vrot.slane %v6022_v23, %v8443_v19 }
0x100a   :  { %v2114_v9 = vmul.f32 0.0078125, %v2110_v62  ;;  %v8788_v25 = vsub.f32 %v2101_v53, %v2113_v13  ;;  %v5989_v53 = vld [vmem:[#allocation6] ss:$0 sm:$0xff]  ;;  %v2289_v13 = vrot.slane %v6022_v23, %v8437_v15 }
0x100c   :  { %v2121_v26 = vmul.f32 %v8788_v25, %v8788_v25  ;;  %v8792_v14 = vsub.f32 %v2102_v36, %v2114_v9  ;;  %v2293_v9 = vrot.slane %v6022_v23, %v8440_v17 }
0x100e   :  { %2127 = vadd.xlane.f32.xlu0 %v2121_v26  ;;  %v2122_v12 = vmul.f32 %v8792_v14, %v8792_v14 }
0x1010   :  { %2129 = vadd.xlane.f32.xlu1 %v2122_v12 }
0x1093   :  { %v2124_v0 = vpop.xlane.xlu0 %2123 }
0x1094   :  { %v2131_v33 = vmul.f32 0.0078125, %v2124_v0 }
0x1095   :  { %v2126_v10 = vpop.xlane.xlu1 %2125 }
0x1096   :  { %v2135_v31 = vadd.f32 1e-12, %v2131_v33  ;;  %v2132_v27 = vmul.f32 0.0078125, %v2126_v10 }
0x1098   :  { %7395 = vrsqrt.f32 %v2135_v31  ;;  %v2136_v38 = vadd.f32 1e-12, %v2132_v27 }
0x109a   :  { %7397 = vrsqrt.f32 %v2136_v38 }
0x109b   :  { %v2128_v11 = vpop.xlane.xlu0 %2127 }
0x109c   :  { %v2133_v52 = vmul.f32 0.0078125, %v2128_v11 }
0x109d   :  { %v2130_v24 = vpop.xlane.xlu1 %2129 }
0x109e   :  { %v2137_v49 = vadd.f32 1e-12, %v2133_v52  ;;  %v2134_v6 = vmul.f32 0.0078125, %v2130_v24 }
0x10a0   :  { %7399 = vrsqrt.f32 %v2137_v49  ;;  %v2138_v7 = vadd.f32 1e-12, %v2134_v6  ;;  %v8866_v6 = vld [vmem:[%s9497_s28] sm:$0xff] }
0x10a2   :  { %v7396_v8 = vpop.eup %7395  ;;  %7401 = vrsqrt.f32 %v2138_v7 }
0x10a3   :  { %v2143_v1 = vmul.f32 %v7396_v8, %v8780_v22 }
0x10a4   :  { %v7398_v42 = vpop.eup %7397 }
0x10a5   :  { %v2153_v46 = vmul.f32 %v5988_v16, %v2143_v1  ;;  %v2144_v47 = vmul.f32 %v7398_v42, %v8784_v56  ;;  %v8870_v1 = vld [vmem:[%s9497_s28 + $0x10] sm:$0xff] }
0x10a7   :  { %v2154_v36 = vmul.f32 %v5988_v16, %v2144_v47  ;;  %v8818_v2 = vadd.f32 %v5989_v53, %v2153_v46  ;;  %v8874_v46 = vld [vmem:[%s9497_s28 + $0x8] sm:$0xff] }
0x10a9   :  { %v8820_v44 = vadd.f32 %v5989_v53, %v2154_v36  ;;  %v8879_v36 = vld [vmem:[%s9497_s28 + $0x18] sm:$0xff] }
0x10aa   :  { %v7400_v50 = vpop.eup %7399 }
0x10ab   :  { %v2283_v37 = vpack.c.bf16 %v8820_v44, %v8818_v2  ;;  %v2145_v18 = vmul.f32 %v7400_v50, %v8788_v25 }
0x10ac   :  { %v7402_v21 = vpop.eup %7401 }
0x10ad   :  { %2462 = vmatmul.mubr.bf16.vlgmr.msra.gmra.mrb[32].mxu1 %v2283_v37  ;;  %6663 = vmatprep.mubr.bf16.mxu0 %v2283_v37  ;;  %v2146_v55 = vmul.f32 %v7402_v21, %v8792_v14  ;;  %v2155_v45 = vmul.f32 %v5988_v16, %v2145_v18 }
0x10ae   :  { %2471 = vmatprep.mubr.bf16.mxu1 %v8086_v39 }
0x10af   :  { %v2156_v22 = vmul.f32 %v5988_v16, %v2146_v55  ;;  %v8827_v58 = vadd.f32 %v5989_v53, %v2155_v45 }
0x10b1   :  { %v8829_v56 = vadd.f32 %v5989_v53, %v2156_v22 }
0x10b3   :  { %v2284_v57 = vpack.c.bf16 %v8829_v56, %v8827_v58 }
0x10b5   :  { %2472 = vmatmul.mubr.bf16.gmra.mrb[36].mxu1 %v2284_v57  ;;  %6664 = vmatmul.mubr.bf16.vlgmr.msra.gmra.mrb[32].mxu0 %v2284_v57 }
0x1180   :  { %v2463_v62 = vpop.f32.mrb[32].mxu1 }
0x1181   :  { %v2465_v25 = vpop.f32.mrb[33].mxu1  ;;  %v2464_v14 = vadd.f32 %v2463_v62, %v2289_v13 }
0x1182   :  { %v2467_v26 = vpop.f32.mrb[34].mxu1  ;;  %v2466_v29 = vadd.f32 %v2465_v25, %v2293_v9 }
0x1183   :  { %v2468_v12 = vadd.f32 %v2467_v26, %v2289_v13  ;;  %v2469_v28 = vpop.f32.mrb[35].mxu1 }
0x1184   :  { %v2470_v59 = vadd.f32 %v2469_v28, %v2293_v9 }
0x1185   :  { %v8836_v30 = vpack.c.bf16 %v2468_v12, %v2464_v14 }
0x1186   :  { %v8838_v32 = vpack.c.bf16 %v2470_v59, %v2466_v29 }
0x1187   :  { %6671 = vmatprep.mubr.msk.bf16.mxu1 %vm794_vm0, %v8836_v30 }
0x1188   :  { %v2473_v34 = vpop.f32.mrb[36].mxu1  ;;  %v6665_v20 = vpop.f32.mrb[32].mxu0  ;;  %6883 = vmatprep.subr.msk.bf16.mxu1 %vm794_vm0, %v8838_v32  ;;  %v2544_v48 = vsel %vm794_vm0, %v8838_v32, 0 }
0x1189   :  { %v2475_v35 = vpop.f32.mrb[37].mxu1  ;;  %v2516_v43 = vpop.f32.mrb[33].mxu0  ;;  %6668 = vmatpush3.bf16.xpose.msra.mxu1 %v2544_v48  ;;  %v2474_v51 = vadd.f32 %v2473_v34, %v2289_v13  ;;  %v2525_v54 = vadd.f32 %v6665_v20, %v2297_v3 }
0x118a   :  { %v2477_v40 = vpop.f32.mrb[38].mxu1  ;;  %v6666_v41 = vpop.f32.mrb[34].mxu0  ;;  %v2476_v5 = vadd.f32 %v2475_v35, %v2293_v9  ;;  %v2517_v0 = vadd.f32 %v2516_v43, %v2297_v3 }
0x118b   :  { %v2478_v60 = vadd.f32 %v2477_v40, %v2289_v13  ;;  %v2528_v4 = vadd.f32 %v6666_v41, %v2297_v3  ;;  %v2479_v61 = vpop.f32.mrb[39].mxu1  ;;  %v2519_v63 = vpop.f32.mrb[35].mxu0 }
0x118c   :  { %v2480_v33 = vadd.f32 %v2479_v61, %v2293_v9  ;;  %v2520_v10 = vadd.f32 %v2519_v63, %v2297_v3 }
0x118d   :  { %v8847_v31 = vpack.c.bf16 %v2478_v60, %v2474_v51  ;;  %v8849_v27 = vpack.c.bf16 %v2528_v4, %v2525_v54 }
0x118e   :  { %v8851_v38 = vpack.c.bf16 %v2480_v33, %v2476_v5  ;;  %v8853_v11 = vpack.c.bf16 %v2520_v10, %v2517_v0 }
0x1190   :  { %6884 = vmatprep.subr.msk.bf16.mxu1 %vm794_vm0, %v8851_v38  ;;  %v2547_v52 = vsel %vm794_vm0, %v8851_v38, 0 }
0x1191   :  { %6670 = vmatpush3.bf16.xpose.msra.mxu1 %v2547_v52 }
0x1192   :  { %6675 = vmatprep.subr.bf16.mxu1 %v8853_v11 }
0x1198   :  { %6672 = vmatmul.mubr.msk.bf16.vlgmr.msra.gmra.mrb[40].mxu1 %vm794_vm0, %v8847_v31 }
0x1199   :  { %6676 = vmatpush3.bf16.msra.mxu1 %v8853_v11 }
0x119a   :  { %6677 = vmatprep.subr.bf16.mxu1 %v8849_v27 }
0x119d   :  { %6678 = vmatpush3.bf16.msra.mxu1 %v8849_v27 }
0x126b   :  { %v6673_v24 = vpop.f32.mrb[40].mxu1 }
0x126c   :  { %v2583_v49 = vpop.f32.mrb[41].mxu1  ;;  %v2592_v42 = vadd.f32 %v8870_v1, %v6673_v24 }
0x126d   :  { %v2584_v7 = vadd.f32 %v8866_v6, %v2583_v49  ;;  %v6674_v8 = vpop.f32.mrb[42].mxu1 }
0x126e   :  { %v2586_v16 = vpop.f32.mrb[43].mxu1  ;;  %v2595_v50 = vadd.f32 %v8879_v36, %v6674_v8  ;;  %v2604_v18 = vsel %vm794_vm0, %v2592_v42, -inf }
0x126f   :  { %v2587_v47 = vadd.f32 %v8874_v46, %v2586_v16  ;;  %v2598_v53 = vsel %vm794_vm0, %v2584_v7, -inf }
0x1270   :  { %2599 = vmax.xlane.f32.xlu0 %v2598_v53  ;;  %v2607_v21 = vsel %vm794_vm0, %v2595_v50, -inf }
0x1271   :  { %v2601_v37 = vsel %vm794_vm0, %v2587_v47, -inf }
0x1272   :  { %2602 = vmax.xlane.f32.xlu1 %v2601_v37 }
0x1274   :  { %2605 = vmax.xlane.f32.xlu0 %v2604_v18 }
0x1276   :  { %2608 = vmax.xlane.f32.xlu1 %v2607_v21 }
0x12fd   :  { %v2600_v55 = vpop.xlane.xlu0 %2599 }
0x12fe   :  { %v2610_v45 = vsub.f32 %v2584_v7, %v2600_v55 }
0x12ff   :  { %v2603_v22 = vpop.xlane.xlu1 %2602 }
0x1300   :  { %v2611_v57 = vsub.f32 %v2587_v47, %v2603_v22  ;;  %v2614_v9 = vmul.f32 1.442695, %v2610_v45 }
0x1301   :  { %v2606_v23 = vpop.xlane.xlu0 %2605 }
0x1302   :  { %v2616_v13 = vmul.f32 1.442695, %v2611_v57  ;;  %v2612_v62 = vsub.f32 %v2592_v42, %v2606_v23 }
0x1303   :  { %v2609_v25 = vpop.xlane.xlu1 %2608 }
0x1304   :  { %7403 = vpow2.f32 %v2616_v13  ;;  %v2618_v26 = vmul.f32 1.442695, %v2612_v62  ;;  %v2613_v14 = vsub.f32 %v2595_v50, %v2609_v25 }
0x1306   :  { %7405 = vpow2.f32 %v2618_v26  ;;  %v2620_v12 = vmul.f32 1.442695, %v2613_v14 }
0x1307   :  { %7407 = vpow2.f32 %v2614_v9 }
0x1308   :  { %7409 = vpow2.f32 %v2620_v12 }
0x130e   :  { %v7404_v28 = vpop.eup %7403 }
0x130f   :  { %v2625_v29 = vsel %vm794_vm0, %v7404_v28, 0.0 }
0x1310   :  { %v7406_v59 = vpop.eup %7405  ;;  %2626 = vadd.xlane.f32.xlu1 %v2625_v29 }
0x1311   :  { %v7408_v3 = vpop.eup %7407  ;;  %v2628_v34 = vsel %vm794_vm0, %v7406_v59, 0.0 }
0x1312   :  { %v7410_v20 = vpop.eup %7409  ;;  %2629 = vadd.xlane.f32.xlu0 %v2628_v34  ;;  %v2622_v35 = vsel %vm794_vm0, %v7408_v3, 0.0 }
0x1313   :  { %v2631_v48 = vsel %vm794_vm0, %v7410_v20, 0.0 }
0x1314   :  { %2632 = vadd.xlane.f32.xlu1 %v2631_v48 }
0x1316   :  { %2623 = vadd.xlane.f32.xlu0 %v2622_v35 }
0x1325   :  { %2709 = vrot.lane.b32.xlu1 %v8851_v38, %s8087_s12 }
0x1329   :  { %2701 = vrot.lane.b32.xlu1 %v8836_v30, %s8087_s12 }
0x132c   :  { %2707 = vrot.lane.b32.xlu0 %v8838_v32, %s8087_s12 }
0x132d   :  { %2703 = vrot.lane.b32.xlu1 %v8847_v31, %s8087_s12 }
0x139d   :  { %v2627_v43 = vpop.xlane.xlu1 %2626 }
0x139e   :  { %7411 = vrcp.f32 %v2627_v43 }
0x139f   :  { %v2630_v40 = vpop.xlane.xlu0 %2629 }
0x13a1   :  { %v2633_v41 = vpop.xlane.xlu1 %2632 }
0x13a2   :  { %7413 = vrcp.f32 %v2633_v41 }
0x13a3   :  { %7415 = vrcp.f32 %v2630_v40  ;;  %v2624_v51 = vpop.xlane.xlu0 %2623 }
0x13a4   :  { %7417 = vrcp.f32 %v2624_v51 }
0x13a5   :  { %v2710_v0 = vpop.permute.xlu1 %2709 }
0x13a6   :  { %v2721_v16 = vsel %vm794_vm0, %v2710_v0, 0 }
0x13a7   :  { %v2708_v54 = vpop.permute.xlu0 %2707 }
0x13a8   :  { %6885 = vmatprep.subr.msk.bf16.mxu1 %vm794_vm0, %v2708_v54  ;;  %v7412_v60 = vpop.eup %7411  ;;  %v2718_v8 = vsel %vm794_vm0, %v2708_v54, 0 }
0x13a9   :  { %v2639_v10 = vmul.f32 %v7412_v60, %v7404_v28  ;;  %v2702_v7 = vpop.permute.xlu1 %2701 }
0x13ac   :  { %v7414_v4 = vpop.eup %7413 }
0x13ad   :  { %v7416_v61 = vpop.eup %7415  ;;  %v2641_v5 = vmul.f32 %v7414_v4, %v7410_v20  ;;  %v2704_v42 = vpop.permute.xlu1 %2703 }
0x13ae   :  { %v7418_v63 = vpop.eup %7417  ;;  %v2640_v52 = vmul.f32 %v7416_v61, %v7406_v59 }
0x13af   :  { %v2638_v33 = vmul.f32 %v7418_v63, %v7408_v3 }
0x13b0   :  { %v2643_v49 = vpack.c.bf16 %v2641_v5, %v2640_v52 }
0x13b1   :  { %v2642_v24 = vpack.c.bf16 %v2639_v10, %v2638_v33 }
0x13b3   :  { %6679 = vmatprep.mubr.msk.bf16.mxu1 %vm794_vm0, %v2642_v24 }
0x13b4   :  { %6680 = vmatmul.mubr.msk.bf16.vlgmr.msra.gmra.mrb[44].mxu1 %vm794_vm0, %v2643_v49 }
0x13b5   :  { %6684 = vmatpush3.bf16.xpose.msra.mxu1 %v2718_v8  ;;  %6687 = vmatprep.mubr.msk.bf16.mxu1 %vm794_vm0, %v2702_v7 }
0x13b6   :  { %6886 = vmatprep.subr.msk.bf16.mxu1 %vm794_vm0, %v2710_v0 }
0x13bd   :  { %6686 = vmatpush3.bf16.xpose.msra.mxu1 %v2721_v16 }
0x13c4   :  { %6688 = vmatmul.mubr.msk.bf16.vlgmr.msra.gmra.mrb[48].mxu1 %vm794_vm0, %v2704_v42 }
0x1487   :  { %v8905_v47 = vpop.f32.mrb[44].mxu1 }
0x1488   :  { %v8907_v53 = vpop.f32.mrb[45].mxu1 }
0x1489   :  { %v8909_v50 = vpop.f32.mrb[46].mxu1 }
0x148a   :  { %v8911_v37 = vpop.f32.mrb[47].mxu1 }
0x1497   :  { %v6689_v18 = vpop.f32.mrb[48].mxu1 }
0x1498   :  { %v2757_v21 = vpop.f32.mrb[49].mxu1  ;;  %v2766_v57 = vadd.f32 %v8870_v1, %v6689_v18 }
0x1499   :  { %v2758_v55 = vadd.f32 %v8866_v6, %v2757_v21  ;;  %v6690_v45 = vpop.f32.mrb[50].mxu1 }
0x149a   :  { %v2760_v22 = vpop.f32.mrb[51].mxu1  ;;  %v2769_v9 = vadd.f32 %v8879_v36, %v6690_v45  ;;  %v2778_v25 = vsel %vm794_vm0, %v2766_v57, -inf }
0x149b   :  { %v2761_v23 = vadd.f32 %v8874_v46, %v2760_v22  ;;  %v2772_v13 = vsel %vm794_vm0, %v2758_v55, -inf }
0x149c   :  { %2773 = vmax.xlane.f32.xlu0 %v2772_v13  ;;  %v2781_v26 = vsel %vm794_vm0, %v2769_v9, -inf }
0x149d   :  { %v2775_v62 = vsel %vm794_vm0, %v2761_v23, -inf }
0x149e   :  { %2776 = vmax.xlane.f32.xlu1 %v2775_v62 }
0x14a0   :  { %2779 = vmax.xlane.f32.xlu0 %v2778_v25 }
0x14a4   :  { %2782 = vmax.xlane.f32.xlu0 %v2781_v26 }
0x14af   :  { %2822 = vrot.lane.b32.xlu1 %v8849_v27, %s8087_s12 }
0x1529   :  { %v2774_v14 = vpop.xlane.xlu0 %2773 }
0x152a   :  { %v2784_v12 = vsub.f32 %v2758_v55, %v2774_v14 }
0x152b   :  { %v2777_v28 = vpop.xlane.xlu1 %2776 }
0x152c   :  { %v2788_v3 = vmul.f32 1.442695, %v2784_v12  ;;  %v2785_v34 = vsub.f32 %v2761_v23, %v2777_v28 }
0x152d   :  { %v2780_v29 = vpop.xlane.xlu0 %2779 }
0x152e   :  { %v2786_v59 = vsub.f32 %v2766_v57, %v2780_v29  ;;  %v2790_v43 = vmul.f32 1.442695, %v2785_v34 }
0x152f   :  { %v2823_v0 = vpop.permute.xlu1 %2822 }
0x1530   :  { %v2792_v20 = vmul.f32 1.442695, %v2786_v59 }
0x1531   :  { %v2783_v48 = vpop.xlane.xlu0 %2782 }
0x1532   :  { %7419 = vpow2.f32 %v2792_v20  ;;  %v2787_v35 = vsub.f32 %v2769_v9, %v2783_v48 }
0x1533   :  { %7421 = vpow2.f32 %v2788_v3 }
0x1534   :  { %v2794_v40 = vmul.f32 1.442695, %v2787_v35 }
0x1536   :  { %7423 = vpow2.f32 %v2794_v40 }
0x1537   :  { %7425 = vpow2.f32 %v2790_v43 }
0x153c   :  { %v7420_v41 = vpop.eup %7419 }
0x153d   :  { %v2802_v51 = vsel %vm794_vm0, %v7420_v41, 0.0  ;;  %v7422_v54 = vpop.eup %7421 }
0x153e   :  { %2803 = vadd.xlane.f32.xlu0 %v2802_v51  ;;  %v2796_v4 = vsel %vm794_vm0, %v7422_v54, 0.0 }
0x1540   :  { %v7424_v60 = vpop.eup %7423 }
0x1541   :  { %v2805_v61 = vsel %vm794_vm0, %v7424_v60, 0.0  ;;  %v7426_v63 = vpop.eup %7425 }
0x1542   :  { %2797 = vadd.xlane.f32.xlu0 %v2796_v4  ;;  %2806 = vadd.xlane.f32.xlu1 %v2805_v61  ;;  %v2799_v5 = vsel %vm794_vm0, %v7426_v63, 0.0 }
0x1546   :  { %2800 = vadd.xlane.f32.xlu1 %v2799_v5 }
0x1557   :  { %2885 = vrot.lane.b32.xlu1 %v8838_v32, %s8077_s27 }
0x1558   :  { %2820 = vrot.lane.b32.xlu0 %v8853_v11, %s8087_s12 }
0x155b   :  { %2887 = vrot.lane.b32.xlu1 %v8851_v38, %s8077_s27 }
0x155c   :  { %2881 = vrot.lane.b32.xlu0 %v8836_v30, %s8077_s27 }
0x155f   :  { %2883 = vrot.lane.b32.xlu1 %v8847_v31, %s8077_s27 }
0x15cb   :  { %v2804_v33 = vpop.xlane.xlu0 %2803 }
0x15cf   :  { %v2807_v10 = vpop.xlane.xlu1 %2806  ;;  %v2798_v52 = vpop.xlane.xlu0 %2797 }
0x15d0   :  { %7427 = vrcp.f32 %v2807_v10 }
0x15d1   :  { %7429 = vrcp.f32 %v2798_v52 }
0x15d2   :  { %7431 = vrcp.f32 %v2804_v33 }
0x15d3   :  { %v2801_v24 = vpop.xlane.xlu1 %2800  ;;  %v2821_v49 = vpop.permute.xlu0 %2820 }
0x15d4   :  { %7433 = vrcp.f32 %v2801_v24  ;;  %6691 = vmatprep.subr.bf16.mxu0 %v2821_v49 }
0x15d5   :  { %6692 = vmatpush3.bf16.msra.mxu0 %v2821_v49 }
0x15d6   :  { %6693 = vmatprep.subr.bf16.mxu0 %v2823_v0 }
0x15d7   :  { %v2886_v7 = vpop.permute.xlu1 %2885  ;;  %v2882_v13 = vpop.permute.xlu0 %2881 }
0x15d8   :  { %v2896_v62 = vsel %vm794_vm0, %v2886_v7, 0 }
0x15d9   :  { %6694 = vmatpush3.bf16.msra.mxu0 %v2823_v0 }
0x15da   :  { %6887 = vmatprep.subr.msk.bf16.mxu0 %vm794_vm0, %v2886_v7  ;;  %v7428_v8 = vpop.eup %7427 }
0x15db   :  { %v7430_v16 = vpop.eup %7429  ;;  %v2815_v21 = vmul.f32 %v7428_v8, %v7424_v60  ;;  %v2888_v9 = vpop.permute.xlu1 %2887 }
0x15dc   :  { %v7432_v42 = vpop.eup %7431  ;;  %v2812_v55 = vmul.f32 %v7430_v16, %v7422_v54  ;;  %v2899_v25 = vsel %vm794_vm0, %v2888_v9, 0 }
0x15dd   :  { %v2814_v22 = vmul.f32 %v7432_v42, %v7420_v41 }
0x15de   :  { %v7434_v18 = vpop.eup %7433 }
0x15df   :  { %v2813_v45 = vmul.f32 %v7434_v18, %v7426_v63  ;;  %v2817_v23 = vpack.c.bf16 %v2815_v21, %v2814_v22  ;;  %v2884_v26 = vpop.permute.xlu1 %2883 }
0x15e1   :  { %v2816_v57 = vpack.c.bf16 %v2813_v45, %v2812_v55 }
0x15e3   :  { %6695 = vmatprep.mubr.msk.bf16.mxu0 %vm794_vm0, %v2816_v57 }
0x15e4   :  { %6696 = vmatmul.mubr.msk.bf16.vlgmr.msra.gmra.mrb[36].mxu0 %vm794_vm0, %v2817_v23 }
0x15e5   :  { %6700 = vmatpush3.bf16.xpose.msra.mxu0 %v2896_v62  ;;  %6703 = vmatprep.mubr.msk.bf16.mxu0 %vm794_vm0, %v2882_v13 }
0x15e6   :  { %6888 = vmatprep.subr.msk.bf16.mxu0 %vm794_vm0, %v2888_v9 }
0x15ed   :  { %6702 = vmatpush3.bf16.xpose.msra.mxu0 %v2899_v25 }
0x15f4   :  { %6704 = vmatmul.mubr.msk.bf16.vlgmr.msra.gmra.mrb[40].mxu0 %vm794_vm0, %v2884_v26 }
0x16b7   :  { %v8945_v14 = vpop.f32.mrb[36].mxu0 }
0x16b8   :  { %v8947_v12 = vpop.f32.mrb[37].mxu0 }
0x16b9   :  { %v8949_v28 = vpop.f32.mrb[38].mxu0 }
0x16ba   :  { %v6996_v29 = vpack.i.bf16 %v8949_v28, %v8945_v14  ;;  %v8953_v59 = vpop.f32.mrb[39].mxu0 }
0x16bb   :  { %v6991_v3 = vpack.i.bf16 %v8953_v59, %v8947_v12 }
0x16c7   :  { %v6705_v34 = vpop.f32.mrb[40].mxu0 }
0x16c8   :  { %v2935_v20 = vpop.f32.mrb[41].mxu0  ;;  %v2944_v40 = vadd.f32 %v8870_v1, %v6705_v34 }
0x16c9   :  { %v2936_v48 = vadd.f32 %v8866_v6, %v2935_v20  ;;  %v6706_v35 = vpop.f32.mrb[42].mxu0 }
0x16ca   :  { %v2938_v43 = vpop.f32.mrb[43].mxu0  ;;  %v2947_v60 = vadd.f32 %v8879_v36, %v6706_v35  ;;  %v2956_v4 = vsel %vm794_vm0, %v2944_v40, -inf }
0x16cb   :  { %v2939_v41 = vadd.f32 %v8874_v46, %v2938_v43  ;;  %v2950_v51 = vsel %vm794_vm0, %v2936_v48, -inf }
0x16cc   :  { %2951 = vmax.xlane.f32.xlu0 %v2950_v51  ;;  %v2959_v61 = vsel %vm794_vm0, %v2947_v60, -inf }
0x16cd   :  { %v2953_v54 = vsel %vm794_vm0, %v2939_v41, -inf }
0x16ce   :  { %2954 = vmax.xlane.f32.xlu1 %v2953_v54 }
0x16d0   :  { %2957 = vmax.xlane.f32.xlu0 %v2956_v4 }
0x16d4   :  { %2960 = vmax.xlane.f32.xlu0 %v2959_v61 }
0x16df   :  { %2998 = vrot.lane.b32.xlu1 %v8849_v27, %s8077_s27 }
0x1759   :  { %v2952_v63 = vpop.xlane.xlu0 %2951 }
0x175a   :  { %v2962_v5 = vsub.f32 %v2936_v48, %v2952_v63 }
0x175b   :  { %v2955_v0 = vpop.xlane.xlu1 %2954 }
0x175c   :  { %v2966_v52 = vmul.f32 1.442695, %v2962_v5  ;;  %v2963_v24 = vsub.f32 %v2939_v41, %v2955_v0 }
0x175d   :  { %v2958_v33 = vpop.xlane.xlu0 %2957 }
0x175e   :  { %v2964_v10 = vsub.f32 %v2944_v40, %v2958_v33  ;;  %v2968_v16 = vmul.f32 1.442695, %v2963_v24 }
0x175f   :  { %v2999_v62 = vpop.permute.xlu1 %2998 }
0x1760   :  { %v2970_v49 = vmul.f32 1.442695, %v2964_v10 }
0x1761   :  { %v2961_v7 = vpop.xlane.xlu0 %2960 }
0x1762   :  { %7435 = vpow2.f32 %v2970_v49  ;;  %v2965_v8 = vsub.f32 %v2947_v60, %v2961_v7 }
0x1763   :  { %7437 = vpow2.f32 %v2966_v52 }
0x1764   :  { %v2972_v42 = vmul.f32 1.442695, %v2965_v8 }
0x1766   :  { %7439 = vpow2.f32 %v2972_v42 }
0x1767   :  { %7441 = vpow2.f32 %v2968_v16 }
0x176c   :  { %v7436_v18 = vpop.eup %7435 }
0x176d   :  { %v2980_v21 = vsel %vm794_vm0, %v7436_v18, 0.0  ;;  %v7438_v55 = vpop.eup %7437 }
0x176e   :  { %2981 = vadd.xlane.f32.xlu0 %v2980_v21  ;;  %v2974_v22 = vsel %vm794_vm0, %v7438_v55, 0.0 }
0x1770   :  { %v7440_v45 = vpop.eup %7439 }
0x1771   :  { %v2983_v57 = vsel %vm794_vm0, %v7440_v45, 0.0  ;;  %v7442_v23 = vpop.eup %7441 }
0x1772   :  { %2975 = vadd.xlane.f32.xlu0 %v2974_v22  ;;  %2984 = vadd.xlane.f32.xlu1 %v2983_v57  ;;  %v2977_v13 = vsel %vm794_vm0, %v7442_v23, 0.0 }
0x1776   :  { %2978 = vadd.xlane.f32.xlu1 %v2977_v13 }
0x1787   :  { %3061 = vrot.lane.b32.xlu1 %v8838_v32, %s8088_s1 }
0x1788   :  { %2996 = vrot.lane.b32.xlu0 %v8853_v11, %s8077_s27 }
0x178b   :  { %3063 = vrot.lane.b32.xlu1 %v8851_v38, %s8088_s1 }
0x178c   :  { %3057 = vrot.lane.b32.xlu0 %v8836_v30, %s8088_s1 }
0x178f   :  { %3059 = vrot.lane.b32.xlu1 %v8847_v31, %s8088_s1 }
0x17fb   :  { %v2982_v9 = vpop.xlane.xlu0 %2981 }
0x17ff   :  { %v2985_v25 = vpop.xlane.xlu1 %2984  ;;  %v2976_v26 = vpop.xlane.xlu0 %2975 }
0x1800   :  { %7443 = vrcp.f32 %v2985_v25 }
0x1801   :  { %7445 = vrcp.f32 %v2976_v26 }
0x1802   :  { %7447 = vrcp.f32 %v2982_v9 }
0x1803   :  { %v2979_v32 = vpop.xlane.xlu1 %2978  ;;  %v2997_v34 = vpop.permute.xlu0 %2996 }
0x1804   :  { %7449 = vrcp.f32 %v2979_v32  ;;  %6707 = vmatprep.subr.bf16.mxu1 %v2997_v34 }
0x1805   :  { %6708 = vmatpush3.bf16.msra.mxu1 %v2997_v34 }
0x1806   :  { %6709 = vmatprep.subr.bf16.mxu1 %v2999_v62 }
0x1807   :  { %v3062_v38 = vpop.permute.xlu1 %3061  ;;  %v3058_v60 = vpop.permute.xlu0 %3057 }
0x1808   :  { %v3072_v4 = vsel %vm794_vm0, %v3062_v38, 0 }
0x1809   :  { %6710 = vmatpush3.bf16.msra.mxu1 %v2999_v62 }
0x180a   :  { %6889 = vmatprep.subr.msk.bf16.mxu1 %vm794_vm0, %v3062_v38  ;;  %v7444_v30 = vpop.eup %7443 }
0x180b   :  { %v7446_v20 = vpop.eup %7445  ;;  %v2993_v35 = vmul.f32 %v7444_v30, %v7440_v45  ;;  %v3064_v61 = vpop.permute.xlu1 %3063 }
0x180c   :  { %v7448_v31 = vpop.eup %7447  ;;  %v2990_v43 = vmul.f32 %v7446_v20, %v7438_v55  ;;  %v3075_v63 = vsel %vm794_vm0, %v3064_v61, 0 }
0x180d   :  { %v2992_v41 = vmul.f32 %v7448_v31, %v7436_v18 }
0x180e   :  { %v7450_v48 = vpop.eup %7449 }
0x180f   :  { %v2991_v40 = vmul.f32 %v7450_v48, %v7442_v23  ;;  %v2995_v54 = vpack.c.bf16 %v2993_v35, %v2992_v41  ;;  %v3060_v5 = vpop.permute.xlu1 %3059 }
0x1811   :  { %v2994_v51 = vpack.c.bf16 %v2991_v40, %v2990_v43 }
0x1813   :  { %6711 = vmatprep.mubr.msk.bf16.mxu1 %vm794_vm0, %v2994_v51 }
0x1814   :  { %6712 = vmatmul.mubr.msk.bf16.vlgmr.msra.gmra.mrb[52].mxu1 %vm794_vm0, %v2995_v54 }
0x1815   :  { %6716 = vmatpush3.bf16.xpose.msra.mxu1 %v3072_v4  ;;  %6719 = vmatprep.mubr.msk.bf16.mxu1 %vm794_vm0, %v3058_v60 }
0x1816   :  { %6890 = vmatprep.subr.msk.bf16.mxu1 %vm794_vm0, %v3064_v61 }
0x181d   :  { %6718 = vmatpush3.bf16.xpose.msra.mxu1 %v3075_v63 }
0x1824   :  { %6720 = vmatmul.mubr.msk.bf16.vlgmr.msra.gmra.mrb[56].mxu1 %vm794_vm0, %v3060_v5 }
0x1825   :  { %3591 = vmatprep.mubr.bf16.mxu1 %v8086_v39 }
0x18e7   :  { %v6713_v0 = vpop.f32.mrb[52].mxu1 }
0x18e8   :  { %v3042_v33 = vpop.f32.mrb[53].mxu1 }
0x18e9   :  { %v6714_v10 = vpop.f32.mrb[54].mxu1 }
0x18ea   :  { %v7006_v52 = vpack.i.bf16 %v6714_v10, %v6713_v0  ;;  %v3045_v24 = vpop.f32.mrb[55].mxu1  ;;  %v7163_v10 = vld [vmem:[%s9498_s2 + $0x40] sm:$0xff]  }
0x18eb   :  { %v7001_v49 = vpack.i.bf16 %v3045_v24, %v3042_v33  ;;  %v7165_v24 = vld [vmem:[%s9498_s2 + $0x50] sm:$0xff]  }
0x18f7   :  { %v6721_v7 = vpop.f32.mrb[56].mxu1 }
0x18f8   :  { %v3111_v8 = vpop.f32.mrb[57].mxu1  ;;  %v3120_v21 = vadd.f32 %v8870_v1, %v6721_v7  ;;  %v7167_v7 = vld [vmem:[%s9498_s2 + $0x60] sm:$0xff]  }
0x18f9   :  { %v3112_v16 = vadd.f32 %v8866_v6, %v3111_v8  ;;  %v6722_v42 = vpop.f32.mrb[58].mxu1  ;;  %v7168_v8 = vld [vmem:[%s9498_s2 + $0x68] sm:$0xff]  }
0x18fa   :  { %v3114_v18 = vpop.f32.mrb[59].mxu1  ;;  %v3123_v57 = vadd.f32 %v8879_v36, %v6722_v42  ;;  %v3132_v23 = vsel %vm794_vm0, %v3120_v21, -inf  ;;  %v7170_v42 = vld [vmem:[%s9498_s2 + $0x78] sm:$0xff]  }
0x18fb   :  { %v3115_v55 = vadd.f32 %v8874_v46, %v3114_v18  ;;  %v3126_v45 = vsel %vm794_vm0, %v3112_v16, -inf }
0x18fc   :  { %3127 = vmax.xlane.f32.xlu0 %v3126_v45  ;;  %v3135_v13 = vsel %vm794_vm0, %v3123_v57, -inf }
0x18fd   :  { %v3129_v22 = vsel %vm794_vm0, %v3115_v55, -inf }
0x18fe   :  { %3130 = vmax.xlane.f32.xlu1 %v3129_v22 }
0x1900   :  { %3133 = vmax.xlane.f32.xlu0 %v3132_v23 }
0x1904   :  { %3136 = vmax.xlane.f32.xlu0 %v3135_v13 }
0x1989   :  { %v3128_v6 = vpop.xlane.xlu0 %3127 }
0x198a   :  { %v3138_v62 = vsub.f32 %v3112_v16, %v3128_v6  ;;  %v7169_v16 = vld [vmem:[%s9498_s2 + $0x70] sm:$0xff]  }
0x198b   :  { %v3131_v9 = vpop.xlane.xlu1 %3130 }
0x198c   :  { %v3142_v46 = vmul.f32 1.442695, %v3138_v62  ;;  %v3139_v26 = vsub.f32 %v3115_v55, %v3131_v9 }
0x198d   :  { %v3134_v1 = vpop.xlane.xlu0 %3133 }
0x198e   :  { %v3140_v25 = vsub.f32 %v3120_v21, %v3134_v1  ;;  %v3144_v30 = vmul.f32 1.442695, %v3139_v26 }
0x1990   :  { %v3146_v32 = vmul.f32 1.442695, %v3140_v25 }
0x1991   :  { %v3137_v34 = vpop.xlane.xlu0 %3136 }
0x1992   :  { %7451 = vpow2.f32 %v3146_v32  ;;  %v3141_v38 = vsub.f32 %v3123_v57, %v3137_v34 }
0x1993   :  { %7453 = vpow2.f32 %v3142_v46 }
0x1994   :  { %v3148_v36 = vmul.f32 1.442695, %v3141_v38 }
0x1996   :  { %7455 = vpow2.f32 %v3148_v36 }
0x1997   :  { %7457 = vpow2.f32 %v3144_v30 }
0x199c   :  { %v7452_v20 = vpop.eup %7451 }
0x199d   :  { %v3156_v31 = vsel %vm794_vm0, %v7452_v20, 0.0  ;;  %v7454_v48 = vpop.eup %7453 }
0x199e   :  { %3157 = vadd.xlane.f32.xlu0 %v3156_v31  ;;  %v3150_v43 = vsel %vm794_vm0, %v7454_v48, 0.0 }
0x19a0   :  { %v7456_v35 = vpop.eup %7455 }
0x19a1   :  { %v3159_v40 = vsel %vm794_vm0, %v7456_v35, 0.0  ;;  %v7458_v41 = vpop.eup %7457 }
0x19a2   :  { %3151 = vadd.xlane.f32.xlu0 %v3150_v43  ;;  %3160 = vadd.xlane.f32.xlu1 %v3159_v40  ;;  %v3153_v51 = vsel %vm794_vm0, %v7458_v41, 0.0 }
0x19a6   :  { %3154 = vadd.xlane.f32.xlu1 %v3153_v51 }
0x19b7   :  { %3174 = vrot.lane.b32.xlu1 %v8849_v27, %s8088_s1 }
0x19b8   :  { %3172 = vrot.lane.b32.xlu0 %v8853_v11, %s8088_s1 }
0x19bb   :  { %6992 = vrot.lane.b32.xlu1 %v6991_v3, %s8088_s1 }
0x19bc   :  { %7002 = vrot.lane.b32.xlu0 %v7001_v49, %s8077_s27  ;;  %v7166_v49 = vld [vmem:[%s9498_s2 + $0x58] sm:$0xff]  }
0x19bf   :  { %6997 = vrot.lane.b32.xlu1 %v6996_v29, %s8088_s1 }
0x19c3   :  { %7007 = vrot.lane.b32.xlu1 %v7006_v52, %s8077_s27  ;;  %v7164_v52 = vld [vmem:[%s9498_s2 + $0x48] sm:$0xff]  }
0x1a2b   :  { %v3158_v54 = vpop.xlane.xlu0 %3157 }
0x1a2f   :  { %v3161_v60 = vpop.xlane.xlu1 %3160  ;;  %v3152_v27 = vpop.xlane.xlu0 %3151 }
0x1a30   :  { %7459 = vrcp.f32 %v3161_v60 }
0x1a31   :  { %7461 = vrcp.f32 %v3152_v27 }
0x1a32   :  { %7463 = vrcp.f32 %v3158_v54 }
0x1a33   :  { %v3155_v11 = vpop.xlane.xlu1 %3154  ;;  %v3173_v4 = vpop.permute.xlu0 %3172 }
0x1a34   :  { %7465 = vrcp.f32 %v3155_v11  ;;  %6723 = vmatprep.subr.bf16.mxu0 %v3173_v4 }
0x1a35   :  { %6724 = vmatpush3.bf16.msra.mxu0 %v3173_v4 }
0x1a37   :  { %v3175_v12 = vpop.permute.xlu1 %3174  ;;  %v7003_v1 = vpop.permute.xlu0 %7002 }
0x1a38   :  { %6725 = vmatprep.subr.bf16.mxu0 %v3175_v12  ;;  %v7005_v34 = vunpack.i.h.bf16 %v7003_v1  ;;  %v7004_v38 = vunpack.i.l.bf16 %v7003_v1  ;;  %v7179_v1 = vld [vmem:[%s9500_s8 + $0xa4] ss:$8 sps:$4 sm:$0xff]  }
0x1a39   :  { %6726 = vmatpush3.bf16.msra.mxu0 %v3175_v12 }
0x1a3a   :  { %v7460_v14 = vpop.eup %7459  ;;  %6731 = vmatprep.subr.bf16.mxu0 %v7163_v10 }
0x1a3b   :  { %v7462_v28 = vpop.eup %7461  ;;  %v3169_v3 = vmul.f32 %v7460_v14, %v7456_v35  ;;  %v6993_v23 = vpop.permute.xlu1 %6992  ;;  %v6131_v14 = vld [vmem:[%s9499_s13 + $0x1] ss:$0 sm:$0xff] }
0x1a3c   :  { %v7464_v29 = vpop.eup %7463  ;;  %v3166_v61 = vmul.f32 %v7462_v28, %v7454_v48  ;;  %v6995_v62 = vunpack.i.h.bf16 %v6993_v23  ;;  %v6994_v9 = vunpack.i.l.bf16 %v6993_v23 }
0x1a3d   :  { %v3168_v5 = vmul.f32 %v7464_v29, %v7452_v20 }
0x1a3e   :  { %v7466_v59 = vpop.eup %7465  ;;  %v3282_v30 = vsel %vm794_vm0, %v8911_v37, %v6995_v62  ;;  %v3281_v36 = vsel %vm794_vm0, %v8907_v53, %v6994_v9 }
0x1a3f   :  { %v3167_v63 = vmul.f32 %v7466_v59, %v7458_v41  ;;  %v3171_v33 = vpack.c.bf16 %v3169_v3, %v3168_v5  ;;  %v6998_v13 = vpop.permute.xlu1 %6997  ;;  %v3285_v27 = vsel %vm1543_vm1, %v3281_v36, %v7004_v38  ;;  %v7188_v38 = vld [vmem:[%s9500_s8 + $0xd4] ss:$8 sps:$4 sm:$0xff]   ;;  %v7189_v36 = vld [vmem:[%s9500_s8 + $0xe0] ss:$8 sps:$4 sm:$0xff]  }
0x1a40   :  { %v7000_v25 = vunpack.i.h.bf16 %v6998_v13  ;;  %v6999_v46 = vunpack.i.l.bf16 %v6998_v13 }
0x1a41   :  { %v3170_v0 = vpack.c.bf16 %v3167_v63, %v3166_v61 }
0x1a42   :  { %v3284_v31 = vsel %vm794_vm0, %v8909_v50, %v7000_v25  ;;  %v3283_v48 = vsel %vm794_vm0, %v8905_v47, %v6999_v46  ;;  %v3286_v50 = vsel %vm1543_vm1, %v3282_v30, %v7005_v34  ;;  %v7177_v25 = vld [vmem:[%s9500_s8 + $0xa0] ss:$8 sps:$4 sm:$0xff]   ;;  %v7182_v46 = vld [vmem:[%s9500_s8 + $0xb4] ss:$8 sps:$4 sm:$0xff]   ;;  %v7186_v30 = vld [vmem:[%s9500_s8 + $0xd0] ss:$8 sps:$4 sm:$0xff]  }
0x1a43   :  { %6727 = vmatprep.mubr.msk.bf16.mxu0 %vm794_vm0, %v3170_v0  ;;  %v7008_v6 = vpop.permute.xlu1 %7007  ;;  %v7183_v34 = vld [vmem:[%s9500_s8 + $0xc0] ss:$8 sps:$4 sm:$0xff]  }
0x1a44   :  { %6728 = vmatmul.mubr.msk.bf16.vlgmr.msra.gmra.mrb[44].mxu0 %vm794_vm0, %v3171_v33  ;;  %v7010_v26 = vunpack.i.h.bf16 %v7008_v6  ;;  %v7009_v32 = vunpack.i.l.bf16 %v7008_v6 }
0x1a45   :  { %6732 = vmatpush3.bf16.msra.mxu0 %v7163_v10 }
0x1a46   :  { %6733 = vmatprep.subr.bf16.mxu0 %v7164_v52  ;;  %v3287_v41 = vsel %vm1543_vm1, %v3283_v48, %v7009_v32  ;;  %v3288_v51 = vsel %vm1543_vm1, %v3284_v31, %v7010_v26  ;;  %v7180_v26 = vld [vmem:[%s9500_s8 + $0xb0] ss:$8 sps:$4 sm:$0xff]   ;;  %v7185_v32 = vld [vmem:[%s9500_s8 + $0xc4] ss:$8 sps:$4 sm:$0xff]   ;;  %v7194_v31 = vld [vmem:[%s9500_s8 + $0xf4] ss:$8 sps:$4 sm:$0xff]  }
0x1a47   :  { %v7192_v48 = vld [vmem:[%s9500_s8 + $0xf0] ss:$8 sps:$4 sm:$0xff]  }
0x1a49   :  { %6734 = vmatpush3.bf16.msra.mxu0 %v7164_v52 }
0x1a4a   :  { %6735 = vmatprep.subr.bf16.mxu0 %v7165_v24 }
0x1a4d   :  { %6736 = vmatpush3.bf16.msra.mxu0 %v7165_v24 }
0x1a4e   :  { %6737 = vmatprep.subr.bf16.mxu0 %v7166_v49 }
0x1a51   :  { %6738 = vmatpush3.bf16.msra.mxu0 %v7166_v49  ;;  %v7171_v49 = vld [vmem:[%s9500_s8 + $0x80] ss:$8 sps:$4 sm:$0xff]  }
0x1a52   :  { %6739 = vmatprep.subr.bf16.mxu0 %v7167_v7 }
0x1a55   :  { %6740 = vmatpush3.bf16.msra.mxu0 %v7167_v7  ;;  %v7173_v7 = vld [vmem:[%s9500_s8 + $0x84] ss:$8 sps:$4 sm:$0xff]  }
0x1a56   :  { %6741 = vmatprep.subr.bf16.mxu0 %v7168_v8  ;;  %3559 = vmatprep.subr.bf16.mxu1 %v7173_v7 }
0x1a57   :  { %3560 = vmatpush1.bf16.msra.mxu1 %v7171_v49 }
0x1a59   :  { %6742 = vmatpush3.bf16.msra.mxu0 %v7168_v8  ;;  %v7176_v8 = vld [vmem:[%s9500_s8 + $0x94] ss:$8 sps:$4 sm:$0xff]  }
0x1a5a   :  { %6743 = vmatprep.subr.bf16.mxu0 %v7169_v16  ;;  %3561 = vmatprep.subr.bf16.mxu1 %v7176_v8 }
0x1a5d   :  { %6744 = vmatpush3.bf16.msra.mxu0 %v7169_v16  ;;  %v7174_v16 = vld [vmem:[%s9500_s8 + $0x90] ss:$8 sps:$4 sm:$0xff]  }
0x1a5e   :  { %6745 = vmatprep.subr.bf16.mxu0 %v7170_v42  ;;  %3562 = vmatpush1.bf16.msra.mxu1 %v7174_v16 }
0x1a5f   :  { %3563 = vmatprep.subr.bf16.mxu1 %v7179_v1  ;;  %v6058_v1 = vld [vmem:[%s9504_s10 + $0x2] sm:$0x3] }
0x1a61   :  { %6746 = vmatpush3.bf16.msra.mxu0 %v7170_v42 }
0x1a62   :  { %3564 = vmatpush1.bf16.msra.mxu1 %v7177_v25  ;;  %v3472_v25 = vrot.slane %v6058_v1, %v8437_v15 }
0x1a63   :  { %3565 = vmatprep.subr.bf16.mxu1 %v7182_v46  ;;  %v3476_v46 = vrot.slane %v6058_v1, %v8440_v17 }
0x1a66   :  { %3566 = vmatpush1.bf16.msra.mxu1 %v7180_v26 }
0x1a67   :  { %3567 = vmatprep.subr.bf16.mxu1 %v7185_v32 }
0x1a6a   :  { %3568 = vmatpush1.bf16.msra.mxu1 %v7183_v34 }
0x1a6b   :  { %3569 = vmatprep.subr.bf16.mxu1 %v7188_v38 }
0x1a6e   :  { %3570 = vmatpush1.bf16.msra.mxu1 %v7186_v30 }
0x1b17   :  { %v6729_v18 = vpop.f32.mrb[44].mxu0 }
0x1b18   :  { %v3218_v21 = vpop.f32.mrb[45].mxu0 }
0x1b19   :  { %v6730_v55 = vpop.f32.mrb[46].mxu0 }
0x1b1a   :  { %v7016_v45 = vpack.i.bf16 %v6730_v55, %v6729_v18  ;;  %v3221_v22 = vpop.f32.mrb[47].mxu0 }
0x1b1b   :  { %v7011_v57 = vpack.i.bf16 %v3221_v22, %v3218_v21 }
0x1b1c   :  { %7017 = vrot.lane.b32.xlu1 %v7016_v45, %s8087_s12 }
0x1b1d   :  { %7012 = vrot.lane.b32.xlu0 %v7011_v57, %s8087_s12 }
0x1b8e   :  { %v7018_v20 = vpop.permute.xlu1 %7017 }
0x1b8f   :  { %v7020_v35 = vunpack.i.h.bf16 %v7018_v20  ;;  %v7019_v43 = vunpack.i.l.bf16 %v7018_v20  ;;  %v7013_v40 = vpop.permute.xlu0 %7012  ;;  %v7191_v20 = vld [vmem:[%s9500_s8 + $0xe4] ss:$8 sps:$4 sm:$0xff]  }
0x1b90   :  { %v7015_v54 = vunpack.i.h.bf16 %v7013_v40  ;;  %v7014_v37 = vunpack.i.l.bf16 %v7013_v40  ;;  %3571 = vmatprep.subr.bf16.mxu1 %v7191_v20 }
0x1b91   :  { %v3292_v60 = vsel %vm1548_vm2, %v3288_v51, %v7020_v35  ;;  %v3291_v53 = vsel %vm1548_vm2, %v3287_v41, %v7019_v43  ;;  %3572 = vmatpush1.bf16.msra.mxu1 %v7189_v36 }
0x1b92   :  { %v3294_v11 = vpack.c.bf16 %v3292_v60, %v3291_v53  ;;  %v3289_v47 = vsel %vm1548_vm2, %v3285_v27, %v7014_v37  ;;  %v3290_v4 = vsel %vm1548_vm2, %v3286_v50, %v7015_v54  ;;  %3573 = vmatprep.subr.bf16.mxu1 %v7194_v31 }
0x1b93   :  { %v3293_v12 = vpack.c.bf16 %v3290_v4, %v3289_v47  ;;  %v6140_v4 = vld [vmem:[%s9501_s24 + $0x1] ss:$0 sm:$0xff] }
0x1b95   :  { %6747 = vmatprep.mubr.bf16.mxu0 %v3293_v12  ;;  %3574 = vmatpush1.bf16.msra.mxu1 %v7192_v48 }
0x1b96   :  { %6748 = vmatmul.mubr.bf16.vlgmr.msra.gmra.mrb[48].mxu0 %v3294_v11 }
0x1c69   :  { %v6749_v28 = vpop.f32.mrb[48].mxu0 }
0x1c6a   :  { %v3383_v29 = vpop.f32.mrb[49].mxu0  ;;  %v3392_v63 = vadd.f32 %v6749_v28, %v6131_v14 }
0x1c6b   :  { %v3384_v59 = vadd.f32 %v6131_v14, %v3383_v29  ;;  %v6750_v3 = vpop.f32.mrb[50].mxu0 }
0x1c6c   :  { %v3386_v61 = vpop.f32.mrb[51].mxu0  ;;  %v3400_v10 = vadd.f32 %v3392_v63, %v8827_v58  ;;  %v3395_v52 = vadd.f32 %v6750_v3, %v6131_v14  ;;  %v6141_v3 = vld [vmem:[%s9502_s6 + $0x1] ss:$0 sm:$0xff] }
0x1c6d   :  { %v3398_v5 = vadd.f32 %v3384_v59, %v8818_v2  ;;  %v3387_v0 = vadd.f32 %v6131_v14, %v3386_v61 }
0x1c6e   :  { %v3401_v24 = vadd.f32 %v3395_v52, %v8829_v56 }
0x1c6f   :  { %v3399_v33 = vadd.f32 %v3387_v0, %v8820_v44  ;;  %3402 = vadd.xlane.f32.xlu0 %v3398_v5 }
0x1c71   :  { %3404 = vadd.xlane.f32.xlu1 %v3399_v33 }
0x1c73   :  { %3406 = vadd.xlane.f32.xlu0 %v3400_v10 }
0x1c77   :  { %3408 = vadd.xlane.f32.xlu0 %v3401_v24 }
0x1cfc   :  { %v3403_v2 = vpop.xlane.xlu0 %3402 }
0x1cfd   :  { %v3410_v42 = vmul.f32 0.0078125, %v3403_v2  ;;  %v7195_v2 = vld [vmem:[%s9503_s7 + $0xc0] sm:$0xff]  }
0x1cfe   :  { %v3405_v44 = vpop.xlane.xlu1 %3404  ;;  %6425 = vmatprep.subr.bf16.mxu0 %v7195_v2 }
0x1cff   :  { %v3414_v18 = vsub.f32 %v3398_v5, %v3410_v42  ;;  %v3411_v21 = vmul.f32 0.0078125, %v3405_v44  ;;  %v7196_v42 = vld [vmem:[%s9503_s7 + $0x80] sm:$0xff]   ;;  %v7197_v44 = vld [vmem:[%s9503_s7 + $0xc8] sm:$0xff]  }
0x1d00   :  { %v3407_v58 = vpop.xlane.xlu0 %3406  ;;  %6426 = vmatpush3.bf16.msra.mxu0 %v7196_v42 }
0x1d01   :  { %v3415_v55 = vsub.f32 %v3399_v33, %v3411_v21  ;;  %v3412_v45 = vmul.f32 0.0078125, %v3407_v58  ;;  %v3418_v56 = vmul.f32 %v3414_v18, %v3414_v18  ;;  %6427 = vmatprep.subr.bf16.mxu0 %v7197_v44  ;;  %v7199_v21 = vld [vmem:[%s9503_s7 + $0xd0] sm:$0xff]  }
0x1d02   :  { %v7200_v58 = vld [vmem:[%s9503_s7 + $0x90] sm:$0xff]  }
0x1d03   :  { %v3416_v22 = vsub.f32 %v3400_v10, %v3412_v45  ;;  %3422 = vadd.xlane.f32.xlu0 %v3418_v56  ;;  %v3419_v57 = vmul.f32 %v3415_v55, %v3415_v55  ;;  %v7202_v45 = vld [vmem:[%s9503_s7 + $0x98] sm:$0xff]   ;;  %v7203_v56 = vld [vmem:[%s9503_s7 + $0xe0] sm:$0xff]  }
0x1d04   :  { %v3409_v23 = vpop.xlane.xlu0 %3408 }
0x1d05   :  { %v3413_v13 = vmul.f32 0.0078125, %v3409_v23  ;;  %3424 = vadd.xlane.f32.xlu1 %v3419_v57  ;;  %v3420_v6 = vmul.f32 %v3416_v22, %v3416_v22  ;;  %v7205_v57 = vld [vmem:[%s9503_s7 + $0xe8] sm:$0xff]  }
0x1d06   :  { %v7206_v23 = vld [vmem:[%s9503_s7 + $0xa8] sm:$0xff]  }
0x1d07   :  { %v3417_v62 = vsub.f32 %v3401_v24, %v3413_v13  ;;  %3426 = vadd.xlane.f32.xlu0 %v3420_v6  ;;  %v7207_v13 = vld [vmem:[%s9503_s7 + $0xf0] sm:$0xff]  }
0x1d08   :  { %v7208_v6 = vld [vmem:[%s9503_s7 + $0xb0] sm:$0xff]  }
0x1d09   :  { %v3421_v9 = vmul.f32 %v3417_v62, %v3417_v62 }
0x1d0b   :  { %3428 = vadd.xlane.f32.xlu1 %v3421_v9  ;;  %v7210_v9 = vld [vmem:[%s9503_s7 + $0xb8] sm:$0xff]  }
0x1d90   :  { %v3423_v35 = vpop.xlane.xlu0 %3422 }
0x1d91   :  { %v3430_v43 = vmul.f32 0.0078125, %v3423_v35 }
0x1d92   :  { %v3425_v40 = vpop.xlane.xlu1 %3424 }
0x1d93   :  { %v3434_v41 = vadd.f32 1e-12, %v3430_v43  ;;  %v3431_v51 = vmul.f32 0.0078125, %v3425_v40 }
0x1d94   :  { %v3427_v54 = vpop.xlane.xlu0 %3426 }
0x1d95   :  { %7467 = vrsqrt.f32 %v3434_v41  ;;  %v3435_v37 = vadd.f32 1e-12, %v3431_v51  ;;  %v3432_v60 = vmul.f32 0.0078125, %v3427_v54 }
0x1d97   :  { %7469 = vrsqrt.f32 %v3435_v37  ;;  %v3436_v53 = vadd.f32 1e-12, %v3432_v60 }
0x1d98   :  { %v3429_v27 = vpop.xlane.xlu1 %3428 }
0x1d99   :  { %7471 = vrsqrt.f32 %v3436_v53  ;;  %v3433_v50 = vmul.f32 0.0078125, %v3429_v27 }
0x1d9b   :  { %v3437_v11 = vadd.f32 1e-12, %v3433_v50 }
0x1d9d   :  { %7473 = vrsqrt.f32 %v3437_v11 }
0x1d9f   :  { %v7468_v47 = vpop.eup %7467 }
0x1da0   :  { %v3442_v12 = vmul.f32 %v7468_v47, %v3414_v18  ;;  %v7198_v18 = vld [vmem:[%s9503_s7 + $0x88] sm:$0xff]  }
0x1da1   :  { %v7470_v14 = vpop.eup %7469  ;;  %6428 = vmatpush3.bf16.msra.mxu0 %v7198_v18 }
0x1da2   :  { %v3443_v28 = vmul.f32 %v7470_v14, %v3415_v55  ;;  %v3452_v29 = vmul.f32 %v6140_v4, %v3442_v12  ;;  %6429 = vmatprep.subr.bf16.mxu0 %v7199_v21  ;;  %v7201_v55 = vld [vmem:[%s9503_s7 + $0xd8] sm:$0xff]  }
0x1da3   :  { %v7472_v59 = vpop.eup %7471 }
0x1da4   :  { %v3453_v61 = vmul.f32 %v6140_v4, %v3443_v28  ;;  %v9067_v63 = vadd.f32 %v6141_v3, %v3452_v29  ;;  %v3444_v0 = vmul.f32 %v7472_v59, %v3416_v22  ;;  %v7204_v22 = vld [vmem:[%s9503_s7 + $0xa0] sm:$0xff]  }
0x1da5   :  { %6430 = vmatpush3.bf16.msra.mxu0 %v7200_v58 }
0x1da6   :  { %v9069_v5 = vadd.f32 %v6141_v3, %v3453_v61  ;;  %v3454_v24 = vmul.f32 %v6140_v4, %v3444_v0  ;;  %6431 = vmatprep.subr.bf16.mxu0 %v7201_v55 }
0x1da7   :  { %v7474_v33 = vpop.eup %7473 }
0x1da8   :  { %v3466_v10 = vpack.c.bf16 %v9069_v5, %v9067_v63  ;;  %v3445_v52 = vmul.f32 %v7474_v33, %v3417_v62  ;;  %v9076_v8 = vadd.f32 %v6141_v3, %v3454_v24  ;;  %v7209_v62 = vld [vmem:[%s9503_s7 + $0xf8] sm:$0xff]  }
0x1da9   :  { %6432 = vmatpush3.bf16.msra.mxu0 %v7202_v45 }
0x1daa   :  { %3592 = vmatmul.mubr.bf16.vlgmr.msra.gmra.mrb[60].mxu1 %v3466_v10  ;;  %v3455_v49 = vmul.f32 %v6140_v4, %v3445_v52  ;;  %6433 = vmatprep.subr.bf16.mxu0 %v7203_v56 }
0x1dab   :  { %3601 = vmatprep.mubr.bf16.mxu1 %v8086_v39 }
0x1dac   :  { %v9074_v7 = vadd.f32 %v6141_v3, %v3455_v49 }
0x1dad   :  { %6434 = vmatpush3.bf16.msra.mxu0 %v7204_v22 }
0x1dae   :  { %v3467_v16 = vpack.c.bf16 %v9074_v7, %v9076_v8  ;;  %6435 = vmatprep.subr.bf16.mxu0 %v7205_v57 }
0x1db1   :  { %6436 = vmatpush3.bf16.msra.mxu0 %v7206_v23 }
0x1db2   :  { %3602 = vmatmul.mubr.bf16.gmra.mrb[64].mxu1 %v3467_v16  ;;  %6437 = vmatprep.subr.bf16.mxu0 %v7207_v13 }
0x1db5   :  { %6438 = vmatpush3.bf16.msra.mxu0 %v7208_v6 }
0x1db6   :  { %6439 = vmatprep.subr.bf16.mxu0 %v7209_v62 }
0x1db9   :  { %6440 = vmatpush3.bf16.msra.mxu0 %v7210_v9 }
0x1e7d   :  { %v3593_v26 = vpop.f32.mrb[60].mxu1 }
0x1e7e   :  { %v9099_v32 = vadd.f32 %v3593_v26, %v3472_v25  ;;  %v3595_v34 = vpop.f32.mrb[61].mxu1 }
0x1e7f   :  { %v9101_v38 = vadd.f32 %v3595_v34, %v3476_v46  ;;  %v3597_v30 = vpop.f32.mrb[62].mxu1 }
0x1e80   :  { %v3620_v36 = vmul.f32 0.044715, %v9099_v32  ;;  %v9104_v20 = vadd.f32 %v3597_v30, %v3472_v25  ;;  %v3599_v31 = vpop.f32.mrb[63].mxu1 }
0x1e81   :  { %v3621_v48 = vmul.f32 0.044715, %v9101_v38  ;;  %v9107_v35 = vadd.f32 %v3599_v31, %v3476_v46 }
0x1e82   :  { %v3628_v43 = vmul.f32 %v3620_v36, %v9099_v32  ;;  %v3622_v40 = vmul.f32 0.044715, %v9104_v20 }
0x1e83   :  { %v3629_v41 = vmul.f32 %v3621_v48, %v9101_v38  ;;  %v3623_v51 = vmul.f32 0.044715, %v9107_v35 }
0x1e84   :  { %v3636_v54 = vmul.f32 %v3628_v43, %v9099_v32  ;;  %v3630_v37 = vmul.f32 %v3622_v40, %v9104_v20  ;;  %v3612_v43 = vmul.f32 0.5, %v9099_v32  ;;  %v3614_v40 = vmul.f32 0.5, %v9104_v20 }
0x1e85   :  { %v3637_v60 = vmul.f32 %v3629_v41, %v9101_v38  ;;  %v3631_v53 = vmul.f32 %v3623_v51, %v9107_v35  ;;  %v3603_v27 = vpop.f32.mrb[64].mxu1  ;;  %v3613_v51 = vmul.f32 0.5, %v9101_v38 }
0x1e86   :  { %v3644_v50 = vadd.f32 %v3636_v54, %v9099_v32  ;;  %v3638_v11 = vmul.f32 %v3630_v37, %v9104_v20  ;;  %v9119_v47 = vadd.f32 %v3603_v27, %v3472_v25  ;;  %v3605_v4 = vpop.f32.mrb[65].mxu1  ;;  %v3615_v54 = vmul.f32 0.5, %v9107_v35 }
0x1e87   :  { %v3639_v12 = vmul.f32 %v3631_v53, %v9107_v35  ;;  %v9122_v14 = vadd.f32 %v3605_v4, %v3476_v46  ;;  %v3607_v28 = vpop.f32.mrb[66].mxu1  ;;  %v3645_v29 = vadd.f32 %v3637_v60, %v9101_v38 }
0x1e88   :  { %v3652_v59 = vmul.f32 0.7978846, %v3644_v50  ;;  %v3646_v3 = vadd.f32 %v3638_v11, %v9104_v20  ;;  %v3624_v61 = vmul.f32 0.044715, %v9119_v47  ;;  %v3608_v0 = vadd.f32 %v3607_v28, %v3472_v25  ;;  %v3609_v33 = vpop.f32.mrb[67].mxu1 }
0x1e89   :  { %v3625_v10 = vmul.f32 0.044715, %v9122_v14  ;;  %v3610_v52 = vadd.f32 %v3609_v33, %v3476_v46  ;;  %v3647_v24 = vadd.f32 %v3639_v12, %v9107_v35  ;;  %v3653_v49 = vmul.f32 0.7978846, %v3645_v29 }
0x1e8a   :  { %7475 = vtanh.f32 %v3652_v59  ;;  %v3654_v16 = vmul.f32 0.7978846, %v3646_v3  ;;  %v3632_v2 = vmul.f32 %v3624_v61, %v9119_v47  ;;  %v3626_v42 = vmul.f32 0.044715, %v3608_v0 }
0x1e8b   :  { %v3633_v44 = vmul.f32 %v3625_v10, %v9122_v14  ;;  %v3627_v18 = vmul.f32 0.044715, %v3610_v52  ;;  %v3655_v21 = vmul.f32 0.7978846, %v3647_v24  ;;  %7477 = vtanh.f32 %v3653_v49 }
0x1e8c   :  { %7479 = vtanh.f32 %v3654_v16  ;;  %v3640_v58 = vmul.f32 %v3632_v2, %v9119_v47  ;;  %v3634_v55 = vmul.f32 %v3626_v42, %v3608_v0  ;;  %v3616_v20 = vmul.f32 0.5, %v9119_v47 }
0x1e8d   :  { %v3641_v45 = vmul.f32 %v3633_v44, %v9122_v14  ;;  %v3635_v56 = vmul.f32 %v3627_v18, %v3610_v52  ;;  %7481 = vtanh.f32 %v3655_v21  ;;  %v3618_v38 = vmul.f32 0.5, %v3608_v0  ;;  %v6158_v21 = vld [vmem:[#allocation2 + $0x1] ss:$0 sm:$0xff] }
0x1e8e   :  { %v3642_v22 = vmul.f32 %v3634_v55, %v3608_v0  ;;  %v3648_v57 = vadd.f32 %v3640_v58, %v9119_v47  ;;  %v3617_v35 = vmul.f32 0.5, %v9122_v14  ;;  %v3619_v33 = vmul.f32 0.5, %v3610_v52 }
0x1e8f   :  { %v3643_v23 = vmul.f32 %v3635_v56, %v3610_v52  ;;  %v3649_v13 = vadd.f32 %v3641_v45, %v9122_v14 }
0x1e90   :  { %v3650_v6 = vadd.f32 %v3642_v22, %v3608_v0  ;;  %v3656_v62 = vmul.f32 0.7978846, %v3648_v57 }
0x1e91   :  { %v3651_v9 = vadd.f32 %v3643_v23, %v3610_v52  ;;  %v3657_v1 = vmul.f32 0.7978846, %v3649_v13 }
0x1e92   :  { %v3658_v25 = vmul.f32 0.7978846, %v3650_v6  ;;  %7483 = vtanh.f32 %v3656_v62 }
0x1e93   :  { %v3659_v46 = vmul.f32 0.7978846, %v3651_v9  ;;  %7485 = vtanh.f32 %v3657_v1 }
0x1e94   :  { %v7476_v26 = vpop.eup %7475  ;;  %7487 = vtanh.f32 %v3658_v25 }
0x1e95   :  { %v7478_v34 = vpop.eup %7477  ;;  %v3668_v30 = vadd.f32 1.0, %v7476_v26  ;;  %7489 = vtanh.f32 %v3659_v46 }
0x1e96   :  { %v7480_v36 = vpop.eup %7479  ;;  %v3669_v31 = vadd.f32 1.0, %v7478_v34 }
0x1e97   :  { %v7482_v48 = vpop.eup %7481  ;;  %v3670_v41 = vadd.f32 1.0, %v7480_v36  ;;  %v3676_v60 = vmul.f32 %v3668_v30, %v3612_v43 }
0x1e98   :  { %v3671_v37 = vadd.f32 1.0, %v7482_v48  ;;  %v3677_v27 = vmul.f32 %v3669_v31, %v3613_v51 }
0x1e99   :  { %v3678_v53 = vmul.f32 %v3670_v41, %v3614_v40 }
0x1e9a   :  { %v3679_v50 = vmul.f32 %v3671_v37, %v3615_v54 }
0x1e9b   :  { %v3684_v11 = vpack.c.bf16 %v3678_v53, %v3676_v60  ;;  %v7211_v53 = vld [vmem:[%s9505_s3] sm:$0xff]  }
0x1e9c   :  { %v7484_v4 = vpop.eup %7483  ;;  %v3685_v12 = vpack.c.bf16 %v3679_v50, %v3677_v27  ;;  %6751 = vmatprep.subr.bf16.mxu1 %v7211_v53  ;;  %v7212_v27 = vld [vmem:[%s9505_s3 + $0x8] sm:$0xff]   ;;  %v7213_v50 = vld [vmem:[%s9505_s3 + $0x10] sm:$0xff]  }
0x1e9d   :  { %v7486_v28 = vpop.eup %7485  ;;  %v3672_v29 = vadd.f32 1.0, %v7484_v4  ;;  %6752 = vmatpush3.bf16.msra.mxu1 %v7211_v53  ;;  %v7215_v4 = vld [vmem:[%s9505_s3 + $0x20] sm:$0xff]  }
0x1e9e   :  { %v7488_v59 = vpop.eup %7487  ;;  %3822 = vmatprep.mubr.bf16.mxu0 %v3685_v12  ;;  %v3673_v32 = vadd.f32 1.0, %v7486_v28  ;;  %6753 = vmatprep.subr.bf16.mxu1 %v7212_v27  ;;  %v7216_v12 = vld [vmem:[%s9505_s3 + $0x28] sm:$0xff]   ;;  %v7217_v28 = vld [vmem:[%s9505_s3 + $0x30] sm:$0xff]  }
0x1e9f   :  { %v7490_v3 = vpop.eup %7489  ;;  %3823 = vmatmul.mubr.bf16.vlgmr.msra.gmra.mrb[52].mxu0 %v3684_v11  ;;  %v3674_v61 = vadd.f32 1.0, %v7488_v59  ;;  %v3680_v24 = vmul.f32 %v3672_v29, %v3616_v20  ;;  %v7214_v11 = vld [vmem:[%s9505_s3 + $0x18] sm:$0xff]  }
0x1ea0   :  { %v3675_v10 = vadd.f32 1.0, %v7490_v3  ;;  %v3681_v16 = vmul.f32 %v3673_v32, %v3617_v35  ;;  %v7218_v29 = vld [vmem:[%s9505_s3 + $0x38] sm:$0xff]  }
0x1ea1   :  { %v3682_v49 = vmul.f32 %v3674_v61, %v3618_v38  ;;  %6754 = vmatpush3.bf16.msra.mxu1 %v7212_v27  ;;  %v7219_v27 = vld [vmem:[#allocation12] ss:$12 sps:$4 sm:$0xff]  }
0x1ea2   :  { %v3683_v2 = vmul.f32 %v3675_v10, %v3619_v33  ;;  %6755 = vmatprep.subr.bf16.mxu1 %v7213_v50 }
0x1ea3   :  { %v3686_v42 = vpack.c.bf16 %v3682_v49, %v3680_v24 }
0x1ea4   :  { %v3687_v44 = vpack.c.bf16 %v3683_v2, %v3681_v16 }
0x1ea5   :  { %6756 = vmatpush3.bf16.msra.mxu1 %v7213_v50  ;;  %v7221_v50 = vld [vmem:[#allocation12 + $0x4] ss:$12 sps:$4 sm:$0xff]  }
0x1ea6   :  { %3830 = vmatprep.mubr.bf16.mxu0 %v3687_v44  ;;  %6757 = vmatprep.subr.bf16.mxu1 %v7214_v11 }
0x1ea7   :  { %3831 = vmatmul.mubr.bf16.gmra.mrb[56].mxu0 %v3686_v42  ;;  %v6175_v42 = vld [vmem:[#allocation4 + $0x1] ss:$0 sm:$0xff]  ;;  %4357 = vmatprep.subr.bf16.mxu0 %v7221_v50 }
0x1ea8   :  { %4389 = vmatprep.mubr.bf16.mxu0 %v8086_v39  ;;  %4358 = vmatpush1.bf16.msra.mxu0 %v7219_v27 }
0x1ea9   :  { %6758 = vmatpush3.bf16.msra.mxu1 %v7214_v11  ;;  %v7224_v11 = vld [vmem:[#allocation12 + $0x1c] ss:$12 sps:$4 sm:$0xff]  }
0x1eaa   :  { %6759 = vmatprep.subr.bf16.mxu1 %v7215_v4  ;;  %4359 = vmatprep.subr.bf16.mxu0 %v7224_v11 }
0x1ead   :  { %6760 = vmatpush3.bf16.msra.mxu1 %v7215_v4  ;;  %v7225_v4 = vld [vmem:[#allocation12 + $0x8] ss:$12 sps:$4 sm:$0xff]  }
0x1eae   :  { %6761 = vmatprep.subr.bf16.mxu1 %v7216_v12 }
0x1eb1   :  { %6762 = vmatpush3.bf16.msra.mxu1 %v7216_v12  ;;  %v7222_v12 = vld [vmem:[#allocation12 + $0x18] ss:$12 sps:$4 sm:$0xff]  }
0x1eb2   :  { %6763 = vmatprep.subr.bf16.mxu1 %v7217_v28  ;;  %4360 = vmatpush1.bf16.msra.mxu0 %v7222_v12 }
0x1eb5   :  { %6764 = vmatpush3.bf16.msra.mxu1 %v7217_v28 }
0x1eb6   :  { %6765 = vmatprep.subr.bf16.mxu1 %v7218_v29 }
0x1eb9   :  { %6766 = vmatpush3.bf16.msra.mxu1 %v7218_v29 }
0x1eba   :  { %6771 = vmatprep.subr.bf16.mxu1 %v7225_v4 }
0x1f72   :  { %v6441_v18 = vpop.f32.mrb[52].mxu0 }
0x1f73   :  { %v6442_v58 = vpop.f32.mrb[53].mxu0 }
0x1f74   :  { %v6443_v47 = vadd.f32 %v6442_v58, %v6441_v18  ;;  %v6444_v0 = vpop.f32.mrb[54].mxu0 }
0x1f75   :  { %v6445_v55 = vpop.f32.mrb[55].mxu0 }
0x1f76   :  { %v3825_v45 = vadd.f32 %v6443_v47, %v6158_v21  ;;  %v6446_v14 = vadd.f32 %v6445_v55, %v6444_v0  ;;  %v6176_v47 = vld [vmem:[#allocation6 + $0x1] ss:$0 sm:$0xff] }
0x1f78   :  { %v3828_v52 = vadd.f32 %v6446_v14, %v6158_v21  ;;  %v3839_v56 = vadd.f32 %v3825_v45, %v9067_v63 }
0x1f7a   :  { %3843 = vadd.xlane.f32.xlu0 %v3839_v56  ;;  %v6447_v22 = vpop.f32.mrb[56].mxu0  ;;  %v3840_v57 = vadd.f32 %v3828_v52, %v9069_v5 }
0x1f7b   :  { %v6448_v23 = vpop.f32.mrb[57].mxu0 }
0x1f7c   :  { %v6449_v13 = vadd.f32 %v6448_v23, %v6447_v22  ;;  %3845 = vadd.xlane.f32.xlu1 %v3840_v57  ;;  %v6450_v6 = vpop.f32.mrb[58].mxu0 }
0x1f7d   :  { %v6451_v62 = vpop.f32.mrb[59].mxu0 }
0x1f7e   :  { %v3833_v9 = vadd.f32 %v6449_v13, %v6158_v21  ;;  %v6452_v1 = vadd.f32 %v6451_v62, %v6450_v6 }
0x1f80   :  { %v3836_v25 = vadd.f32 %v6452_v1, %v6158_v21  ;;  %v3841_v46 = vadd.f32 %v3833_v9, %v9076_v8  ;;  %v6177_v1 = vld [vmem:[#allocation7] ss:$0 sm:$0xff] }
0x1f82   :  { %3847 = vadd.xlane.f32.xlu0 %v3841_v46  ;;  %v3842_v26 = vadd.f32 %v3836_v25, %v9074_v7 }
0x1f84   :  { %3849 = vadd.xlane.f32.xlu1 %v3842_v26 }
0x2007   :  { %v3844_v34 = vpop.xlane.xlu0 %3843 }
0x2008   :  { %v3851_v63 = vmul.f32 0.0078125, %v3844_v34 }
0x2009   :  { %v3846_v30 = vpop.xlane.xlu1 %3845 }
0x200a   :  { %v3855_v36 = vsub.f32 %v3839_v56, %v3851_v63  ;;  %v3852_v31 = vmul.f32 0.0078125, %v3846_v30  ;;  %v4033_v30 = vld [vmem:[%s9506_s11] sm:$0xff] }
0x200c   :  { %v3856_v5 = vsub.f32 %v3840_v57, %v3852_v31  ;;  %v3859_v48 = vmul.f32 %v3855_v36, %v3855_v36 }
0x200e   :  { %3863 = vadd.xlane.f32.xlu0 %v3859_v48  ;;  %v3860_v43 = vmul.f32 %v3856_v5, %v3856_v5 }
0x200f   :  { %v3848_v40 = vpop.xlane.xlu0 %3847 }
0x2010   :  { %v3853_v41 = vmul.f32 0.0078125, %v3848_v40  ;;  %3865 = vadd.xlane.f32.xlu1 %v3860_v43  ;;  %v4034_v43 = vld [vmem:[%s9506_s11 + $0x8] sm:$0xff] }
0x2011   :  { %v3850_v8 = vpop.xlane.xlu1 %3849 }
0x2012   :  { %v3857_v51 = vsub.f32 %v3841_v46, %v3853_v41  ;;  %v3854_v7 = vmul.f32 0.0078125, %v3850_v8 }
0x2014   :  { %v3858_v54 = vsub.f32 %v3842_v26, %v3854_v7  ;;  %v3861_v37 = vmul.f32 %v3857_v51, %v3857_v51 }
0x2016   :  { %3867 = vadd.xlane.f32.xlu0 %v3861_v37  ;;  %v3862_v60 = vmul.f32 %v3858_v54, %v3858_v54  ;;  %v4036_v37 = vld [vmem:[%s9506_s11 + $0x18] sm:$0xff] }
0x2018   :  { %3869 = vadd.xlane.f32.xlu1 %v3862_v60 }
0x209b   :  { %v3864_v59 = vpop.xlane.xlu0 %3863 }
0x209c   :  { %v3871_v32 = vmul.f32 0.0078125, %v3864_v59 }
0x209d   :  { %v3866_v3 = vpop.xlane.xlu1 %3865 }
0x209e   :  { %v3875_v20 = vadd.f32 1e-12, %v3871_v32  ;;  %v3872_v38 = vmul.f32 0.0078125, %v3866_v3 }
0x20a0   :  { %7491 = vrsqrt.f32 %v3875_v20  ;;  %v3876_v61 = vadd.f32 1e-12, %v3872_v38 }
0x20a2   :  { %7493 = vrsqrt.f32 %v3876_v61 }
0x20a3   :  { %v3868_v35 = vpop.xlane.xlu0 %3867 }
0x20a4   :  { %v3873_v33 = vmul.f32 0.0078125, %v3868_v35 }
0x20a5   :  { %v3870_v10 = vpop.xlane.xlu1 %3869 }
0x20a6   :  { %v3877_v24 = vadd.f32 1e-12, %v3873_v33  ;;  %v3874_v49 = vmul.f32 0.0078125, %v3870_v10 }
0x20a8   :  { %7495 = vrsqrt.f32 %v3877_v24  ;;  %v3878_v16 = vadd.f32 1e-12, %v3874_v49 }
0x20aa   :  { %v7492_v2 = vpop.eup %7491  ;;  %7497 = vrsqrt.f32 %v3878_v16 }
0x20ab   :  { %v3883_v44 = vmul.f32 %v7492_v2, %v3855_v36 }
0x20ac   :  { %v7494_v18 = vpop.eup %7493 }
0x20ad   :  { %v3884_v21 = vmul.f32 %v7494_v18, %v3856_v5  ;;  %v3893_v58 = vmul.f32 %v6175_v42, %v3883_v44  ;;  %v7228_v44 = vld [vmem:[#allocation12 + $0x34] ss:$12 sps:$4 sm:$0xff]  }
0x20ae   :  { %v7229_v18 = vld [vmem:[#allocation12 + $0x20] ss:$12 sps:$4 sm:$0xff]   ;;  %4361 = vmatprep.subr.bf16.mxu0 %v7228_v44 }
0x20af   :  { %v3894_v0 = vmul.f32 %v6175_v42, %v3884_v21  ;;  %v3903_v55 = vadd.f32 %v6176_v47, %v3893_v58  ;;  %v7226_v21 = vld [vmem:[#allocation12 + $0x30] ss:$12 sps:$4 sm:$0xff]   ;;  %v7232_v58 = vld [vmem:[#allocation12 + $0x4c] ss:$12 sps:$4 sm:$0xff]  }
0x20b0   :  { %4362 = vmatpush1.bf16.msra.mxu0 %v7226_v21 }
0x20b1   :  { %v3904_v45 = vadd.f32 %v6176_v47, %v3894_v0  ;;  %v7230_v0 = vld [vmem:[#allocation12 + $0x48] ss:$12 sps:$4 sm:$0xff]   ;;  %4363 = vmatprep.subr.bf16.mxu0 %v7232_v58 }
0x20b2   :  { %v7496_v14 = vpop.eup %7495 }
0x20b3   :  { %v3885_v52 = vmul.f32 %v7496_v14, %v3857_v51  ;;  %v3923_v56 = vpack.c.bf16 %v3904_v45, %v3903_v55  ;;  %v4035_v51 = vld [vmem:[%s9506_s11 + $0x10] sm:$0xff]  ;;  %v7237_v45 = vld [vmem:[#allocation12 + $0x50] ss:$12 sps:$4 sm:$0xff]   ;;  %v7234_v14 = vld [vmem:[#allocation12 + $0x60] ss:$12 sps:$4 sm:$0xff]  }
0x20b4   :  { %v7498_v22 = vpop.eup %7497  ;;  %4364 = vmatpush1.bf16.msra.mxu0 %v7230_v0  ;;  %v7236_v55 = vld [vmem:[#allocation12 + $0x64] ss:$12 sps:$4 sm:$0xff]  }
0x20b5   :  { %v3886_v57 = vmul.f32 %v7498_v22, %v3858_v54  ;;  %6767 = vmatprep.mubr.bf16.mxu1 %v3923_v56  ;;  %v3895_v23 = vmul.f32 %v6175_v42, %v3885_v52  ;;  %4365 = vmatprep.subr.bf16.mxu0 %v7236_v55  ;;  %v7240_v52 = vld [vmem:[#allocation12 + $0x7c] ss:$12 sps:$4 sm:$0xff]   ;;  %v7238_v22 = vld [vmem:[#allocation12 + $0x78] ss:$12 sps:$4 sm:$0xff]  }
0x20b6   :  { %v7241_v56 = vld [vmem:[#allocation12 + $0x68] ss:$12 sps:$4 sm:$0xff]  }
0x20b7   :  { %v3896_v13 = vmul.f32 %v6175_v42, %v3886_v57  ;;  %v3905_v6 = vadd.f32 %v6176_v47, %v3895_v23  ;;  %v7242_v57 = vld [vmem:[#allocation12 + $0x90] ss:$12 sps:$4 sm:$0xff]   ;;  %v7244_v23 = vld [vmem:[#allocation12 + $0x94] ss:$12 sps:$4 sm:$0xff]  }
0x20b8   :  { %4366 = vmatpush1.bf16.msra.mxu0 %v7234_v14 }
0x20b9   :  { %v3906_v62 = vadd.f32 %v6176_v47, %v3896_v13  ;;  %v7233_v47 = vld [vmem:[#allocation12 + $0x38] ss:$12 sps:$4 sm:$0xff]   ;;  %4367 = vmatprep.subr.bf16.mxu0 %v7240_v52  ;;  %v7245_v13 = vld [vmem:[#allocation12 + $0x80] ss:$12 sps:$4 sm:$0xff]  }
0x20bb   :  { %v3924_v9 = vpack.c.bf16 %v3906_v62, %v3905_v6  ;;  %v7248_v6 = vld [vmem:[#allocation12 + $0xac] ss:$12 sps:$4 sm:$0xff]  }
0x20bc   :  { %4368 = vmatpush1.bf16.msra.mxu0 %v7238_v22  ;;  %v7249_v62 = vld [vmem:[#allocation12 + $0x98] ss:$12 sps:$4 sm:$0xff]  }
0x20bd   :  { %6768 = vmatmul.mubr.bf16.vlgmr.msra.gmra.mrb[68].mxu1 %v3924_v9  ;;  %4369 = vmatprep.subr.bf16.mxu0 %v7244_v23  ;;  %v7246_v9 = vld [vmem:[#allocation12 + $0xa8] ss:$12 sps:$4 sm:$0xff]  }
0x20be   :  { %6772 = vmatpush3.bf16.msra.mxu1 %v7225_v4 }
0x20bf   :  { %6773 = vmatprep.subr.bf16.mxu1 %v7229_v18 }
0x20c0   :  { %4370 = vmatpush1.bf16.msra.mxu0 %v7242_v57 }
0x20c1   :  { %4371 = vmatprep.subr.bf16.mxu0 %v7248_v6 }
0x20c2   :  { %6774 = vmatpush3.bf16.msra.mxu1 %v7229_v18 }
0x20c3   :  { %6775 = vmatprep.subr.bf16.mxu1 %v7233_v47 }
0x20c4   :  { %4372 = vmatpush1.bf16.msra.mxu0 %v7246_v9 }
0x20c6   :  { %6776 = vmatpush3.bf16.msra.mxu1 %v7233_v47 }
0x20c7   :  { %6777 = vmatprep.subr.bf16.mxu1 %v7237_v45 }
0x20ca   :  { %6778 = vmatpush3.bf16.msra.mxu1 %v7237_v45 }
0x20cb   :  { %6779 = vmatprep.subr.bf16.mxu1 %v7241_v56 }
0x20ce   :  { %6780 = vmatpush3.bf16.msra.mxu1 %v7241_v56 }
0x20cf   :  { %6781 = vmatprep.subr.bf16.mxu1 %v7245_v13 }
0x20d2   :  { %6782 = vmatpush3.bf16.msra.mxu1 %v7245_v13 }
0x20d3   :  { %6783 = vmatprep.subr.bf16.mxu1 %v7249_v62 }
0x20d6   :  { %6784 = vmatpush3.bf16.msra.mxu1 %v7249_v62 }
0x2190   :  { %v6769_v25 = vpop.f32.mrb[68].mxu1 }
0x2191   :  { %v4014_v46 = vpop.f32.mrb[69].mxu1  ;;  %v4023_v26 = vadd.f32 %v6769_v25, %v6177_v1 }
0x2192   :  { %v4015_v34 = vadd.f32 %v6177_v1, %v4014_v46  ;;  %v6770_v63 = vpop.f32.mrb[70].mxu1 }
0x2193   :  { %v4017_v36 = vpop.f32.mrb[71].mxu1  ;;  %v4026_v5 = vadd.f32 %v6770_v63, %v6177_v1  ;;  %v4031_v40 = vmax.f32 %v4023_v26, 0.0 }
0x2194   :  { %v4029_v31 = vmax.f32 %v4015_v34, 0.0  ;;  %v4018_v48 = vadd.f32 %v6177_v1, %v4017_v36  ;;  %v7250_v1 = vld [vmem:[#allocation12 + $0xb0] ss:$12 sps:$4 sm:$0xff]  }
0x2195   :  { %v4032_v7 = vmax.f32 %v4026_v5, 0.0  ;;  %v4039_v60 = vadd.f32 %v4035_v51, %v4031_v40  ;;  %6785 = vmatprep.subr.bf16.mxu1 %v7250_v1 }
0x2196   :  { %v4037_v41 = vadd.f32 %v4033_v30, %v4029_v31  ;;  %v4030_v8 = vmax.f32 %v4018_v48, 0.0  ;;  %6786 = vmatpush3.bf16.msra.mxu1 %v7250_v1 }
0x2197   :  { %v4040_v53 = vadd.f32 %v4036_v37, %v4032_v7 }
0x2198   :  { %v4038_v54 = vadd.f32 %v4034_v43, %v4030_v8  ;;  %4043 = vadd.xlane.f32.xlu0 %v4037_v41  ;;  %v6186_v8 = vld [vmem:[#allocation9] ss:$0 sm:$0xff] }
0x219a   :  { %4045 = vadd.xlane.f32.xlu1 %v4038_v54 }
0x219c   :  { %4047 = vadd.xlane.f32.xlu0 %v4039_v60 }
0x219e   :  { %4049 = vadd.xlane.f32.xlu1 %v4040_v53 }
0x2225   :  { %v4044_v28 = vpop.xlane.xlu0 %4043 }
0x2226   :  { %v4051_v29 = vmul.f32 0.0078125, %v4044_v28 }
0x2227   :  { %v4046_v59 = vpop.xlane.xlu1 %4045 }
0x2228   :  { %v9158_v32 = vsub.f32 %v4037_v41, %v4051_v29  ;;  %v4052_v3 = vmul.f32 0.0078125, %v4046_v59 }
0x2229   :  { %v4048_v20 = vpop.xlane.xlu0 %4047 }
0x222a   :  { %v9160_v38 = vsub.f32 %v4038_v54, %v4052_v3  ;;  %v4053_v61 = vmul.f32 0.0078125, %v4048_v20  ;;  %v4059_v35 = vmul.f32 %v9158_v32, %v9158_v32 }
0x222b   :  { %v4050_v33 = vpop.xlane.xlu1 %4049 }
0x222c   :  { %v9164_v10 = vsub.f32 %v4039_v60, %v4053_v61  ;;  %v4054_v24 = vmul.f32 0.0078125, %v4050_v33  ;;  %4063 = vadd.xlane.f32.xlu0 %v4059_v35  ;;  %v4060_v49 = vmul.f32 %v9160_v38, %v9160_v38  ;;  %v4139_v61 = vld [vmem:[#allocation13] sm:$0x7] }
0x222d   :  { %v4217_v35 = vrot.slane %v4139_v61, %v8437_v15  ;;  %v4225_v44 = vrot.slane %v4139_v61, %v8443_v19 }
0x222e   :  { %v9168_v16 = vsub.f32 %v4040_v53, %v4054_v24  ;;  %4065 = vadd.xlane.f32.xlu1 %v4060_v49  ;;  %v4061_v2 = vmul.f32 %v9164_v10, %v9164_v10  ;;  %v6187_v53 = vld [vmem:[#allocation10] ss:$0 sm:$0xff] }
0x2230   :  { %4067 = vadd.xlane.f32.xlu0 %v4061_v2  ;;  %v4062_v42 = vmul.f32 %v9168_v16, %v9168_v16 }
0x2232   :  { %4069 = vadd.xlane.f32.xlu1 %v4062_v42 }
0x22b9   :  { %v4064_v25 = vpop.xlane.xlu0 %4063 }
0x22ba   :  { %v4071_v46 = vmul.f32 0.0078125, %v4064_v25 }
0x22bb   :  { %v4066_v26 = vpop.xlane.xlu1 %4065 }
0x22bc   :  { %v4075_v34 = vadd.f32 1e-05, %v4071_v46  ;;  %v4072_v63 = vmul.f32 0.0078125, %v4066_v26 }
0x22bd   :  { %v4068_v30 = vpop.xlane.xlu0 %4067 }
0x22be   :  { %7499 = vrsqrt.f32 %v4075_v34  ;;  %v4076_v36 = vadd.f32 1e-05, %v4072_v63  ;;  %v4073_v31 = vmul.f32 0.0078125, %v4068_v30 }
0x22bf   :  { %v4070_v5 = vpop.xlane.xlu1 %4069 }
0x22c0   :  { %7501 = vrsqrt.f32 %v4076_v36  ;;  %v4077_v48 = vadd.f32 1e-05, %v4073_v31  ;;  %v4074_v43 = vmul.f32 0.0078125, %v4070_v5 }
0x22c2   :  { %7503 = vrsqrt.f32 %v4077_v48  ;;  %v4078_v40 = vadd.f32 1e-05, %v4074_v43  ;;  %v9223_v48 = vld [vmem:[%s9497_s28] sm:$0xff] }
0x22c4   :  { %7505 = vrsqrt.f32 %v4078_v40 }
0x22c8   :  { %v7500_v41 = vpop.eup %7499 }
0x22c9   :  { %v4083_v51 = vmul.f32 %v7500_v41, %v9158_v32 }
0x22ca   :  { %v7502_v7 = vpop.eup %7501 }
0x22cb   :  { %v4093_v54 = vmul.f32 %v6186_v8, %v4083_v51  ;;  %v4084_v37 = vmul.f32 %v7502_v7, %v9160_v38  ;;  %v9231_v7 = vld [vmem:[%s9497_s28 + $0x8] sm:$0xff] }
0x22cc   :  { %v7504_v60 = vpop.eup %7503 }
0x22cd   :  { %v4094_v27 = vmul.f32 %v6186_v8, %v4084_v37  ;;  %v4085_v50 = vmul.f32 %v7504_v60, %v9164_v10  ;;  %v9178_v12 = vadd.f32 %v6187_v53, %v4093_v54  ;;  %v4221_v10 = vrot.slane %v4139_v61, %v8440_v17  ;;  %v9236_v60 = vld [vmem:[%s9497_s28 + $0x18] sm:$0xff] }
0x22ce   :  { %v7506_v11 = vpop.eup %7505 }
0x22cf   :  { %v4086_v4 = vmul.f32 %v7506_v11, %v9168_v16  ;;  %v9180_v28 = vadd.f32 %v6187_v53, %v4094_v27  ;;  %v4095_v29 = vmul.f32 %v6186_v8, %v4085_v50 }
0x22d1   :  { %v4211_v59 = vpack.c.bf16 %v9180_v28, %v9178_v12  ;;  %v4096_v32 = vmul.f32 %v6186_v8, %v4086_v4  ;;  %v9184_v3 = vadd.f32 %v6187_v53, %v4095_v29  ;;  %v9227_v8 = vld [vmem:[%s9497_s28 + $0x10] sm:$0xff] }
0x22d3   :  { %4390 = vmatmul.mubr.bf16.vlgmr.msra.gmra.mrb[60].mxu0 %v4211_v59  ;;  %6787 = vmatprep.mubr.bf16.mxu1 %v4211_v59  ;;  %v9186_v20 = vadd.f32 %v6187_v53, %v4096_v32 }
0x22d4   :  { %4399 = vmatprep.mubr.bf16.mxu0 %v8086_v39 }
0x22d5   :  { %v4212_v38 = vpack.c.bf16 %v9186_v20, %v9184_v3 }
0x22d7   :  { %6788 = vmatmul.mubr.bf16.vlgmr.msra.gmra.mrb[72].mxu1 %v4212_v38 }
0x22db   :  { %4400 = vmatmul.mubr.bf16.gmra.mrb[64].mxu0 %v4212_v38 }
0x23a6   :  { %v4391_v33 = vpop.f32.mrb[60].mxu0 }
0x23a7   :  { %v4393_v24 = vpop.f32.mrb[61].mxu0  ;;  %v4392_v16 = vadd.f32 %v4391_v33, %v4217_v35 }
0x23a8   :  { %v4395_v49 = vpop.f32.mrb[62].mxu0  ;;  %v4394_v18 = vadd.f32 %v4393_v24, %v4221_v10 }
0x23a9   :  { %v4396_v2 = vadd.f32 %v4395_v49, %v4217_v35  ;;  %v4397_v42 = vpop.f32.mrb[63].mxu0 }
0x23aa   :  { %v4398_v21 = vadd.f32 %v4397_v42, %v4221_v10  ;;  %v6789_v58 = vpop.f32.mrb[72].mxu1 }
0x23ab   :  { %v9194_v47 = vpack.c.bf16 %v4396_v2, %v4392_v16  ;;  %v4444_v0 = vpop.f32.mrb[73].mxu1  ;;  %v4453_v14 = vadd.f32 %v6789_v58, %v4225_v44 }
0x23ac   :  { %v9196_v55 = vpack.c.bf16 %v4398_v21, %v4394_v18  ;;  %v6790_v45 = vpop.f32.mrb[74].mxu1  ;;  %v4445_v22 = vadd.f32 %v4444_v0, %v4225_v44 }
0x23ad   :  { %v4456_v52 = vadd.f32 %v6790_v45, %v4225_v44  ;;  %v4447_v56 = vpop.f32.mrb[75].mxu1  ;;  %6795 = vmatprep.mubr.msk.bf16.mxu0 %vm794_vm0, %v9194_v47 }
0x23ae   :  { %v4448_v57 = vadd.f32 %v4447_v56, %v4225_v44  ;;  %v4401_v23 = vpop.f32.mrb[64].mxu0  ;;  %6891 = vmatprep.subr.msk.bf16.mxu0 %vm794_vm0, %v9196_v55  ;;  %v4472_v19 = vsel %vm794_vm0, %v9196_v55, 0 }
0x23af   :  { %v9204_v13 = vpack.c.bf16 %v4456_v52, %v4453_v14  ;;  %v4403_v6 = vpop.f32.mrb[65].mxu0  ;;  %6792 = vmatpush3.bf16.xpose.msra.mxu0 %v4472_v19  ;;  %v4402_v1 = vadd.f32 %v4401_v23, %v4217_v35 }
0x23b0   :  { %v9206_v62 = vpack.c.bf16 %v4448_v57, %v4445_v22  ;;  %v4405_v9 = vpop.f32.mrb[66].mxu0  ;;  %v4404_v26 = vadd.f32 %v4403_v6, %v4221_v10 }
0x23b1   :  { %v4406_v25 = vadd.f32 %v4405_v9, %v4217_v35  ;;  %v4407_v46 = vpop.f32.mrb[67].mxu0 }
0x23b2   :  { %v4408_v34 = vadd.f32 %v4407_v46, %v4221_v10  ;;  %6799 = vmatprep.subr.bf16.mxu1 %v9206_v62 }
0x23b3   :  { %v9209_v63 = vpack.c.bf16 %v4406_v25, %v4402_v1  ;;  %6800 = vmatpush3.bf16.msra.mxu1 %v9206_v62 }
0x23b4   :  { %v9212_v30 = vpack.c.bf16 %v4408_v34, %v4404_v26  ;;  %6801 = vmatprep.subr.bf16.mxu1 %v9204_v13 }
0x23b6   :  { %6892 = vmatprep.subr.msk.bf16.mxu0 %vm794_vm0, %v9212_v30  ;;  %v4475_v36 = vsel %vm794_vm0, %v9212_v30, 0 }
0x23b7   :  { %6794 = vmatpush3.bf16.xpose.msra.mxu0 %v4475_v36  ;;  %6802 = vmatpush3.bf16.msra.mxu1 %v9204_v13 }
0x23be   :  { %6796 = vmatmul.mubr.msk.bf16.vlgmr.msra.gmra.mrb[68].mxu0 %vm794_vm0, %v9209_v63 }
0x2491   :  { %v6797_v31 = vpop.f32.mrb[68].mxu0 }
0x2492   :  { %v4511_v5 = vpop.f32.mrb[69].mxu0  ;;  %v4520_v51 = vadd.f32 %v9227_v8, %v6797_v31 }
0x2493   :  { %v4512_v43 = vadd.f32 %v9223_v48, %v4511_v5  ;;  %v6798_v40 = vpop.f32.mrb[70].mxu0 }
0x2494   :  { %v4514_v41 = vpop.f32.mrb[71].mxu0  ;;  %v4523_v53 = vadd.f32 %v9236_v60, %v6798_v40  ;;  %v4532_v50 = vsel %vm794_vm0, %v4520_v51, -inf }
0x2495   :  { %v4515_v54 = vadd.f32 %v9231_v7, %v4514_v41  ;;  %v4526_v37 = vsel %vm794_vm0, %v4512_v43, -inf }
0x2496   :  { %4527 = vmax.xlane.f32.xlu0 %v4526_v37  ;;  %v4535_v11 = vsel %vm794_vm0, %v4523_v53, -inf }
0x2497   :  { %v4529_v27 = vsel %vm794_vm0, %v4515_v54, -inf }
0x2498   :  { %4530 = vmax.xlane.f32.xlu1 %v4529_v27 }
0x249a   :  { %4533 = vmax.xlane.f32.xlu0 %v4532_v50 }
0x249c   :  { %4536 = vmax.xlane.f32.xlu1 %v4535_v11 }
0x2523   :  { %v4528_v4 = vpop.xlane.xlu0 %4527 }
0x2524   :  { %v4538_v29 = vsub.f32 %v4512_v43, %v4528_v4 }
0x2525   :  { %v4531_v59 = vpop.xlane.xlu1 %4530 }
0x2526   :  { %v4539_v32 = vsub.f32 %v4515_v54, %v4531_v59  ;;  %v4542_v33 = vmul.f32 1.442695, %v4538_v29 }
0x2527   :  { %v4534_v38 = vpop.xlane.xlu0 %4533 }
0x2528   :  { %v4544_v61 = vmul.f32 1.442695, %v4539_v32  ;;  %v4540_v35 = vsub.f32 %v4520_v51, %v4534_v38 }
0x2529   :  { %v4537_v10 = vpop.xlane.xlu1 %4536 }
0x252a   :  { %7507 = vpow2.f32 %v4544_v61  ;;  %v4546_v24 = vmul.f32 1.442695, %v4540_v35  ;;  %v4541_v49 = vsub.f32 %v4523_v53, %v4537_v10 }
0x252c   :  { %7509 = vpow2.f32 %v4546_v24  ;;  %v4548_v16 = vmul.f32 1.442695, %v4541_v49 }
0x252d   :  { %7511 = vpow2.f32 %v4542_v33 }
0x252e   :  { %7513 = vpow2.f32 %v4548_v16 }
0x2534   :  { %v7508_v2 = vpop.eup %7507 }
0x2535   :  { %v4553_v42 = vsel %vm794_vm0, %v7508_v2, 0.0 }
0x2536   :  { %v7510_v44 = vpop.eup %7509  ;;  %4554 = vadd.xlane.f32.xlu1 %v4553_v42 }
0x2537   :  { %v7512_v18 = vpop.eup %7511  ;;  %v4556_v21 = vsel %vm794_vm0, %v7510_v44, 0.0 }
0x2538   :  { %v7514_v58 = vpop.eup %7513  ;;  %4557 = vadd.xlane.f32.xlu0 %v4556_v21  ;;  %v4550_v45 = vsel %vm794_vm0, %v7512_v18, 0.0 }
0x2539   :  { %v4559_v0 = vsel %vm794_vm0, %v7514_v58, 0.0 }
0x253a   :  { %4560 = vadd.xlane.f32.xlu1 %v4559_v0 }
0x253c   :  { %4551 = vadd.xlane.f32.xlu0 %v4550_v45 }
0x254b   :  { %4637 = vrot.lane.b32.xlu1 %v9212_v30, %s8087_s12 }
0x254f   :  { %4629 = vrot.lane.b32.xlu1 %v9194_v47, %s8087_s12 }
0x2552   :  { %4635 = vrot.lane.b32.xlu0 %v9196_v55, %s8087_s12 }
0x2553   :  { %4631 = vrot.lane.b32.xlu1 %v9209_v63, %s8087_s12 }
0x25c3   :  { %v4555_v14 = vpop.xlane.xlu1 %4554 }
0x25c4   :  { %7515 = vrcp.f32 %v4555_v14 }
0x25c5   :  { %v4558_v52 = vpop.xlane.xlu0 %4557 }
0x25c7   :  { %v4561_v56 = vpop.xlane.xlu1 %4560 }
0x25c8   :  { %7517 = vrcp.f32 %v4561_v56 }
0x25c9   :  { %7519 = vrcp.f32 %v4558_v52  ;;  %v4552_v22 = vpop.xlane.xlu0 %4551 }
0x25ca   :  { %7521 = vrcp.f32 %v4552_v22 }
0x25cb   :  { %v4638_v25 = vpop.permute.xlu1 %4637 }
0x25cc   :  { %v4649_v40 = vsel %vm794_vm0, %v4638_v25, 0 }
0x25cd   :  { %v4636_v57 = vpop.permute.xlu0 %4635 }
0x25ce   :  { %6893 = vmatprep.subr.msk.bf16.mxu1 %vm794_vm0, %v4636_v57  ;;  %v7516_v23 = vpop.eup %7515  ;;  %v4646_v5 = vsel %vm794_vm0, %v4636_v57, 0 }
0x25cf   :  { %v4567_v26 = vmul.f32 %v7516_v23, %v7508_v2  ;;  %v4630_v43 = vpop.permute.xlu1 %4629 }
0x25d2   :  { %v7518_v19 = vpop.eup %7517 }
0x25d3   :  { %v7520_v6 = vpop.eup %7519  ;;  %v4569_v1 = vmul.f32 %v7518_v19, %v7514_v58  ;;  %v4632_v41 = vpop.permute.xlu1 %4631 }
0x25d4   :  { %v7522_v9 = vpop.eup %7521  ;;  %v4568_v34 = vmul.f32 %v7520_v6, %v7510_v44 }
0x25d5   :  { %v4566_v46 = vmul.f32 %v7522_v9, %v7512_v18 }
0x25d6   :  { %v4571_v31 = vpack.c.bf16 %v4569_v1, %v4568_v34 }
0x25d7   :  { %v4570_v36 = vpack.c.bf16 %v4567_v26, %v4566_v46 }
0x25d9   :  { %6803 = vmatprep.mubr.msk.bf16.mxu1 %vm794_vm0, %v4570_v36 }
0x25da   :  { %6804 = vmatmul.mubr.msk.bf16.vlgmr.msra.gmra.mrb[76].mxu1 %vm794_vm0, %v4571_v31 }
0x25db   :  { %6808 = vmatpush3.bf16.xpose.msra.mxu1 %v4646_v5  ;;  %6811 = vmatprep.mubr.msk.bf16.mxu1 %vm794_vm0, %v4630_v43 }
0x25dc   :  { %6894 = vmatprep.subr.msk.bf16.mxu1 %vm794_vm0, %v4638_v25 }
0x25e3   :  { %6810 = vmatpush3.bf16.xpose.msra.mxu1 %v4649_v40 }
0x25ea   :  { %6812 = vmatmul.mubr.msk.bf16.vlgmr.msra.gmra.mrb[80].mxu1 %vm794_vm0, %v4632_v41 }
0x26ad   :  { %v9262_v51 = vpop.f32.mrb[76].mxu1 }
0x26ae   :  { %v9264_v54 = vpop.f32.mrb[77].mxu1 }
0x26af   :  { %v9266_v37 = vpop.f32.mrb[78].mxu1 }
0x26b0   :  { %v9268_v53 = vpop.f32.mrb[79].mxu1 }
0x26bd   :  { %v6813_v27 = vpop.f32.mrb[80].mxu1 }
0x26be   :  { %v4685_v50 = vpop.f32.mrb[81].mxu1  ;;  %v4694_v59 = vadd.f32 %v9227_v8, %v6813_v27 }
0x26bf   :  { %v4686_v11 = vadd.f32 %v9223_v48, %v4685_v50  ;;  %v6814_v4 = vpop.f32.mrb[82].mxu1 }
0x26c0   :  { %v4688_v29 = vpop.f32.mrb[83].mxu1  ;;  %v4697_v35 = vadd.f32 %v9236_v60, %v6814_v4  ;;  %v4706_v33 = vsel %vm794_vm0, %v4694_v59, -inf }
0x26c1   :  { %v4689_v32 = vadd.f32 %v9231_v7, %v4688_v29  ;;  %v4700_v38 = vsel %vm794_vm0, %v4686_v11, -inf }
0x26c2   :  { %4701 = vmax.xlane.f32.xlu0 %v4700_v38  ;;  %v4709_v10 = vsel %vm794_vm0, %v4697_v35, -inf }
0x26c3   :  { %v4703_v61 = vsel %vm794_vm0, %v4689_v32, -inf }
0x26c4   :  { %4704 = vmax.xlane.f32.xlu1 %v4703_v61 }
0x26c6   :  { %4707 = vmax.xlane.f32.xlu0 %v4706_v33 }
0x26ca   :  { %4710 = vmax.xlane.f32.xlu0 %v4709_v10 }
0x26d5   :  { %4750 = vrot.lane.b32.xlu1 %v9204_v13, %s8087_s12 }
0x274f   :  { %v4702_v24 = vpop.xlane.xlu0 %4701 }
0x2750   :  { %v4712_v49 = vsub.f32 %v4686_v11, %v4702_v24 }
0x2751   :  { %v4705_v16 = vpop.xlane.xlu1 %4704 }
0x2752   :  { %v4716_v44 = vmul.f32 1.442695, %v4712_v49  ;;  %v4713_v18 = vsub.f32 %v4689_v32, %v4705_v16 }
0x2753   :  { %v4708_v2 = vpop.xlane.xlu0 %4707 }
0x2754   :  { %v4714_v42 = vsub.f32 %v4694_v59, %v4708_v2  ;;  %v4718_v45 = vmul.f32 1.442695, %v4713_v18 }
0x2755   :  { %v4751_v1 = vpop.permute.xlu1 %4750 }
0x2756   :  { %v4720_v21 = vmul.f32 1.442695, %v4714_v42 }
0x2757   :  { %v4711_v58 = vpop.xlane.xlu0 %4710 }
0x2758   :  { %7523 = vpow2.f32 %v4720_v21  ;;  %v4715_v0 = vsub.f32 %v4697_v35, %v4711_v58 }
0x2759   :  { %7525 = vpow2.f32 %v4716_v44 }
0x275a   :  { %v4722_v14 = vmul.f32 1.442695, %v4715_v0 }
0x275c   :  { %7527 = vpow2.f32 %v4722_v14 }
0x275d   :  { %7529 = vpow2.f32 %v4718_v45 }
0x2762   :  { %v7524_v52 = vpop.eup %7523 }
0x2763   :  { %v4730_v56 = vsel %vm794_vm0, %v7524_v52, 0.0  ;;  %v7526_v22 = vpop.eup %7525 }
0x2764   :  { %4731 = vadd.xlane.f32.xlu0 %v4730_v56  ;;  %v4724_v23 = vsel %vm794_vm0, %v7526_v22, 0.0 }
0x2766   :  { %v7528_v57 = vpop.eup %7527 }
0x2767   :  { %v4733_v19 = vsel %vm794_vm0, %v7528_v57, 0.0  ;;  %v7530_v6 = vpop.eup %7529 }
0x2768   :  { %4725 = vadd.xlane.f32.xlu0 %v4724_v23  ;;  %4734 = vadd.xlane.f32.xlu1 %v4733_v19  ;;  %v4727_v9 = vsel %vm794_vm0, %v7530_v6, 0.0 }
0x276c   :  { %4728 = vadd.xlane.f32.xlu1 %v4727_v9 }
0x277d   :  { %4813 = vrot.lane.b32.xlu1 %v9196_v55, %s8077_s27 }
0x277e   :  { %4748 = vrot.lane.b32.xlu0 %v9206_v62, %s8087_s12 }
0x2781   :  { %4815 = vrot.lane.b32.xlu1 %v9212_v30, %s8077_s27 }
0x2782   :  { %4809 = vrot.lane.b32.xlu0 %v9194_v47, %s8077_s27 }
0x2785   :  { %4811 = vrot.lane.b32.xlu1 %v9209_v63, %s8077_s27 }
0x27f1   :  { %v4732_v25 = vpop.xlane.xlu0 %4731 }
0x27f5   :  { %v4735_v46 = vpop.xlane.xlu1 %4734  ;;  %v4726_v26 = vpop.xlane.xlu0 %4725 }
0x27f6   :  { %7531 = vrcp.f32 %v4735_v46 }
0x27f7   :  { %7533 = vrcp.f32 %v4726_v26 }
0x27f8   :  { %7535 = vrcp.f32 %v4732_v25 }
0x27f9   :  { %v4729_v34 = vpop.xlane.xlu1 %4728  ;;  %v4749_v36 = vpop.permute.xlu0 %4748 }
0x27fa   :  { %7537 = vrcp.f32 %v4729_v34  ;;  %6815 = vmatprep.subr.bf16.mxu0 %v4749_v36 }
0x27fb   :  { %6816 = vmatpush3.bf16.msra.mxu0 %v4749_v36 }
0x27fc   :  { %6817 = vmatprep.subr.bf16.mxu0 %v4751_v1 }
0x27fd   :  { %v4814_v31 = vpop.permute.xlu1 %4813  ;;  %v4810_v38 = vpop.permute.xlu0 %4809 }
0x27fe   :  { %v4824_v32 = vsel %vm794_vm0, %v4814_v31, 0 }
0x27ff   :  { %6818 = vmatpush3.bf16.msra.mxu0 %v4751_v1 }
0x2800   :  { %6895 = vmatprep.subr.msk.bf16.mxu0 %vm794_vm0, %v4814_v31  ;;  %v7532_v5 = vpop.eup %7531 }
0x2801   :  { %v7534_v43 = vpop.eup %7533  ;;  %v4743_v27 = vmul.f32 %v7532_v5, %v7528_v57  ;;  %v4816_v61 = vpop.permute.xlu1 %4815 }
0x2802   :  { %v7536_v40 = vpop.eup %7535  ;;  %v4740_v50 = vmul.f32 %v7534_v43, %v7526_v22  ;;  %v4827_v35 = vsel %vm794_vm0, %v4816_v61, 0 }
0x2803   :  { %v4742_v4 = vmul.f32 %v7536_v40, %v7524_v52 }
0x2804   :  { %v7538_v41 = vpop.eup %7537 }
0x2805   :  { %v4741_v11 = vmul.f32 %v7538_v41, %v7530_v6  ;;  %v4745_v59 = vpack.c.bf16 %v4743_v27, %v4742_v4  ;;  %v4812_v33 = vpop.permute.xlu1 %4811 }
0x2807   :  { %v4744_v29 = vpack.c.bf16 %v4741_v11, %v4740_v50 }
0x2809   :  { %6819 = vmatprep.mubr.msk.bf16.mxu0 %vm794_vm0, %v4744_v29 }
0x280a   :  { %6820 = vmatmul.mubr.msk.bf16.vlgmr.msra.gmra.mrb[72].mxu0 %vm794_vm0, %v4745_v59 }
0x280b   :  { %6824 = vmatpush3.bf16.xpose.msra.mxu0 %v4824_v32  ;;  %6827 = vmatprep.mubr.msk.bf16.mxu0 %vm794_vm0, %v4810_v38 }
0x280c   :  { %6896 = vmatprep.subr.msk.bf16.mxu0 %vm794_vm0, %v4816_v61 }
0x2813   :  { %6826 = vmatpush3.bf16.xpose.msra.mxu0 %v4827_v35 }
0x281a   :  { %6828 = vmatmul.mubr.msk.bf16.vlgmr.msra.gmra.mrb[76].mxu0 %vm794_vm0, %v4812_v33 }
0x28dd   :  { %v9302_v10 = vpop.f32.mrb[72].mxu0 }
0x28de   :  { %v9304_v24 = vpop.f32.mrb[73].mxu0 }
0x28df   :  { %v9306_v49 = vpop.f32.mrb[74].mxu0 }
0x28e0   :  { %v7026_v16 = vpack.i.bf16 %v9306_v49, %v9302_v10  ;;  %v9310_v2 = vpop.f32.mrb[75].mxu0 }
0x28e1   :  { %v7021_v42 = vpack.i.bf16 %v9310_v2, %v9304_v24 }
0x28ed   :  { %v6829_v44 = vpop.f32.mrb[76].mxu0 }
0x28ee   :  { %v4863_v18 = vpop.f32.mrb[77].mxu0  ;;  %v4872_v45 = vadd.f32 %v9227_v8, %v6829_v44 }
0x28ef   :  { %v4864_v21 = vadd.f32 %v9223_v48, %v4863_v18  ;;  %v6830_v58 = vpop.f32.mrb[78].mxu0 }
0x28f0   :  { %v4866_v0 = vpop.f32.mrb[79].mxu0  ;;  %v4875_v22 = vadd.f32 %v9236_v60, %v6830_v58  ;;  %v4884_v57 = vsel %vm794_vm0, %v4872_v45, -inf }
0x28f1   :  { %v4867_v14 = vadd.f32 %v9231_v7, %v4866_v0  ;;  %v4878_v52 = vsel %vm794_vm0, %v4864_v21, -inf }
0x28f2   :  { %4879 = vmax.xlane.f32.xlu0 %v4878_v52  ;;  %v4887_v23 = vsel %vm794_vm0, %v4875_v22, -inf }
0x28f3   :  { %v4881_v56 = vsel %vm794_vm0, %v4867_v14, -inf }
0x28f4   :  { %4882 = vmax.xlane.f32.xlu1 %v4881_v56 }
0x28f6   :  { %4885 = vmax.xlane.f32.xlu0 %v4884_v57 }
0x28fa   :  { %4888 = vmax.xlane.f32.xlu0 %v4887_v23 }
0x2905   :  { %4926 = vrot.lane.b32.xlu1 %v9204_v13, %s8077_s27 }
0x297f   :  { %v4880_v19 = vpop.xlane.xlu0 %4879 }
0x2980   :  { %v4890_v6 = vsub.f32 %v4864_v21, %v4880_v19 }
0x2981   :  { %v4883_v9 = vpop.xlane.xlu1 %4882 }
0x2982   :  { %v4894_v46 = vmul.f32 1.442695, %v4890_v6  ;;  %v4891_v26 = vsub.f32 %v4867_v14, %v4883_v9 }
0x2983   :  { %v4886_v1 = vpop.xlane.xlu0 %4885 }
0x2984   :  { %v4892_v25 = vsub.f32 %v4872_v45, %v4886_v1  ;;  %v4896_v5 = vmul.f32 1.442695, %v4891_v26 }
0x2985   :  { %v4927_v32 = vpop.permute.xlu1 %4926 }
0x2986   :  { %v4898_v34 = vmul.f32 1.442695, %v4892_v25 }
0x2987   :  { %v4889_v36 = vpop.xlane.xlu0 %4888 }
0x2988   :  { %7539 = vpow2.f32 %v4898_v34  ;;  %v4893_v31 = vsub.f32 %v4875_v22, %v4889_v36 }
0x2989   :  { %7541 = vpow2.f32 %v4894_v46 }
0x298a   :  { %v4900_v43 = vmul.f32 1.442695, %v4893_v31 }
0x298c   :  { %7543 = vpow2.f32 %v4900_v43 }
0x298d   :  { %7545 = vpow2.f32 %v4896_v5 }
0x2992   :  { %v7540_v40 = vpop.eup %7539 }
0x2993   :  { %v4908_v41 = vsel %vm794_vm0, %v7540_v40, 0.0  ;;  %v7542_v27 = vpop.eup %7541 }
0x2994   :  { %4909 = vadd.xlane.f32.xlu0 %v4908_v41  ;;  %v4902_v11 = vsel %vm794_vm0, %v7542_v27, 0.0 }
0x2996   :  { %v7544_v50 = vpop.eup %7543 }
0x2997   :  { %v4911_v4 = vsel %vm794_vm0, %v7544_v50, 0.0  ;;  %v7546_v29 = vpop.eup %7545 }
0x2998   :  { %4903 = vadd.xlane.f32.xlu0 %v4902_v11  ;;  %4912 = vadd.xlane.f32.xlu1 %v4911_v4  ;;  %v4905_v59 = vsel %vm794_vm0, %v7546_v29, 0.0 }
0x299c   :  { %4906 = vadd.xlane.f32.xlu1 %v4905_v59 }
0x29ad   :  { %4989 = vrot.lane.b32.xlu1 %v9196_v55, %s8088_s1 }
0x29ae   :  { %4924 = vrot.lane.b32.xlu0 %v9206_v62, %s8077_s27 }
0x29b1   :  { %4991 = vrot.lane.b32.xlu1 %v9212_v30, %s8088_s1 }
0x29b2   :  { %4985 = vrot.lane.b32.xlu0 %v9194_v47, %s8088_s1 }
0x29b5   :  { %4987 = vrot.lane.b32.xlu1 %v9209_v63, %s8088_s1 }
0x2a21   :  { %v4910_v38 = vpop.xlane.xlu0 %4909 }
0x2a25   :  { %v4913_v61 = vpop.xlane.xlu1 %4912  ;;  %v4904_v35 = vpop.xlane.xlu0 %4903 }
0x2a26   :  { %7547 = vrcp.f32 %v4913_v61 }
0x2a27   :  { %7549 = vrcp.f32 %v4904_v35 }
0x2a28   :  { %7551 = vrcp.f32 %v4910_v38 }
0x2a29   :  { %v4907_v55 = vpop.xlane.xlu1 %4906  ;;  %v4925_v33 = vpop.permute.xlu0 %4924 }
0x2a2a   :  { %7553 = vrcp.f32 %v4907_v55  ;;  %6831 = vmatprep.subr.bf16.mxu1 %v4925_v33 }
0x2a2b   :  { %6832 = vmatpush3.bf16.msra.mxu1 %v4925_v33 }
0x2a2c   :  { %6833 = vmatprep.subr.bf16.mxu1 %v4927_v32 }
0x2a2d   :  { %v4990_v30 = vpop.permute.xlu1 %4989  ;;  %v4986_v22 = vpop.permute.xlu0 %4985 }
0x2a2e   :  { %v5000_v56 = vsel %vm794_vm0, %v4990_v30, 0 }
0x2a2f   :  { %6834 = vmatpush3.bf16.msra.mxu1 %v4927_v32 }
0x2a30   :  { %6897 = vmatprep.subr.msk.bf16.mxu1 %vm794_vm0, %v4990_v30  ;;  %v7548_v47 = vpop.eup %7547 }
0x2a31   :  { %v7550_v44 = vpop.eup %7549  ;;  %v4921_v21 = vmul.f32 %v7548_v47, %v7544_v50  ;;  %v4992_v57 = vpop.permute.xlu1 %4991 }
0x2a32   :  { %v7552_v63 = vpop.eup %7551  ;;  %v4918_v58 = vmul.f32 %v7550_v44, %v7542_v27  ;;  %v5003_v23 = vsel %vm794_vm0, %v4992_v57, 0 }
0x2a33   :  { %v4920_v45 = vmul.f32 %v7552_v63, %v7540_v40 }
0x2a34   :  { %v7554_v18 = vpop.eup %7553 }
0x2a35   :  { %v4919_v0 = vmul.f32 %v7554_v18, %v7546_v29  ;;  %v4923_v52 = vpack.c.bf16 %v4921_v21, %v4920_v45  ;;  %v4988_v19 = vpop.permute.xlu1 %4987 }
0x2a37   :  { %v4922_v14 = vpack.c.bf16 %v4919_v0, %v4918_v58 }
0x2a39   :  { %6835 = vmatprep.mubr.msk.bf16.mxu1 %vm794_vm0, %v4922_v14 }
0x2a3a   :  { %6836 = vmatmul.mubr.msk.bf16.vlgmr.msra.gmra.mrb[84].mxu1 %vm794_vm0, %v4923_v52 }
0x2a3b   :  { %6840 = vmatpush3.bf16.xpose.msra.mxu1 %v5000_v56  ;;  %6843 = vmatprep.mubr.msk.bf16.mxu1 %vm794_vm0, %v4986_v22 }
0x2a3c   :  { %6898 = vmatprep.subr.msk.bf16.mxu1 %vm794_vm0, %v4992_v57 }
0x2a43   :  { %6842 = vmatpush3.bf16.xpose.msra.mxu1 %v5003_v23 }
0x2a4a   :  { %6844 = vmatmul.mubr.msk.bf16.vlgmr.msra.gmra.mrb[88].mxu1 %vm794_vm0, %v4988_v19 }
0x2a4b   :  { %5519 = vmatprep.mubr.bf16.mxu1 %v8086_v39 }
0x2b0d   :  { %v6837_v6 = vpop.f32.mrb[84].mxu1 }
0x2b0e   :  { %v4970_v9 = vpop.f32.mrb[85].mxu1 }
0x2b0f   :  { %v6838_v1 = vpop.f32.mrb[86].mxu1 }
0x2b10   :  { %v7036_v25 = vpack.i.bf16 %v6838_v1, %v6837_v6  ;;  %v4973_v46 = vpop.f32.mrb[87].mxu1  ;;  %v7252_v1 = vld [vmem:[#allocation15 + $0x8] sm:$0xff]  }
0x2b11   :  { %v7031_v26 = vpack.i.bf16 %v4973_v46, %v4970_v9  ;;  %v7251_v9 = vld [vmem:[#allocation15] sm:$0xff]   ;;  %v7254_v46 = vld [vmem:[#allocation15 + $0x18] sm:$0xff]  }
0x2b1d   :  { %v6845_v34 = vpop.f32.mrb[88].mxu1 }
0x2b1e   :  { %v5039_v36 = vpop.f32.mrb[89].mxu1  ;;  %v5048_v40 = vadd.f32 %v9227_v8, %v6845_v34  ;;  %v7256_v34 = vld [vmem:[#allocation15 + $0x28] sm:$0xff]  }
0x2b1f   :  { %v5040_v31 = vadd.f32 %v9223_v48, %v5039_v36  ;;  %v6846_v5 = vpop.f32.mrb[90].mxu1  ;;  %v7257_v36 = vld [vmem:[#allocation15 + $0x30] sm:$0xff]  }
0x2b20   :  { %v5042_v43 = vpop.f32.mrb[91].mxu1  ;;  %v5051_v11 = vadd.f32 %v9236_v60, %v6846_v5  ;;  %v5060_v4 = vsel %vm794_vm0, %v5048_v40, -inf }
0x2b21   :  { %v5043_v41 = vadd.f32 %v9231_v7, %v5042_v43  ;;  %v5054_v27 = vsel %vm794_vm0, %v5040_v31, -inf }
0x2b22   :  { %5055 = vmax.xlane.f32.xlu0 %v5054_v27  ;;  %v5063_v29 = vsel %vm794_vm0, %v5051_v11, -inf }
0x2b23   :  { %v5057_v50 = vsel %vm794_vm0, %v5043_v41, -inf }
0x2b24   :  { %5058 = vmax.xlane.f32.xlu1 %v5057_v50 }
0x2b26   :  { %5061 = vmax.xlane.f32.xlu0 %v5060_v4 }
0x2b2a   :  { %5064 = vmax.xlane.f32.xlu0 %v5063_v29 }
0x2baf   :  { %v5056_v48 = vpop.xlane.xlu0 %5055 }
0x2bb0   :  { %v5066_v59 = vsub.f32 %v5040_v31, %v5056_v48  ;;  %v7258_v31 = vld [vmem:[#allocation15 + $0x38] sm:$0xff]  }
0x2bb1   :  { %v5059_v32 = vpop.xlane.xlu1 %5058 }
0x2bb2   :  { %v5070_v7 = vmul.f32 1.442695, %v5066_v59  ;;  %v5067_v61 = vsub.f32 %v5043_v41, %v5059_v32 }
0x2bb3   :  { %v5062_v8 = vpop.xlane.xlu0 %5061 }
0x2bb4   :  { %v5068_v38 = vsub.f32 %v5048_v40, %v5062_v8  ;;  %v5072_v30 = vmul.f32 1.442695, %v5067_v61 }
0x2bb6   :  { %v5074_v35 = vmul.f32 1.442695, %v5068_v38 }
0x2bb7   :  { %v5065_v55 = vpop.xlane.xlu0 %5064 }
0x2bb8   :  { %7555 = vpow2.f32 %v5074_v35  ;;  %v5069_v33 = vsub.f32 %v5051_v11, %v5065_v55 }
0x2bb9   :  { %7557 = vpow2.f32 %v5070_v7 }
0x2bba   :  { %v5076_v60 = vmul.f32 1.442695, %v5069_v33 }
0x2bbc   :  { %7559 = vpow2.f32 %v5076_v60 }
0x2bbd   :  { %7561 = vpow2.f32 %v5072_v30 }
0x2bc2   :  { %v7556_v47 = vpop.eup %7555 }
0x2bc3   :  { %v5084_v44 = vsel %vm794_vm0, %v7556_v47, 0.0  ;;  %v7558_v63 = vpop.eup %7557 }
0x2bc4   :  { %5085 = vadd.xlane.f32.xlu0 %v5084_v44  ;;  %v5078_v21 = vsel %vm794_vm0, %v7558_v63, 0.0 }
0x2bc6   :  { %v7560_v18 = vpop.eup %7559 }
0x2bc7   :  { %v5087_v58 = vsel %vm794_vm0, %v7560_v18, 0.0  ;;  %v7562_v0 = vpop.eup %7561 }
0x2bc8   :  { %5079 = vadd.xlane.f32.xlu0 %v5078_v21  ;;  %5088 = vadd.xlane.f32.xlu1 %v5087_v58  ;;  %v5081_v45 = vsel %vm794_vm0, %v7562_v0, 0.0 }
0x2bcc   :  { %5082 = vadd.xlane.f32.xlu1 %v5081_v45 }
0x2bdd   :  { %5102 = vrot.lane.b32.xlu1 %v9204_v13, %s8088_s1 }
0x2bde   :  { %5100 = vrot.lane.b32.xlu0 %v9206_v62, %s8088_s1 }
0x2be1   :  { %7022 = vrot.lane.b32.xlu1 %v7021_v42, %s8088_s1 }
0x2be2   :  { %7032 = vrot.lane.b32.xlu0 %v7031_v26, %s8077_s27  ;;  %v7255_v26 = vld [vmem:[#allocation15 + $0x20] sm:$0xff]  }
0x2be5   :  { %7027 = vrot.lane.b32.xlu1 %v7026_v16, %s8088_s1 }
0x2be9   :  { %7037 = vrot.lane.b32.xlu1 %v7036_v25, %s8077_s27  ;;  %v7253_v25 = vld [vmem:[#allocation15 + $0x10] sm:$0xff]  }
0x2c51   :  { %v5086_v14 = vpop.xlane.xlu0 %5085 }
0x2c55   :  { %v5089_v52 = vpop.xlane.xlu1 %5088  ;;  %v5080_v13 = vpop.xlane.xlu0 %5079 }
0x2c56   :  { %7563 = vrcp.f32 %v5089_v52 }
0x2c57   :  { %7565 = vrcp.f32 %v5080_v13 }
0x2c58   :  { %7567 = vrcp.f32 %v5086_v14 }
0x2c59   :  { %v5083_v62 = vpop.xlane.xlu1 %5082  ;;  %v5101_v56 = vpop.permute.xlu0 %5100 }
0x2c5a   :  { %7569 = vrcp.f32 %v5083_v62  ;;  %6847 = vmatprep.subr.bf16.mxu0 %v5101_v56 }
0x2c5b   :  { %6848 = vmatpush3.bf16.msra.mxu0 %v5101_v56 }
0x2c5d   :  { %v5103_v24 = vpop.permute.xlu1 %5102  ;;  %v7033_v32 = vpop.permute.xlu0 %7032 }
0x2c5e   :  { %6849 = vmatprep.subr.bf16.mxu0 %v5103_v24  ;;  %v7035_v35 = vunpack.i.h.bf16 %v7033_v32  ;;  %v7034_v55 = vunpack.i.l.bf16 %v7033_v32  ;;  %v7265_v32 = vld [vmem:[#allocation21 + $0x20] ss:$8 sps:$4 sm:$0xff]  }
0x2c5f   :  { %6850 = vmatpush3.bf16.msra.mxu0 %v5103_v24  ;;  %v6228_v24 = vld [vmem:[#allocation16] ss:$0 sm:$0xff] }
0x2c60   :  { %v7564_v2 = vpop.eup %7563  ;;  %6855 = vmatprep.subr.bf16.mxu0 %v7251_v9 }
0x2c61   :  { %v7566_v42 = vpop.eup %7565  ;;  %v5097_v16 = vmul.f32 %v7564_v2, %v7560_v18  ;;  %v7023_v11 = vpop.permute.xlu1 %7022 }
0x2c62   :  { %v7568_v10 = vpop.eup %7567  ;;  %v5094_v22 = vmul.f32 %v7566_v42, %v7558_v63  ;;  %v7025_v48 = vunpack.i.h.bf16 %v7023_v11  ;;  %v7024_v59 = vunpack.i.l.bf16 %v7023_v11 }
0x2c63   :  { %v5096_v23 = vmul.f32 %v7568_v10, %v7556_v47 }
0x2c64   :  { %v7570_v49 = vpop.eup %7569  ;;  %v5210_v33 = vsel %vm794_vm0, %v9268_v53, %v7025_v48  ;;  %v5209_v30 = vsel %vm794_vm0, %v9264_v54, %v7024_v59  ;;  %v7267_v59 = vld [vmem:[#allocation21 + $0x24] ss:$8 sps:$4 sm:$0xff]  }
0x2c65   :  { %v5095_v57 = vmul.f32 %v7570_v49, %v7562_v0  ;;  %v5099_v6 = vpack.c.bf16 %v5097_v16, %v5096_v23  ;;  %v7028_v4 = vpop.permute.xlu1 %7027  ;;  %v5213_v52 = vsel %vm1543_vm1, %v5209_v30, %v7034_v55  ;;  %v7274_v55 = vld [vmem:[#allocation21 + $0x50] ss:$8 sps:$4 sm:$0xff]   ;;  %v7279_v30 = vld [vmem:[#allocation21 + $0x64] ss:$8 sps:$4 sm:$0xff]  }
0x2c66   :  { %v7030_v8 = vunpack.i.h.bf16 %v7028_v4  ;;  %v7029_v38 = vunpack.i.l.bf16 %v7028_v4 }
0x2c67   :  { %v5098_v19 = vpack.c.bf16 %v5095_v57, %v5094_v22 }
0x2c68   :  { %v5212_v47 = vsel %vm794_vm0, %v9266_v37, %v7030_v8  ;;  %v5211_v44 = vsel %vm794_vm0, %v9262_v51, %v7029_v38  ;;  %v5214_v37 = vsel %vm1543_vm1, %v5210_v33, %v7035_v35  ;;  %v7270_v8 = vld [vmem:[#allocation21 + $0x34] ss:$8 sps:$4 sm:$0xff]   ;;  %v7268_v38 = vld [vmem:[#allocation21 + $0x30] ss:$8 sps:$4 sm:$0xff]   ;;  %v7277_v33 = vld [vmem:[#allocation21 + $0x60] ss:$8 sps:$4 sm:$0xff]  }
0x2c69   :  { %6851 = vmatprep.mubr.msk.bf16.mxu0 %vm794_vm0, %v5098_v19  ;;  %v7038_v29 = vpop.permute.xlu1 %7037  ;;  %v7276_v35 = vld [vmem:[#allocation21 + $0x54] ss:$8 sps:$4 sm:$0xff]  }
0x2c6a   :  { %6852 = vmatmul.mubr.msk.bf16.vlgmr.msra.gmra.mrb[80].mxu0 %vm794_vm0, %v5099_v6  ;;  %v7040_v7 = vunpack.i.h.bf16 %v7038_v29  ;;  %v7039_v61 = vunpack.i.l.bf16 %v7038_v29 }
0x2c6b   :  { %6856 = vmatpush3.bf16.msra.mxu0 %v7251_v9 }
0x2c6c   :  { %6857 = vmatprep.subr.bf16.mxu0 %v7252_v1  ;;  %v5215_v58 = vsel %vm1543_vm1, %v5211_v44, %v7039_v61  ;;  %v5216_v0 = vsel %vm1543_vm1, %v5212_v47, %v7040_v7  ;;  %v7273_v7 = vld [vmem:[#allocation21 + $0x44] ss:$8 sps:$4 sm:$0xff]   ;;  %v7271_v61 = vld [vmem:[#allocation21 + $0x40] ss:$8 sps:$4 sm:$0xff]   ;;  %v7280_v47 = vld [vmem:[#allocation21 + $0x70] ss:$8 sps:$4 sm:$0xff]  }
0x2c6f   :  { %6858 = vmatpush3.bf16.msra.mxu0 %v7252_v1 }
0x2c70   :  { %6859 = vmatprep.subr.bf16.mxu0 %v7253_v25 }
0x2c73   :  { %6860 = vmatpush3.bf16.msra.mxu0 %v7253_v25  ;;  %v7259_v25 = vld [vmem:[#allocation21] ss:$8 sps:$4 sm:$0xff]  }
0x2c74   :  { %6861 = vmatprep.subr.bf16.mxu0 %v7254_v46 }
0x2c77   :  { %6862 = vmatpush3.bf16.msra.mxu0 %v7254_v46  ;;  %v7261_v46 = vld [vmem:[#allocation21 + $0x4] ss:$8 sps:$4 sm:$0xff]  }
0x2c78   :  { %6863 = vmatprep.subr.bf16.mxu0 %v7255_v26  ;;  %5487 = vmatprep.subr.bf16.mxu1 %v7261_v46 }
0x2c79   :  { %5488 = vmatpush1.bf16.msra.mxu1 %v7259_v25 }
0x2c7b   :  { %6864 = vmatpush3.bf16.msra.mxu0 %v7255_v26  ;;  %v7264_v26 = vld [vmem:[#allocation21 + $0x14] ss:$8 sps:$4 sm:$0xff]  }
0x2c7c   :  { %6865 = vmatprep.subr.bf16.mxu0 %v7256_v34  ;;  %5489 = vmatprep.subr.bf16.mxu1 %v7264_v26 }
0x2c7f   :  { %6866 = vmatpush3.bf16.msra.mxu0 %v7256_v34  ;;  %v7262_v34 = vld [vmem:[#allocation21 + $0x10] ss:$8 sps:$4 sm:$0xff]  }
0x2c80   :  { %6867 = vmatprep.subr.bf16.mxu0 %v7257_v36  ;;  %5490 = vmatpush1.bf16.msra.mxu1 %v7262_v34  ;;  %v7283_v34 = vld [vmem:[#allocation24 + $0x40] sm:$0xff]  }
0x2c81   :  { %5491 = vmatprep.subr.bf16.mxu1 %v7267_v59 }
0x2c83   :  { %6868 = vmatpush3.bf16.msra.mxu0 %v7257_v36 }
0x2c84   :  { %6869 = vmatprep.subr.bf16.mxu0 %v7258_v31  ;;  %5492 = vmatpush1.bf16.msra.mxu1 %v7265_v32 }
0x2c85   :  { %5493 = vmatprep.subr.bf16.mxu1 %v7270_v8 }
0x2c87   :  { %6870 = vmatpush3.bf16.msra.mxu0 %v7258_v31 }
0x2c88   :  { %5494 = vmatpush1.bf16.msra.mxu1 %v7268_v38  ;;  %6515 = vmatprep.subr.bf16.mxu0 %v7283_v34 }
0x2c89   :  { %5495 = vmatprep.subr.bf16.mxu1 %v7273_v7 }
0x2c8c   :  { %5496 = vmatpush1.bf16.msra.mxu1 %v7271_v61 }
0x2c8d   :  { %5497 = vmatprep.subr.bf16.mxu1 %v7276_v35 }
0x2c90   :  { %5498 = vmatpush1.bf16.msra.mxu1 %v7274_v55 }
0x2c91   :  { %5499 = vmatprep.subr.bf16.mxu1 %v7279_v30 }
0x2c94   :  { %5500 = vmatpush1.bf16.msra.mxu1 %v7277_v33 }
0x2d3d   :  { %v6853_v5 = vpop.f32.mrb[80].mxu0 }
0x2d3e   :  { %v5146_v43 = vpop.f32.mrb[81].mxu0 }
0x2d3f   :  { %v6854_v40 = vpop.f32.mrb[82].mxu0 }
0x2d40   :  { %v7046_v41 = vpack.i.bf16 %v6854_v40, %v6853_v5  ;;  %v5149_v27 = vpop.f32.mrb[83].mxu0 }
0x2d41   :  { %v7041_v50 = vpack.i.bf16 %v5149_v27, %v5146_v43 }
0x2d42   :  { %7047 = vrot.lane.b32.xlu1 %v7046_v41, %s8087_s12 }
0x2d43   :  { %7042 = vrot.lane.b32.xlu0 %v7041_v50, %s8087_s12 }
0x2db4   :  { %v7048_v60 = vpop.permute.xlu1 %7047 }
0x2db5   :  { %v7050_v63 = vunpack.i.h.bf16 %v7048_v60  ;;  %v7049_v18 = vunpack.i.l.bf16 %v7048_v60  ;;  %v7043_v21 = vpop.permute.xlu0 %7042  ;;  %v7282_v60 = vld [vmem:[#allocation21 + $0x74] ss:$8 sps:$4 sm:$0xff]  }
0x2db6   :  { %v7045_v45 = vunpack.i.h.bf16 %v7043_v21  ;;  %v7044_v14 = vunpack.i.l.bf16 %v7043_v21  ;;  %5501 = vmatprep.subr.bf16.mxu1 %v7282_v60 }
0x2db7   :  { %v5220_v53 = vsel %vm1548_vm2, %v5216_v0, %v7050_v63  ;;  %v5219_v54 = vsel %vm1548_vm2, %v5215_v58, %v7049_v18  ;;  %5502 = vmatpush1.bf16.msra.mxu1 %v7280_v47 }
0x2db8   :  { %v5222_v13 = vpack.c.bf16 %v5220_v53, %v5219_v54  ;;  %v5217_v51 = vsel %vm1548_vm2, %v5213_v52, %v7044_v14  ;;  %v5218_v62 = vsel %vm1548_vm2, %v5214_v37, %v7045_v45 }
0x2db9   :  { %v5221_v56 = vpack.c.bf16 %v5218_v62, %v5217_v51  ;;  %v6237_v51 = vld [vmem:[#allocation18] ss:$0 sm:$0xff] }
0x2dbb   :  { %6871 = vmatprep.mubr.bf16.mxu0 %v5221_v56 }
0x2dbc   :  { %6872 = vmatmul.mubr.bf16.vlgmr.msra.gmra.mrb[84].mxu0 %v5222_v13 }
0x2e8f   :  { %v6873_v2 = vpop.f32.mrb[84].mxu0 }
0x2e90   :  { %v5311_v42 = vpop.f32.mrb[85].mxu0  ;;  %v5320_v22 = vadd.f32 %v6873_v2, %v6228_v24 }
0x2e91   :  { %v5312_v10 = vadd.f32 %v6228_v24, %v5311_v42  ;;  %v6874_v49 = vpop.f32.mrb[86].mxu0 }
0x2e92   :  { %v5314_v16 = vpop.f32.mrb[87].mxu0  ;;  %v5328_v6 = vadd.f32 %v5320_v22, %v9184_v3  ;;  %v5323_v9 = vadd.f32 %v6874_v49, %v6228_v24 }
0x2e93   :  { %v5326_v57 = vadd.f32 %v5312_v10, %v9178_v12  ;;  %v5315_v23 = vadd.f32 %v6228_v24, %v5314_v16  ;;  %v6238_v10 = vld [vmem:[#allocation19] ss:$0 sm:$0xff] }
0x2e94   :  { %v5329_v1 = vadd.f32 %v5323_v9, %v9186_v20 }
0x2e95   :  { %v5327_v19 = vadd.f32 %v5315_v23, %v9180_v28  ;;  %5330 = vadd.xlane.f32.xlu0 %v5326_v57 }
0x2e97   :  { %5332 = vadd.xlane.f32.xlu1 %v5327_v19 }
0x2e99   :  { %5334 = vadd.xlane.f32.xlu0 %v5328_v6 }
0x2e9d   :  { %5336 = vadd.xlane.f32.xlu0 %v5329_v1 }
0x2f22   :  { %v5331_v12 = vpop.xlane.xlu0 %5330 }
0x2f23   :  { %v5338_v36 = vmul.f32 0.0078125, %v5331_v12  ;;  %v7284_v12 = vld [vmem:[#allocation24] sm:$0xff]  }
0x2f24   :  { %v5333_v28 = vpop.xlane.xlu1 %5332  ;;  %6516 = vmatpush3.bf16.msra.mxu0 %v7284_v12 }
0x2f25   :  { %v5342_v31 = vsub.f32 %v5326_v57, %v5338_v36  ;;  %v5339_v5 = vmul.f32 0.0078125, %v5333_v28  ;;  %v7285_v36 = vld [vmem:[#allocation24 + $0x48] sm:$0xff]  }
0x2f26   :  { %v5335_v3 = vpop.xlane.xlu0 %5334  ;;  %v7286_v28 = vld [vmem:[#allocation24 + $0x8] sm:$0xff]   ;;  %6517 = vmatprep.subr.bf16.mxu0 %v7285_v36 }
0x2f27   :  { %v5343_v43 = vsub.f32 %v5327_v19, %v5339_v5  ;;  %v5340_v40 = vmul.f32 0.0078125, %v5335_v3  ;;  %v5346_v41 = vmul.f32 %v5342_v31, %v5342_v31  ;;  %v7288_v5 = vld [vmem:[#allocation24 + $0x10] sm:$0xff]   ;;  %v7290_v3 = vld [vmem:[#allocation24 + $0x18] sm:$0xff]  }
0x2f28   :  { %6518 = vmatpush3.bf16.msra.mxu0 %v7286_v28 }
0x2f29   :  { %v5344_v27 = vsub.f32 %v5328_v6, %v5340_v40  ;;  %5350 = vadd.xlane.f32.xlu0 %v5346_v41  ;;  %v5347_v20 = vmul.f32 %v5343_v43, %v5343_v43  ;;  %v7292_v40 = vld [vmem:[#allocation24 + $0x20] sm:$0xff]   ;;  %v7293_v41 = vld [vmem:[#allocation24 + $0x68] sm:$0xff]  }
0x2f2a   :  { %v5337_v50 = vpop.xlane.xlu0 %5336 }
0x2f2b   :  { %v5341_v11 = vmul.f32 0.0078125, %v5337_v50  ;;  %5352 = vadd.xlane.f32.xlu1 %v5347_v20  ;;  %v5348_v4 = vmul.f32 %v5344_v27, %v5344_v27  ;;  %v7295_v20 = vld [vmem:[#allocation24 + $0x70] sm:$0xff]  }
0x2f2c   :  { %v7296_v50 = vld [vmem:[#allocation24 + $0x30] sm:$0xff]  }
0x2f2d   :  { %v5345_v29 = vsub.f32 %v5329_v1, %v5341_v11  ;;  %5354 = vadd.xlane.f32.xlu0 %v5348_v4  ;;  %v7297_v11 = vld [vmem:[#allocation24 + $0x78] sm:$0xff]  }
0x2f2e   :  { %v7298_v4 = vld [vmem:[#allocation24 + $0x38] sm:$0xff]  }
0x2f2f   :  { %v5349_v48 = vmul.f32 %v5345_v29, %v5345_v29 }
0x2f31   :  { %5356 = vadd.xlane.f32.xlu1 %v5349_v48 }
0x2fb6   :  { %v5351_v44 = vpop.xlane.xlu0 %5350 }
0x2fb7   :  { %v5358_v63 = vmul.f32 0.0078125, %v5351_v44 }
0x2fb8   :  { %v5353_v18 = vpop.xlane.xlu1 %5352 }
0x2fb9   :  { %v5362_v21 = vadd.f32 1e-05, %v5358_v63  ;;  %v5359_v58 = vmul.f32 0.0078125, %v5353_v18 }
0x2fba   :  { %v5355_v0 = vpop.xlane.xlu0 %5354 }
0x2fbb   :  { %7571 = vrsqrt.f32 %v5362_v21  ;;  %v5363_v45 = vadd.f32 1e-05, %v5359_v58  ;;  %v5360_v14 = vmul.f32 0.0078125, %v5355_v0 }
0x2fbd   :  { %7573 = vrsqrt.f32 %v5363_v45  ;;  %v5364_v53 = vadd.f32 1e-05, %v5360_v14 }
0x2fbe   :  { %v5357_v54 = vpop.xlane.xlu1 %5356 }
0x2fbf   :  { %7575 = vrsqrt.f32 %v5364_v53  ;;  %v5361_v52 = vmul.f32 0.0078125, %v5357_v54 }
0x2fc1   :  { %v5365_v37 = vadd.f32 1e-05, %v5361_v52 }
0x2fc3   :  { %7577 = vrsqrt.f32 %v5365_v37 }
0x2fc5   :  { %v7572_v13 = vpop.eup %7571 }
0x2fc6   :  { %v5370_v62 = vmul.f32 %v7572_v13, %v5342_v31  ;;  %v7287_v31 = vld [vmem:[#allocation24 + $0x50] sm:$0xff]  }
0x2fc7   :  { %v7574_v56 = vpop.eup %7573  ;;  %6519 = vmatprep.subr.bf16.mxu0 %v7287_v31 }
0x2fc8   :  { %v5371_v24 = vmul.f32 %v7574_v56, %v5343_v43  ;;  %v5380_v2 = vmul.f32 %v6237_v51, %v5370_v62  ;;  %6520 = vmatpush3.bf16.msra.mxu0 %v7288_v5  ;;  %v7291_v43 = vld [vmem:[#allocation24 + $0x60] sm:$0xff]  }
0x2fc9   :  { %v7576_v42 = vpop.eup %7575 }
0x2fca   :  { %v5381_v49 = vmul.f32 %v6237_v51, %v5371_v24  ;;  %v9397_v16 = vadd.f32 %v6238_v10, %v5380_v2  ;;  %v5372_v57 = vmul.f32 %v7576_v42, %v5344_v27  ;;  %v7294_v27 = vld [vmem:[#allocation24 + $0x28] sm:$0xff]  }
0x2fcc   :  { %v9399_v22 = vadd.f32 %v6238_v10, %v5381_v49  ;;  %v5382_v9 = vmul.f32 %v6237_v51, %v5372_v57 }
0x2fcd   :  { %v7578_v23 = vpop.eup %7577 }
0x2fce   :  { %v5394_v19 = vpack.c.bf16 %v9399_v22, %v9397_v16  ;;  %v5373_v6 = vmul.f32 %v7578_v23, %v5345_v29  ;;  %v9406_v46 = vadd.f32 %v6238_v10, %v5382_v9  ;;  %v4175_v29 = vld [vmem:[#allocation22] sm:$0x3] }
0x2fcf   :  { %v5400_v48 = vrot.slane %v4175_v29, %v8437_v15  ;;  %v5404_v59 = vrot.slane %v4175_v29, %v8440_v17 }
0x2fd0   :  { %5520 = vmatmul.mubr.bf16.vlgmr.msra.gmra.mrb[92].mxu1 %v5394_v19  ;;  %v5383_v1 = vmul.f32 %v6237_v51, %v5373_v6 }
0x2fd1   :  { %5529 = vmatprep.mubr.bf16.mxu1 %v8086_v39  ;;  %v7289_v39 = vld [vmem:[#allocation24 + $0x58] sm:$0xff]  }
0x2fd2   :  { %v9404_v25 = vadd.f32 %v6238_v10, %v5383_v1  ;;  %6521 = vmatprep.subr.bf16.mxu0 %v7289_v39 }
0x2fd3   :  { %6522 = vmatpush3.bf16.msra.mxu0 %v7290_v3 }
0x2fd4   :  { %v5395_v26 = vpack.c.bf16 %v9404_v25, %v9406_v46  ;;  %6523 = vmatprep.subr.bf16.mxu0 %v7291_v43 }
0x2fd7   :  { %6524 = vmatpush3.bf16.msra.mxu0 %v7292_v40 }
0x2fd8   :  { %5530 = vmatmul.mubr.bf16.gmra.mrb[96].mxu1 %v5395_v26  ;;  %6525 = vmatprep.subr.bf16.mxu0 %v7293_v41 }
0x2fdb   :  { %6526 = vmatpush3.bf16.msra.mxu0 %v7294_v27 }
0x2fdc   :  { %6527 = vmatprep.subr.bf16.mxu0 %v7295_v20 }
0x2fdf   :  { %6528 = vmatpush3.bf16.msra.mxu0 %v7296_v50 }
0x2fe0   :  { %6529 = vmatprep.subr.bf16.mxu0 %v7297_v11 }
0x2fe3   :  { %6530 = vmatpush3.bf16.msra.mxu0 %v7298_v4 }
0x30a3   :  { %v5521_v32 = vpop.f32.mrb[92].mxu1 }
0x30a4   :  { %v9412_v8 = vadd.f32 %v5521_v32, %v5400_v48  ;;  %v5523_v38 = vpop.f32.mrb[93].mxu1 }
0x30a5   :  { %v9414_v7 = vadd.f32 %v5523_v38, %v5404_v59  ;;  %v5525_v61 = vpop.f32.mrb[94].mxu1 }
0x30a6   :  { %v5548_v35 = vmul.f32 0.044715, %v9412_v8  ;;  %v9417_v55 = vadd.f32 %v5525_v61, %v5400_v48  ;;  %v5527_v33 = vpop.f32.mrb[95].mxu1  ;;  %v5540_v61 = vmul.f32 0.5, %v9412_v8 }
0x30a7   :  { %v5549_v30 = vmul.f32 0.044715, %v9414_v7  ;;  %v9420_v60 = vadd.f32 %v5527_v33, %v5404_v59 }
0x30a8   :  { %v5556_v15 = vmul.f32 %v5548_v35, %v9412_v8  ;;  %v5550_v17 = vmul.f32 0.044715, %v9417_v55  ;;  %v5542_v35 = vmul.f32 0.5, %v9417_v55 }
0x30a9   :  { %v5557_v47 = vmul.f32 %v5549_v30, %v9414_v7  ;;  %v5551_v44 = vmul.f32 0.044715, %v9420_v60  ;;  %v5541_v30 = vmul.f32 0.5, %v9414_v7 }
0x30aa   :  { %v5564_v63 = vmul.f32 %v5556_v15, %v9412_v8  ;;  %v5558_v18 = vmul.f32 %v5550_v17, %v9417_v55  ;;  %v5543_v15 = vmul.f32 0.5, %v9420_v60 }
0x30ab   :  { %v5565_v21 = vmul.f32 %v5557_v47, %v9414_v7  ;;  %v5559_v58 = vmul.f32 %v5551_v44, %v9420_v60  ;;  %v5531_v0 = vpop.f32.mrb[96].mxu1 }
0x30ac   :  { %v5572_v45 = vadd.f32 %v5564_v63, %v9412_v8  ;;  %v5566_v14 = vmul.f32 %v5558_v18, %v9417_v55  ;;  %v9432_v53 = vadd.f32 %v5531_v0, %v5400_v48  ;;  %v5533_v54 = vpop.f32.mrb[97].mxu1 }
0x30ad   :  { %v5567_v52 = vmul.f32 %v5559_v58, %v9420_v60  ;;  %v9435_v37 = vadd.f32 %v5533_v54, %v5404_v59  ;;  %v5535_v13 = vpop.f32.mrb[98].mxu1  ;;  %v5573_v51 = vadd.f32 %v5565_v21, %v9414_v7 }
0x30ae   :  { %v5580_v62 = vmul.f32 0.7978846, %v5572_v45  ;;  %v5574_v56 = vadd.f32 %v5566_v14, %v9417_v55  ;;  %v5552_v24 = vmul.f32 0.044715, %v9432_v53  ;;  %v5536_v2 = vadd.f32 %v5535_v13, %v5400_v48  ;;  %v5537_v42 = vpop.f32.mrb[99].mxu1 }
0x30af   :  { %v5553_v10 = vmul.f32 0.044715, %v9435_v37  ;;  %v5538_v49 = vadd.f32 %v5537_v42, %v5404_v59  ;;  %v5575_v57 = vadd.f32 %v5567_v52, %v9420_v60  ;;  %v5581_v23 = vmul.f32 0.7978846, %v5573_v51 }
0x30b0   :  { %7579 = vtanh.f32 %v5580_v62  ;;  %v5582_v19 = vmul.f32 0.7978846, %v5574_v56  ;;  %v5560_v6 = vmul.f32 %v5552_v24, %v9432_v53  ;;  %v5554_v9 = vmul.f32 0.044715, %v5536_v2 }
0x30b1   :  { %v5561_v1 = vmul.f32 %v5553_v10, %v9435_v37  ;;  %v5555_v26 = vmul.f32 0.044715, %v5538_v49  ;;  %v5583_v34 = vmul.f32 0.7978846, %v5575_v57  ;;  %7581 = vtanh.f32 %v5581_v23 }
0x30b2   :  { %7583 = vtanh.f32 %v5582_v19  ;;  %v5568_v12 = vmul.f32 %v5560_v6, %v9432_v53  ;;  %v5562_v36 = vmul.f32 %v5554_v9, %v5536_v2  ;;  %v5544_v55 = vmul.f32 0.5, %v9432_v53  ;;  %v6255_v6 = vld [vmem:[#allocation25] ss:$0 sm:$0xff] }
0x30b3   :  { %v5569_v28 = vmul.f32 %v5561_v1, %v9435_v37  ;;  %v5563_v31 = vmul.f32 %v5555_v26, %v5538_v49  ;;  %7585 = vtanh.f32 %v5583_v34  ;;  %v5546_v7 = vmul.f32 0.5, %v5536_v2 }
0x30b4   :  { %v5570_v5 = vmul.f32 %v5562_v36, %v5536_v2  ;;  %v5576_v39 = vadd.f32 %v5568_v12, %v9432_v53  ;;  %v5545_v60 = vmul.f32 0.5, %v9435_v37  ;;  %v5547_v51 = vmul.f32 0.5, %v5538_v49 }
0x30b5   :  { %v5571_v3 = vmul.f32 %v5563_v31, %v5538_v49  ;;  %v5577_v43 = vadd.f32 %v5569_v28, %v9435_v37 }
0x30b6   :  { %v5578_v40 = vadd.f32 %v5570_v5, %v5536_v2  ;;  %v5584_v41 = vmul.f32 0.7978846, %v5576_v39 }
0x30b7   :  { %v5579_v27 = vadd.f32 %v5571_v3, %v5538_v49  ;;  %v5585_v20 = vmul.f32 0.7978846, %v5577_v43 }
0x30b8   :  { %v5586_v50 = vmul.f32 0.7978846, %v5578_v40  ;;  %7587 = vtanh.f32 %v5584_v41 }
0x30b9   :  { %v5587_v11 = vmul.f32 0.7978846, %v5579_v27  ;;  %7589 = vtanh.f32 %v5585_v20 }
0x30ba   :  { %v7580_v4 = vpop.eup %7579  ;;  %7591 = vtanh.f32 %v5586_v50 }
0x30bb   :  { %v7582_v29 = vpop.eup %7581  ;;  %v5596_v48 = vadd.f32 1.0, %v7580_v4  ;;  %7593 = vtanh.f32 %v5587_v11 }
0x30bc   :  { %v7584_v59 = vpop.eup %7583  ;;  %v5597_v32 = vadd.f32 1.0, %v7582_v29 }
0x30bd   :  { %v7586_v38 = vpop.eup %7585  ;;  %v5598_v33 = vadd.f32 1.0, %v7584_v59  ;;  %v5604_v47 = vmul.f32 %v5596_v48, %v5540_v61 }
0x30be   :  { %v5599_v17 = vadd.f32 1.0, %v7586_v38  ;;  %v5605_v63 = vmul.f32 %v5597_v32, %v5541_v30 }
0x30bf   :  { %v5606_v44 = vmul.f32 %v5598_v33, %v5542_v35 }
0x30c0   :  { %v5607_v18 = vmul.f32 %v5599_v17, %v5543_v15 }
0x30c1   :  { %v5612_v21 = vpack.c.bf16 %v5606_v44, %v5604_v47 }
0x30c2   :  { %v7588_v58 = vpop.eup %7587  ;;  %v5613_v0 = vpack.c.bf16 %v5607_v18, %v5605_v63 }
0x30c3   :  { %v7590_v45 = vpop.eup %7589  ;;  %v5600_v14 = vadd.f32 1.0, %v7588_v58 }
0x30c4   :  { %v7592_v54 = vpop.eup %7591  ;;  %5750 = vmatprep.mubr.bf16.mxu0 %v5613_v0  ;;  %v5601_v8 = vadd.f32 1.0, %v7590_v45 }
0x30c5   :  { %v7594_v52 = vpop.eup %7593  ;;  %5751 = vmatmul.mubr.bf16.vlgmr.msra.gmra.mrb[88].mxu0 %v5612_v21  ;;  %v5602_v13 = vadd.f32 1.0, %v7592_v54  ;;  %v5608_v56 = vmul.f32 %v5600_v14, %v5544_v55 }
0x30c6   :  { %v5603_v62 = vadd.f32 1.0, %v7594_v52  ;;  %v5609_v42 = vmul.f32 %v5601_v8, %v5545_v60  ;;  %v6272_v8 = vld [vmem:[#allocation27] ss:$0 sm:$0xff]  ;;  %v6273_v60 = vld [vmem:[#allocation28] ss:$0 sm:$0xff] }
0x30c7   :  { %v5610_v24 = vmul.f32 %v5602_v13, %v5546_v7 }
0x30c8   :  { %v5611_v10 = vmul.f32 %v5603_v62, %v5547_v51 }
0x30c9   :  { %v5614_v57 = vpack.c.bf16 %v5610_v24, %v5608_v56 }
0x30ca   :  { %v5615_v23 = vpack.c.bf16 %v5611_v10, %v5609_v42 }
0x30cc   :  { %5758 = vmatprep.mubr.bf16.mxu0 %v5615_v23 }
0x30cd   :  { %5759 = vmatmul.mubr.bf16.gmra.mrb[92].mxu0 %v5614_v57 }
0x3198   :  { %v6531_v19 = vpop.f32.mrb[88].mxu0 }
0x3199   :  { %v6532_v9 = vpop.f32.mrb[89].mxu0 }
0x319a   :  { %v6533_v1 = vadd.f32 %v6532_v9, %v6531_v19  ;;  %v6534_v26 = vpop.f32.mrb[90].mxu0 }
0x319b   :  { %v6535_v53 = vpop.f32.mrb[91].mxu0 }
0x319c   :  { %v5753_v2 = vadd.f32 %v6533_v1, %v6255_v6  ;;  %v6536_v34 = vadd.f32 %v6535_v53, %v6534_v26 }
0x319e   :  { %v5756_v12 = vadd.f32 %v6536_v34, %v6255_v6  ;;  %v5767_v37 = vadd.f32 %v5753_v2, %v9397_v16 }
0x31a0   :  { %5771 = vadd.xlane.f32.xlu0 %v5767_v37  ;;  %v6537_v49 = vpop.f32.mrb[92].mxu0  ;;  %v5768_v36 = vadd.f32 %v5756_v12, %v9399_v22 }
0x31a1   :  { %v6538_v28 = vpop.f32.mrb[93].mxu0 }
0x31a2   :  { %v6539_v31 = vadd.f32 %v6538_v28, %v6537_v49  ;;  %5773 = vadd.xlane.f32.xlu1 %v5768_v36  ;;  %v6540_v5 = vpop.f32.mrb[94].mxu0 }
0x31a3   :  { %v6541_v39 = vpop.f32.mrb[95].mxu0 }
0x31a4   :  { %v5761_v3 = vadd.f32 %v6539_v31, %v6255_v6  ;;  %v6542_v43 = vadd.f32 %v6541_v39, %v6540_v5 }
0x31a6   :  { %v5764_v40 = vadd.f32 %v6542_v43, %v6255_v6  ;;  %v5769_v41 = vadd.f32 %v5761_v3, %v9406_v46 }
0x31a8   :  { %5775 = vadd.xlane.f32.xlu0 %v5769_v41  ;;  %v5770_v27 = vadd.f32 %v5764_v40, %v9404_v25 }
0x31aa   :  { %5777 = vadd.xlane.f32.xlu1 %v5770_v27 }
0x322d   :  { %v5772_v20 = vpop.xlane.xlu0 %5771 }
0x322e   :  { %v5779_v16 = vmul.f32 0.0078125, %v5772_v20 }
0x322f   :  { %v5774_v50 = vpop.xlane.xlu1 %5773 }
0x3230   :  { %v5783_v11 = vsub.f32 %v5767_v37, %v5779_v16  ;;  %v5780_v4 = vmul.f32 0.0078125, %v5774_v50 }
0x3232   :  { %v5784_v22 = vsub.f32 %v5768_v36, %v5780_v4  ;;  %v5787_v29 = vmul.f32 %v5783_v11, %v5783_v11 }
0x3234   :  { %5791 = vadd.xlane.f32.xlu0 %v5787_v29  ;;  %v5788_v48 = vmul.f32 %v5784_v22, %v5784_v22 }
0x3235   :  { %v5776_v59 = vpop.xlane.xlu0 %5775 }
0x3236   :  { %v5781_v32 = vmul.f32 0.0078125, %v5776_v59  ;;  %5793 = vadd.xlane.f32.xlu1 %v5788_v48 }
0x3237   :  { %v5778_v38 = vpop.xlane.xlu1 %5777 }
0x3238   :  { %v5785_v61 = vsub.f32 %v5769_v41, %v5781_v32  ;;  %v5782_v35 = vmul.f32 0.0078125, %v5778_v38 }
0x323a   :  { %v5786_v46 = vsub.f32 %v5770_v27, %v5782_v35  ;;  %v5789_v33 = vmul.f32 %v5785_v61, %v5785_v61 }
0x323c   :  { %5795 = vadd.xlane.f32.xlu0 %v5789_v33  ;;  %v5790_v25 = vmul.f32 %v5786_v46, %v5786_v46 }
0x323e   :  { %5797 = vadd.xlane.f32.xlu1 %v5790_v25 }
0x32c1   :  { %v5792_v30 = vpop.xlane.xlu0 %5791 }
0x32c2   :  { %v5799_v15 = vmul.f32 0.0078125, %v5792_v30 }
0x32c3   :  { %v5794_v17 = vpop.xlane.xlu1 %5793 }
0x32c4   :  { %v5803_v47 = vadd.f32 1e-05, %v5799_v15  ;;  %v5800_v44 = vmul.f32 0.0078125, %v5794_v17 }
0x32c6   :  { %7595 = vrsqrt.f32 %v5803_v47  ;;  %v5804_v63 = vadd.f32 1e-05, %v5800_v44 }
0x32c8   :  { %7597 = vrsqrt.f32 %v5804_v63 }
0x32c9   :  { %v5796_v18 = vpop.xlane.xlu0 %5795 }
0x32ca   :  { %v5801_v21 = vmul.f32 0.0078125, %v5796_v18 }
0x32cb   :  { %v5798_v58 = vpop.xlane.xlu1 %5797 }
0x32cc   :  { %v5805_v0 = vadd.f32 1e-05, %v5801_v21  ;;  %v5802_v45 = vmul.f32 0.0078125, %v5798_v58 }
0x32ce   :  { %7599 = vrsqrt.f32 %v5805_v0  ;;  %v5806_v14 = vadd.f32 1e-05, %v5802_v45 }
0x32d0   :  { %v7596_v54 = vpop.eup %7595  ;;  %7601 = vrsqrt.f32 %v5806_v14 }
0x32d1   :  { %v5811_v52 = vmul.f32 %v7596_v54, %v5783_v11 }
0x32d2   :  { %v7598_v55 = vpop.eup %7597 }
0x32d3   :  { %v5821_v7 = vmul.f32 %v6272_v8, %v5811_v52  ;;  %v5812_v13 = vmul.f32 %v7598_v55, %v5784_v22 }
0x32d5   :  { %v5822_v51 = vmul.f32 %v6272_v8, %v5812_v13  ;;  %v5831_v62 = vadd.f32 %v6273_v60, %v5821_v7 }
0x32d7   :  { %v5832_v56 = vadd.f32 %v6273_v60, %v5822_v51 }
0x32d8   :  { %v7600_v24 = vpop.eup %7599 }
0x32d9   :  { %v6285_v42 = vpack.c.bf16 %v5832_v56, %v5831_v62  ;;  %v5813_v10 = vmul.f32 %v7600_v24, %v5785_v61 }
0x32da   :  { %v7602_v57 = vpop.eup %7601 }
0x32db   :  { %6286 = vst [vmem:[%s8262_s17] sm:$0xff] %v6285_v42   ;;  %v5823_v23 = vmul.f32 %v6272_v8, %v5813_v10  ;;  %v5814_v19 = vmul.f32 %v7602_v57, %v5786_v46 }
0x32dd   :  { %v5824_v6 = vmul.f32 %v6272_v8, %v5814_v19  ;;  %v5833_v9 = vadd.f32 %v6273_v60, %v5823_v23 }
0x32df   :  { %v5834_v1 = vadd.f32 %v6273_v60, %v5824_v6 }
0x32e1   :  { %v6290_v26 = vpack.c.bf16 %v5834_v1, %v5833_v9 }
0x32e3   :  { %6292 = vst [vmem:[%s8262_s17 + $0x8] sm:$0xff] %v6290_v26  }
0x32e4   :  { %5859 = vsyncpa [#allocation3], 1 }
0x32e5   :  { %5860 = vsyncpa [#allocation5], 1 }
0x32e6   :  { %5861 = vsyncpa [#allocation8], 1 }
0x32e7   :  { %5862 = vsyncpa [#allocation11], 1 }
0x32e8   :  { %5863 = vsyncpa [#allocation14], 1 }
0x32e9   :  { %5864 = vsyncpa [#allocation17], 1 }
0x32ea   :  { %5865 = vsyncpa [#allocation20], 1 }
0x32eb   :  { %5866 = vsyncpa [#allocation23], 1 }
0x32ec   :  { %5867 = vsyncpa [#allocation26], 1 }
0x32ed   :  { %5868 = vsyncpa [#allocation29], 1 }

</bundles_post_ra>
